<compile_context>
chip_gen: v5e
topology: v5e:2x2
jax: 0.10.0
libtpu: 0.0.40
codegen_flags: <defaults>
</compile_context>

<pallas_src>
import jax
import jax.numpy as jnp
from jax import lax
from jax.experimental import pallas as pl
from jax.experimental.pallas import tpu as pltpu


def _lstm_mlp_kernel(x_ref, wih_ref, whh_ref, bias_ref,
                     w1_ref, w2_ref, wo_ref,
                     out_ref, gx_sc):
    """One-shot LSTM recurrence + MLP head.

    x_ref   : (S*Bp, I)  time-major rows (t major, batch minor), batch padded to mult. of 8
    wih_ref : (I, 4H)    pre-transposed, PyTorch gate order [i, f, g, o]
    whh_ref : (H, 4H)
    bias_ref: (4, 4H)    row0 = b_ih + b_hh, row1 = dense1 bias, row2 = dense2 bias,
                         row3 = output bias (rows 1..3 zero-padded to 4H lanes)
    w1_ref, w2_ref : (H, H);  wo_ref : (H, C)
    out_ref : (Bp, C)    softmax probabilities
    gx_sc   : (S*Bp, 4H) VMEM scratch with the hoisted input projection
    """
    H = whh_ref.shape[0]
    C = wo_ref.shape[1]
    Bp = out_ref.shape[0]
    S = x_ref.shape[0] // Bp

    b_lstm = bias_ref[0:1, :]            # (1, 4H)
    b1 = bias_ref[1:2, 0:H]              # (1, H)
    b2 = bias_ref[2:3, 0:H]              # (1, H)
    bo = bias_ref[3:4, 0:C]              # (1, C)

    # Hoisted input projection: x @ W_ih^T has no dependence on h, so compute it for
    # ALL time steps in one batched MXU matmul and park it in VMEM scratch.
    gx_sc[...] = (jnp.dot(x_ref[...], wih_ref[...],
                          preferred_element_type=jnp.float32) + b_lstm)

    h0 = jnp.zeros((Bp, H), jnp.float32)
    c0 = jnp.zeros((Bp, H), jnp.float32)

    def step(t, carry):
        h, c = carry
        off = pl.multiple_of(t * Bp, 8)          # Bp is a multiple of 8 -> aligned vld
        gates = (gx_sc[pl.ds(off, Bp), :] +
                 jnp.dot(h, whh_ref[...], preferred_element_type=jnp.float32))
        # H is a multiple of 128, so each gate slice is a whole number of vregs
        # (no sub-vreg lane shuffles inside the serial recurrence).
        i_g = jax.nn.sigmoid(gates[:, 0:H])
        f_g = jax.nn.sigmoid(gates[:, H:2 * H])
        g_g = jnp.tanh(gates[:, 2 * H:3 * H])
        o_g = jax.nn.sigmoid(gates[:, 3 * H:4 * H])
        c_new = f_g * c + i_g * g_g
        h_new = o_g * jnp.tanh(c_new)
        return h_new, c_new

    # Fully unrolled in-kernel time loop: no grid-step overhead, LLO sees across steps.
    h, _ = lax.fori_loop(0, S, step, (h0, c0), unroll=True)

    # MLP head on the last hidden state.
    z1 = jnp.maximum(
        jnp.dot(h, w1_ref[...], preferred_element_type=jnp.float32) + b1, 0.0)
    z2 = jnp.maximum(
        jnp.dot(z1, w2_ref[...], preferred_element_type=jnp.float32) + b2, 0.0)
    logits = jnp.dot(z2, wo_ref[...], preferred_element_type=jnp.float32) + bo

    # softmax over classes (dim=1); reciprocal on the EUP slot instead of a VPU divide.
    m = jnp.max(logits, axis=1, keepdims=True)
    e = jnp.exp(logits - m)
    inv = pl.reciprocal(jnp.sum(e, axis=1, keepdims=True), approx=True)
    out_ref[...] = e * inv


@jax.jit
def lstm_model_forward(x, params):
    """x: (batch, seq, input_size), batch_first like the PyTorch module.
    params follow PyTorch layouts: w_ih (4H,I), w_hh (4H,H), b_* (4H,)/(H,)/(C,),
    w1/w2 (H,H), w_out (C,H)."""
    B, S, I = x.shape
    H = params["w_hh"].shape[1]          # weight_hh_l0 is (4H, H)
    C = params["w_out"].shape[0]         # output weight is (C, H)
    Bp = ((B + 7) // 8) * 8              # pad batch to the f32 sublane granule

    # time-major + batch pad + flatten so the hoisted projection sees (S*Bp, I) rows.
    x_tm = jnp.transpose(x.astype(jnp.float32), (1, 0, 2))      # (S, B, I) -- ~1 KB, negligible
    x_tm = jnp.pad(x_tm, ((0, 0), (0, Bp - B), (0, 0)))          # (S, Bp, I)
    x2d = x_tm.reshape(S * Bp, I)

    # Pack all bias vectors into ONE small VMEM operand (fewer tiny pipelined inputs).
    fourH = 4 * H
    def _row(v):
        v = v.astype(jnp.float32)
        return jnp.pad(v, (0, fourH - v.shape[0]))
    biases = jnp.stack([
        _row(params["b_ih"] + params["b_hh"]),
        _row(params["b1"]),
        _row(params["b2"]),
        _row(params["b_out"]),
    ])                                                           # (4, 4H)

    vmem = pl.BlockSpec(memory_space=pltpu.MemorySpace.VMEM)
    out = pl.pallas_call(
        _lstm_mlp_kernel,
        out_shape=jax.ShapeDtypeStruct((Bp, C), jnp.float32),
        in_specs=[vmem] * 7,
        out_specs=vmem,
        scratch_shapes=[pltpu.VMEM((S * Bp, fourH), jnp.float32)],
    )(x2d,
      params["w_ih"].T.astype(jnp.float32),        # (I, 4H)
      params["w_hh"].T.astype(jnp.float32),        # (H, 4H)
      biases,
      params["w1"].T.astype(jnp.float32),          # (H, H)
      params["w2"].T.astype(jnp.float32),          # (H, H)
      params["w_out"].T.astype(jnp.float32))       # (H, C)
    return out[:B]


def make_params(key, input_size, hidden_size, num_classes):
    ks = jax.random.split(key, 10)
    s = 0.1
    return {
        # nn.LSTM: weight_ih_l0 (4H, I), weight_hh_l0 (4H, H), biases (4H,)
        "w_ih": s * jax.random.normal(ks[0], (4 * hidden_size, input_size), jnp.float32),
        "w_hh": s * jax.random.normal(ks[1], (4 * hidden_size, hidden_size), jnp.float32),
        "b_ih": s * jax.random.normal(ks[2], (4 * hidden_size,), jnp.float32),
        "b_hh": s * jax.random.normal(ks[3], (4 * hidden_size,), jnp.float32),
        # nn.Linear: weight (out, in), bias (out,)
        "w1":    s * jax.random.normal(ks[4], (hidden_size, hidden_size), jnp.float32),
        "b1":    s * jax.random.normal(ks[5], (hidden_size,), jnp.float32),
        "w2":    s * jax.random.normal(ks[6], (hidden_size, hidden_size), jnp.float32),
        "b2":    s * jax.random.normal(ks[7], (hidden_size,), jnp.float32),
        "w_out": s * jax.random.normal(ks[8], (num_classes, hidden_size), jnp.float32),
        "b_out": s * jax.random.normal(ks[9], (num_classes,), jnp.float32),
    }


def reference_forward(x, params):
    """Pure-JAX reference matching torch semantics."""
    B, S, I = x.shape
    H = params["w_hh"].shape[1]
    h = jnp.zeros((B, H), jnp.float32)
    c = jnp.zeros((B, H), jnp.float32)
    b = params["b_ih"] + params["b_hh"]
    for t in range(S):
        g = x[:, t, :] @ params["w_ih"].T + h @ params["w_hh"].T + b
        i_g = jax.nn.sigmoid(g[:, 0:H])
        f_g = jax.nn.sigmoid(g[:, H:2 * H])
        g_g = jnp.tanh(g[:, 2 * H:3 * H])
        o_g = jax.nn.sigmoid(g[:, 3 * H:4 * H])
        c = f_g * c + i_g * g_g
        h = o_g * jnp.tanh(c)
    z1 = jax.nn.relu(h @ params["w1"].T + params["b1"])
    z2 = jax.nn.relu(z1 @ params["w2"].T + params["b2"])
    logits = z2 @ params["w_out"].T + params["b_out"]
    return jax.nn.softmax(logits, axis=1)


if __name__ == "__main__":
    batch, seq, input_size = 2, 8, 16
    hidden, num_classes = 256, 3          # hidden_size / num_classes from the torch spec

    key = jax.random.PRNGKey(0)
    kx, kp = jax.random.split(key)
    x = jax.random.normal(kx, (batch, seq, input_size), jnp.float32)
    params = make_params(kp, input_size, hidden, num_classes)

    out = jax.block_until_ready(lstm_model_forward(x, params))
    ref = reference_forward(x, params)

    assert out.shape == (batch, num_classes), out.shape
    assert bool(jnp.all(jnp.isfinite(out)))
    # approx reciprocal in the in-kernel softmax -> slightly loosened tolerance
    assert jnp.allclose(out, ref, atol=5e-3, rtol=0.0), (out, ref)
    assert jnp.allclose(jnp.sum(out, axis=1), 1.0, atol=1e-2)
    assert bool(jnp.all(jnp.argmax(out, axis=1) == jnp.argmax(ref, axis=1)))
    # NOTE: self.dropout is defined in the torch module but never used in forward().
    print("KERNEL_OK")
</pallas_src>

<mosaic_0001>
module attributes {stable_mosaic.version = 11 : i64} {
  func.func @_lstm_mlp_kernel(%arg0: memref<64x16xf32, #tpu.memory_space<vmem>>, %arg1: memref<16x1024xf32, #tpu.memory_space<vmem>>, %arg2: memref<256x1024xf32, #tpu.memory_space<vmem>>, %arg3: memref<4x1024xf32, #tpu.memory_space<vmem>>, %arg4: memref<256x256xf32, #tpu.memory_space<vmem>>, %arg5: memref<256x256xf32, #tpu.memory_space<vmem>>, %arg6: memref<256x3xf32, #tpu.memory_space<vmem>>, %arg7: memref<8x3xf32, #tpu.memory_space<vmem>>, %arg8: memref<64x1024xf32, #tpu.memory_space<vmem>>) attributes {dimension_semantics = [], scalar_prefetch = 0 : i64, scratch_operands = 1 : i64, tpu.core_type = #tpu.core_type<tc>} {
    %c0 = arith.constant 0 : index
    %c0_0 = arith.constant 0 : index
    %0 = vector.load %arg3[%c0, %c0_0] : memref<4x1024xf32, #tpu.memory_space<vmem>>, vector<1x1024xf32>
    %c1 = arith.constant 1 : index
    %c0_1 = arith.constant 0 : index
    %1 = vector.load %arg3[%c1, %c0_1] : memref<4x1024xf32, #tpu.memory_space<vmem>>, vector<1x256xf32>
    %c2 = arith.constant 2 : index
    %c0_2 = arith.constant 0 : index
    %2 = vector.load %arg3[%c2, %c0_2] : memref<4x1024xf32, #tpu.memory_space<vmem>>, vector<1x256xf32>
    %c3 = arith.constant 3 : index
    %c0_3 = arith.constant 0 : index
    %3 = vector.load %arg3[%c3, %c0_3] : memref<4x1024xf32, #tpu.memory_space<vmem>>, vector<1x3xf32>
    %c0_4 = arith.constant 0 : index
    %c0_5 = arith.constant 0 : index
    %4 = vector.load %arg0[%c0_4, %c0_5] : memref<64x16xf32, #tpu.memory_space<vmem>>, vector<64x16xf32>
    %c0_6 = arith.constant 0 : index
    %c0_7 = arith.constant 0 : index
    %5 = vector.load %arg1[%c0_6, %c0_7] : memref<16x1024xf32, #tpu.memory_space<vmem>>, vector<16x1024xf32>
    %cst = arith.constant dense<0.000000e+00> : vector<64x1024xf32>
    %6 = tpu.matmul %4, %5, %cst {dimension_numbers = #tpu.dot_dimension_numbers<[1], [0], [0], [1], [0, 0, 1, 1], [], []>} : vector<64x16xf32>, vector<16x1024xf32>, vector<64x1024xf32> -> vector<64x1024xf32>
    %7 = vector.broadcast %0 : vector<1x1024xf32> to vector<64x1024xf32>
    %8 = arith.addf %6, %7 : vector<64x1024xf32>
    %c0_8 = arith.constant 0 : index
    %c0_9 = arith.constant 0 : index
    %9 = vector.load %arg8[%c0_8, %c0_9] : memref<64x1024xf32, #tpu.memory_space<vmem>>, vector<64x1024xf32>
    tpu.vector_store %arg8[%c0_8, %c0_9], %8 {strides = array<i32>} : memref<64x1024xf32, #tpu.memory_space<vmem>>, vector<64x1024xf32>,
    %cst_10 = arith.constant 0.000000e+00 : f32
    %10 = vector.broadcast %cst_10 : f32 to vector<8x256xf32>
    %cst_11 = arith.constant 0.000000e+00 : f32
    %11 = vector.broadcast %cst_11 : f32 to vector<8x256xf32>
    %c0_i32 = arith.constant 0 : i32
    %c8_i32 = arith.constant 8 : i32
    %12 = arith.muli %c0_i32, %c8_i32 : i32
    %13 = tpu.assume_multiple %12, 8 : i32
    %14 = arith.index_cast %13 : i32 to index
    %c0_12 = arith.constant 0 : index
    %15 = vector.load %arg8[%14, %c0_12] : memref<64x1024xf32, #tpu.memory_space<vmem>>, vector<8x1024xf32>
    %c0_13 = arith.constant 0 : index
    %c0_14 = arith.constant 0 : index
    %16 = vector.load %arg2[%c0_13, %c0_14] : memref<256x1024xf32, #tpu.memory_space<vmem>>, vector<256x1024xf32>
    %cst_15 = arith.constant dense<0.000000e+00> : vector<8x1024xf32>
    %17 = tpu.matmul %10, %16, %cst_15 {dimension_numbers = #tpu.dot_dimension_numbers<[1], [0], [0], [1], [0, 0, 1, 1], [], []>} : vector<8x256xf32>, vector<256x1024xf32>, vector<8x1024xf32> -> vector<8x1024xf32>
    %18 = arith.addf %15, %17 : vector<8x1024xf32>
    %19 = vector.extract_strided_slice %18 {offsets = [0, 0], sizes = [8, 256], strides = [1, 1]} : vector<8x1024xf32> to vector<8x256xf32>
    %20 = arith.negf %19 : vector<8x256xf32>
    %21 = math.exp %20 : vector<8x256xf32>
    %cst_16 = arith.constant 1.000000e+00 : f32
    %22 = vector.broadcast %cst_16 : f32 to vector<8x256xf32>
    %23 = arith.addf %22, %21 : vector<8x256xf32>
    %24 = arith.divf %22, %23 : vector<8x256xf32>
    %25 = vector.extract_strided_slice %18 {offsets = [0, 256], sizes = [8, 256], strides = [1, 1]} : vector<8x1024xf32> to vector<8x256xf32>
    %26 = arith.negf %25 : vector<8x256xf32>
    %27 = math.exp %26 : vector<8x256xf32>
    %cst_17 = arith.constant 1.000000e+00 : f32
    %28 = vector.broadcast %cst_17 : f32 to vector<8x256xf32>
    %29 = arith.addf %28, %27 : vector<8x256xf32>
    %30 = arith.divf %28, %29 : vector<8x256xf32>
    %31 = vector.extract_strided_slice %18 {offsets = [0, 512], sizes = [8, 256], strides = [1, 1]} : vector<8x1024xf32> to vector<8x256xf32>
    %32 = math.tanh %31 : vector<8x256xf32>
    %33 = vector.extract_strided_slice %18 {offsets = [0, 768], sizes = [8, 256], strides = [1, 1]} : vector<8x1024xf32> to vector<8x256xf32>
    %34 = arith.negf %33 : vector<8x256xf32>
    %35 = math.exp %34 : vector<8x256xf32>
    %cst_18 = arith.constant 1.000000e+00 : f32
    %36 = vector.broadcast %cst_18 : f32 to vector<8x256xf32>
    %37 = arith.addf %36, %35 : vector<8x256xf32>
    %38 = arith.divf %36, %37 : vector<8x256xf32>
    %39 = arith.mulf %30, %11 : vector<8x256xf32>
    %40 = arith.mulf %24, %32 : vector<8x256xf32>
    %41 = arith.addf %39, %40 : vector<8x256xf32>
    %42 = math.tanh %41 : vector<8x256xf32>
    %43 = arith.mulf %38, %42 : vector<8x256xf32>
    %c1_i32 = arith.constant 1 : i32
    %c8_i32_19 = arith.constant 8 : i32
    %44 = arith.muli %c1_i32, %c8_i32_19 : i32
    %45 = tpu.assume_multiple %44, 8 : i32
    %46 = arith.index_cast %45 : i32 to index
    %c0_20 = arith.constant 0 : index
    %47 = vector.load %arg8[%46, %c0_20] : memref<64x1024xf32, #tpu.memory_space<vmem>>, vector<8x1024xf32>
    %c0_21 = arith.constant 0 : index
    %c0_22 = arith.constant 0 : index
    %48 = vector.load %arg2[%c0_21, %c0_22] : memref<256x1024xf32, #tpu.memory_space<vmem>>, vector<256x1024xf32>
    %cst_23 = arith.constant dense<0.000000e+00> : vector<8x1024xf32>
    %49 = tpu.matmul %43, %48, %cst_23 {dimension_numbers = #tpu.dot_dimension_numbers<[1], [0], [0], [1], [0, 0, 1, 1], [], []>} : vector<8x256xf32>, vector<256x1024xf32>, vector<8x1024xf32> -> vector<8x1024xf32>
    %50 = arith.addf %47, %49 : vector<8x1024xf32>
    %51 = vector.extract_strided_slice %50 {offsets = [0, 0], sizes = [8, 256], strides = [1, 1]} : vector<8x1024xf32> to vector<8x256xf32>
    %52 = arith.negf %51 : vector<8x256xf32>
    %53 = math.exp %52 : vector<8x256xf32>
    %cst_24 = arith.constant 1.000000e+00 : f32
    %54 = vector.broadcast %cst_24 : f32 to vector<8x256xf32>
    %55 = arith.addf %54, %53 : vector<8x256xf32>
    %56 = arith.divf %54, %55 : vector<8x256xf32>
    %57 = vector.extract_strided_slice %50 {offsets = [0, 256], sizes = [8, 256], strides = [1, 1]} : vector<8x1024xf32> to vector<8x256xf32>
    %58 = arith.negf %57 : vector<8x256xf32>
    %59 = math.exp %58 : vector<8x256xf32>
    %cst_25 = arith.constant 1.000000e+00 : f32
    %60 = vector.broadcast %cst_25 : f32 to vector<8x256xf32>
    %61 = arith.addf %60, %59 : vector<8x256xf32>
    %62 = arith.divf %60, %61 : vector<8x256xf32>
    %63 = vector.extract_strided_slice %50 {offsets = [0, 512], sizes = [8, 256], strides = [1, 1]} : vector<8x1024xf32> to vector<8x256xf32>
    %64 = math.tanh %63 : vector<8x256xf32>
    %65 = vector.extract_strided_slice %50 {offsets = [0, 768], sizes = [8, 256], strides = [1, 1]} : vector<8x1024xf32> to vector<8x256xf32>
    %66 = arith.negf %65 : vector<8x256xf32>
    %67 = math.exp %66 : vector<8x256xf32>
    %cst_26 = arith.constant 1.000000e+00 : f32
    %68 = vector.broadcast %cst_26 : f32 to vector<8x256xf32>
    %69 = arith.addf %68, %67 : vector<8x256xf32>
    %70 = arith.divf %68, %69 : vector<8x256xf32>
    %71 = arith.mulf %62, %41 : vector<8x256xf32>
    %72 = arith.mulf %56, %64 : vector<8x256xf32>
    %73 = arith.addf %71, %72 : vector<8x256xf32>
    %74 = math.tanh %73 : vector<8x256xf32>
    %75 = arith.mulf %70, %74 : vector<8x256xf32>
    %c2_i32 = arith.constant 2 : i32
    %c8_i32_27 = arith.constant 8 : i32
    %76 = arith.muli %c2_i32, %c8_i32_27 : i32
    %77 = tpu.assume_multiple %76, 8 : i32
    %78 = arith.index_cast %77 : i32 to index
    %c0_28 = arith.constant 0 : index
    %79 = vector.load %arg8[%78, %c0_28] : memref<64x1024xf32, #tpu.memory_space<vmem>>, vector<8x1024xf32>
    %c0_29 = arith.constant 0 : index
    %c0_30 = arith.constant 0 : index
    %80 = vector.load %arg2[%c0_29, %c0_30] : memref<256x1024xf32, #tpu.memory_space<vmem>>, vector<256x1024xf32>
    %cst_31 = arith.constant dense<0.000000e+00> : vector<8x1024xf32>
    %81 = tpu.matmul %75, %80, %cst_31 {dimension_numbers = #tpu.dot_dimension_numbers<[1], [0], [0], [1], [0, 0, 1, 1], [], []>} : vector<8x256xf32>, vector<256x1024xf32>, vector<8x1024xf32> -> vector<8x1024xf32>
    %82 = arith.addf %79, %81 : vector<8x1024xf32>
    %83 = vector.extract_strided_slice %82 {offsets = [0, 0], sizes = [8, 256], strides = [1, 1]} : vector<8x1024xf32> to vector<8x256xf32>
    %84 = arith.negf %83 : vector<8x256xf32>
    %85 = math.exp %84 : vector<8x256xf32>
    %cst_32 = arith.constant 1.000000e+00 : f32
    %86 = vector.broadcast %cst_32 : f32 to vector<8x256xf32>
    %87 = arith.addf %86, %85 : vector<8x256xf32>
    %88 = arith.divf %86, %87 : vector<8x256xf32>
    %89 = vector.extract_strided_slice %82 {offsets = [0, 256], sizes = [8, 256], strides = [1, 1]} : vector<8x1024xf32> to vector<8x256xf32>
    %90 = arith.negf %89 : vector<8x256xf32>
    %91 = math.exp %90 : vector<8x256xf32>
    %cst_33 = arith.constant 1.000000e+00 : f32
    %92 = vector.broadcast %cst_33 : f32 to vector<8x256xf32>
    %93 = arith.addf %92, %91 : vector<8x256xf32>
    %94 = arith.divf %92, %93 : vector<8x256xf32>
    %95 = vector.extract_strided_slice %82 {offsets = [0, 512], sizes = [8, 256], strides = [1, 1]} : vector<8x1024xf32> to vector<8x256xf32>
    %96 = math.tanh %95 : vector<8x256xf32>
    %97 = vector.extract_strided_slice %82 {offsets = [0, 768], sizes = [8, 256], strides = [1, 1]} : vector<8x1024xf32> to vector<8x256xf32>
    %98 = arith.negf %97 : vector<8x256xf32>
    %99 = math.exp %98 : vector<8x256xf32>
    %cst_34 = arith.constant 1.000000e+00 : f32
    %100 = vector.broadcast %cst_34 : f32 to vector<8x256xf32>
    %101 = arith.addf %100, %99 : vector<8x256xf32>
    %102 = arith.divf %100, %101 : vector<8x256xf32>
    %103 = arith.mulf %94, %73 : vector<8x256xf32>
    %104 = arith.mulf %88, %96 : vector<8x256xf32>
    %105 = arith.addf %103, %104 : vector<8x256xf32>
    %106 = math.tanh %105 : vector<8x256xf32>
    %107 = arith.mulf %102, %106 : vector<8x256xf32>
    %c3_i32 = arith.constant 3 : i32
    %c8_i32_35 = arith.constant 8 : i32
    %108 = arith.muli %c3_i32, %c8_i32_35 : i32
    %109 = tpu.assume_multiple %108, 8 : i32
    %110 = arith.index_cast %109 : i32 to index
    %c0_36 = arith.constant 0 : index
    %111 = vector.load %arg8[%110, %c0_36] : memref<64x1024xf32, #tpu.memory_space<vmem>>, vector<8x1024xf32>
    %c0_37 = arith.constant 0 : index
    %c0_38 = arith.constant 0 : index
    %112 = vector.load %arg2[%c0_37, %c0_38] : memref<256x1024xf32, #tpu.memory_space<vmem>>, vector<256x1024xf32>
    %cst_39 = arith.constant dense<0.000000e+00> : vector<8x1024xf32>
    %113 = tpu.matmul %107, %112, %cst_39 {dimension_numbers = #tpu.dot_dimension_numbers<[1], [0], [0], [1], [0, 0, 1, 1], [], []>} : vector<8x256xf32>, vector<256x1024xf32>, vector<8x1024xf32> -> vector<8x1024xf32>
    %114 = arith.addf %111, %113 : vector<8x1024xf32>
    %115 = vector.extract_strided_slice %114 {offsets = [0, 0], sizes = [8, 256], strides = [1, 1]} : vector<8x1024xf32> to vector<8x256xf32>
    %116 = arith.negf %115 : vector<8x256xf32>
    %117 = math.exp %116 : vector<8x256xf32>
    %cst_40 = arith.constant 1.000000e+00 : f32
    %118 = vector.broadcast %cst_40 : f32 to vector<8x256xf32>
    %119 = arith.addf %118, %117 : vector<8x256xf32>
    %120 = arith.divf %118, %119 : vector<8x256xf32>
    %121 = vector.extract_strided_slice %114 {offsets = [0, 256], sizes = [8, 256], strides = [1, 1]} : vector<8x1024xf32> to vector<8x256xf32>
    %122 = arith.negf %121 : vector<8x256xf32>
    %123 = math.exp %122 : vector<8x256xf32>
    %cst_41 = arith.constant 1.000000e+00 : f32
    %124 = vector.broadcast %cst_41 : f32 to vector<8x256xf32>
    %125 = arith.addf %124, %123 : vector<8x256xf32>
    %126 = arith.divf %124, %125 : vector<8x256xf32>
    %127 = vector.extract_strided_slice %114 {offsets = [0, 512], sizes = [8, 256], strides = [1, 1]} : vector<8x1024xf32> to vector<8x256xf32>
    %128 = math.tanh %127 : vector<8x256xf32>
    %129 = vector.extract_strided_slice %114 {offsets = [0, 768], sizes = [8, 256], strides = [1, 1]} : vector<8x1024xf32> to vector<8x256xf32>
    %130 = arith.negf %129 : vector<8x256xf32>
    %131 = math.exp %130 : vector<8x256xf32>
    %cst_42 = arith.constant 1.000000e+00 : f32
    %132 = vector.broadcast %cst_42 : f32 to vector<8x256xf32>
    %133 = arith.addf %132, %131 : vector<8x256xf32>
    %134 = arith.divf %132, %133 : vector<8x256xf32>
    %135 = arith.mulf %126, %105 : vector<8x256xf32>
    %136 = arith.mulf %120, %128 : vector<8x256xf32>
    %137 = arith.addf %135, %136 : vector<8x256xf32>
    %138 = math.tanh %137 : vector<8x256xf32>
    %139 = arith.mulf %134, %138 : vector<8x256xf32>
    %c4_i32 = arith.constant 4 : i32
    %c8_i32_43 = arith.constant 8 : i32
    %140 = arith.muli %c4_i32, %c8_i32_43 : i32
    %141 = tpu.assume_multiple %140, 8 : i32
    %142 = arith.index_cast %141 : i32 to index
    %c0_44 = arith.constant 0 : index
    %143 = vector.load %arg8[%142, %c0_44] : memref<64x1024xf32, #tpu.memory_space<vmem>>, vector<8x1024xf32>
    %c0_45 = arith.constant 0 : index
    %c0_46 = arith.constant 0 : index
    %144 = vector.load %arg2[%c0_45, %c0_46] : memref<256x1024xf32, #tpu.memory_space<vmem>>, vector<256x1024xf32>
    %cst_47 = arith.constant dense<0.000000e+00> : vector<8x1024xf32>
    %145 = tpu.matmul %139, %144, %cst_47 {dimension_numbers = #tpu.dot_dimension_numbers<[1], [0], [0], [1], [0, 0, 1, 1], [], []>} : vector<8x256xf32>, vector<256x1024xf32>, vector<8x1024xf32> -> vector<8x1024xf32>
    %146 = arith.addf %143, %145 : vector<8x1024xf32>
    %147 = vector.extract_strided_slice %146 {offsets = [0, 0], sizes = [8, 256], strides = [1, 1]} : vector<8x1024xf32> to vector<8x256xf32>
    %148 = arith.negf %147 : vector<8x256xf32>
    %149 = math.exp %148 : vector<8x256xf32>
    %cst_48 = arith.constant 1.000000e+00 : f32
    %150 = vector.broadcast %cst_48 : f32 to vector<8x256xf32>
    %151 = arith.addf %150, %149 : vector<8x256xf32>
    %152 = arith.divf %150, %151 : vector<8x256xf32>
    %153 = vector.extract_strided_slice %146 {offsets = [0, 256], sizes = [8, 256], strides = [1, 1]} : vector<8x1024xf32> to vector<8x256xf32>
    %154 = arith.negf %153 : vector<8x256xf32>
    %155 = math.exp %154 : vector<8x256xf32>
    %cst_49 = arith.constant 1.000000e+00 : f32
    %156 = vector.broadcast %cst_49 : f32 to vector<8x256xf32>
    %157 = arith.addf %156, %155 : vector<8x256xf32>
    %158 = arith.divf %156, %157 : vector<8x256xf32>
    %159 = vector.extract_strided_slice %146 {offsets = [0, 512], sizes = [8, 256], strides = [1, 1]} : vector<8x1024xf32> to vector<8x256xf32>
    %160 = math.tanh %159 : vector<8x256xf32>
    %161 = vector.extract_strided_slice %146 {offsets = [0, 768], sizes = [8, 256], strides = [1, 1]} : vector<8x1024xf32> to vector<8x256xf32>
    %162 = arith.negf %161 : vector<8x256xf32>
    %163 = math.exp %162 : vector<8x256xf32>
    %cst_50 = arith.constant 1.000000e+00 : f32
    %164 = vector.broadcast %cst_50 : f32 to vector<8x256xf32>
    %165 = arith.addf %164, %163 : vector<8x256xf32>
    %166 = arith.divf %164, %165 : vector<8x256xf32>
    %167 = arith.mulf %158, %137 : vector<8x256xf32>
    %168 = arith.mulf %152, %160 : vector<8x256xf32>
    %169 = arith.addf %167, %168 : vector<8x256xf32>
    %170 = math.tanh %169 : vector<8x256xf32>
    %171 = arith.mulf %166, %170 : vector<8x256xf32>
    %c5_i32 = arith.constant 5 : i32
    %c8_i32_51 = arith.constant 8 : i32
    %172 = arith.muli %c5_i32, %c8_i32_51 : i32
    %173 = tpu.assume_multiple %172, 8 : i32
    %174 = arith.index_cast %173 : i32 to index
    %c0_52 = arith.constant 0 : index
    %175 = vector.load %arg8[%174, %c0_52] : memref<64x1024xf32, #tpu.memory_space<vmem>>, vector<8x1024xf32>
    %c0_53 = arith.constant 0 : index
    %c0_54 = arith.constant 0 : index
    %176 = vector.load %arg2[%c0_53, %c0_54] : memref<256x1024xf32, #tpu.memory_space<vmem>>, vector<256x1024xf32>
    %cst_55 = arith.constant dense<0.000000e+00> : vector<8x1024xf32>
    %177 = tpu.matmul %171, %176, %cst_55 {dimension_numbers = #tpu.dot_dimension_numbers<[1], [0], [0], [1], [0, 0, 1, 1], [], []>} : vector<8x256xf32>, vector<256x1024xf32>, vector<8x1024xf32> -> vector<8x1024xf32>
    %178 = arith.addf %175, %177 : vector<8x1024xf32>
    %179 = vector.extract_strided_slice %178 {offsets = [0, 0], sizes = [8, 256], strides = [1, 1]} : vector<8x1024xf32> to vector<8x256xf32>
    %180 = arith.negf %179 : vector<8x256xf32>
    %181 = math.exp %180 : vector<8x256xf32>
    %cst_56 = arith.constant 1.000000e+00 : f32
    %182 = vector.broadcast %cst_56 : f32 to vector<8x256xf32>
    %183 = arith.addf %182, %181 : vector<8x256xf32>
    %184 = arith.divf %182, %183 : vector<8x256xf32>
    %185 = vector.extract_strided_slice %178 {offsets = [0, 256], sizes = [8, 256], strides = [1, 1]} : vector<8x1024xf32> to vector<8x256xf32>
    %186 = arith.negf %185 : vector<8x256xf32>
    %187 = math.exp %186 : vector<8x256xf32>
    %cst_57 = arith.constant 1.000000e+00 : f32
    %188 = vector.broadcast %cst_57 : f32 to vector<8x256xf32>
    %189 = arith.addf %188, %187 : vector<8x256xf32>
    %190 = arith.divf %188, %189 : vector<8x256xf32>
    %191 = vector.extract_strided_slice %178 {offsets = [0, 512], sizes = [8, 256], strides = [1, 1]} : vector<8x1024xf32> to vector<8x256xf32>
    %192 = math.tanh %191 : vector<8x256xf32>
    %193 = vector.extract_strided_slice %178 {offsets = [0, 768], sizes = [8, 256], strides = [1, 1]} : vector<8x1024xf32> to vector<8x256xf32>
    %194 = arith.negf %193 : vector<8x256xf32>
    %195 = math.exp %194 : vector<8x256xf32>
    %cst_58 = arith.constant 1.000000e+00 : f32
    %196 = vector.broadcast %cst_58 : f32 to vector<8x256xf32>
    %197 = arith.addf %196, %195 : vector<8x256xf32>
    %198 = arith.divf %196, %197 : vector<8x256xf32>
    %199 = arith.mulf %190, %169 : vector<8x256xf32>
    %200 = arith.mulf %184, %192 : vector<8x256xf32>
    %201 = arith.addf %199, %200 : vector<8x256xf32>
    %202 = math.tanh %201 : vector<8x256xf32>
    %203 = arith.mulf %198, %202 : vector<8x256xf32>
    %c6_i32 = arith.constant 6 : i32
    %c8_i32_59 = arith.constant 8 : i32
    %204 = arith.muli %c6_i32, %c8_i32_59 : i32
    %205 = tpu.assume_multiple %204, 8 : i32
    %206 = arith.index_cast %205 : i32 to index
    %c0_60 = arith.constant 0 : index
    %207 = vector.load %arg8[%206, %c0_60] : memref<64x1024xf32, #tpu.memory_space<vmem>>, vector<8x1024xf32>
    %c0_61 = arith.constant 0 : index
    %c0_62 = arith.constant 0 : index
    %208 = vector.load %arg2[%c0_61, %c0_62] : memref<256x1024xf32, #tpu.memory_space<vmem>>, vector<256x1024xf32>
    %cst_63 = arith.constant dense<0.000000e+00> : vector<8x1024xf32>
    %209 = tpu.matmul %203, %208, %cst_63 {dimension_numbers = #tpu.dot_dimension_numbers<[1], [0], [0], [1], [0, 0, 1, 1], [], []>} : vector<8x256xf32>, vector<256x1024xf32>, vector<8x1024xf32> -> vector<8x1024xf32>
    %210 = arith.addf %207, %209 : vector<8x1024xf32>
    %211 = vector.extract_strided_slice %210 {offsets = [0, 0], sizes = [8, 256], strides = [1, 1]} : vector<8x1024xf32> to vector<8x256xf32>
    %212 = arith.negf %211 : vector<8x256xf32>
    %213 = math.exp %212 : vector<8x256xf32>
    %cst_64 = arith.constant 1.000000e+00 : f32
    %214 = vector.broadcast %cst_64 : f32 to vector<8x256xf32>
    %215 = arith.addf %214, %213 : vector<8x256xf32>
    %216 = arith.divf %214, %215 : vector<8x256xf32>
    %217 = vector.extract_strided_slice %210 {offsets = [0, 256], sizes = [8, 256], strides = [1, 1]} : vector<8x1024xf32> to vector<8x256xf32>
    %218 = arith.negf %217 : vector<8x256xf32>
    %219 = math.exp %218 : vector<8x256xf32>
    %cst_65 = arith.constant 1.000000e+00 : f32
    %220 = vector.broadcast %cst_65 : f32 to vector<8x256xf32>
    %221 = arith.addf %220, %219 : vector<8x256xf32>
    %222 = arith.divf %220, %221 : vector<8x256xf32>
    %223 = vector.extract_strided_slice %210 {offsets = [0, 512], sizes = [8, 256], strides = [1, 1]} : vector<8x1024xf32> to vector<8x256xf32>
    %224 = math.tanh %223 : vector<8x256xf32>
    %225 = vector.extract_strided_slice %210 {offsets = [0, 768], sizes = [8, 256], strides = [1, 1]} : vector<8x1024xf32> to vector<8x256xf32>
    %226 = arith.negf %225 : vector<8x256xf32>
    %227 = math.exp %226 : vector<8x256xf32>
    %cst_66 = arith.constant 1.000000e+00 : f32
    %228 = vector.broadcast %cst_66 : f32 to vector<8x256xf32>
    %229 = arith.addf %228, %227 : vector<8x256xf32>
    %230 = arith.divf %228, %229 : vector<8x256xf32>
    %231 = arith.mulf %222, %201 : vector<8x256xf32>
    %232 = arith.mulf %216, %224 : vector<8x256xf32>
    %233 = arith.addf %231, %232 : vector<8x256xf32>
    %234 = math.tanh %233 : vector<8x256xf32>
    %235 = arith.mulf %230, %234 : vector<8x256xf32>
    %c7_i32 = arith.constant 7 : i32
    %c8_i32_67 = arith.constant 8 : i32
    %236 = arith.muli %c7_i32, %c8_i32_67 : i32
    %237 = tpu.assume_multiple %236, 8 : i32
    %238 = arith.index_cast %237 : i32 to index
    %c0_68 = arith.constant 0 : index
    %239 = vector.load %arg8[%238, %c0_68] : memref<64x1024xf32, #tpu.memory_space<vmem>>, vector<8x1024xf32>
    %c0_69 = arith.constant 0 : index
    %c0_70 = arith.constant 0 : index
    %240 = vector.load %arg2[%c0_69, %c0_70] : memref<256x1024xf32, #tpu.memory_space<vmem>>, vector<256x1024xf32>
    %cst_71 = arith.constant dense<0.000000e+00> : vector<8x1024xf32>
    %241 = tpu.matmul %235, %240, %cst_71 {dimension_numbers = #tpu.dot_dimension_numbers<[1], [0], [0], [1], [0, 0, 1, 1], [], []>} : vector<8x256xf32>, vector<256x1024xf32>, vector<8x1024xf32> -> vector<8x1024xf32>
    %242 = arith.addf %239, %241 : vector<8x1024xf32>
    %243 = vector.extract_strided_slice %242 {offsets = [0, 0], sizes = [8, 256], strides = [1, 1]} : vector<8x1024xf32> to vector<8x256xf32>
    %244 = arith.negf %243 : vector<8x256xf32>
    %245 = math.exp %244 : vector<8x256xf32>
    %cst_72 = arith.constant 1.000000e+00 : f32
    %246 = vector.broadcast %cst_72 : f32 to vector<8x256xf32>
    %247 = arith.addf %246, %245 : vector<8x256xf32>
    %248 = arith.divf %246, %247 : vector<8x256xf32>
    %249 = vector.extract_strided_slice %242 {offsets = [0, 256], sizes = [8, 256], strides = [1, 1]} : vector<8x1024xf32> to vector<8x256xf32>
    %250 = arith.negf %249 : vector<8x256xf32>
    %251 = math.exp %250 : vector<8x256xf32>
    %cst_73 = arith.constant 1.000000e+00 : f32
    %252 = vector.broadcast %cst_73 : f32 to vector<8x256xf32>
    %253 = arith.addf %252, %251 : vector<8x256xf32>
    %254 = arith.divf %252, %253 : vector<8x256xf32>
    %255 = vector.extract_strided_slice %242 {offsets = [0, 512], sizes = [8, 256], strides = [1, 1]} : vector<8x1024xf32> to vector<8x256xf32>
    %256 = math.tanh %255 : vector<8x256xf32>
    %257 = vector.extract_strided_slice %242 {offsets = [0, 768], sizes = [8, 256], strides = [1, 1]} : vector<8x1024xf32> to vector<8x256xf32>
    %258 = arith.negf %257 : vector<8x256xf32>
    %259 = math.exp %258 : vector<8x256xf32>
    %cst_74 = arith.constant 1.000000e+00 : f32
    %260 = vector.broadcast %cst_74 : f32 to vector<8x256xf32>
    %261 = arith.addf %260, %259 : vector<8x256xf32>
    %262 = arith.divf %260, %261 : vector<8x256xf32>
    %263 = arith.mulf %254, %233 : vector<8x256xf32>
    %264 = arith.mulf %248, %256 : vector<8x256xf32>
    %265 = arith.addf %263, %264 : vector<8x256xf32>
    %266 = math.tanh %265 : vector<8x256xf32>
    %267 = arith.mulf %262, %266 : vector<8x256xf32>
    %c8_i32_75 = arith.constant 8 : i32
    %c0_76 = arith.constant 0 : index
    %c0_77 = arith.constant 0 : index
    %268 = vector.load %arg4[%c0_76, %c0_77] : memref<256x256xf32, #tpu.memory_space<vmem>>, vector<256x256xf32>
    %cst_78 = arith.constant dense<0.000000e+00> : vector<8x256xf32>
    %269 = tpu.matmul %267, %268, %cst_78 {dimension_numbers = #tpu.dot_dimension_numbers<[1], [0], [0], [1], [0, 0, 1, 1], [], []>} : vector<8x256xf32>, vector<256x256xf32>, vector<8x256xf32> -> vector<8x256xf32>
    %270 = vector.broadcast %1 : vector<1x256xf32> to vector<8x256xf32>
    %271 = arith.addf %269, %270 : vector<8x256xf32>
    %cst_79 = arith.constant 0.000000e+00 : f32
    %272 = vector.broadcast %cst_79 : f32 to vector<8x256xf32>
    %273 = arith.maximumf %271, %272 : vector<8x256xf32>
    %c0_80 = arith.constant 0 : index
    %c0_81 = arith.constant 0 : index
    %274 = vector.load %arg5[%c0_80, %c0_81] : memref<256x256xf32, #tpu.memory_space<vmem>>, vector<256x256xf32>
    %cst_82 = arith.constant dense<0.000000e+00> : vector<8x256xf32>
    %275 = tpu.matmul %273, %274, %cst_82 {dimension_numbers = #tpu.dot_dimension_numbers<[1], [0], [0], [1], [0, 0, 1, 1], [], []>} : vector<8x256xf32>, vector<256x256xf32>, vector<8x256xf32> -> vector<8x256xf32>
    %276 = vector.broadcast %2 : vector<1x256xf32> to vector<8x256xf32>
    %277 = arith.addf %275, %276 : vector<8x256xf32>
    %cst_83 = arith.constant 0.000000e+00 : f32
    %278 = vector.broadcast %cst_83 : f32 to vector<8x256xf32>
    %279 = arith.maximumf %277, %278 : vector<8x256xf32>
    %c0_84 = arith.constant 0 : index
    %c0_85 = arith.constant 0 : index
    %280 = vector.load %arg6[%c0_84, %c0_85] : memref<256x3xf32, #tpu.memory_space<vmem>>, vector<256x3xf32>
    %cst_86 = arith.constant dense<0.000000e+00> : vector<8x3xf32>
    %281 = tpu.matmul %279, %280, %cst_86 {dimension_numbers = #tpu.dot_dimension_numbers<[1], [0], [0], [1], [0, 0, 1, 1], [], []>} : vector<8x256xf32>, vector<256x3xf32>, vector<8x3xf32> -> vector<8x3xf32>
    %282 = vector.broadcast %3 : vector<1x3xf32> to vector<8x3xf32>
    %283 = arith.addf %281, %282 : vector<8x3xf32>
    %cst_87 = arith.constant dense<0xFF800000> : vector<8xf32>
    %284 = vector.multi_reduction <maximumf>, %283, %cst_87 [1] : vector<8x3xf32> to vector<8xf32>
    %285 = vector.shape_cast %284 : vector<8xf32> to vector<8x1xf32>
    %286 = vector.broadcast %285 : vector<8x1xf32> to vector<8x3xf32>
    %287 = arith.subf %283, %286 : vector<8x3xf32>
    %288 = math.exp %287 : vector<8x3xf32>
    %cst_88 = arith.constant dense<0.000000e+00> : vector<8xf32>
    %289 = vector.multi_reduction <add>, %288, %cst_88 [1] : vector<8x3xf32> to vector<8xf32>
    %290 = vector.shape_cast %289 : vector<8xf32> to vector<8x1xf32>
    %291 = tpu.reciprocal %290 {approx = true} : vector<8x1xf32> -> vector<8x1xf32>
    %292 = vector.broadcast %291 : vector<8x1xf32> to vector<8x3xf32>
    %293 = arith.mulf %288, %292 : vector<8x3xf32>
    %c0_89 = arith.constant 0 : index
    %c0_90 = arith.constant 0 : index
    %294 = vector.load %arg7[%c0_89, %c0_90] : memref<8x3xf32, #tpu.memory_space<vmem>>, vector<8x3xf32>
    tpu.vector_store %arg7[%c0_89, %c0_90], %293 {strides = array<i32>} : memref<8x3xf32, #tpu.memory_space<vmem>>, vector<8x3xf32>,
    return
  }
}

</mosaic_0001>

<bundles_post_ra>
// kernel: lstm_model_forward.1
= control target key start
LH: loop header
LB: loop body
LE: loop exit
PB: predicated region body
PF: predicated region fallthrough
CT: control target
= control target key end

     0   :  { %vm73_vm0 = vcmask 130048   ;;  %s14862_s1 = inlined_call_operand.vmem [shape: f32[16,1024], index: 1, kind: input, shape index: {}]   ;;  %s14863_s0 = inlined_call_operand.vmem [shape: f32[64,16], index: 0, kind: input, shape index: {}]   ;;  %s14864_s3 = inlined_call_operand.vmem [shape: f32[4,1024], index: 3, kind: input, shape index: {}]   ;;  %s14865_s2 = inlined_call_operand.vmem [shape: f32[256,1024], index: 2, kind: input, shape index: {}]   ;;  %s14866_s4 = inlined_call_operand.vmem [shape: f32[256,256], index: 4, kind: input, shape index: {}]   ;;  %s14867_s5 = inlined_call_operand.vmem [shape: f32[256,256], index: 5, kind: input, shape index: {}]   ;;  %s14868_s6 = inlined_call_operand.vmem [shape: f32[256,3], index: 6, kind: input, shape index: {}]   ;;  %s14869_s7 = inlined_call_operand.vmem [shape: f32[8,3], index: 7, kind: output, shape index: {}]  }
   0x1   :  { %v48_v0 = vld [vmem:[%s14862_s1 + $0x40] sm:$0xff]  ;;  %v49_v1 = vld [vmem:[%s14862_s1 + $0x48] sm:$0xff]  ;;  %v6254_v5 = vld [vmem:[%s14863_s0 + $0x30] sm:$0xff] }
   0x2   :  { %v40_v2 = vld [vmem:[%s14862_s1] sm:$0xff]  ;;  %112 = vmatpush.msra.mxu0 %v48_v0  ;;  %4979 = vmatpush.msra.mxu2 %v48_v0  ;;  %v41_v3 = vld [vmem:[%s14862_s1 + $0x8] sm:$0xff]  ;;  %v50_v6 = vld [vmem:[%s14862_s1 + $0x50] sm:$0xff] }
   0x3   :  { %153 = vmatpush.msra.mxu1 %v49_v1  ;;  %4981 = vmatpush.msra.mxu3 %v49_v1  ;;  %v6249_v4 = vld [vmem:[%s14863_s0] sm:$0xff]  ;;  %v51_v7 = vld [vmem:[%s14862_s1 + $0x58] sm:$0xff]  ;;  %v42_v8 = vld [vmem:[%s14862_s1 + $0x10] sm:$0xff] }
   0x4   :  { %113 = vmatpush.msra.mxu0 %v40_v2  ;;  %4980 = vmatpush.msra.mxu2 %v40_v2  ;;  %v43_v9 = vld [vmem:[%s14862_s1 + $0x18] sm:$0xff]  ;;  %v6279_v10 = vld [vmem:[%s14863_s0 + $0x8] sm:$0xff]  ;;  %v52_v12 = vld [vmem:[%s14862_s1 + $0x60] sm:$0xff] }
   0x5   :  { %154 = vmatpush.msra.mxu1 %v41_v3  ;;  %4982 = vmatpush.msra.mxu3 %v41_v3  ;;  %v6284_v11 = vld [vmem:[%s14863_s0 + $0x38] sm:$0xff]  ;;  %v53_v13 = vld [vmem:[%s14862_s1 + $0x68] sm:$0xff]  ;;  %v44_v14 = vld [vmem:[%s14862_s1 + $0x20] sm:$0xff] }
   0x6   :  { %4867 = vmatmul.msk.f32.vlgmr.msra.gmra.mxu0 %vm73_vm0, %v6249_v4  ;;  %4873 = vmatmul.msk.f32.vlgmr.msra.gmra.mxu2 %vm73_vm0, %v6254_v5  ;;  %v45_v15 = vld [vmem:[%s14862_s1 + $0x28] sm:$0xff]  ;;  %v6309_v16 = vld [vmem:[%s14863_s0 + $0x10] sm:$0xff]  ;;  %v621_v17 = vld [vmem:[%s14865_s2 + $0x3c0] sm:$0xff] }
   0x7   :  { %4875 = vmatmul.msk.f32.vlgmr.msra.gmra.mxu1 %vm73_vm0, %v6249_v4  ;;  %4881 = vmatmul.msk.f32.vlgmr.msra.gmra.mxu3 %vm73_vm0, %v6254_v5  ;;  %v749_v18 = vld [vmem:[%s14865_s2 + $0x7c0] sm:$0xff]  ;;  %v6340_v23 = vld [vmem:[%s14863_s0 + $0x18] sm:$0xff]  ;;  %v6402_v37 = vld [vmem:[%s14863_s0 + $0x28] sm:$0xff] }
   0x8   :  { %194 = vmatpush.msrb.mxu2 %v50_v6  ;;  %235 = vmatpush.msrb.mxu3 %v51_v7  ;;  %v613_v19 = vld [vmem:[%s14865_s2 + $0x380] sm:$0xff]  ;;  %v54_v42 = vld [vmem:[%s14862_s1 + $0x70] sm:$0xff]  ;;  %v55_v43 = vld [vmem:[%s14862_s1 + $0x78] sm:$0xff] }
   0x9   :  { %276 = vmatpush.msrb.mxu0 %v52_v12  ;;  %317 = vmatpush.msrb.mxu1 %v53_v13  ;;  %v741_v20 = vld [vmem:[%s14865_s2 + $0x780] sm:$0xff]  ;;  %v46_v46 = vld [vmem:[%s14862_s1 + $0x30] sm:$0xff]  ;;  %v47_v47 = vld [vmem:[%s14862_s1 + $0x38] sm:$0xff] }
   0xa   :  { %195 = vmatpush.msrb.mxu2 %v42_v8  ;;  %236 = vmatpush.msrb.mxu3 %v43_v9  ;;  %v605_v21 = vld [vmem:[%s14865_s2 + $0x340] sm:$0xff]  ;;  %v622_v52 = vld [vmem:[%s14865_s2 + $0x3c8] sm:$0xff]  ;;  %v623_v62 = vld [vmem:[%s14865_s2 + $0x3d0] sm:$0xff] }
   0xb   :  { %277 = vmatpush.msrb.mxu0 %v44_v14  ;;  %318 = vmatpush.msrb.mxu1 %v45_v15  ;;  %v733_v22 = vld [vmem:[%s14865_s2 + $0x740] sm:$0xff]  ;;  %v750_v54 = vld [vmem:[%s14865_s2 + $0x7c8] sm:$0xff]  ;;  %v751_v63 = vld [vmem:[%s14865_s2 + $0x7d0] sm:$0xff] }
   0xc   :  { %v597_v24 = vld [vmem:[%s14865_s2 + $0x300] sm:$0xff]  ;;  %358 = vmatpush.msra.mxu2 %v54_v42  ;;  %399 = vmatpush.msra.mxu3 %v55_v43  ;;  %v614_v56 = vld [vmem:[%s14865_s2 + $0x388] sm:$0xff]  ;;  %v615_v2 = vld [vmem:[%s14865_s2 + $0x390] sm:$0xff] }
   0xd   :  { %757 = vmatpush.msra.mxu0 %v621_v17  ;;  %777 = vmatpush.msra.mxu1 %v749_v18  ;;  %v725_v25 = vld [vmem:[%s14865_s2 + $0x700] sm:$0xff]  ;;  %v742_v57 = vld [vmem:[%s14865_s2 + $0x788] sm:$0xff]  ;;  %v743_v3 = vld [vmem:[%s14865_s2 + $0x790] sm:$0xff] }
   0xe   :  { %4868 = vmatmul.msk.f32.gmra.mxu0 %vm73_vm0, %v6279_v10  ;;  %4874 = vmatmul.msk.f32.gmra.mxu2 %vm73_vm0, %v6284_v11  ;;  %v589_v26 = vld [vmem:[%s14865_s2 + $0x2c0] sm:$0xff]  ;;  %v606_v58 = vld [vmem:[%s14865_s2 + $0x348] sm:$0xff]  ;;  %v607_v8 = vld [vmem:[%s14865_s2 + $0x350] sm:$0xff] }
   0xf   :  { %4876 = vmatmul.msk.f32.gmra.mxu1 %vm73_vm0, %v6279_v10  ;;  %4882 = vmatmul.msk.f32.gmra.mxu3 %vm73_vm0, %v6284_v11  ;;  %v717_v27 = vld [vmem:[%s14865_s2 + $0x6c0] sm:$0xff]  ;;  %v734_v59 = vld [vmem:[%s14865_s2 + $0x748] sm:$0xff]  ;;  %v735_v9 = vld [vmem:[%s14865_s2 + $0x750] sm:$0xff] }
  0x10   :  { %758 = vmatpush.msra.mxu0 %v613_v19  ;;  %778 = vmatpush.msra.mxu1 %v741_v20  ;;  %v581_v28 = vld [vmem:[%s14865_s2 + $0x280] sm:$0xff]  ;;  %v598_v0 = vld [vmem:[%s14865_s2 + $0x308] sm:$0xff]  ;;  %v599_v12 = vld [vmem:[%s14865_s2 + $0x310] sm:$0xff] }
  0x11   :  { %v709_v29 = vld [vmem:[%s14865_s2 + $0x680] sm:$0xff]  ;;  %359 = vmatpush.msra.mxu2 %v46_v46  ;;  %400 = vmatpush.msra.mxu3 %v47_v47  ;;  %v726_v1 = vld [vmem:[%s14865_s2 + $0x708] sm:$0xff]  ;;  %v727_v13 = vld [vmem:[%s14865_s2 + $0x710] sm:$0xff] }
  0x12   :  { %759 = vmatpush.msra.mxu0 %v605_v21  ;;  %779 = vmatpush.msra.mxu1 %v733_v22  ;;  %v6371_v30 = vld [vmem:[%s14863_s0 + $0x20] sm:$0xff]  ;;  %v590_v6 = vld [vmem:[%s14865_s2 + $0x2c8] sm:$0xff]  ;;  %v591_v17 = vld [vmem:[%s14865_s2 + $0x2d0] sm:$0xff] }
  0x13   :  { %v573_v31 = vld [vmem:[%s14865_s2 + $0x240] sm:$0xff]  ;;  %v718_v7 = vld [vmem:[%s14865_s2 + $0x6c8] sm:$0xff]  ;;  %v719_v18 = vld [vmem:[%s14865_s2 + $0x6d0] sm:$0xff] }
  0x14   :  { %760 = vmatpush.msra.mxu0 %v597_v24  ;;  %780 = vmatpush.msra.mxu1 %v725_v25  ;;  %v701_v32 = vld [vmem:[%s14865_s2 + $0x640] sm:$0xff]  ;;  %v582_v14 = vld [vmem:[%s14865_s2 + $0x288] sm:$0xff]  ;;  %v583_v21 = vld [vmem:[%s14865_s2 + $0x290] sm:$0xff] }
  0x15   :  { %v565_v33 = vld [vmem:[%s14865_s2 + $0x200] sm:$0xff]  ;;  %v710_v15 = vld [vmem:[%s14865_s2 + $0x688] sm:$0xff]  ;;  %v711_v22 = vld [vmem:[%s14865_s2 + $0x690] sm:$0xff] }
  0x16   :  { %4869 = vmatmul.msk.f32.gmra.mxu0 %vm73_vm0, %v6309_v16  ;;  %4883 = vmatmul.msk.f32.vlgmr.msrb.gmra.mxu2 %vm73_vm0, %v6249_v4  ;;  %v693_v34 = vld [vmem:[%s14865_s2 + $0x600] sm:$0xff]  ;;  %v574_v19 = vld [vmem:[%s14865_s2 + $0x248] sm:$0xff] }
  0x17   :  { %4877 = vmatmul.msk.f32.gmra.mxu1 %vm73_vm0, %v6309_v16  ;;  %4891 = vmatmul.msk.f32.vlgmr.msrb.gmra.mxu3 %vm73_vm0, %v6249_v4  ;;  %v557_v35 = vld [vmem:[%s14865_s2 + $0x1c0] sm:$0xff]  ;;  %v702_v20 = vld [vmem:[%s14865_s2 + $0x648] sm:$0xff] }
  0x18   :  { %761 = vmatpush.msra.mxu0 %v589_v26  ;;  %781 = vmatpush.msra.mxu1 %v717_v27  ;;  %v685_v36 = vld [vmem:[%s14865_s2 + $0x5c0] sm:$0xff]  ;;  %v566_v24 = vld [vmem:[%s14865_s2 + $0x208] sm:$0xff]  ;;  %v575_v26 = vld [vmem:[%s14865_s2 + $0x250] sm:$0xff] }
  0x19   :  { %v549_v38 = vld [vmem:[%s14865_s2 + $0x180] sm:$0xff]  ;;  %797 = vmatpush.msrb.mxu2 %v622_v52  ;;  %817 = vmatpush.msrb.mxu3 %v750_v54  ;;  %v694_v25 = vld [vmem:[%s14865_s2 + $0x608] sm:$0xff]  ;;  %v703_v27 = vld [vmem:[%s14865_s2 + $0x650] sm:$0xff] }
  0x1a   :  { %762 = vmatpush.msra.mxu0 %v581_v28  ;;  %782 = vmatpush.msra.mxu1 %v709_v29  ;;  %v677_v39 = vld [vmem:[%s14865_s2 + $0x580] sm:$0xff]  ;;  %v558_v28 = vld [vmem:[%s14865_s2 + $0x1c8] sm:$0xff]  ;;  %v655_v52 = vld [vmem:[%s14865_s2 + $0x4d0] sm:$0xff] }
  0x1b   :  { %v541_v40 = vld [vmem:[%s14865_s2 + $0x140] sm:$0xff]  ;;  %798 = vmatpush.msrb.mxu2 %v614_v56  ;;  %818 = vmatpush.msrb.mxu3 %v742_v57  ;;  %v686_v29 = vld [vmem:[%s14865_s2 + $0x5c8] sm:$0xff]  ;;  %v647_v56 = vld [vmem:[%s14865_s2 + $0x490] sm:$0xff] }
  0x1c   :  { %763 = vmatpush.msra.mxu0 %v573_v31  ;;  %783 = vmatpush.msra.mxu1 %v701_v32  ;;  %v669_v41 = vld [vmem:[%s14865_s2 + $0x540] sm:$0xff]  ;;  %v567_v31 = vld [vmem:[%s14865_s2 + $0x210] sm:$0xff]  ;;  %v534_v42 = vld [vmem:[%s14865_s2 + $0x108] sm:$0xff] }
  0x1d   :  { %v533_v44 = vld [vmem:[%s14865_s2 + $0x100] sm:$0xff]  ;;  %799 = vmatpush.msrb.mxu2 %v606_v58  ;;  %819 = vmatpush.msrb.mxu3 %v734_v59  ;;  %v695_v32 = vld [vmem:[%s14865_s2 + $0x610] sm:$0xff]  ;;  %v662_v43 = vld [vmem:[%s14865_s2 + $0x508] sm:$0xff] }
  0x1e   :  { %4870 = vmatmul.msk.f32.gmra.mxu0 %vm73_vm0, %v6340_v23  ;;  %4884 = vmatmul.msk.f32.gmra.mxu2 %vm73_vm0, %v6279_v10  ;;  %v661_v45 = vld [vmem:[%s14865_s2 + $0x500] sm:$0xff]  ;;  %v526_v46 = vld [vmem:[%s14865_s2 + $0xc8] sm:$0xff]  ;;  %v639_v59 = vld [vmem:[%s14865_s2 + $0x450] sm:$0xff] }
  0x1f   :  { %4878 = vmatmul.msk.f32.gmra.mxu1 %vm73_vm0, %v6340_v23  ;;  %4892 = vmatmul.msk.f32.gmra.mxu3 %vm73_vm0, %v6279_v10  ;;  %v525_v48 = vld [vmem:[%s14865_s2 + $0xc0] sm:$0xff]  ;;  %v654_v47 = vld [vmem:[%s14865_s2 + $0x4c8] sm:$0xff] }
  0x20   :  { %764 = vmatpush.msra.mxu0 %v565_v33  ;;  %784 = vmatpush.msra.mxu1 %v693_v34  ;;  %v653_v49 = vld [vmem:[%s14865_s2 + $0x4c0] sm:$0xff]  ;;  %v550_v33 = vld [vmem:[%s14865_s2 + $0x188] sm:$0xff] }
  0x21   :  { %v517_v50 = vld [vmem:[%s14865_s2 + $0x80] sm:$0xff]  ;;  %800 = vmatpush.msrb.mxu2 %v598_v0  ;;  %820 = vmatpush.msrb.mxu3 %v726_v1  ;;  %v678_v34 = vld [vmem:[%s14865_s2 + $0x588] sm:$0xff]  ;;  %v6732_v0 = vld [vmem:[%s14865_s2 + $0x398] sm:$0xff] }
  0x22   :  { %765 = vmatpush.msra.mxu0 %v557_v35  ;;  %785 = vmatpush.msra.mxu1 %v685_v36  ;;  %v645_v51 = vld [vmem:[%s14865_s2 + $0x480] sm:$0xff]  ;;  %v559_v35 = vld [vmem:[%s14865_s2 + $0x1d0] sm:$0xff]  ;;  %v638_v54 = vld [vmem:[%s14865_s2 + $0x448] sm:$0xff] }
  0x23   :  { %v509_v53 = vld [vmem:[%s14865_s2 + $0x40] sm:$0xff]  ;;  %801 = vmatpush.msrb.mxu2 %v590_v6  ;;  %821 = vmatpush.msrb.mxu3 %v718_v7  ;;  %v687_v36 = vld [vmem:[%s14865_s2 + $0x5d0] sm:$0xff]  ;;  %v502_v57 = vld [vmem:[%s14865_s2 + $0x8] sm:$0xff] }
  0x24   :  { %766 = vmatpush.msra.mxu0 %v549_v38  ;;  %786 = vmatpush.msra.mxu1 %v677_v39  ;;  %v637_v55 = vld [vmem:[%s14865_s2 + $0x440] sm:$0xff]  ;;  %v542_v38 = vld [vmem:[%s14865_s2 + $0x148] sm:$0xff]  ;;  %v6737_v1 = vld [vmem:[%s14865_s2 + $0x798] sm:$0xff] }
  0x25   :  { %v501_v60 = vld [vmem:[%s14865_s2] sm:$0xff]  ;;  %802 = vmatpush.msrb.mxu2 %v582_v14  ;;  %822 = vmatpush.msrb.mxu3 %v710_v15  ;;  %v670_v39 = vld [vmem:[%s14865_s2 + $0x548] sm:$0xff]  ;;  %v6765_v6 = vld [vmem:[%s14865_s2 + $0x718] sm:$0xff] }
  0x26   :  { %4871 = vmatmul.msk.f32.gmra.mxu0 %vm73_vm0, %v6371_v30  ;;  %4885 = vmatmul.msk.f32.gmra.mxu2 %vm73_vm0, %v6309_v16  ;;  %v629_v61 = vld [vmem:[%s14865_s2 + $0x400] sm:$0xff]  ;;  %v630_v58 = vld [vmem:[%s14865_s2 + $0x408] sm:$0xff]  ;;  %v6774_v7 = vld [vmem:[%s14865_s2 + $0x2d8] sm:$0xff] }
  0x27   :  { %4879 = vmatmul.msk.f32.gmra.mxu1 %vm73_vm0, %v6371_v30  ;;  %4893 = vmatmul.msk.f32.gmra.mxu3 %vm73_vm0, %v6309_v16  ;;  %v625_v14 = vld [vmem:[%s14865_s2 + $0x3e0] sm:$0xff] }
  0x28   :  { %767 = vmatpush.msra.mxu0 %v541_v40  ;;  %787 = vmatpush.msra.mxu1 %v669_v41  ;;  %v551_v40 = vld [vmem:[%s14865_s2 + $0x190] sm:$0xff]  ;;  %v753_v15 = vld [vmem:[%s14865_s2 + $0x7e0] sm:$0xff] }
  0x29   :  { %803 = vmatpush.msrb.mxu2 %v574_v19  ;;  %823 = vmatpush.msrb.mxu3 %v702_v20  ;;  %v679_v41 = vld [vmem:[%s14865_s2 + $0x590] sm:$0xff]  ;;  %v6832_v19 = vld [vmem:[%s14865_s2 + $0x618] sm:$0xff]  ;;  %v617_v20 = vld [vmem:[%s14865_s2 + $0x3a0] sm:$0xff] }
  0x2a   :  { %768 = vmatpush.msra.mxu0 %v533_v44  ;;  %788 = vmatpush.msra.mxu1 %v661_v45  ;;  %v543_v44 = vld [vmem:[%s14865_s2 + $0x150] sm:$0xff] }
  0x2b   :  { %804 = vmatpush.msrb.mxu2 %v566_v24  ;;  %824 = vmatpush.msrb.mxu3 %v694_v25  ;;  %v671_v45 = vld [vmem:[%s14865_s2 + $0x550] sm:$0xff]  ;;  %v609_v24 = vld [vmem:[%s14865_s2 + $0x360] sm:$0xff] }
  0x2c   :  { %769 = vmatpush.msra.mxu0 %v525_v48  ;;  %789 = vmatpush.msra.mxu1 %v653_v49  ;;  %v663_v48 = vld [vmem:[%s14865_s2 + $0x510] sm:$0xff]  ;;  %v518_v49 = vld [vmem:[%s14865_s2 + $0x88] sm:$0xff]  ;;  %v737_v25 = vld [vmem:[%s14865_s2 + $0x760] sm:$0xff] }
  0x2d   :  { %805 = vmatpush.msrb.mxu2 %v558_v28  ;;  %825 = vmatpush.msrb.mxu3 %v686_v29  ;;  %v601_v28 = vld [vmem:[%s14865_s2 + $0x320] sm:$0xff] }
  0x2e   :  { %4872 = vmatmul.msk.f32.gmra.mxu0 %vm73_vm0, %v6402_v37  ;;  %4886 = vmatmul.msk.f32.gmra.mxu2 %vm73_vm0, %v6340_v23  ;;  %v729_v29 = vld [vmem:[%s14865_s2 + $0x720] sm:$0xff] }
  0x2f   :  { %4880 = vmatmul.msk.f32.gmra.mxu1 %vm73_vm0, %v6402_v37  ;;  %4894 = vmatmul.msk.f32.gmra.mxu3 %vm73_vm0, %v6340_v23 }
  0x30   :  { %770 = vmatpush.msra.mxu0 %v517_v50  ;;  %790 = vmatpush.msra.mxu1 %v645_v51  ;;  %v646_v50 = vld [vmem:[%s14865_s2 + $0x488] sm:$0xff]  ;;  %v527_v51 = vld [vmem:[%s14865_s2 + $0xd0] sm:$0xff] }
  0x31   :  { %806 = vmatpush.msrb.mxu2 %v550_v33  ;;  %826 = vmatpush.msrb.mxu3 %v678_v34  ;;  %v6894_v33 = vld [vmem:[%s14865_s2 + $0x158] sm:$0xff] }
  0x32   :  { %771 = vmatpush.msra.mxu0 %v509_v53  ;;  %791 = vmatpush.msra.mxu1 %v637_v55  ;;  %v510_v53 = vld [vmem:[%s14865_s2 + $0x48] sm:$0xff]  ;;  %v6685_v55 = vld [vmem:[%s14865_s2 + $0x90] sm:$0xff]  ;;  %v6899_v34 = vld [vmem:[%s14865_s2 + $0x558] sm:$0xff] }
  0x33   :  { %807 = vmatpush.msrb.mxu2 %v542_v38  ;;  %827 = vmatpush.msrb.mxu3 %v670_v39  ;;  %v6917_v38 = vld [vmem:[%s14865_s2 + $0x518] sm:$0xff]  ;;  %v577_v39 = vld [vmem:[%s14865_s2 + $0x260] sm:$0xff] }
  0x34   :  { %772 = vmatpush.msra.mxu0 %v501_v60  ;;  %792 = vmatpush.msra.mxu1 %v629_v61  ;;  %v6708_v60 = vld [vmem:[%s14865_s2 + $0x3d8] sm:$0xff] }
  0x35   :  { %808 = vmatpush.msrb.mxu2 %v534_v42  ;;  %828 = vmatpush.msrb.mxu3 %v662_v43  ;;  %v752_v61 = vld [vmem:[%s14865_s2 + $0x7d8] sm:$0xff] }
  0x36   :  { %4887 = vmatmul.msk.f32.gmra.mxu2 %vm73_vm0, %v6371_v30  ;;  %4899 = vmatmul.msk.f32.vlgmr.msrb.gmra.mxu0 %vm73_vm0, %v6249_v4  ;;  %v6932_v42 = vld [vmem:[%s14865_s2 + $0xd8] sm:$0xff] }
  0x37   :  { %4895 = vmatmul.msk.f32.gmra.mxu3 %vm73_vm0, %v6371_v30  ;;  %4907 = vmatmul.msk.f32.vlgmr.msrb.gmra.mxu1 %vm73_vm0, %v6249_v4  ;;  %v6937_v43 = vld [vmem:[%s14865_s2 + $0x4d8] sm:$0xff] }
  0x38   :  { %837 = vmatpush.msrb.mxu0 %v623_v62  ;;  %857 = vmatpush.msrb.mxu1 %v751_v63  ;;  %v6717_v62 = vld [vmem:[%s14865_s2 + $0x10] sm:$0xff] }
  0x39   :  { %809 = vmatpush.msrb.mxu2 %v526_v46  ;;  %829 = vmatpush.msrb.mxu3 %v654_v47  ;;  %v6722_v63 = vld [vmem:[%s14865_s2 + $0x410] sm:$0xff]  ;;  %v697_v46 = vld [vmem:[%s14865_s2 + $0x620] sm:$0xff] }
  0x3a   :  { %838 = vmatpush.msrb.mxu0 %v615_v2  ;;  %858 = vmatpush.msrb.mxu1 %v743_v3  ;;  %v6748_v2 = vld [vmem:[%s14865_s2 + $0x358] sm:$0xff]  ;;  %v561_v47 = vld [vmem:[%s14865_s2 + $0x1e0] sm:$0xff] }
  0x3b   :  { %810 = vmatpush.msrb.mxu2 %v518_v49  ;;  %830 = vmatpush.msrb.mxu3 %v646_v50  ;;  %v6753_v3 = vld [vmem:[%s14865_s2 + $0x758] sm:$0xff]  ;;  %v553_v50 = vld [vmem:[%s14865_s2 + $0x1a0] sm:$0xff] }
  0x3c   :  { %839 = vmatpush.msrb.mxu0 %v607_v8  ;;  %859 = vmatpush.msrb.mxu1 %v735_v9  ;;  %v6779_v8 = vld [vmem:[%s14865_s2 + $0x6d8] sm:$0xff] }
  0x3d   :  { %811 = vmatpush.msrb.mxu2 %v510_v53  ;;  %831 = vmatpush.msrb.mxu3 %v638_v54  ;;  %v6792_v9 = vld [vmem:[%s14865_s2 + $0x298] sm:$0xff] }
  0x3e   :  { %4888 = vmatmul.msk.f32.gmra.mxu2 %vm73_vm0, %v6402_v37  ;;  %4900 = vmatmul.msk.f32.gmra.mxu0 %vm73_vm0, %v6279_v10  ;;  %v6965_v49 = vld [vmem:[%s14865_s2 + $0x498] sm:$0xff] }
  0x3f   :  { %4896 = vmatmul.msk.f32.gmra.mxu3 %vm73_vm0, %v6402_v37  ;;  %4908 = vmatmul.msk.f32.gmra.mxu1 %vm73_vm0, %v6279_v10  ;;  %v6982_v53 = vld [vmem:[%s14865_s2 + $0x58] sm:$0xff] }
  0x40   :  { %840 = vmatpush.msrb.mxu0 %v599_v12  ;;  %860 = vmatpush.msrb.mxu1 %v727_v13  ;;  %v6797_v12 = vld [vmem:[%s14865_s2 + $0x698] sm:$0xff] }
  0x41   :  { %812 = vmatpush.msrb.mxu2 %v502_v57  ;;  %832 = vmatpush.msrb.mxu3 %v630_v58  ;;  %v6804_v13 = vld [vmem:[%s14865_s2 + $0x258] sm:$0xff]  ;;  %v673_v57 = vld [vmem:[%s14865_s2 + $0x560] sm:$0xff] }
  0x42   :  { %841 = vmatpush.msrb.mxu0 %v591_v17  ;;  %861 = vmatpush.msrb.mxu1 %v719_v18  ;;  %v14870_v17 = vmov 0.0   ;;  %v6827_v18 = vld [vmem:[%s14865_s2 + $0x218] sm:$0xff] }
  0x44   :  { %842 = vmatpush.msrb.mxu0 %v583_v21  ;;  %862 = vmatpush.msrb.mxu1 %v711_v22  ;;  %v745_v21 = vld [vmem:[%s14865_s2 + $0x7a0] sm:$0xff]  ;;  %v6846_v22 = vld [vmem:[%s14865_s2 + $0x1d8] sm:$0xff] }
  0x46   :  { %4889 = vmatmul.msk.f32.gmra.mxu2 %vm73_vm0, %v6254_v5  ;;  %4901 = vmatmul.msk.f32.gmra.mxu0 %vm73_vm0, %v6309_v16 }
  0x47   :  { %4897 = vmatmul.msk.f32.gmra.mxu3 %vm73_vm0, %v6254_v5  ;;  %4909 = vmatmul.msk.f32.gmra.mxu1 %vm73_vm0, %v6309_v16 }
  0x48   :  { %843 = vmatpush.msrb.mxu0 %v575_v26  ;;  %863 = vmatpush.msrb.mxu1 %v703_v27  ;;  %v6864_v26 = vld [vmem:[%s14865_s2 + $0x198] sm:$0xff] }
  0x49   :  { %v6869_v27 = vld [vmem:[%s14865_s2 + $0x598] sm:$0xff] }
  0x4a   :  { %844 = vmatpush.msrb.mxu0 %v567_v31  ;;  %864 = vmatpush.msrb.mxu1 %v695_v32  ;;  %v593_v31 = vld [vmem:[%s14865_s2 + $0x2e0] sm:$0xff] }
  0x4b   :  { %v721_v32 = vld [vmem:[%s14865_s2 + $0x6e0] sm:$0xff] }
  0x4c   :  { %845 = vmatpush.msrb.mxu0 %v559_v35  ;;  %865 = vmatpush.msrb.mxu1 %v687_v36  ;;  %v585_v35 = vld [vmem:[%s14865_s2 + $0x2a0] sm:$0xff]  ;;  %v6912_v36 = vld [vmem:[%s14865_s2 + $0x118] sm:$0xff] }
  0x4e   :  { %4890 = vmatmul.msk.f32.gmra.mxu2 %vm73_vm0, %v6284_v11  ;;  %4902 = vmatmul.msk.f32.gmra.mxu0 %vm73_vm0, %v6340_v23 }
  0x4f   :  { %4898 = vmatmul.msk.f32.gmra.mxu3 %vm73_vm0, %v6284_v11  ;;  %4910 = vmatmul.msk.f32.gmra.mxu1 %vm73_vm0, %v6340_v23 }
  0x50   :  { %846 = vmatpush.msrb.mxu0 %v551_v40  ;;  %866 = vmatpush.msrb.mxu1 %v679_v41  ;;  %v705_v40 = vld [vmem:[%s14865_s2 + $0x660] sm:$0xff] }
  0x52   :  { %847 = vmatpush.msrb.mxu0 %v543_v44  ;;  %867 = vmatpush.msrb.mxu1 %v671_v45  ;;  %v569_v45 = vld [vmem:[%s14865_s2 + $0x220] sm:$0xff] }
  0x54   :  { %868 = vmatpush.msrb.mxu1 %v663_v48  ;;  %v6960_v48 = vld [vmem:[%s14865_s2 + $0x98] sm:$0xff] }
  0x56   :  { %4903 = vmatmul.msk.f32.gmra.mxu0 %vm73_vm0, %v6371_v30  ;;  %4915 = vmatmul.msk.f32.vlgmr.msra.gmra.mxu2 %vm73_vm0, %v6249_v4 }
  0x57   :  { %4911 = vmatmul.msk.f32.gmra.mxu1 %vm73_vm0, %v6371_v30  ;;  %4923 = vmatmul.msk.f32.vlgmr.msra.gmra.mxu3 %vm73_vm0, %v6249_v4  ;;  %v535_v4 = vld [vmem:[%s14865_s2 + $0x110] sm:$0xff] }
  0x58   :  { %848 = vmatpush.msrb.mxu0 %v535_v4  ;;  %869 = vmatpush.msrb.mxu1 %v655_v52  ;;  %v689_v4 = vld [vmem:[%s14865_s2 + $0x5e0] sm:$0xff] }
  0x59   :  { %877 = vmatpush.msra.mxu2 %v6708_v60  ;;  %897 = vmatpush.msra.mxu3 %v752_v61  ;;  %v7009_v61 = vld [vmem:[%s14865_s2 + $0x418] sm:$0xff] }
  0x5a   :  { %849 = vmatpush.msrb.mxu0 %v527_v51  ;;  %870 = vmatpush.msrb.mxu1 %v647_v56  ;;  %v681_v51 = vld [vmem:[%s14865_s2 + $0x5a0] sm:$0xff] }
  0x5b   :  { %878 = vmatpush.msra.mxu2 %v6732_v0  ;;  %898 = vmatpush.msra.mxu3 %v6737_v1  ;;  %v545_v56 = vld [vmem:[%s14865_s2 + $0x160] sm:$0xff] }
  0x5c   :  { %850 = vmatpush.msrb.mxu0 %v6685_v55  ;;  %871 = vmatpush.msrb.mxu1 %v639_v59  ;;  %v7004_v59 = vld [vmem:[%s14865_s2 + $0x18] sm:$0xff] }
  0x5d   :  { %879 = vmatpush.msra.mxu2 %v6748_v2  ;;  %899 = vmatpush.msra.mxu3 %v6753_v3 }
  0x5e   :  { %4904 = vmatmul.msk.f32.gmra.mxu0 %vm73_vm0, %v6402_v37  ;;  %4916 = vmatmul.msk.f32.gmra.mxu2 %vm73_vm0, %v6279_v10 }
  0x5f   :  { %4912 = vmatmul.msk.f32.gmra.mxu1 %vm73_vm0, %v6402_v37  ;;  %4924 = vmatmul.msk.f32.gmra.mxu3 %vm73_vm0, %v6279_v10  ;;  %v6699_v10 = vld [vmem:[%s14865_s2 + $0x50] sm:$0xff] }
  0x60   :  { %851 = vmatpush.msrb.mxu0 %v6699_v10  ;;  %872 = vmatpush.msrb.mxu1 %v6722_v63 }
  0x61   :  { %900 = vmatpush.msra.mxu3 %v6765_v6 }
  0x62   :  { %852 = vmatpush.msrb.mxu0 %v6717_v62 }
  0x63   :  { %901 = vmatpush.msra.mxu3 %v6779_v8 }
  0x65   :  { %902 = vmatpush.msra.mxu3 %v6797_v12 }
  0x66   :  { %4905 = vmatmul.msk.f32.gmra.mxu0 %vm73_vm0, %v6254_v5  ;;  %4917 = vmatmul.msk.f32.gmra.mxu2 %vm73_vm0, %v6309_v16 }
  0x67   :  { %4913 = vmatmul.msk.f32.gmra.mxu1 %vm73_vm0, %v6254_v5  ;;  %4925 = vmatmul.msk.f32.gmra.mxu3 %vm73_vm0, %v6309_v16  ;;  %v6760_v16 = vld [vmem:[%s14865_s2 + $0x318] sm:$0xff] }
  0x68   :  { %880 = vmatpush.msra.mxu2 %v6760_v16 }
  0x6a   :  { %881 = vmatpush.msra.mxu2 %v6774_v7 }
  0x6c   :  { %882 = vmatpush.msra.mxu2 %v6792_v9 }
  0x6e   :  { %4906 = vmatmul.msk.f32.gmra.mxu0 %vm73_vm0, %v6284_v11  ;;  %4918 = vmatmul.msk.f32.gmra.mxu2 %vm73_vm0, %v6340_v23 }
  0x6f   :  { %4914 = vmatmul.msk.f32.gmra.mxu1 %vm73_vm0, %v6284_v11  ;;  %4926 = vmatmul.msk.f32.gmra.mxu3 %vm73_vm0, %v6340_v23  ;;  %v6809_v23 = vld [vmem:[%s14865_s2 + $0x658] sm:$0xff] }
  0x70   :  { %883 = vmatpush.msra.mxu2 %v6804_v13  ;;  %903 = vmatpush.msra.mxu3 %v6809_v23 }
  0x72   :  { %884 = vmatpush.msra.mxu2 %v6827_v18  ;;  %904 = vmatpush.msra.mxu3 %v6832_v19 }
  0x74   :  { %885 = vmatpush.msra.mxu2 %v6846_v22 }
  0x76   :  { %4919 = vmatmul.msk.f32.gmra.mxu2 %vm73_vm0, %v6371_v30  ;;  %773 = vmatmul.f32.vlgmr.msra.gmra.mxu0 %v14870_v17 }
  0x77   :  { %4927 = vmatmul.msk.f32.gmra.mxu3 %vm73_vm0, %v6371_v30  ;;  %793 = vmatmul.f32.vlgmr.msra.gmra.mxu1 %v14870_v17  ;;  %v6851_v30 = vld [vmem:[%s14865_s2 + $0x5d8] sm:$0xff] }
  0x78   :  { %917 = vmatpush.msra.mxu0 %v625_v14  ;;  %937 = vmatpush.msra.mxu1 %v753_v15  ;;  %v537_v15 = vld [vmem:[%s14865_s2 + $0x120] sm:$0xff] }
  0x79   :  { %905 = vmatpush.msra.mxu3 %v6851_v30  ;;  %886 = vmatpush.msra.mxu2 %v6864_v26 }
  0x7a   :  { %918 = vmatpush.msra.mxu0 %v617_v20  ;;  %938 = vmatpush.msra.mxu1 %v745_v21  ;;  %v665_v20 = vld [vmem:[%s14865_s2 + $0x520] sm:$0xff] }
  0x7b   :  { %906 = vmatpush.msra.mxu3 %v6869_v27  ;;  %887 = vmatpush.msra.mxu2 %v6894_v33  ;;  %v529_v21 = vld [vmem:[%s14865_s2 + $0xe0] sm:$0xff] }
  0x7c   :  { %919 = vmatpush.msra.mxu0 %v609_v24  ;;  %939 = vmatpush.msra.mxu1 %v737_v25  ;;  %v657_v24 = vld [vmem:[%s14865_s2 + $0x4e0] sm:$0xff] }
  0x7d   :  { %907 = vmatpush.msra.mxu3 %v6899_v34  ;;  %888 = vmatpush.msra.mxu2 %v6912_v36  ;;  %v521_v25 = vld [vmem:[%s14865_s2 + $0xa0] sm:$0xff] }
  0x7e   :  { %920 = vmatpush.msra.mxu0 %v601_v28  ;;  %940 = vmatpush.msra.mxu1 %v729_v29  ;;  %v649_v28 = vld [vmem:[%s14865_s2 + $0x4a0] sm:$0xff] }
  0x7f   :  { %4920 = vmatmul.msk.f32.gmra.mxu2 %vm73_vm0, %v6402_v37  ;;  %4928 = vmatmul.msk.f32.gmra.mxu3 %vm73_vm0, %v6402_v37  ;;  %v713_v37 = vld [vmem:[%s14865_s2 + $0x6a0] sm:$0xff] }
  0x80   :  { %853 = vmatmul.f32.vlgmr.msrb.gmra.mxu0 %v14870_v17  ;;  %873 = vmatmul.f32.vlgmr.msrb.gmra.mxu1 %v14870_v17 }
  0x81   :  { %921 = vmatpush.msra.mxu0 %v593_v31  ;;  %941 = vmatpush.msra.mxu1 %v721_v32  ;;  %v513_v32 = vld [vmem:[%s14865_s2 + $0x60] sm:$0xff] }
  0x82   :  { %908 = vmatpush.msra.mxu3 %v6917_v38  ;;  %889 = vmatpush.msra.mxu2 %v6932_v42 }
  0x83   :  { %922 = vmatpush.msra.mxu0 %v585_v35  ;;  %942 = vmatpush.msra.mxu1 %v713_v37  ;;  %v6927_v41 = vpop.f32.mrf.mxu0 }
  0x84   :  { %v6939_v44 = vpop.f32.mrf.mxu1  ;;  %909 = vmatpush.msra.mxu3 %v6937_v43  ;;  %890 = vmatpush.msra.mxu2 %v6960_v48 }
  0x85   :  { %923 = vmatpush.msra.mxu0 %v577_v39  ;;  %943 = vmatpush.msra.mxu1 %v705_v40  ;;  %v505_v39 = vld [vmem:[%s14865_s2 + $0x20] sm:$0xff] }
  0x86   :  { %910 = vmatpush.msra.mxu3 %v6965_v49  ;;  %891 = vmatpush.msra.mxu2 %v6982_v53  ;;  %v633_v40 = vld [vmem:[%s14865_s2 + $0x420] sm:$0xff] }
  0x87   :  { %924 = vmatpush.msra.mxu0 %v569_v45  ;;  %944 = vmatpush.msra.mxu1 %v697_v46  ;;  %v627_v45 = vld [vmem:[%s14865_s2 + $0x3f0] sm:$0xff] }
  0x88   :  { %4921 = vmatmul.msk.f32.gmra.mxu2 %vm73_vm0, %v6254_v5  ;;  %4929 = vmatmul.msk.f32.gmra.mxu3 %vm73_vm0, %v6254_v5  ;;  %v6987_v5 = vld [vmem:[%s14865_s2 + $0x458] sm:$0xff]  ;;  %v755_v46 = vld [vmem:[%s14865_s2 + $0x7f0] sm:$0xff] }
  0x89   :  { %925 = vmatpush.msra.mxu0 %v561_v47  ;;  %945 = vmatpush.msra.mxu1 %v689_v4  ;;  %v6977_v52 = vpop.f32.mrf.mxu2  ;;  %v7070_v47 = vld [vmem:[%s14865_s2 + $0x3e8] sm:$0xff] }
  0x8a   :  { %15480 = vst [vmem:[#allocation3_spill] sm:$0xff] %v6977_v52  ;;  %v6989_v54 = vpop.f32.mrf.mxu3  ;;  %911 = vmatpush.msra.mxu3 %v6987_v5  ;;  %892 = vmatpush.msra.mxu2 %v7004_v59  ;;  %v754_v4 = vld [vmem:[%s14865_s2 + $0x7e8] sm:$0xff] }
  0x8b   :  { %15481 = vst [vmem:[#allocation4_spill] sm:$0xff] %v6989_v54  ;;  %926 = vmatpush.msra.mxu0 %v553_v50  ;;  %946 = vmatpush.msra.mxu1 %v681_v51  ;;  %v6999_v58 = vpop.f32.mrf.mxu0  ;;  %v619_v50 = vld [vmem:[%s14865_s2 + $0x3b0] sm:$0xff]  ;;  %v698_v52 = vld [vmem:[%s14865_s2 + $0x628] sm:$0xff] }
  0x8c   :  { %15482 = vst [vmem:[#allocation5_spill] sm:$0xff] %v6999_v58  ;;  %v7011_v14 = vpop.f32.mrf.mxu1  ;;  %912 = vmatpush.msra.mxu3 %v7009_v61  ;;  %v747_v51 = vld [vmem:[%s14865_s2 + $0x7b0] sm:$0xff] }
  0x8d   :  { %15483 = vst [vmem:[#allocation6_spill] sm:$0xff] %v7011_v14  ;;  %927 = vmatpush.msra.mxu0 %v545_v56  ;;  %947 = vmatpush.msra.mxu1 %v673_v57  ;;  %v7088_v57 = vld [vmem:[%s14865_s2 + $0x3a8] sm:$0xff]  ;;  %v571_v54 = vld [vmem:[%s14865_s2 + $0x230] sm:$0xff] }
  0x8e   :  { %v7330_v14 = vld [vmem:[%s14865_s2 + $0x28] sm:$0xff] }
  0x8f   :  { %928 = vmatpush.msra.mxu0 %v537_v15  ;;  %948 = vmatpush.msra.mxu1 %v665_v20  ;;  %v746_v15 = vld [vmem:[%s14865_s2 + $0x7a8] sm:$0xff]  ;;  %15503 = vst [vmem:[#allocation26_spill] sm:$0xff] %v7330_v14 }
  0x90   :  { %4922 = vmatmul.msk.f32.gmra.mxu2 %vm73_vm0, %v6284_v11  ;;  %4930 = vmatmul.msk.f32.gmra.mxu3 %vm73_vm0, %v6284_v11  ;;  %v641_v11 = vld [vmem:[%s14865_s2 + $0x460] sm:$0xff] }
  0x91   :  { %929 = vmatpush.msra.mxu0 %v529_v21  ;;  %949 = vmatpush.msra.mxu1 %v657_v24  ;;  %v7039_v29 = vpop.f32.mrf.mxu2  ;;  %v611_v21 = vld [vmem:[%s14865_s2 + $0x370] sm:$0xff] }
  0x92   :  { %15484 = vst [vmem:[#allocation7_spill] sm:$0xff] %v7039_v29  ;;  %v7041_v31 = vpop.f32.mrf.mxu3  ;;  %v739_v24 = vld [vmem:[%s14865_s2 + $0x770] sm:$0xff]  ;;  %v7179_v29 = vld [vmem:[%s14865_s2 + $0x268] sm:$0xff] }
  0x93   :  { %15485 = vst [vmem:[#allocation8_spill] sm:$0xff] %v7041_v31  ;;  %930 = vmatpush.msra.mxu0 %v521_v25  ;;  %950 = vmatpush.msra.mxu1 %v649_v28  ;;  %v7049_v35 = vpop.f32.mrf.mxu0  ;;  %v7107_v28 = vld [vmem:[%s14865_s2 + $0x368] sm:$0xff] }
  0x94   :  { %15486 = vst [vmem:[#allocation9_spill] sm:$0xff] %v7049_v35  ;;  %v7051_v37 = vpop.f32.mrf.mxu1  ;;  %v523_v35 = vld [vmem:[%s14865_s2 + $0xb0] sm:$0xff] }
  0x95   :  { %15487 = vst [vmem:[#allocation10_spill] sm:$0xff] %v7051_v37  ;;  %931 = vmatpush.msra.mxu0 %v513_v32  ;;  %951 = vmatpush.msra.mxu1 %v641_v11  ;;  %v738_v32 = vld [vmem:[%s14865_s2 + $0x768] sm:$0xff] }
  0x96   :  { %v658_v37 = vld [vmem:[%s14865_s2 + $0x4e8] sm:$0xff] }
  0x97   :  { %932 = vmatpush.msra.mxu0 %v505_v39  ;;  %952 = vmatpush.msra.mxu1 %v633_v40  ;;  %v603_v39 = vld [vmem:[%s14865_s2 + $0x330] sm:$0xff] }
  0x98   :  { %933 = vmatmul.f32.vlgmr.msra.gmra.mxu0 %v14870_v17  ;;  %953 = vmatmul.f32.vlgmr.msra.gmra.mxu1 %v14870_v17  ;;  %v731_v40 = vld [vmem:[%s14865_s2 + $0x730] sm:$0xff] }
  0x99   :  { %997 = vmatpush.msrb.mxu0 %v627_v45  ;;  %1017 = vmatpush.msrb.mxu1 %v755_v46  ;;  %v7081_v56 = vpop.f32.mrf.mxu2  ;;  %v7124_v45 = vld [vmem:[%s14865_s2 + $0x328] sm:$0xff] }
  0x9a   :  { %813 = vmatmul.f32.vlgmr.msrb.gmra.mxu2 %v14870_v17  ;;  %833 = vmatmul.f32.vlgmr.msrb.gmra.mxu3 %v14870_v17  ;;  %v7093_v20 = vpop.f32.mrf.mxu3  ;;  %v730_v46 = vld [vmem:[%s14865_s2 + $0x728] sm:$0xff] }
  0x9b   :  { %957 = vmatpush.msrb.mxu2 %v7070_v47  ;;  %977 = vmatpush.msrb.mxu3 %v754_v4  ;;  %v7102_v25 = vpop.f32.mrf.mxu0  ;;  %v595_v4 = vld [vmem:[%s14865_s2 + $0x2f0] sm:$0xff] }
  0x9c   :  { %15488 = vst [vmem:[#allocation11_spill] sm:$0xff] %v7102_v25  ;;  %998 = vmatpush.msrb.mxu0 %v619_v50  ;;  %1018 = vmatpush.msrb.mxu1 %v747_v51  ;;  %v7112_v11 = vpop.f32.mrf.mxu1  ;;  %v723_v50 = vld [vmem:[%s14865_s2 + $0x6f0] sm:$0xff]  ;;  %v7140_v51 = vld [vmem:[%s14865_s2 + $0x2e8] sm:$0xff] }
  0x9d   :  { %15489 = vst [vmem:[#allocation12_spill] sm:$0xff] %v7112_v11  ;;  %958 = vmatpush.msrb.mxu2 %v7088_v57  ;;  %978 = vmatpush.msrb.mxu3 %v746_v15  ;;  %v722_v15 = vld [vmem:[%s14865_s2 + $0x6e8] sm:$0xff]  ;;  %v547_v25 = vld [vmem:[%s14865_s2 + $0x170] sm:$0xff] }
  0x9e   :  { %999 = vmatpush.msrb.mxu0 %v611_v21  ;;  %1019 = vmatpush.msrb.mxu1 %v739_v24  ;;  %v587_v24 = vld [vmem:[%s14865_s2 + $0x2b0] sm:$0xff]  ;;  %v7228_v11 = vld [vmem:[%s14865_s2 + $0x1a8] sm:$0xff] }
  0x9f   :  { %959 = vmatpush.msrb.mxu2 %v7107_v28  ;;  %979 = vmatpush.msrb.mxu3 %v738_v32  ;;  %v715_v32 = vld [vmem:[%s14865_s2 + $0x6b0] sm:$0xff] }
  0xa0   :  { %1000 = vmatpush.msrb.mxu0 %v603_v39  ;;  %1020 = vmatpush.msrb.mxu1 %v731_v40  ;;  %v7160_v40 = vld [vmem:[%s14865_s2 + $0x2a8] sm:$0xff] }
  0xa1   :  { %960 = vmatpush.msrb.mxu2 %v7124_v45  ;;  %980 = vmatpush.msrb.mxu3 %v730_v46  ;;  %v7145_v21 = vpop.f32.mrf.mxu2  ;;  %v714_v46 = vld [vmem:[%s14865_s2 + $0x6a8] sm:$0xff] }
  0xa2   :  { %15490 = vst [vmem:[#allocation13_spill] sm:$0xff] %v7145_v21  ;;  %1001 = vmatpush.msrb.mxu0 %v595_v4  ;;  %1021 = vmatpush.msrb.mxu1 %v723_v50  ;;  %v7153_v39 = vpop.f32.mrf.mxu3  ;;  %v579_v50 = vld [vmem:[%s14865_s2 + $0x270] sm:$0xff] }
  0xa3   :  { %15491 = vst [vmem:[#allocation14_spill] sm:$0xff] %v7153_v39  ;;  %893 = vmatmul.f32.vlgmr.msra.gmra.mxu2 %v14870_v17  ;;  %913 = vmatmul.f32.vlgmr.msra.gmra.mxu3 %v14870_v17  ;;  %v7165_v4 = vpop.f32.mrf.mxu0  ;;  %v707_v17 = vld [vmem:[%s14865_s2 + $0x670] sm:$0xff]  ;;  %v7296_v39 = vld [vmem:[%s14865_s2 + $0xa8] sm:$0xff] }
  0xa4   :  { %15492 = vst [vmem:[#allocation15_spill] sm:$0xff] %v7165_v4  ;;  %961 = vmatpush.msrb.mxu2 %v7140_v51  ;;  %981 = vmatpush.msrb.mxu3 %v722_v15  ;;  %v7174_v31 = vpop.f32.mrf.mxu1  ;;  %v706_v15 = vld [vmem:[%s14865_s2 + $0x668] sm:$0xff]  ;;  %v555_v4 = vld [vmem:[%s14865_s2 + $0x1b0] sm:$0xff] }
  0xa5   :  { %15493 = vst [vmem:[#allocation16_spill] sm:$0xff] %v7174_v31  ;;  %1002 = vmatpush.msrb.mxu0 %v587_v24  ;;  %1022 = vmatpush.msrb.mxu1 %v715_v32  ;;  %v699_v24 = vld [vmem:[%s14865_s2 + $0x630] sm:$0xff]  ;;  %v7194_v32 = vld [vmem:[%s14865_s2 + $0x228] sm:$0xff] }
  0xa6   :  { %962 = vmatpush.msrb.mxu2 %v7160_v40  ;;  %982 = vmatpush.msrb.mxu3 %v714_v46  ;;  %v563_v46 = vld [vmem:[%s14865_s2 + $0x1f0] sm:$0xff]  ;;  %v690_v31 = vld [vmem:[%s14865_s2 + $0x5e8] sm:$0xff]  ;;  %15501 = vst [vmem:[#allocation24_spill] sm:$0xff] %v7296_v39 }
  0xa7   :  { %1003 = vmatpush.msrb.mxu0 %v579_v50  ;;  %1023 = vmatpush.msrb.mxu1 %v707_v17  ;;  %v691_v17 = vld [vmem:[%s14865_s2 + $0x5f0] sm:$0xff]  ;;  %v7209_v50 = vld [vmem:[%s14865_s2 + $0x1e8] sm:$0xff] }
  0xa8   :  { %963 = vmatpush.msrb.mxu2 %v7179_v29  ;;  %983 = vmatpush.msrb.mxu3 %v706_v15  ;;  %v507_v21 = vld [vmem:[%s14865_s2 + $0x30] sm:$0xff] }
  0xa9   :  { %1004 = vmatpush.msrb.mxu0 %v571_v54  ;;  %1024 = vmatpush.msrb.mxu1 %v699_v24  ;;  %v7214_v15 = vpop.f32.mrf.mxu2  ;;  %v683_v54 = vld [vmem:[%s14865_s2 + $0x5b0] sm:$0xff] }
  0xaa   :  { %15494 = vst [vmem:[#allocation17_spill] sm:$0xff] %v7214_v15  ;;  %964 = vmatpush.msrb.mxu2 %v7194_v32  ;;  %984 = vmatpush.msrb.mxu3 %v698_v52  ;;  %v7223_v24 = vpop.f32.mrf.mxu3  ;;  %v682_v52 = vld [vmem:[%s14865_s2 + $0x5a8] sm:$0xff] }
  0xab   :  { %15495 = vst [vmem:[#allocation18_spill] sm:$0xff] %v7223_v24  ;;  %1005 = vmatpush.msrb.mxu0 %v563_v46  ;;  %1025 = vmatpush.msrb.mxu1 %v691_v17  ;;  %v675_v46 = vld [vmem:[%s14865_s2 + $0x570] sm:$0xff]  ;;  %v7240_v17 = vpop.f32.mrf.mxu0  ;;  %v7245_v24 = vld [vmem:[%s14865_s2 + $0x168] sm:$0xff] }
  0xac   :  { %965 = vmatpush.msrb.mxu2 %v7209_v50  ;;  %985 = vmatpush.msrb.mxu3 %v690_v31  ;;  %15496 = vst [vmem:[#allocation19_spill] sm:$0xff] %v7240_v17  ;;  %v674_v31 = vld [vmem:[%s14865_s2 + $0x568] sm:$0xff]  ;;  %v7250_v15 = vpop.f32.mrf.mxu1  ;;  %v539_v17 = vld [vmem:[%s14865_s2 + $0x130] sm:$0xff] }
  0xad   :  { %1006 = vmatpush.msrb.mxu0 %v555_v4  ;;  %1026 = vmatpush.msrb.mxu1 %v683_v54  ;;  %15497 = vst [vmem:[#allocation20_spill] sm:$0xff] %v7250_v15  ;;  %v667_v4 = vld [vmem:[%s14865_s2 + $0x530] sm:$0xff]  ;;  %v7262_v54 = vld [vmem:[%s14865_s2 + $0x128] sm:$0xff] }
  0xae   :  { %966 = vmatpush.msrb.mxu2 %v7228_v11  ;;  %986 = vmatpush.msrb.mxu3 %v682_v52  ;;  %v666_v15 = vld [vmem:[%s14865_s2 + $0x528] sm:$0xff]  ;;  %v531_v52 = vld [vmem:[%s14865_s2 + $0xf0] sm:$0xff] }
  0xaf   :  { %1007 = vmatpush.msrb.mxu0 %v547_v25  ;;  %1027 = vmatpush.msrb.mxu1 %v675_v46  ;;  %v659_v25 = vld [vmem:[%s14865_s2 + $0x4f0] sm:$0xff]  ;;  %v7277_v46 = vld [vmem:[%s14865_s2 + $0xe8] sm:$0xff] }
  0xb0   :  { %967 = vmatpush.msrb.mxu2 %v7245_v24  ;;  %987 = vmatpush.msrb.mxu3 %v674_v31  ;;  %15498 = vst [vmem:[#allocation21_spill] sm:$0xff] %v7277_v46 }
  0xb1   :  { %1008 = vmatpush.msrb.mxu0 %v539_v17  ;;  %1028 = vmatpush.msrb.mxu1 %v667_v4  ;;  %v7282_v31 = vpop.f32.mrf.mxu2  ;;  %v651_v17 = vld [vmem:[%s14865_s2 + $0x4b0] sm:$0xff] }
  0xb2   :  { %15499 = vst [vmem:[#allocation22_spill] sm:$0xff] %v7282_v31  ;;  %968 = vmatpush.msrb.mxu2 %v7262_v54  ;;  %988 = vmatpush.msrb.mxu3 %v666_v15  ;;  %v7291_v4 = vpop.f32.mrf.mxu3  ;;  %v650_v15 = vld [vmem:[%s14865_s2 + $0x4a8] sm:$0xff]  ;;  %v515_v31 = vld [vmem:[%s14865_s2 + $0x70] sm:$0xff] }
  0xb3   :  { %15500 = vst [vmem:[#allocation23_spill] sm:$0xff] %v7291_v4  ;;  %1009 = vmatpush.msrb.mxu0 %v531_v52  ;;  %1029 = vmatpush.msrb.mxu1 %v659_v25  ;;  %v643_v52 = vld [vmem:[%s14865_s2 + $0x470] sm:$0xff]  ;;  %v7311_v25 = vld [vmem:[%s14865_s2 + $0x68] sm:$0xff] }
  0xb4   :  { %969 = vmatpush.msrb.mxu2 %v7277_v46  ;;  %989 = vmatpush.msrb.mxu3 %v658_v37  ;;  %15502 = vst [vmem:[#allocation25_spill] sm:$0xff] %v7311_v25  ;;  %v642_v4 = vld [vmem:[%s14865_s2 + $0x468] sm:$0xff]  ;;  %v7317_v37 = vpop.f32.mrf.mxu0 }
  0xb5   :  { %1010 = vmatpush.msrb.mxu0 %v523_v35  ;;  %1030 = vmatpush.msrb.mxu1 %v651_v17  ;;  %v635_v35 = vld [vmem:[%s14865_s2 + $0x430] sm:$0xff]  ;;  %v7325_v17 = vpop.f32.mrf.mxu1 }
  0xb6   :  { %970 = vmatpush.msrb.mxu2 %v7296_v39  ;;  %990 = vmatpush.msrb.mxu3 %v650_v15  ;;  %v634_v15 = vld [vmem:[%s14865_s2 + $0x428] sm:$0xff] }
  0xb7   :  { %1011 = vmatpush.msrb.mxu0 %v515_v31  ;;  %1031 = vmatpush.msrb.mxu1 %v643_v52  ;;  %v7342_v31 = vld [vmem:[%s14865_s2 + $0x3f8] sm:$0xff] }
  0xb8   :  { %971 = vmatpush.msrb.mxu2 %v7311_v25  ;;  %991 = vmatpush.msrb.mxu3 %v642_v4  ;;  %15505 = vst [vmem:[#allocation28_spill] sm:$0xff] %v7342_v31  ;;  %v756_v52 = vld [vmem:[%s14865_s2 + $0x7f8] sm:$0xff]  ;;  %v15507_v25 = vmov 0.0  }
  0xb9   :  { %1012 = vmatpush.msrb.mxu0 %v507_v21  ;;  %1032 = vmatpush.msrb.mxu1 %v635_v35  ;;  %v7336_v58 = vpop.f32.mrf.mxu2  ;;  %v7356_v21 = vld [vmem:[%s14865_s2 + $0x3b8] sm:$0xff] }
  0xba   :  { %15504 = vst [vmem:[#allocation27_spill] sm:$0xff] %v7336_v58  ;;  %972 = vmatpush.msrb.mxu2 %v7330_v14  ;;  %992 = vmatpush.msrb.mxu3 %v634_v15  ;;  %v7347_v39 = vpop.f32.mrf.mxu3  ;;  %v748_v4 = vld [vmem:[%s14865_s2 + $0x7b8] sm:$0xff] }
  0xbb   :  { %15506 = vst [vmem:[#allocation29_spill] sm:$0xff] %v7347_v39  ;;  %1013 = vmatmul.f32.vlgmr.msrb.gmra.mxu0 %v15507_v25  ;;  %1033 = vmatmul.f32.vlgmr.msrb.gmra.mxu1 %v15507_v25  ;;  %v7365_v35 = vld [vmem:[%s14865_s2 + $0x378] sm:$0xff]  ;;  %v7373_v39 = vld [vmem:[%s14865_s2 + $0x3c0] sm:$0xff] }
  0xbc   :  { %973 = vmatmul.f32.vlgmr.msrb.gmra.mxu2 %v15507_v25  ;;  %993 = vmatmul.f32.vlgmr.msrb.gmra.mxu3 %v15507_v25  ;;  %15508 = vst [vmem:[#allocation30_spill] sm:$0xff] %v7356_v21  ;;  %v740_v15 = vld [vmem:[%s14865_s2 + $0x778] sm:$0xff]  ;;  %v7380_v58 = vpop.f32.mrf.mxu0 }
  0xbd   :  { %1037 = vmatpush.msra.mxu2 %v7342_v31  ;;  %1057 = vmatpush.msra.mxu3 %v756_v52  ;;  %15509 = vst [vmem:[#allocation31_spill] sm:$0xff] %v7373_v39  ;;  %v5246_v52 = vld [vmem:[%s14865_s2 + $0x7c0] sm:$0xff]  ;;  %v7385_v31 = vld [vmem:[%s14865_s2 + $0x338] sm:$0xff] }
  0xbe   :  { %1222 = vmatpush.msra.mxu0 %v7373_v39  ;;  %1242 = vmatpush.msra.mxu1 %v5246_v52  ;;  %15510 = vst [vmem:[#allocation32_spill] sm:$0xff] %v7380_v58  ;;  %v732_v14 = vld [vmem:[%s14865_s2 + $0x738] sm:$0xff]  ;;  %v7393_v39 = vld [vmem:[%s14865_s2 + $0x380] sm:$0xff]  ;;  %v7400_v52 = vpop.f32.mrf.mxu1 }
  0xbf   :  { %1038 = vmatpush.msra.mxu2 %v7356_v21  ;;  %1058 = vmatpush.msra.mxu3 %v748_v4  ;;  %15511 = vst [vmem:[#allocation33_spill] sm:$0xff] %v7385_v31  ;;  %v5248_v4 = vld [vmem:[%s14865_s2 + $0x780] sm:$0xff]  ;;  %v7407_v21 = vld [vmem:[%s14865_s2 + $0x2f8] sm:$0xff] }
  0xc0   :  { %15512 = vst [vmem:[#allocation34_spill] sm:$0xff] %v7393_v39  ;;  %1223 = vmatpush.msra.mxu0 %v7393_v39  ;;  %1243 = vmatpush.msra.mxu1 %v5248_v4  ;;  %v724_v39 = vld [vmem:[%s14865_s2 + $0x6f8] sm:$0xff]  ;;  %v7417_v4 = vld [vmem:[%s14865_s2 + $0x340] sm:$0xff] }
  0xc1   :  { %1039 = vmatpush.msra.mxu2 %v7365_v35  ;;  %1059 = vmatpush.msra.mxu3 %v740_v15  ;;  %15513 = vst [vmem:[#allocation35_spill] sm:$0xff] %v7400_v52  ;;  %v7402_v58 = vpop.f32.mrf.mxu2  ;;  %v5250_v15 = vld [vmem:[%s14865_s2 + $0x740] sm:$0xff] }
  0xc2   :  { %15514 = vst [vmem:[#allocation36_spill] sm:$0xff] %v7402_v58  ;;  %v7412_v46 = vpop.f32.mrf.mxu3  ;;  %1224 = vmatpush.msra.mxu0 %v7417_v4  ;;  %1244 = vmatpush.msra.mxu1 %v5250_v15  ;;  %v7427_v58 = vld [vmem:[%s14865_s2 + $0x2b8] sm:$0xff]  ;;  %v7435_v52 = vld [vmem:[%s14865_s2 + $0x300] sm:$0xff] }
  0xc3   :  { %15515 = vst [vmem:[#allocation37_spill] sm:$0xff] %v7407_v21  ;;  %1040 = vmatpush.msra.mxu2 %v7385_v31  ;;  %1060 = vmatpush.msra.mxu3 %v732_v14  ;;  %v5252_v14 = vld [vmem:[%s14865_s2 + $0x700] sm:$0xff]  ;;  %v7445_v15 = vld [vmem:[%s14865_s2 + $0x278] sm:$0xff] }
  0xc4   :  { %15516 = vst [vmem:[#allocation38_spill] sm:$0xff] %v7412_v46  ;;  %v716_v46 = vld [vmem:[%s14865_s2 + $0x6b8] sm:$0xff]  ;;  %1225 = vmatpush.msra.mxu0 %v7435_v52  ;;  %1245 = vmatpush.msra.mxu1 %v5252_v14 }
  0xc5   :  { %15517 = vst [vmem:[#allocation39_spill] sm:$0xff] %v7417_v4  ;;  %1041 = vmatpush.msra.mxu2 %v7407_v21  ;;  %1061 = vmatpush.msra.mxu3 %v724_v39  ;;  %v708_v4 = vld [vmem:[%s14865_s2 + $0x678] sm:$0xff]  ;;  %v5254_v39 = vld [vmem:[%s14865_s2 + $0x6c0] sm:$0xff] }
  0xc6   :  { %15518 = vst [vmem:[#allocation40_spill] sm:$0xff] %v7427_v58  ;;  %1246 = vmatpush.msra.mxu1 %v5254_v39  ;;  %v7463_v14 = vld [vmem:[%s14865_s2 + $0x238] sm:$0xff] }
  0xc7   :  { %15519 = vst [vmem:[#allocation41_spill] sm:$0xff] %v7435_v52  ;;  %v7453_v52 = vld [vmem:[%s14865_s2 + $0x2c0] sm:$0xff]  ;;  %1042 = vmatpush.msra.mxu2 %v7427_v58  ;;  %1062 = vmatpush.msra.mxu3 %v716_v46  ;;  %v7468_v21 = vld [vmem:[%s14865_s2 + $0x638] sm:$0xff] }
  0xc8   :  { %15520 = vst [vmem:[#allocation42_spill] sm:$0xff] %v7445_v15  ;;  %1226 = vmatpush.msra.mxu0 %v7453_v52  ;;  %v5256_v46 = vld [vmem:[%s14865_s2 + $0x680] sm:$0xff]  ;;  %v7485_v58 = vld [vmem:[%s14865_s2 + $0x1f8] sm:$0xff] }
  0xc9   :  { %15521 = vst [vmem:[#allocation43_spill] sm:$0xff] %v7453_v52  ;;  %v7473_v52 = vld [vmem:[%s14865_s2 + $0x280] sm:$0xff]  ;;  %1247 = vmatpush.msra.mxu1 %v5256_v46  ;;  %1043 = vmatpush.msra.mxu2 %v7445_v15  ;;  %v7480_v39 = vpop.f32.mrf.mxu2  ;;  %v7490_v31 = vld [vmem:[%s14865_s2 + $0x5f8] sm:$0xff]  ;;  %v7505_v15 = vpop.f32.mrf.mxu1 }
  0xca   :  { %15522 = vst [vmem:[#allocation44_spill] sm:$0xff] %v7463_v14  ;;  %1227 = vmatpush.msra.mxu0 %v7473_v52  ;;  %1063 = vmatpush.msra.mxu3 %v708_v4  ;;  %v7497_v46 = vld [vmem:[%s14865_s2 + $0x240] sm:$0xff] }
  0xcb   :  { %15523 = vst [vmem:[#allocation45_spill] sm:$0xff] %v7468_v21  ;;  %v5258_v4 = vld [vmem:[%s14865_s2 + $0x640] sm:$0xff]  ;;  %1044 = vmatpush.msra.mxu2 %v7463_v14  ;;  %v7600_v14 = vld [vmem:[%s14865_s2 + $0xb8] sm:$0xff] }
  0xcc   :  { %15524 = vst [vmem:[#allocation46_spill] sm:$0xff] %v7473_v52  ;;  %v7492_v52 = vpop.f32.mrf.mxu3  ;;  %1228 = vmatpush.msra.mxu0 %v7497_v46  ;;  %1248 = vmatpush.msra.mxu1 %v5258_v4  ;;  %v7522_v4 = vld [vmem:[%s14865_s2 + $0x200] sm:$0xff] }
  0xcd   :  { %15525 = vst [vmem:[#allocation47_spill] sm:$0xff] %v7480_v39  ;;  %v7503_v39 = vpop.f32.mrf.mxu0  ;;  %1064 = vmatpush.msra.mxu3 %v7468_v21  ;;  %1045 = vmatpush.msra.mxu2 %v7485_v58  ;;  %v7538_v21 = vld [vmem:[%s14865_s2 + $0x578] sm:$0xff] }
  0xce   :  { %15526 = vst [vmem:[#allocation48_spill] sm:$0xff] %v7485_v58  ;;  %1229 = vmatpush.msra.mxu0 %v7522_v4  ;;  %v7559_v58 = vld [vmem:[%s14865_s2 + $0x538] sm:$0xff] }
  0xcf   :  { %15527 = vst [vmem:[#allocation49_spill] sm:$0xff] %v7490_v31  ;;  %1065 = vmatpush.msra.mxu3 %v7490_v31  ;;  %v7554_v31 = vld [vmem:[%s14865_s2 + $0x138] sm:$0xff] }
  0xd0   :  { %15528 = vst [vmem:[#allocation50_spill] sm:$0xff] %v7492_v52  ;;  %v7512_v52 = vld [vmem:[%s14865_s2 + $0x1b8] sm:$0xff] }
  0xd1   :  { %15529 = vst [vmem:[#allocation51_spill] sm:$0xff] %v7497_v46  ;;  %v7517_v46 = vld [vmem:[%s14865_s2 + $0x5b8] sm:$0xff]  ;;  %1046 = vmatpush.msra.mxu2 %v7512_v52 }
  0xd2   :  { %15530 = vst [vmem:[#allocation52_spill] sm:$0xff] %v7503_v39  ;;  %v7533_v39 = vld [vmem:[%s14865_s2 + $0x178] sm:$0xff]  ;;  %1066 = vmatpush.msra.mxu3 %v7517_v46 }
  0xd3   :  { %15531 = vst [vmem:[#allocation53_spill] sm:$0xff] %v7505_v15  ;;  %v5260_v15 = vld [vmem:[%s14865_s2 + $0x600] sm:$0xff]  ;;  %1047 = vmatpush.msra.mxu2 %v7533_v39 }
  0xd4   :  { %15532 = vst [vmem:[#allocation54_spill] sm:$0xff] %v7512_v52  ;;  %1249 = vmatpush.msra.mxu1 %v5260_v15  ;;  %v5262_v15 = vld [vmem:[%s14865_s2 + $0x5c0] sm:$0xff]  ;;  %1067 = vmatpush.msra.mxu3 %v7538_v21  ;;  %v7580_v52 = vld [vmem:[%s14865_s2 + $0x4f8] sm:$0xff] }
  0xd5   :  { %15533 = vst [vmem:[#allocation55_spill] sm:$0xff] %v7517_v46  ;;  %v7575_v46 = vld [vmem:[%s14865_s2 + $0xf8] sm:$0xff]  ;;  %1048 = vmatpush.msra.mxu2 %v7554_v31 }
  0xd6   :  { %15534 = vst [vmem:[#allocation56_spill] sm:$0xff] %v7522_v4  ;;  %v7543_v4 = vld [vmem:[%s14865_s2 + $0x1c0] sm:$0xff]  ;;  %1250 = vmatpush.msra.mxu1 %v5262_v15  ;;  %1068 = vmatpush.msra.mxu3 %v7559_v58 }
  0xd7   :  { %15535 = vst [vmem:[#allocation57_spill] sm:$0xff] %v7533_v39  ;;  %1230 = vmatpush.msra.mxu0 %v7543_v4  ;;  %v5264_v15 = vld [vmem:[%s14865_s2 + $0x580] sm:$0xff]  ;;  %v7595_v39 = vpop.f32.mrf.mxu3  ;;  %1049 = vmatpush.msra.mxu2 %v7575_v46 }
  0xd8   :  { %15536 = vst [vmem:[#allocation58_spill] sm:$0xff] %v7538_v21  ;;  %1251 = vmatpush.msra.mxu1 %v5264_v15  ;;  %v5266_v15 = vld [vmem:[%s14865_s2 + $0x540] sm:$0xff]  ;;  %v7593_v21 = vpop.f32.mrf.mxu2  ;;  %1069 = vmatpush.msra.mxu3 %v7580_v52 }
  0xd9   :  { %15537 = vst [vmem:[#allocation59_spill] sm:$0xff] %v7543_v4  ;;  %v7564_v4 = vld [vmem:[%s14865_s2 + $0x180] sm:$0xff]  ;;  %1050 = vmatpush.msra.mxu2 %v7600_v14 }
  0xda   :  { %15538 = vst [vmem:[#allocation60_spill] sm:$0xff] %v7554_v31  ;;  %1231 = vmatpush.msra.mxu0 %v7564_v4  ;;  %1252 = vmatpush.msra.mxu1 %v5266_v15  ;;  %v7610_v15 = vld [vmem:[%s14865_s2 + $0x100] sm:$0xff]  ;;  %v7625_v31 = vld [vmem:[%s14865_s2 + $0x78] sm:$0xff] }
  0xdb   :  { %15539 = vst [vmem:[#allocation61_spill] sm:$0xff] %v7559_v58  ;;  %v7618_v58 = vpop.f32.mrf.mxu1  ;;  %1051 = vmatpush.msra.mxu2 %v7625_v31 }
  0xdc   :  { %15540 = vst [vmem:[#allocation62_spill] sm:$0xff] %v7564_v4  ;;  %v7585_v4 = vld [vmem:[%s14865_s2 + $0x140] sm:$0xff] }
  0xdd   :  { %15541 = vst [vmem:[#allocation63_spill] sm:$0xff] %v7580_v52  ;;  %1232 = vmatpush.msra.mxu0 %v7585_v4  ;;  %v7651_v52 = vld [vmem:[%s14865_s2 + $0x438] sm:$0xff] }
  0xde   :  { %15542 = vst [vmem:[#allocation64_spill] sm:$0xff] %v7585_v4  ;;  %v7605_v4 = vld [vmem:[%s14865_s2 + $0x4b8] sm:$0xff] }
  0xdf   :  { %15543 = vst [vmem:[#allocation65_spill] sm:$0xff] %v7593_v21  ;;  %1233 = vmatpush.msra.mxu0 %v7610_v15  ;;  %v7616_v21 = vpop.f32.mrf.mxu0  ;;  %1070 = vmatpush.msra.mxu3 %v7605_v4 }
  0xe0   :  { %15544 = vst [vmem:[#allocation66_spill] sm:$0xff] %v7595_v39  ;;  %v5268_v39 = vld [vmem:[%s14865_s2 + $0x500] sm:$0xff] }
  0xe1   :  { %15545 = vst [vmem:[#allocation67_spill] sm:$0xff] %v7605_v4  ;;  %1253 = vmatpush.msra.mxu1 %v5268_v39  ;;  %v7635_v39 = vld [vmem:[%s14865_s2 + $0xc0] sm:$0xff] }
  0xe2   :  { %15546 = vst [vmem:[#allocation68_spill] sm:$0xff] %v7610_v15  ;;  %v7630_v15 = vld [vmem:[%s14865_s2 + $0x478] sm:$0xff]  ;;  %1234 = vmatpush.msra.mxu0 %v7635_v39  ;;  %v7667_v4 = vld [vmem:[%s14865_s2 + $0x40] sm:$0xff] }
  0xe3   :  { %15547 = vst [vmem:[#allocation69_spill] sm:$0xff] %v7616_v21  ;;  %v7646_v21 = vld [vmem:[%s14865_s2 + $0x38] sm:$0xff]  ;;  %1071 = vmatpush.msra.mxu3 %v7630_v15 }
  0xe4   :  { %15548 = vst [vmem:[#allocation70_spill] sm:$0xff] %v7618_v58  ;;  %v5270_v58 = vld [vmem:[%s14865_s2 + $0x4c0] sm:$0xff]  ;;  %1052 = vmatpush.msra.mxu2 %v7646_v21 }
  0xe5   :  { %15549 = vst [vmem:[#allocation71_spill] sm:$0xff] %v7630_v15  ;;  %1254 = vmatpush.msra.mxu1 %v5270_v58  ;;  %v5272_v58 = vld [vmem:[%s14865_s2 + $0x480] sm:$0xff]  ;;  %1072 = vmatpush.msra.mxu3 %v7651_v52  ;;  %v7679_v15 = vpop.f32.mrf.mxu3 }
  0xe6   :  { %15550 = vst [vmem:[#allocation72_spill] sm:$0xff] %v7635_v39  ;;  %v7656_v39 = vld [vmem:[%s14865_s2 + $0x80] sm:$0xff]  ;;  %1053 = vmatmul.f32.vlgmr.msra.gmra.mxu2 %v15507_v25  ;;  %1073 = vmatmul.f32.vlgmr.msra.gmra.mxu3 %v15507_v25  ;;  %v7696_v25 = vld [vmem:[%s14865_s2 + $0x3d0] sm:$0xff] }
  0xe7   :  { %15551 = vst [vmem:[#allocation73_spill] sm:$0xff] %v7646_v21  ;;  %1235 = vmatpush.msra.mxu0 %v7656_v39  ;;  %1255 = vmatpush.msra.mxu1 %v5272_v58  ;;  %v7677_v58 = vpop.f32.mrf.mxu2  ;;  %v7707_v21 = vpop.f32.mrf.mxu1 }
  0xe8   :  { %15552 = vst [vmem:[#allocation74_spill] sm:$0xff] %v7651_v52  ;;  %v7702_v52 = vld [vmem:[%s14865_s2 + $0x7c8] sm:$0xff] }
  0xe9   :  { %15553 = vst [vmem:[#allocation75_spill] sm:$0xff] %v7656_v39  ;;  %1236 = vmatpush.msra.mxu0 %v7667_v4  ;;  %v5274_v39 = vld [vmem:[%s14865_s2 + $0x440] sm:$0xff]  ;;  %1282 = vmatpush.msrb.mxu3 %v7702_v52 }
  0xea   :  { %15554 = vst [vmem:[#allocation76_spill] sm:$0xff] %v7667_v4  ;;  %1256 = vmatpush.msra.mxu1 %v5274_v39  ;;  %v7684_v4 = vld [vmem:[%s14865_s2 + $0x3c8] sm:$0xff]  ;;  %v7690_v39 = vld [vmem:[%s14865_s2] sm:$0xff] }
  0xeb   :  { %15555 = vst [vmem:[#allocation77_spill] sm:$0xff] %v7684_v4  ;;  %1262 = vmatpush.msrb.mxu2 %v7684_v4  ;;  %1237 = vmatpush.msra.mxu0 %v7690_v39  ;;  %v7705_v4 = vpop.f32.mrf.mxu0 }
  0xec   :  { %15556 = vst [vmem:[#allocation78_spill] sm:$0xff] %v7690_v39  ;;  %v7712_v39 = vld [vmem:[%s14865_s2 + $0x388] sm:$0xff] }
  0xed   :  { %15557 = vst [vmem:[#allocation79_spill] sm:$0xff] %v7696_v25  ;;  %1302 = vmatpush.msrb.mxu0 %v7696_v25  ;;  %1263 = vmatpush.msrb.mxu2 %v7712_v39  ;;  %v5280_v25 = vld [vmem:[%s14865_s2 + $0x400] sm:$0xff] }
  0xee   :  { %15558 = vst [vmem:[#allocation80_spill] sm:$0xff] %v7702_v52  ;;  %1257 = vmatpush.msra.mxu1 %v5280_v25  ;;  %v7721_v52 = vld [vmem:[%s14865_s2 + $0x390] sm:$0xff] }
  0xef   :  { %15559 = vst [vmem:[#allocation81_spill] sm:$0xff] %v7705_v4  ;;  %1303 = vmatpush.msrb.mxu0 %v7721_v52  ;;  %v7733_v4 = vld [vmem:[%s14865_s2 + $0x348] sm:$0xff]  ;;  %v5284_v25 = vld [vmem:[%s14865_s2 + $0x7d0] sm:$0xff] }
  0xf0   :  { %15560 = vst [vmem:[#allocation82_spill] sm:$0xff] %v7707_v21  ;;  %v7727_v21 = vld [vmem:[%s14865_s2 + $0x788] sm:$0xff]  ;;  %1264 = vmatpush.msrb.mxu2 %v7733_v4  ;;  %1322 = vmatpush.msrb.mxu1 %v5284_v25  ;;  %v5288_v25 = vld [vmem:[%s14865_s2 + $0x790] sm:$0xff] }
  0xf1   :  { %15561 = vst [vmem:[#allocation83_spill] sm:$0xff] %v7712_v39  ;;  %1283 = vmatpush.msrb.mxu3 %v7727_v21  ;;  %v7795_v39 = vpop.f32.mrf.mxu3 }
  0xf2   :  { %15562 = vst [vmem:[#allocation84_spill] sm:$0xff] %v7721_v52  ;;  %v7742_v52 = vld [vmem:[%s14865_s2 + $0x350] sm:$0xff]  ;;  %1323 = vmatpush.msrb.mxu1 %v5288_v25 }
  0xf3   :  { %15563 = vst [vmem:[#allocation85_spill] sm:$0xff] %v7727_v21  ;;  %1304 = vmatpush.msrb.mxu0 %v7742_v52  ;;  %v7748_v21 = vld [vmem:[%s14865_s2 + $0x748] sm:$0xff]  ;;  %v5292_v25 = vld [vmem:[%s14865_s2 + $0x750] sm:$0xff] }
  0xf4   :  { %15564 = vst [vmem:[#allocation86_spill] sm:$0xff] %v7733_v4  ;;  %1284 = vmatpush.msrb.mxu3 %v7748_v21  ;;  %v7754_v4 = vld [vmem:[%s14865_s2 + $0x308] sm:$0xff]  ;;  %1324 = vmatpush.msrb.mxu1 %v5292_v25 }
  0xf5   :  { %15565 = vst [vmem:[#allocation87_spill] sm:$0xff] %v7742_v52  ;;  %1265 = vmatpush.msrb.mxu2 %v7754_v4  ;;  %v7763_v52 = vld [vmem:[%s14865_s2 + $0x310] sm:$0xff]  ;;  %v7800_v25 = vld [vmem:[%s14865_s2 + $0x288] sm:$0xff] }
  0xf6   :  { %15566 = vst [vmem:[#allocation88_spill] sm:$0xff] %v7748_v21  ;;  %1305 = vmatpush.msrb.mxu0 %v7763_v52  ;;  %v7769_v21 = vld [vmem:[%s14865_s2 + $0x708] sm:$0xff] }
  0xf7   :  { %15567 = vst [vmem:[#allocation89_spill] sm:$0xff] %v7754_v4  ;;  %1285 = vmatpush.msrb.mxu3 %v7769_v21  ;;  %v7775_v4 = vld [vmem:[%s14865_s2 + $0x2c8] sm:$0xff] }
  0xf8   :  { %15568 = vst [vmem:[#allocation90_spill] sm:$0xff] %v7763_v52  ;;  %1266 = vmatpush.msrb.mxu2 %v7775_v4  ;;  %v7784_v52 = vld [vmem:[%s14865_s2 + $0x2d0] sm:$0xff] }
  0xf9   :  { %15569 = vst [vmem:[#allocation91_spill] sm:$0xff] %v7769_v21  ;;  %1306 = vmatpush.msrb.mxu0 %v7784_v52  ;;  %v7790_v21 = vld [vmem:[%s14865_s2 + $0x6c8] sm:$0xff] }
  0xfa   :  { %15570 = vst [vmem:[#allocation92_spill] sm:$0xff] %v7775_v4  ;;  %1286 = vmatpush.msrb.mxu3 %v7790_v21  ;;  %v7793_v4 = vpop.f32.mrf.mxu2  ;;  %1267 = vmatpush.msrb.mxu2 %v7800_v25 }
  0xfb   :  { %15571 = vst [vmem:[#allocation93_spill] sm:$0xff] %v7784_v52  ;;  %v5296_v52 = vld [vmem:[%s14865_s2 + $0x710] sm:$0xff] }
  0xfc   :  { %15572 = vst [vmem:[#allocation94_spill] sm:$0xff] %v7790_v21  ;;  %1325 = vmatpush.msrb.mxu1 %v5296_v52  ;;  %v7809_v21 = vld [vmem:[%s14865_s2 + $0x290] sm:$0xff]  ;;  %v7825_v52 = vld [vmem:[%s14865_s2 + $0x248] sm:$0xff] }
  0xfd   :  { %15573 = vst [vmem:[#allocation95_spill] sm:$0xff] %v7793_v4  ;;  %1307 = vmatpush.msrb.mxu0 %v7809_v21  ;;  %v7818_v4 = vpop.f32.mrf.mxu0  ;;  %1268 = vmatpush.msrb.mxu2 %v7825_v52 }
  0xfe   :  { %15574 = vst [vmem:[#allocation96_spill] sm:$0xff] %v7795_v39  ;;  %v7815_v39 = vld [vmem:[%s14865_s2 + $0x688] sm:$0xff] }
  0xff   :  { %15575 = vst [vmem:[#allocation97_spill] sm:$0xff] %v7800_v25  ;;  %1287 = vmatpush.msrb.mxu3 %v7815_v39  ;;  %v7820_v25 = vpop.f32.mrf.mxu1 }
 0x100   :  { %15576 = vst [vmem:[#allocation98_spill] sm:$0xff] %v7809_v21  ;;  %v5300_v21 = vld [vmem:[%s14865_s2 + $0x6d0] sm:$0xff] }
 0x101   :  { %15577 = vst [vmem:[#allocation99_spill] sm:$0xff] %v7815_v39  ;;  %1326 = vmatpush.msrb.mxu1 %v5300_v21  ;;  %v7834_v39 = vld [vmem:[%s14865_s2 + $0x250] sm:$0xff] }
 0x102   :  { %15578 = vst [vmem:[#allocation100_spill] sm:$0xff] %v7818_v4  ;;  %1308 = vmatpush.msrb.mxu0 %v7834_v39  ;;  %v7846_v4 = vld [vmem:[%s14865_s2 + $0x208] sm:$0xff]  ;;  %v5304_v21 = vld [vmem:[%s14865_s2 + $0x690] sm:$0xff] }
 0x103   :  { %15579 = vst [vmem:[#allocation101_spill] sm:$0xff] %v7820_v25  ;;  %v7840_v25 = vld [vmem:[%s14865_s2 + $0x648] sm:$0xff]  ;;  %1269 = vmatpush.msrb.mxu2 %v7846_v4  ;;  %1327 = vmatpush.msrb.mxu1 %v5304_v21  ;;  %v5308_v21 = vld [vmem:[%s14865_s2 + $0x650] sm:$0xff] }
 0x104   :  { %15580 = vst [vmem:[#allocation102_spill] sm:$0xff] %v7825_v52  ;;  %1288 = vmatpush.msrb.mxu3 %v7840_v25  ;;  %v7911_v52 = vpop.f32.mrf.mxu3 }
 0x105   :  { %15581 = vst [vmem:[#allocation103_spill] sm:$0xff] %v7834_v39  ;;  %v7855_v39 = vld [vmem:[%s14865_s2 + $0x210] sm:$0xff]  ;;  %1328 = vmatpush.msrb.mxu1 %v5308_v21 }
 0x106   :  { %15582 = vst [vmem:[#allocation104_spill] sm:$0xff] %v7840_v25  ;;  %1309 = vmatpush.msrb.mxu0 %v7855_v39  ;;  %v7861_v25 = vld [vmem:[%s14865_s2 + $0x608] sm:$0xff]  ;;  %v7894_v21 = vld [vmem:[%s14865_s2 + $0x610] sm:$0xff] }
 0x107   :  { %15583 = vst [vmem:[#allocation105_spill] sm:$0xff] %v7846_v4  ;;  %1289 = vmatpush.msrb.mxu3 %v7861_v25  ;;  %v7867_v4 = vld [vmem:[%s14865_s2 + $0x1c8] sm:$0xff]  ;;  %1329 = vmatpush.msrb.mxu1 %v7894_v21 }
 0x108   :  { %15584 = vst [vmem:[#allocation106_spill] sm:$0xff] %v7855_v39  ;;  %1270 = vmatpush.msrb.mxu2 %v7867_v4  ;;  %v7876_v39 = vld [vmem:[%s14865_s2 + $0x1d0] sm:$0xff] }
 0x109   :  { %15585 = vst [vmem:[#allocation107_spill] sm:$0xff] %v7861_v25  ;;  %1310 = vmatpush.msrb.mxu0 %v7876_v39  ;;  %v7882_v25 = vld [vmem:[%s14865_s2 + $0x5c8] sm:$0xff] }
 0x10a   :  { %15586 = vst [vmem:[#allocation108_spill] sm:$0xff] %v7867_v4  ;;  %1290 = vmatpush.msrb.mxu3 %v7882_v25  ;;  %v7888_v4 = vld [vmem:[%s14865_s2 + $0x188] sm:$0xff] }
 0x10b   :  { %15587 = vst [vmem:[#allocation109_spill] sm:$0xff] %v7876_v39  ;;  %1271 = vmatpush.msrb.mxu2 %v7888_v4  ;;  %v7900_v39 = vld [vmem:[%s14865_s2 + $0x190] sm:$0xff] }
 0x10c   :  { %15588 = vst [vmem:[#allocation110_spill] sm:$0xff] %v7882_v25  ;;  %1311 = vmatpush.msrb.mxu0 %v7900_v39  ;;  %v7906_v25 = vld [vmem:[%s14865_s2 + $0x588] sm:$0xff] }
 0x10d   :  { %15589 = vst [vmem:[#allocation111_spill] sm:$0xff] %v7888_v4  ;;  %1291 = vmatpush.msrb.mxu3 %v7906_v25  ;;  %v7909_v4 = vpop.f32.mrf.mxu2 }
 0x10e   :  { %15590 = vst [vmem:[#allocation112_spill] sm:$0xff] %v7894_v21  ;;  %v7916_v21 = vld [vmem:[%s14865_s2 + $0x148] sm:$0xff] }
 0x10f   :  { %15591 = vst [vmem:[#allocation113_spill] sm:$0xff] %v7900_v39  ;;  %1272 = vmatpush.msrb.mxu2 %v7916_v21  ;;  %v7922_v39 = vld [vmem:[%s14865_s2 + $0x5d0] sm:$0xff] }
 0x110   :  { %15592 = vst [vmem:[#allocation114_spill] sm:$0xff] %v7906_v25  ;;  %1330 = vmatpush.msrb.mxu1 %v7922_v39  ;;  %v7937_v25 = vpop.f32.mrf.mxu0 }
 0x111   :  { %15593 = vst [vmem:[#allocation115_spill] sm:$0xff] %v7909_v4  ;;  %v7928_v4 = vld [vmem:[%s14865_s2 + $0x150] sm:$0xff] }
 0x112   :  { %15594 = vst [vmem:[#allocation116_spill] sm:$0xff] %v7911_v52  ;;  %1312 = vmatpush.msrb.mxu0 %v7928_v4  ;;  %v7934_v52 = vld [vmem:[%s14865_s2 + $0x548] sm:$0xff] }
 0x113   :  { %15595 = vst [vmem:[#allocation117_spill] sm:$0xff] %v7916_v21  ;;  %1292 = vmatpush.msrb.mxu3 %v7934_v52  ;;  %v7939_v21 = vpop.f32.mrf.mxu1 }
 0x114   :  { %15596 = vst [vmem:[#allocation118_spill] sm:$0xff] %v7922_v39  ;;  %v7944_v39 = vld [vmem:[%s14865_s2 + $0x108] sm:$0xff] }
 0x115   :  { %15597 = vst [vmem:[#allocation119_spill] sm:$0xff] %v7928_v4  ;;  %1273 = vmatpush.msrb.mxu2 %v7944_v39  ;;  %v7950_v4 = vld [vmem:[%s14865_s2 + $0x590] sm:$0xff] }
 0x116   :  { %15598 = vst [vmem:[#allocation120_spill] sm:$0xff] %v7934_v52  ;;  %1331 = vmatpush.msrb.mxu1 %v7950_v4  ;;  %v7968_v52 = vld [vmem:[%s14865_s2 + $0xc8] sm:$0xff] }
 0x117   :  { %15599 = vst [vmem:[#allocation121_spill] sm:$0xff] %v7937_v25  ;;  %v7956_v25 = vld [vmem:[%s14865_s2 + $0x110] sm:$0xff]  ;;  %1274 = vmatpush.msrb.mxu2 %v7968_v52 }
 0x118   :  { %15600 = vst [vmem:[#allocation122_spill] sm:$0xff] %v7939_v21  ;;  %1313 = vmatpush.msrb.mxu0 %v7956_v25  ;;  %v7962_v21 = vld [vmem:[%s14865_s2 + $0x508] sm:$0xff] }
 0x119   :  { %15601 = vst [vmem:[#allocation123_spill] sm:$0xff] %v7950_v4  ;;  %1293 = vmatpush.msrb.mxu3 %v7962_v21  ;;  %v7974_v4 = vld [vmem:[%s14865_s2 + $0x550] sm:$0xff] }
 0x11a   :  { %15602 = vst [vmem:[#allocation124_spill] sm:$0xff] %v7956_v25  ;;  %1332 = vmatpush.msrb.mxu1 %v7974_v4  ;;  %v7980_v25 = vld [vmem:[%s14865_s2 + $0xd0] sm:$0xff] }
 0x11b   :  { %15603 = vst [vmem:[#allocation125_spill] sm:$0xff] %v7962_v21  ;;  %1314 = vmatpush.msrb.mxu0 %v7980_v25  ;;  %v7986_v21 = vld [vmem:[%s14865_s2 + $0x4c8] sm:$0xff] }
 0x11c   :  { %15604 = vst [vmem:[#allocation126_spill] sm:$0xff] %v7968_v52  ;;  %1294 = vmatpush.msrb.mxu3 %v7986_v21  ;;  %v7992_v52 = vld [vmem:[%s14865_s2 + $0x88] sm:$0xff] }
 0x11d   :  { %15605 = vst [vmem:[#allocation127_spill] sm:$0xff] %v7974_v4  ;;  %1275 = vmatpush.msrb.mxu2 %v7992_v52  ;;  %v7998_v4 = vld [vmem:[%s14865_s2 + $0x510] sm:$0xff]  ;;  %1315 = vmatpush.msrb.mxu0 %v6685_v55  ;;  %v8024_v55 = vld [vmem:[%s14865_s2 + $0x448] sm:$0xff] }
 0x11e   :  { %15606 = vst [vmem:[#allocation128_spill] sm:$0xff] %v7980_v25  ;;  %1333 = vmatpush.msrb.mxu1 %v7998_v4  ;;  %v8011_v25 = vld [vmem:[%s14865_s2 + $0x48] sm:$0xff] }
 0x11f   :  { %15607 = vst [vmem:[#allocation129_spill] sm:$0xff] %v7986_v21  ;;  %v8005_v21 = vld [vmem:[%s14865_s2 + $0x488] sm:$0xff]  ;;  %1276 = vmatpush.msrb.mxu2 %v8011_v25  ;;  %1316 = vmatpush.msrb.mxu0 %v6699_v10  ;;  %v8040_v10 = vld [vmem:[%s14865_s2 + $0x490] sm:$0xff] }
 0x120   :  { %15608 = vst [vmem:[#allocation130_spill] sm:$0xff] %v7992_v52  ;;  %1295 = vmatpush.msrb.mxu3 %v8005_v21  ;;  %v8029_v52 = vpop.f32.mrf.mxu3 }
 0x121   :  { %15609 = vst [vmem:[#allocation131_spill] sm:$0xff] %v7998_v4  ;;  %v8017_v4 = vld [vmem:[%s14865_s2 + $0x4d0] sm:$0xff]  ;;  %1317 = vmatpush.msrb.mxu0 %v6717_v62 }
 0x122   :  { %15610 = vst [vmem:[#allocation132_spill] sm:$0xff] %v8005_v21  ;;  %1334 = vmatpush.msrb.mxu1 %v8017_v4  ;;  %1296 = vmatpush.msrb.mxu3 %v8024_v55  ;;  %v8027_v21 = vpop.f32.mrf.mxu2 }
 0x123   :  { %15611 = vst [vmem:[#allocation133_spill] sm:$0xff] %v8011_v25  ;;  %v8034_v25 = vld [vmem:[%s14865_s2 + $0x8] sm:$0xff] }
 0x124   :  { %15612 = vst [vmem:[#allocation134_spill] sm:$0xff] %v8017_v4  ;;  %1277 = vmatpush.msrb.mxu2 %v8034_v25  ;;  %1335 = vmatpush.msrb.mxu1 %v8040_v10  ;;  %v8052_v4 = vld [vmem:[%s14865_s2 + $0x408] sm:$0xff] }
 0x125   :  { %15613 = vst [vmem:[#allocation135_spill] sm:$0xff] %v8024_v55  ;;  %1297 = vmatpush.msrb.mxu3 %v8052_v4  ;;  %v8058_v55 = vld [vmem:[%s14865_s2 + $0x450] sm:$0xff] }
 0x126   :  { %15614 = vst [vmem:[#allocation136_spill] sm:$0xff] %v8027_v21  ;;  %1342 = vmatpush.msra.mxu2 %v6708_v60  ;;  %v8045_v21 = vpop.f32.mrf.mxu0  ;;  %1336 = vmatpush.msrb.mxu1 %v8058_v55  ;;  %v8065_v60 = vld [vmem:[%s14865_s2 + $0x7d8] sm:$0xff] }
 0x127   :  { %15615 = vst [vmem:[#allocation137_spill] sm:$0xff] %v8029_v52  ;;  %v8047_v52 = vpop.f32.mrf.mxu1  ;;  %1362 = vmatpush.msra.mxu3 %v8065_v60 }
 0x128   :  { %15616 = vst [vmem:[#allocation138_spill] sm:$0xff] %v8045_v21  ;;  %1343 = vmatpush.msra.mxu2 %v6732_v0  ;;  %1337 = vmatpush.msrb.mxu1 %v6722_v63  ;;  %v8077_v0 = vpop.f32.mrf.mxu3 }
 0x129   :  { %15617 = vst [vmem:[#allocation139_spill] sm:$0xff] %v8047_v52  ;;  %1363 = vmatpush.msra.mxu3 %v6737_v1 }
 0x12a   :  { %1344 = vmatpush.msra.mxu2 %v6748_v2  ;;  %v8075_v62 = vpop.f32.mrf.mxu2  ;;  %15619 = vst [vmem:[#allocation141_spill] sm:$0xff] %v8077_v0  ;;  %v8496_v0 = vld [vmem:[%s14865_s2 + $0x170] sm:$0xff] }
 0x12b   :  { %1364 = vmatpush.msra.mxu3 %v6753_v3  ;;  %15618 = vst [vmem:[#allocation140_spill] sm:$0xff] %v8075_v62  ;;  %v8503_v62 = vld [vmem:[%s14865_s2 + $0x620] sm:$0xff] }
 0x12c   :  { %1345 = vmatpush.msra.mxu2 %v6760_v16  ;;  %v8096_v16 = vld [vmem:[%s14864_s3] ss:$4 sm:$0xff] }
 0x12d   :  { %1365 = vmatpush.msra.mxu3 %v6765_v6 }
 0x12e   :  { %1346 = vmatpush.msra.mxu2 %v6774_v7  ;;  %v774_v63 = vpop.f32.mrf.mxu0 }
 0x12f   :  { %1366 = vmatpush.msra.mxu3 %v6779_v8  ;;  %v794_v2 = vpop.f32.mrf.mxu1  ;;  %v8101_v8 = vperm.slane %v8096_v16, 2 }
 0x130   :  { %1347 = vmatpush.msra.mxu2 %v6792_v9  ;;  %v8091_v3 = vpop.f32.mrf.mxu3  ;;  %v8106_v9 = vperm.slane %v8096_v16, 0 }
 0x131   :  { %1367 = vmatpush.msra.mxu3 %v6797_v12  ;;  %15621 = vst [vmem:[#allocation143_spill] sm:$0xff] %v8091_v3  ;;  %v795_v12 = vadd.f32 %v794_v2, %v774_v63 }
 0x132   :  { %1348 = vmatpush.msra.mxu2 %v6804_v13  ;;  %v8089_v1 = vpop.f32.mrf.mxu2  ;;  %15622 = vst [vmem:[#allocation144_spill] sm:$0xff] %v8101_v8 }
 0x133   :  { %1368 = vmatpush.msra.mxu3 %v6809_v23  ;;  %15620 = vst [vmem:[#allocation142_spill] sm:$0xff] %v8089_v1  ;;  %v116_v23 = vadd.f32 %v6927_v41, %v8106_v9  ;;  %v8490_v1 = vld [vmem:[%s14865_s2 + $0x668] sm:$0xff] }
 0x134   :  { %1349 = vmatpush.msra.mxu2 %v6827_v18  ;;  %15623 = vst [vmem:[#allocation145_spill] sm:$0xff] %v8106_v9  ;;  %v198_v18 = vadd.f32 %v7081_v56, %v8101_v8 }
 0x135   :  { %1369 = vmatpush.msra.mxu3 %v6832_v19  ;;  %v1077_v19 = vadd.f32 %v795_v12, %v116_v23 }
 0x136   :  { %1350 = vmatpush.msra.mxu2 %v6846_v22  ;;  %v854_v6 = vpop.f32.mrf.mxu0 }
 0x137   :  { %1370 = vmatpush.msra.mxu3 %v6851_v30  ;;  %v874_v7 = vpop.f32.mrf.mxu1 }
 0x138   :  { %1351 = vmatpush.msra.mxu2 %v6864_v26  ;;  %v875_v13 = vadd.f32 %v874_v7, %v854_v6  ;;  %v8120_v26 = vpop.f32.mrf.mxu3  ;;  %v8133_v6 = vperm.slane %v8096_v16, 4 }
 0x139   :  { %1371 = vmatpush.msra.mxu3 %v6869_v27  ;;  %15625 = vst [vmem:[#allocation147_spill] sm:$0xff] %v8120_v26  ;;  %v4931_v27 = vmul.f32 -1.442695, %v1077_v19 }
 0x13a   :  { %1352 = vmatpush.msra.mxu2 %v6894_v33  ;;  %v1079_v22 = vadd.f32 %v875_v13, %v198_v18  ;;  %v8118_v30 = vpop.f32.mrf.mxu2  ;;  %15628 = vst [vmem:[#allocation150_spill] sm:$0xff] %v8133_v6  ;;  %v8136_v18 = vperm.slane %v8096_v16, 3 }
 0x13b   :  { %1372 = vmatpush.msra.mxu3 %v6899_v34  ;;  %15624 = vst [vmem:[#allocation146_spill] sm:$0xff] %v8118_v30  ;;  %4985 = vpow2.f32 %v4931_v27 }
 0x13c   :  { %1353 = vmatpush.msra.mxu2 %v6912_v36  ;;  %v4933_v33 = vmul.f32 -1.442695, %v1079_v22  ;;  %15629 = vst [vmem:[#allocation151_spill] sm:$0xff] %v8136_v18  ;;  %v239_v30 = vadd.f32 %v7093_v20, %v8136_v18 }
 0x13d   :  { %1373 = vmatpush.msra.mxu3 %v6917_v38 }
 0x13e   :  { %1354 = vmatpush.msra.mxu2 %v6932_v42  ;;  %4987 = vpow2.f32 %v4933_v33  ;;  %v8141_v33 = vperm.slane %v8096_v16, 1 }
 0x13f   :  { %1374 = vmatpush.msra.mxu3 %v6937_v43 }
 0x140   :  { %1355 = vmatpush.msra.mxu2 %v6960_v48  ;;  %v8127_v36 = vpop.f32.mrf.mxu3  ;;  %15630 = vst [vmem:[#allocation152_spill] sm:$0xff] %v8141_v33  ;;  %v157_v26 = vadd.f32 %v6939_v44, %v8141_v33 }
 0x141   :  { %1375 = vmatpush.msra.mxu3 %v6965_v49  ;;  %15627 = vst [vmem:[#allocation149_spill] sm:$0xff] %v8127_v36  ;;  %v4986_v38 = vpop.eup %4985 }
 0x142   :  { %1356 = vmatpush.msra.mxu2 %v6982_v53  ;;  %v8125_v34 = vpop.f32.mrf.mxu2  ;;  %v1091_v42 = vadd.f32 1.0, %v4986_v38  ;;  %v934_v53 = vpop.f32.mrf.mxu0 }
 0x143   :  { %1376 = vmatpush.msra.mxu3 %v6987_v5  ;;  %15626 = vst [vmem:[#allocation148_spill] sm:$0xff] %v8125_v34  ;;  %v954_v5 = vpop.f32.mrf.mxu1  ;;  %v280_v34 = vadd.f32 %v7317_v37, %v8133_v6 }
 0x144   :  { %1357 = vmatpush.msra.mxu2 %v7004_v59  ;;  %v4988_v41 = vpop.eup %4987  ;;  %4989 = vrcp.f32 %v1091_v42  ;;  %v955_v22 = vadd.f32 %v954_v5, %v934_v53  ;;  %vm1098_vm3 = vweird.f32 %v1091_v42 }
 0x145   :  { %1377 = vmatpush.msra.mxu3 %v7009_v61  ;;  %v1129_v43 = vadd.f32 1.0, %v4988_v41  ;;  %v8130_v61 = vperm.slane %v8096_v16, 6 }
 0x147   :  { %4991 = vrcp.f32 %v1129_v43  ;;  %v362_v19 = vadd.f32 %v7677_v58, %v8130_v61  ;;  %v1081_v58 = vadd.f32 %v955_v22, %v280_v34  ;;  %vm1136_vm4 = vweird.f32 %v1129_v43 }
 0x148   :  { %v834_v49 = vpop.f32.mrf.mxu3  ;;  %v1140_v34 = vand.u32 2147483647, %v1129_v43 }
 0x14a   :  { %v814_v48 = vpop.f32.mrf.mxu2  ;;  %v4990_v59 = vpop.eup %4989  ;;  %vm1141_vm8 = vcmp.eq.f32.partialorder %v1140_v34, 8.507059e+37 }
 0x14b   :  { %v1094_v63 = vmul.f32 %v4990_v59, %v1091_v42  ;;  %v1014_v13 = vpop.f32.mrf.mxu0  ;;  %v1034_v23 = vpop.f32.mrf.mxu1  ;;  %v835_v36 = vadd.f32 %v834_v49, %v814_v48  ;;  %vm1099_vm1 = vweird.f32 %v4990_v59 }
 0x14c   :  { %v1035_v27 = vadd.f32 %v1034_v23, %v1014_v13  ;;  %vm8149_vm5 = vmor %vm1098_vm3, %vm1099_vm1 }
 0x14d   :  { %v4992_v56 = vpop.eup %4991  ;;  %v1095_v38 = vsub.f32 1.0, %v1094_v63  ;;  %v1078_v23 = vadd.f32 %v835_v36, %v157_v26  ;;  %v1142_v63 = vand.u32 2147483648, %v1129_v43 }
 0x14e   :  { %v1132_v2 = vmul.f32 %v4992_v56, %v1129_v43  ;;  %v1083_v21 = vadd.f32 %v1035_v27, %v362_v19  ;;  %vm1137_vm2 = vweird.f32 %v4992_v56 }
 0x14f   :  { %v1096_v13 = vmul.f32 %v4990_v59, %v1095_v38  ;;  %v4932_v37 = vmul.f32 -1.442695, %v1078_v23  ;;  %vm1138_vm6 = vmor %vm1136_vm4, %vm1137_vm2 }
 0x150   :  { %v914_v12 = vpop.f32.mrf.mxu3  ;;  %v1133_v41 = vsub.f32 1.0, %v1132_v2  ;;  %v4935_v53 = vmul.f32 -1.442695, %v1083_v21  ;;  %v1104_v2 = vand.u32 2147483648, %v1091_v42  ;;  %v1102_v21 = vand.u32 2147483647, %v1091_v42 }
 0x151   :  { %v1097_v48 = vadd.f32 %v4990_v59, %v1096_v13 }
 0x152   :  { %v894_v7 = vpop.f32.mrf.mxu2  ;;  %v1134_v5 = vmul.f32 %v4992_v56, %v1133_v41  ;;  %4993 = vpow2.f32 %v4935_v53  ;;  %v1105_v19 = vor.u32 1.1754944e-38, %v1104_v2  ;;  %vm1103_vm7 = vcmp.eq.f32.partialorder %v1102_v21, 8.507059e+37 }
 0x153   :  { %v915_v52 = vadd.f32 %v914_v12, %v894_v7  ;;  %4995 = vtanh.f32 %v1081_v58  ;;  %v1143_v12 = vor.u32 1.1754944e-38, %v1142_v63 }
 0x154   :  { %v1135_v49 = vadd.f32 %v4992_v56, %v1134_v5  ;;  %4997 = vpow2.f32 %v4932_v37 }
 0x155   :  { %v1080_v3 = vadd.f32 %v915_v52, %v239_v30  ;;  %v1101_v52 = vsel %vm8149_vm5, %v4990_v59, %v1097_v48 }
 0x156   :  { %v1139_v30 = vsel %vm1138_vm6, %v4992_v56, %v1135_v49 }
 0x157   :  { %v4934_v44 = vmul.f32 -1.442695, %v1080_v3  ;;  %v1106_v3 = vsel %vm1103_vm7, %v1105_v19, %v1101_v52  ;;  %v1144_v22 = vsel %vm1141_vm8, %v1143_v12, %v1139_v30  ;;  %v8173_v30 = vperm.slane %v8096_v16, 7 }
 0x158   :  { %v4994_v26 = vpop.eup %4993  ;;  %v1201_v43 = vmul.f32 0.0, %v1144_v22  ;;  %v8187_v19 = vperm.slane %v8096_v16, 5  ;;  %v8201_v16 = vld [vmem:[%s14865_s2 + $0x360] sm:$0xff] }
 0x159   :  { %v1169_v36 = vadd.f32 1.0, %v4994_v26  ;;  %v4996_v7 = vpop.eup %4995  ;;  %4999 = vpow2.f32 %v4934_v44  ;;  %v994_v44 = vpop.f32.mrf.mxu3 }
 0x15a   :  { %v1203_v27 = vmul.f32 %v4996_v7, %v1106_v3  ;;  %v4998_v42 = vpop.eup %4997  ;;  %v974_v2 = vpop.f32.mrf.mxu2  ;;  %15633 = vst [vmem:[#allocation153_spill] sm:$0xff] %v8187_v19  ;;  %v8192_v3 = vld [vmem:[%s14865_s2 + $0x3a0] sm:$0xff] }
 0x15b   :  { %5001 = vrcp.f32 %v1169_v36  ;;  %v8157_v59 = vadd.f32 1.0, %v4998_v42  ;;  %v1182_v13 = vand.u32 2147483648, %v1169_v36  ;;  %v1180_v48 = vand.u32 2147483647, %v1169_v36 }
 0x15c   :  { %v8155_v58 = vadd.f32 %v1203_v27, %v1201_v43  ;;  %vm1176_vm10 = vweird.f32 %v1169_v36  ;;  %v403_v27 = vadd.f32 %v7679_v15, %v8173_v30  ;;  %v995_v42 = vadd.f32 %v994_v44, %v974_v2  ;;  %v8210_v15 = vld [vmem:[%s14865_s2 + $0x320] sm:$0xff] }
 0x15d   :  { %v1183_v37 = vor.u32 1.1754944e-38, %v1182_v13  ;;  %vm1181_vm12 = vcmp.eq.f32.partialorder %v1180_v48, 8.507059e+37  ;;  %vm1113_vm15 = vweird.f32 %v8157_v59  ;;  %v1117_v2 = vand.u32 2147483647, %v8157_v59 }
 0x15e   :  { %5003 = vtanh.f32 %v8155_v58 }
 0x15f   :  { %v5000_v38 = vpop.eup %4999  ;;  %5005 = vrcp.f32 %v8157_v59  ;;  %vm1118_vm3 = vcmp.eq.f32.partialorder %v1117_v2, 8.507059e+37 }
 0x160   :  { %v8159_v53 = vadd.f32 1.0, %v5000_v38 }
 0x161   :  { %v5002_v41 = vpop.eup %5001 }
 0x162   :  { %v1172_v56 = vmul.f32 %v5002_v41, %v1169_v36  ;;  %vm1177_vm9 = vweird.f32 %v5002_v41  ;;  %5007 = vrcp.f32 %v8159_v53  ;;  %v8178_v36 = vld [vmem:[%s14865_s2 + $0x3e0] sm:$0xff]  ;;  %vm1151_vm0 = vweird.f32 %v8159_v53 }
 0x163   :  { %vm1178_vm11 = vmor %vm1176_vm10, %vm1177_vm9  ;;  %v1155_v44 = vand.u32 2147483647, %v8159_v53 }
 0x164   :  { %v1173_v5 = vsub.f32 1.0, %v1172_v56  ;;  %v5004_v20 = vpop.eup %5003 }
 0x165   :  { %v8164_v34 = vpop.eup %5005  ;;  %vm1156_vm4 = vcmp.eq.f32.partialorder %v1155_v44, 8.507059e+37  ;;  %v8336_v44 = vld [vmem:[%s14865_s2 + $0x3f0] sm:$0xff] }
 0x166   :  { %v1174_v23 = vmul.f32 %v5002_v41, %v1173_v5  ;;  %v1109_v7 = vmul.f32 %v8164_v34, %v8157_v59  ;;  %vm1114_vm13 = vweird.f32 %v8164_v34 }
 0x167   :  { %vm8256_vm1 = vmor %vm1113_vm15, %vm1114_vm13 }
 0x168   :  { %v1175_v49 = vadd.f32 %v5002_v41, %v1174_v23  ;;  %v8168_v52 = vpop.eup %5007  ;;  %v1110_v38 = vsub.f32 1.0, %v1109_v7 }
 0x169   :  { %v1147_v12 = vmul.f32 %v8168_v52, %v8159_v53  ;;  %v1054_v22 = vpop.f32.mrf.mxu2  ;;  %vm1152_vm14 = vweird.f32 %v8168_v52 }
 0x16a   :  { %v1179_v63 = vsel %vm1178_vm11, %v5002_v41, %v1175_v49  ;;  %v1111_v23 = vmul.f32 %v8164_v34, %v1110_v38  ;;  %vm8262_vm2 = vmor %vm1151_vm0, %vm1152_vm14  ;;  %v8303_v38 = vld [vmem:[%s14865_s2 + $0xe0] sm:$0xff] }
 0x16b   :  { %v1184_v21 = vsel %vm1181_vm12, %v1183_v37, %v1179_v63  ;;  %v1148_v41 = vsub.f32 1.0, %v1147_v12  ;;  %v1119_v37 = vand.u32 2147483648, %v8157_v59  ;;  %v8249_v63 = vld [vmem:[%s14865_s2 + $0x220] sm:$0xff] }
 0x16c   :  { %v8166_v26 = vmul.f32 %v5004_v20, %v1184_v21  ;;  %v1112_v48 = vadd.f32 %v8164_v34, %v1111_v23  ;;  %v15642_v23 = vld [vmem:[#allocation25_spill] sm:$0xff] }
 0x16d   :  { %v1149_v13 = vmul.f32 %v8168_v52, %v1148_v41  ;;  %v15638_v41 = vld [vmem:[#allocation21_spill] sm:$0xff] }
 0x16e   :  { %1238 = vmatmul.f32.vlgmr.msra.gmra.mxu0 %v8166_v26  ;;  %1278 = vmatmul.f32.vlgmr.msrb.gmra.mxu2 %v8166_v26  ;;  %v1116_v59 = vsel %vm8256_vm1, %v8164_v34, %v1112_v48 }
 0x16f   :  { %1382 = vmatpush.msra.mxu0 %v8178_v36  ;;  %1422 = vmatpush.msrb.mxu2 %v7070_v47  ;;  %v1074_v47 = vpop.f32.mrf.mxu3  ;;  %v1150_v49 = vadd.f32 %v8168_v52, %v1149_v13  ;;  %v8319_v13 = vld [vmem:[%s14865_s2 + $0x60] sm:$0xff] }
 0x170   :  { %v1075_v43 = vadd.f32 %v1074_v47, %v1054_v22  ;;  %v1120_v47 = vor.u32 1.1754944e-38, %v1119_v37  ;;  %v8327_v37 = vld [vmem:[%s14865_s2 + $0x20] sm:$0xff] }
 0x171   :  { %1383 = vmatpush.msra.mxu0 %v8192_v3  ;;  %1423 = vmatpush.msrb.mxu2 %v7088_v57  ;;  %v321_v57 = vadd.f32 %v7325_v17, %v8187_v19  ;;  %v8219_v17 = vld [vmem:[%s14865_s2 + $0x2e0] sm:$0xff]  ;;  %15643 = vst [vmem:[#allocation25_spill] sm:$0xff] %v8327_v37 }
 0x172   :  { %v1084_v56 = vadd.f32 %v1075_v43, %v403_v27  ;;  %v8282_v27 = vld [vmem:[%s14865_s2 + $0x1a0] sm:$0xff] }
 0x173   :  { %1384 = vmatpush.msra.mxu0 %v8201_v16  ;;  %1424 = vmatpush.msrb.mxu2 %v7107_v28  ;;  %v1082_v28 = vadd.f32 %v995_v42, %v321_v57  ;;  %v8296_v43 = vld [vmem:[%s14865_s2 + $0x120] sm:$0xff] }
 0x174   :  { %v4936_v5 = vmul.f32 -1.442695, %v1084_v56 }
 0x175   :  { %1385 = vmatpush.msra.mxu0 %v8210_v15  ;;  %1425 = vmatpush.msrb.mxu2 %v7124_v45  ;;  %v8228_v45 = vld [vmem:[%s14865_s2 + $0x2a0] sm:$0xff] }
 0x176   :  { %1318 = vmatmul.f32.vlgmr.msrb.gmra.mxu0 %v8166_v26  ;;  %1358 = vmatmul.f32.vlgmr.msra.gmra.mxu2 %v8166_v26  ;;  %5009 = vpow2.f32 %v4936_v5 }
 0x177   :  { %1386 = vmatpush.msra.mxu0 %v8219_v17  ;;  %1426 = vmatpush.msrb.mxu2 %v7140_v51  ;;  %5011 = vtanh.f32 %v1082_v28  ;;  %v8236_v51 = vld [vmem:[%s14865_s2 + $0x260] sm:$0xff] }
 0x178   :  { %v8312_v28 = vld [vmem:[%s14865_s2 + $0xa0] sm:$0xff] }
 0x179   :  { %1387 = vmatpush.msra.mxu0 %v8228_v45  ;;  %1427 = vmatpush.msrb.mxu2 %v7160_v40  ;;  %v1157_v40 = vand.u32 2147483648, %v8159_v53  ;;  %v1154_v53 = vsel %vm8262_vm2, %v8168_v52, %v1150_v49  ;;  %v8289_v52 = vld [vmem:[%s14865_s2 + $0x160] sm:$0xff]  ;;  %15639 = vst [vmem:[#allocation21_spill] sm:$0xff] %v8312_v28 }
 0x17b   :  { %1388 = vmatpush.msra.mxu0 %v8236_v51  ;;  %1428 = vmatpush.msrb.mxu2 %v7179_v29  ;;  %v1158_v22 = vor.u32 1.1754944e-38, %v1157_v40  ;;  %v15644_v29 = vld [vmem:[#allocation26_spill] sm:$0xff] }
 0x17c   :  { %v5010_v20 = vpop.eup %5009  ;;  %15645 = vst [vmem:[#allocation26_spill] sm:$0xff] %v8336_v44 }
 0x17d   :  { %1389 = vmatpush.msra.mxu0 %v8249_v63  ;;  %1429 = vmatpush.msrb.mxu2 %v7194_v32  ;;  %v8269_v32 = vld [vmem:[%s14865_s2 + $0x1e0] sm:$0xff]  ;;  %v1170_v7 = vadd.f32 1.0, %v5010_v20  ;;  %v5012_v12 = vpop.eup %5011  ;;  %v1159_v34 = vsel %vm1156_vm4, %v1158_v22, %v1154_v53  ;;  %v15646_v20 = vld [vmem:[#allocation28_spill] sm:$0xff]  ;;  %v8343_v53 = vld [vmem:[%s14865_s2 + $0x3b0] sm:$0xff] }
 0x17e   :  { %15647 = vst [vmem:[#allocation28_spill] sm:$0xff] %v8343_v53 }
 0x17f   :  { %1390 = vmatpush.msra.mxu0 %v8269_v32  ;;  %1430 = vmatpush.msrb.mxu2 %v7209_v50  ;;  %5013 = vrcp.f32 %v1170_v7  ;;  %v1121_v50 = vsel %vm1118_vm3, %v1120_v47, %v1116_v59  ;;  %v1197_v48 = vand.u32 2147483648, %v1170_v7  ;;  %v1195_v40 = vand.u32 2147483647, %v1170_v7 }
 0x180   :  { %v1204_v42 = vmul.f32 %v5012_v12, %v1121_v50  ;;  %vm1191_vm6 = vweird.f32 %v1170_v7  ;;  %v8352_v50 = vld [vmem:[%s14865_s2 + $0x370] sm:$0xff] }
 0x181   :  { %1391 = vmatpush.msra.mxu0 %v8282_v27  ;;  %1431 = vmatpush.msrb.mxu2 %v7228_v11  ;;  %v1202_v11 = vmul.f32 0.0, %v1159_v34  ;;  %v1198_v21 = vor.u32 1.1754944e-38, %v1197_v48  ;;  %vm1196_vm8 = vcmp.eq.f32.partialorder %v1195_v40, 8.507059e+37  ;;  %v8359_v34 = vld [vmem:[%s14865_s2 + $0x330] sm:$0xff]  ;;  %v8406_v48 = vld [vmem:[%s14865_s2 + $0x760] sm:$0xff] }
 0x182   :  { %15650 = vst [vmem:[#allocation154_spill] sm:$0xff] %v8359_v34  ;;  %v8418_v40 = vld [vmem:[%s14865_s2 + $0x270] sm:$0xff] }
 0x183   :  { %1392 = vmatpush.msra.mxu0 %v8289_v52  ;;  %1432 = vmatpush.msrb.mxu2 %v7245_v24  ;;  %v8307_v57 = vadd.f32 %v1204_v42, %v1202_v11  ;;  %v15651_v42 = vld [vmem:[#allocation33_spill] sm:$0xff]  ;;  %v8368_v11 = vld [vmem:[%s14865_s2 + $0x7e0] sm:$0xff] }
 0x185   :  { %1393 = vmatpush.msra.mxu0 %v8296_v43  ;;  %1433 = vmatpush.msrb.mxu2 %v7262_v54  ;;  %v5014_v24 = vpop.eup %5013  ;;  %v15640_v54 = vld [vmem:[#allocation24_spill] sm:$0xff]  ;;  %5015 = vtanh.f32 %v8307_v57 }
 0x186   :  { %v1187_v56 = vmul.f32 %v5014_v24, %v1170_v7  ;;  %15641 = vst [vmem:[#allocation24_spill] sm:$0xff] %v8319_v13  ;;  %vm1192_vm5 = vweird.f32 %v5014_v24  ;;  %v15648_v7 = vld [vmem:[#allocation30_spill] sm:$0xff] }
 0x187   :  { %1394 = vmatpush.msra.mxu0 %v8303_v38  ;;  %1434 = vmatpush.msrb.mxu2 %v15638_v41  ;;  %vm1193_vm7 = vmor %vm1191_vm6, %vm1192_vm5  ;;  %15649 = vst [vmem:[#allocation30_spill] sm:$0xff] %v8352_v50  ;;  %v8380_v41 = vld [vmem:[%s14865_s2 + $0x2f0] sm:$0xff] }
 0x188   :  { %v1188_v5 = vsub.f32 1.0, %v1187_v56  ;;  %15652 = vst [vmem:[#allocation33_spill] sm:$0xff] %v8380_v41  ;;  %v8387_v56 = vld [vmem:[%s14865_s2 + $0x7a0] sm:$0xff] }
 0x189   :  { %1395 = vmatpush.msra.mxu0 %v8312_v28  ;;  %1435 = vmatpush.msrb.mxu2 %v15640_v54  ;;  %v8393_v54 = vld [vmem:[%s14865_s2 + $0x7a8] sm:$0xff] }
 0x18a   :  { %v1189_v49 = vmul.f32 %v5014_v24, %v1188_v5  ;;  %v8399_v5 = vld [vmem:[%s14865_s2 + $0x2b0] sm:$0xff] }
 0x18b   :  { %1396 = vmatpush.msra.mxu0 %v8319_v13  ;;  %1436 = vmatpush.msrb.mxu2 %v15642_v23  ;;  %v5016_v12 = vpop.eup %5015  ;;  %v15655_v23 = vld [vmem:[#allocation40_spill] sm:$0xff] }
 0x18c   :  { %v1190_v2 = vadd.f32 %v5014_v24, %v1189_v49  ;;  %v8412_v49 = vld [vmem:[%s14865_s2 + $0x768] sm:$0xff]  ;;  %15656 = vst [vmem:[#allocation40_spill] sm:$0xff] %v8418_v40 }
 0x18d   :  { %1397 = vmatpush.msra.mxu0 %v8327_v37  ;;  %1437 = vmatpush.msrb.mxu2 %v15644_v29  ;;  %v15657_v29 = vld [vmem:[#allocation42_spill] sm:$0xff]  ;;  %v15726_v37 = vld [vmem:[#allocation117_spill] sm:$0xff] }
 0x18e   :  { %1398 = vmatmul.f32.vlgmr.msra.gmra.mxu0 %v8166_v26  ;;  %1438 = vmatmul.f32.vlgmr.msrb.gmra.mxu2 %v8166_v26  ;;  %v1194_v59 = vsel %vm1193_vm7, %v5014_v24, %v1190_v2  ;;  %v15653_v24 = vld [vmem:[#allocation37_spill] sm:$0xff]  ;;  %v8425_v2 = vld [vmem:[%s14865_s2 + $0x720] sm:$0xff] }
 0x18f   :  { %1462 = vmatpush.msrb.mxu0 %v8336_v44  ;;  %1502 = vmatpush.msra.mxu2 %v15646_v20  ;;  %v1199_v22 = vsel %vm1196_vm8, %v1198_v21, %v1194_v59  ;;  %15654 = vst [vmem:[#allocation37_spill] sm:$0xff] %v8399_v5  ;;  %v8431_v20 = vld [vmem:[%s14865_s2 + $0x728] sm:$0xff]  ;;  %v8437_v21 = vld [vmem:[%s14865_s2 + $0x230] sm:$0xff] }
 0x190   :  { %v8347_v47 = vmul.f32 %v5016_v12, %v1199_v22  ;;  %15658 = vst [vmem:[#allocation42_spill] sm:$0xff] %v8437_v21  ;;  %v15659_v59 = vld [vmem:[#allocation44_spill] sm:$0xff]  ;;  %v8458_v22 = vld [vmem:[%s14865_s2 + $0x1f0] sm:$0xff] }
 0x191   :  { %1463 = vmatpush.msrb.mxu0 %v8343_v53  ;;  %1503 = vmatpush.msra.mxu2 %v15648_v7  ;;  %v8446_v7 = vld [vmem:[%s14865_s2 + $0x6e0] sm:$0xff]  ;;  %v8452_v12 = vld [vmem:[%s14865_s2 + $0x6e8] sm:$0xff]  ;;  %15660 = vst [vmem:[#allocation44_spill] sm:$0xff] %v8458_v22  ;;  %v15684_v44 = vld [vmem:[#allocation77_spill] sm:$0xff] }
 0x192   :  { %1258 = vmatmul.f32.vlgmr.msra.gmra.mxu1 %v8347_v47  ;;  %1298 = vmatmul.f32.vlgmr.msrb.gmra.mxu3 %v8347_v47  ;;  %v15683_v53 = vld [vmem:[#allocation31_spill] sm:$0xff] }
 0x193   :  { %1464 = vmatpush.msrb.mxu0 %v8352_v50  ;;  %1504 = vmatpush.msra.mxu2 %v7365_v35  ;;  %v8374_v35 = vld [vmem:[%s14865_s2 + $0x7e8] sm:$0xff] }
 0x194   :  { %1402 = vmatpush.msra.mxu1 %v8368_v11  ;;  %1442 = vmatpush.msrb.mxu3 %v8374_v35  ;;  %v8604_v50 = vld [vmem:[%s14865_s2 + $0x4e8] sm:$0xff] }
 0x195   :  { %1465 = vmatpush.msrb.mxu0 %v8359_v34  ;;  %1505 = vmatpush.msra.mxu2 %v15651_v42  ;;  %v15661_v42 = vld [vmem:[#allocation48_spill] sm:$0xff]  ;;  %v8598_v34 = vld [vmem:[%s14865_s2 + $0x4e0] sm:$0xff]  ;;  %15680 = vst [vmem:[#allocation164_spill] sm:$0xff] %v8604_v50 }
 0x196   :  { %1403 = vmatpush.msra.mxu1 %v8387_v56  ;;  %1443 = vmatpush.msrb.mxu3 %v8393_v54 }
 0x197   :  { %1466 = vmatpush.msrb.mxu0 %v8380_v41  ;;  %1506 = vmatpush.msra.mxu2 %v15653_v24  ;;  %v8465_v24 = vld [vmem:[%s14865_s2 + $0x6a0] sm:$0xff]  ;;  %v8585_v41 = vld [vmem:[%s14865_s2 + $0x528] sm:$0xff] }
 0x198   :  { %1404 = vmatpush.msra.mxu1 %v8406_v48  ;;  %1444 = vmatpush.msrb.mxu3 %v8412_v49  ;;  %15676 = vst [vmem:[#allocation162_spill] sm:$0xff] %v8585_v41 }
 0x199   :  { %1467 = vmatpush.msrb.mxu0 %v8399_v5  ;;  %1507 = vmatpush.msra.mxu2 %v15655_v23  ;;  %v8471_v23 = vld [vmem:[%s14865_s2 + $0x6a8] sm:$0xff] }
 0x19a   :  { %1405 = vmatpush.msra.mxu1 %v8425_v2  ;;  %1445 = vmatpush.msrb.mxu3 %v8431_v20  ;;  %v8566_v5 = vld [vmem:[%s14865_s2 + $0x568] sm:$0xff] }
 0x19b   :  { %1468 = vmatpush.msrb.mxu0 %v8418_v40  ;;  %1508 = vmatpush.msra.mxu2 %v15657_v29  ;;  %v8477_v29 = vld [vmem:[%s14865_s2 + $0x1b0] sm:$0xff]  ;;  %v8547_v40 = vld [vmem:[%s14865_s2 + $0x5a8] sm:$0xff]  ;;  %15673 = vst [vmem:[#allocation159_spill] sm:$0xff] %v8566_v5 }
 0x19c   :  { %1338 = vmatmul.f32.vlgmr.msrb.gmra.mxu1 %v8347_v47  ;;  %1378 = vmatmul.f32.vlgmr.msra.gmra.mxu3 %v8347_v47  ;;  %15662 = vst [vmem:[#allocation48_spill] sm:$0xff] %v8477_v29 }
 0x19d   :  { %1469 = vmatpush.msrb.mxu0 %v8437_v21  ;;  %1509 = vmatpush.msra.mxu2 %v15659_v59  ;;  %v15663_v59 = vld [vmem:[#allocation54_spill] sm:$0xff]  ;;  %v8528_v21 = vld [vmem:[%s14865_s2 + $0x5e8] sm:$0xff]  ;;  %15670 = vst [vmem:[#allocation156_spill] sm:$0xff] %v8547_v40 }
 0x19e   :  { %1406 = vmatpush.msra.mxu1 %v8446_v7  ;;  %1446 = vmatpush.msrb.mxu3 %v8452_v12  ;;  %15664 = vst [vmem:[#allocation54_spill] sm:$0xff] %v8496_v0 }
 0x19f   :  { %1470 = vmatpush.msrb.mxu0 %v8458_v22  ;;  %1510 = vmatpush.msra.mxu2 %v15661_v42  ;;  %v8484_v42 = vld [vmem:[%s14865_s2 + $0x660] sm:$0xff] }
 0x1a0   :  { %1407 = vmatpush.msra.mxu1 %v8465_v24  ;;  %1447 = vmatpush.msrb.mxu3 %v8471_v23  ;;  %v8522_v22 = vld [vmem:[%s14865_s2 + $0x5e0] sm:$0xff] }
 0x1a1   :  { %1471 = vmatpush.msrb.mxu0 %v8477_v29  ;;  %1511 = vmatpush.msra.mxu2 %v15663_v59  ;;  %v15665_v59 = vld [vmem:[#allocation57_spill] sm:$0xff]  ;;  %v8509_v29 = vld [vmem:[%s14865_s2 + $0x628] sm:$0xff] }
 0x1a2   :  { %1408 = vmatpush.msra.mxu1 %v8484_v42  ;;  %1448 = vmatpush.msrb.mxu3 %v8490_v1 }
 0x1a3   :  { %1472 = vmatpush.msrb.mxu0 %v8496_v0  ;;  %1512 = vmatpush.msra.mxu2 %v15665_v59  ;;  %v8515_v0 = vld [vmem:[%s14865_s2 + $0x130] sm:$0xff]  ;;  %v15667_v59 = vld [vmem:[#allocation60_spill] sm:$0xff] }
 0x1a4   :  { %1409 = vmatpush.msra.mxu1 %v8503_v62  ;;  %1449 = vmatpush.msrb.mxu3 %v8509_v29  ;;  %15666 = vst [vmem:[#allocation57_spill] sm:$0xff] %v8515_v0 }
 0x1a5   :  { %1473 = vmatpush.msrb.mxu0 %v8515_v0  ;;  %1513 = vmatpush.msra.mxu2 %v15667_v59  ;;  %v8534_v0 = vld [vmem:[%s14865_s2 + $0xf0] sm:$0xff]  ;;  %v8541_v59 = vld [vmem:[%s14865_s2 + $0x5a0] sm:$0xff] }
 0x1a6   :  { %1410 = vmatpush.msra.mxu1 %v8522_v22  ;;  %1450 = vmatpush.msrb.mxu3 %v8528_v21  ;;  %15668 = vst [vmem:[#allocation60_spill] sm:$0xff] %v8534_v0 }
 0x1a7   :  { %1474 = vmatpush.msrb.mxu0 %v8534_v0  ;;  %1514 = vmatpush.msra.mxu2 %v7575_v46  ;;  %15669 = vst [vmem:[#allocation155_spill] sm:$0xff] %v8541_v59  ;;  %v8553_v0 = vld [vmem:[%s14865_s2 + $0xb0] sm:$0xff]  ;;  %v8560_v46 = vld [vmem:[%s14865_s2 + $0x560] sm:$0xff] }
 0x1a8   :  { %1411 = vmatpush.msra.mxu1 %v8541_v59  ;;  %1451 = vmatpush.msrb.mxu3 %v8547_v40  ;;  %15671 = vst [vmem:[#allocation157_spill] sm:$0xff] %v8553_v0 }
 0x1a9   :  { %1475 = vmatpush.msrb.mxu0 %v8553_v0  ;;  %1515 = vmatpush.msra.mxu2 %v7600_v14  ;;  %15672 = vst [vmem:[#allocation158_spill] sm:$0xff] %v8560_v46  ;;  %v8572_v0 = vld [vmem:[%s14865_s2 + $0x70] sm:$0xff]  ;;  %v8579_v14 = vld [vmem:[%s14865_s2 + $0x520] sm:$0xff] }
 0x1aa   :  { %1412 = vmatpush.msra.mxu1 %v8560_v46  ;;  %1452 = vmatpush.msrb.mxu3 %v8566_v5  ;;  %15674 = vst [vmem:[#allocation160_spill] sm:$0xff] %v8572_v0  ;;  %v15844_v5 = vld [vmem:[#allocation14_spill] sm:$0xff] }
 0x1ab   :  { %1476 = vmatpush.msrb.mxu0 %v8572_v0  ;;  %1516 = vmatpush.msra.mxu2 %v7625_v31  ;;  %15675 = vst [vmem:[#allocation161_spill] sm:$0xff] %v8579_v14  ;;  %v8591_v0 = vld [vmem:[%s14865_s2 + $0x30] sm:$0xff] }
 0x1ac   :  { %1413 = vmatpush.msra.mxu1 %v8579_v14  ;;  %1453 = vmatpush.msrb.mxu3 %v8585_v41  ;;  %15677 = vst [vmem:[#allocation163_spill] sm:$0xff] %v8591_v0  ;;  %v15678_v31 = vld [vmem:[#allocation73_spill] sm:$0xff] }
 0x1ad   :  { %1477 = vmatpush.msrb.mxu0 %v8591_v0  ;;  %1517 = vmatpush.msra.mxu2 %v15678_v31  ;;  %15679 = vst [vmem:[#allocation73_spill] sm:$0xff] %v8598_v34  ;;  %v8612_v31 = vld [vmem:[%s14865_s2 + $0x4a0] sm:$0xff]  ;;  %v8618_v0 = vld [vmem:[%s14865_s2 + $0x4a8] sm:$0xff] }
 0x1ae   :  { %1414 = vmatpush.msra.mxu1 %v8598_v34  ;;  %1454 = vmatpush.msrb.mxu3 %v8604_v50  ;;  %15681 = vst [vmem:[#allocation165_spill] sm:$0xff] %v8612_v31  ;;  %v15687_v50 = vld [vmem:[#allocation34_spill] sm:$0xff]  ;;  %v15722_v34 = vld [vmem:[#allocation111_spill] sm:$0xff] }
 0x1af   :  { %1478 = vmatmul.f32.vlgmr.msrb.gmra.mxu0 %v8166_v26  ;;  %1518 = vmatmul.f32.vlgmr.msra.gmra.mxu2 %v8166_v26  ;;  %15682 = vst [vmem:[#allocation166_spill] sm:$0xff] %v8618_v0  ;;  %v8626_v26 = vld [vmem:[%s14865_s2 + $0x460] sm:$0xff] }
 0x1b0   :  { %1415 = vmatpush.msra.mxu1 %v8612_v31  ;;  %1455 = vmatpush.msrb.mxu3 %v8618_v0  ;;  %15685 = vst [vmem:[#allocation31_spill] sm:$0xff] %v8626_v26  ;;  %v8632_v31 = vld [vmem:[%s14865_s2 + $0x468] sm:$0xff]  ;;  %v15688_v0 = vld [vmem:[#allocation83_spill] sm:$0xff] }
 0x1b1   :  { %1687 = vmatpush.msra.mxu0 %v15683_v53  ;;  %1727 = vmatpush.msrb.mxu2 %v15684_v44  ;;  %15686 = vst [vmem:[#allocation77_spill] sm:$0xff] %v8632_v31  ;;  %v8640_v44 = vld [vmem:[%s14865_s2 + $0x420] sm:$0xff]  ;;  %v8646_v53 = vld [vmem:[%s14865_s2 + $0x428] sm:$0xff] }
 0x1b2   :  { %1416 = vmatpush.msra.mxu1 %v8626_v26  ;;  %1456 = vmatpush.msrb.mxu3 %v8632_v31  ;;  %15689 = vst [vmem:[#allocation34_spill] sm:$0xff] %v8640_v44  ;;  %v8668_v31 = vld [vmem:[%s14865_s2 + $0x7b0] sm:$0xff] }
 0x1b3   :  { %1688 = vmatpush.msra.mxu0 %v15687_v50  ;;  %1728 = vmatpush.msrb.mxu2 %v15688_v0  ;;  %15690 = vst [vmem:[#allocation83_spill] sm:$0xff] %v8646_v53  ;;  %v8654_v0 = vld [vmem:[%s14865_s2 + $0x7f0] sm:$0xff]  ;;  %v8660_v50 = vld [vmem:[%s14865_s2 + $0x7f8] sm:$0xff] }
 0x1b4   :  { %1417 = vmatpush.msra.mxu1 %v8640_v44  ;;  %1457 = vmatpush.msrb.mxu3 %v8646_v53  ;;  %15691 = vst [vmem:[#allocation167_spill] sm:$0xff] %v8654_v0  ;;  %v15693_v44 = vld [vmem:[#allocation39_spill] sm:$0xff]  ;;  %v15694_v53 = vld [vmem:[#allocation86_spill] sm:$0xff]  ;;  %v15697_v26 = vld [vmem:[#allocation41_spill] sm:$0xff] }
 0x1b5   :  { %1418 = vmatmul.f32.vlgmr.msra.gmra.mxu1 %v8347_v47  ;;  %1458 = vmatmul.f32.vlgmr.msrb.gmra.mxu3 %v8347_v47  ;;  %15692 = vst [vmem:[#allocation168_spill] sm:$0xff] %v8660_v50 }
 0x1b6   :  { %1482 = vmatpush.msrb.mxu1 %v8654_v0  ;;  %1522 = vmatpush.msra.mxu3 %v8660_v50  ;;  %15695 = vst [vmem:[#allocation39_spill] sm:$0xff] %v8668_v31  ;;  %v8674_v0 = vld [vmem:[%s14865_s2 + $0x7b8] sm:$0xff]  ;;  %v15698_v50 = vld [vmem:[#allocation89_spill] sm:$0xff] }
 0x1b7   :  { %1689 = vmatpush.msra.mxu0 %v15693_v44  ;;  %1729 = vmatpush.msrb.mxu2 %v15694_v53  ;;  %15696 = vst [vmem:[#allocation86_spill] sm:$0xff] %v8674_v0  ;;  %v8682_v44 = vld [vmem:[%s14865_s2 + $0x770] sm:$0xff]  ;;  %v8688_v53 = vld [vmem:[%s14865_s2 + $0x778] sm:$0xff] }
 0x1b8   :  { %1483 = vmatpush.msrb.mxu1 %v8668_v31  ;;  %1523 = vmatpush.msra.mxu3 %v8674_v0  ;;  %15699 = vst [vmem:[#allocation41_spill] sm:$0xff] %v8682_v44  ;;  %v15701_v31 = vld [vmem:[#allocation43_spill] sm:$0xff]  ;;  %v15702_v0 = vld [vmem:[#allocation92_spill] sm:$0xff] }
 0x1b9   :  { %1690 = vmatpush.msra.mxu0 %v15697_v26  ;;  %1730 = vmatpush.msrb.mxu2 %v15698_v50  ;;  %15700 = vst [vmem:[#allocation89_spill] sm:$0xff] %v8688_v53  ;;  %v8696_v26 = vld [vmem:[%s14865_s2 + $0x730] sm:$0xff]  ;;  %v8702_v50 = vld [vmem:[%s14865_s2 + $0x738] sm:$0xff] }
 0x1ba   :  { %1484 = vmatpush.msrb.mxu1 %v8682_v44  ;;  %1524 = vmatpush.msra.mxu3 %v8688_v53  ;;  %15703 = vst [vmem:[#allocation43_spill] sm:$0xff] %v8696_v26  ;;  %v15705_v44 = vld [vmem:[#allocation46_spill] sm:$0xff]  ;;  %v15706_v53 = vld [vmem:[#allocation97_spill] sm:$0xff] }
 0x1bb   :  { %1691 = vmatpush.msra.mxu0 %v15701_v31  ;;  %1731 = vmatpush.msrb.mxu2 %v15702_v0  ;;  %15704 = vst [vmem:[#allocation92_spill] sm:$0xff] %v8702_v50  ;;  %v8710_v31 = vld [vmem:[%s14865_s2 + $0x6f0] sm:$0xff]  ;;  %v8716_v0 = vld [vmem:[%s14865_s2 + $0x6f8] sm:$0xff] }
 0x1bc   :  { %1485 = vmatpush.msrb.mxu1 %v8696_v26  ;;  %1525 = vmatpush.msra.mxu3 %v8702_v50  ;;  %15707 = vst [vmem:[#allocation46_spill] sm:$0xff] %v8710_v31  ;;  %v15709_v26 = vld [vmem:[#allocation51_spill] sm:$0xff]  ;;  %v15710_v50 = vld [vmem:[#allocation102_spill] sm:$0xff] }
 0x1bd   :  { %1692 = vmatpush.msra.mxu0 %v15705_v44  ;;  %1732 = vmatpush.msrb.mxu2 %v15706_v53  ;;  %15708 = vst [vmem:[#allocation97_spill] sm:$0xff] %v8716_v0  ;;  %v8724_v44 = vld [vmem:[%s14865_s2 + $0x6b0] sm:$0xff]  ;;  %v8730_v53 = vld [vmem:[%s14865_s2 + $0x6b8] sm:$0xff] }
 0x1be   :  { %1486 = vmatpush.msrb.mxu1 %v8710_v31  ;;  %1526 = vmatpush.msra.mxu3 %v8716_v0  ;;  %15711 = vst [vmem:[#allocation51_spill] sm:$0xff] %v8724_v44  ;;  %v15713_v31 = vld [vmem:[#allocation56_spill] sm:$0xff]  ;;  %v15714_v0 = vld [vmem:[#allocation105_spill] sm:$0xff] }
 0x1bf   :  { %1693 = vmatpush.msra.mxu0 %v15709_v26  ;;  %1733 = vmatpush.msrb.mxu2 %v15710_v50  ;;  %15712 = vst [vmem:[#allocation102_spill] sm:$0xff] %v8730_v53  ;;  %v8738_v26 = vld [vmem:[%s14865_s2 + $0x670] sm:$0xff]  ;;  %v8744_v50 = vld [vmem:[%s14865_s2 + $0x678] sm:$0xff] }
 0x1c0   :  { %1487 = vmatpush.msrb.mxu1 %v8724_v44  ;;  %1527 = vmatpush.msra.mxu3 %v8730_v53  ;;  %15715 = vst [vmem:[#allocation56_spill] sm:$0xff] %v8738_v26  ;;  %v15717_v44 = vld [vmem:[#allocation59_spill] sm:$0xff]  ;;  %v15718_v53 = vld [vmem:[#allocation108_spill] sm:$0xff] }
 0x1c1   :  { %1694 = vmatpush.msra.mxu0 %v15713_v31  ;;  %1734 = vmatpush.msrb.mxu2 %v15714_v0  ;;  %15716 = vst [vmem:[#allocation105_spill] sm:$0xff] %v8744_v50  ;;  %v8752_v31 = vld [vmem:[%s14865_s2 + $0x630] sm:$0xff] }
 0x1c2   :  { %1488 = vmatpush.msrb.mxu1 %v8738_v26  ;;  %1528 = vmatpush.msra.mxu3 %v8744_v50  ;;  %15719 = vst [vmem:[#allocation59_spill] sm:$0xff] %v8752_v31  ;;  %v15720_v0 = vld [vmem:[#allocation45_spill] sm:$0xff]  ;;  %v15721_v26 = vld [vmem:[#allocation62_spill] sm:$0xff] }
 0x1c3   :  { %1695 = vmatpush.msra.mxu0 %v15717_v44  ;;  %1735 = vmatpush.msrb.mxu2 %v15718_v53  ;;  %v8761_v50 = vld [vmem:[%s14865_s2 + $0x5f0] sm:$0xff]  ;;  %v15725_v53 = vld [vmem:[#allocation64_spill] sm:$0xff] }
 0x1c4   :  { %1489 = vmatpush.msrb.mxu1 %v8752_v31  ;;  %1529 = vmatpush.msra.mxu3 %v15720_v0  ;;  %15723 = vst [vmem:[#allocation108_spill] sm:$0xff] %v8761_v50  ;;  %v15724_v44 = vld [vmem:[#allocation49_spill] sm:$0xff] }
 0x1c5   :  { %1696 = vmatpush.msra.mxu0 %v15721_v26  ;;  %1736 = vmatpush.msrb.mxu2 %v15722_v34  ;;  %v8770_v0 = vld [vmem:[%s14865_s2 + $0x5b0] sm:$0xff]  ;;  %v15728_v34 = vld [vmem:[#allocation55_spill] sm:$0xff]  ;;  %v15729_v26 = vld [vmem:[#allocation68_spill] sm:$0xff] }
 0x1c6   :  { %1490 = vmatpush.msrb.mxu1 %v8761_v50  ;;  %1530 = vmatpush.msra.mxu3 %v15724_v44  ;;  %15727 = vst [vmem:[#allocation45_spill] sm:$0xff] %v8770_v0  ;;  %v8779_v44 = vld [vmem:[%s14865_s2 + $0x570] sm:$0xff]  ;;  %v15733_v50 = vld [vmem:[#allocation126_spill] sm:$0xff] }
 0x1c7   :  { %1697 = vmatpush.msra.mxu0 %v15725_v53  ;;  %1737 = vmatpush.msrb.mxu2 %v15726_v37  ;;  %15730 = vst [vmem:[#allocation62_spill] sm:$0xff] %v8779_v44  ;;  %v15731_v37 = vld [vmem:[#allocation58_spill] sm:$0xff]  ;;  %v15732_v53 = vld [vmem:[#allocation72_spill] sm:$0xff] }
 0x1c8   :  { %1491 = vmatpush.msrb.mxu1 %v8770_v0  ;;  %1531 = vmatpush.msra.mxu3 %v15728_v34  ;;  %v8788_v34 = vld [vmem:[%s14865_s2 + $0x530] sm:$0xff]  ;;  %v15737_v0 = vld [vmem:[#allocation130_spill] sm:$0xff] }
 0x1c9   :  { %1698 = vmatpush.msra.mxu0 %v15729_v26  ;;  %1738 = vmatpush.msrb.mxu2 %v7944_v39  ;;  %15734 = vst [vmem:[#allocation111_spill] sm:$0xff] %v8788_v34  ;;  %v15735_v39 = vld [vmem:[#allocation61_spill] sm:$0xff]  ;;  %v15736_v26 = vld [vmem:[#allocation75_spill] sm:$0xff] }
 0x1ca   :  { %1492 = vmatpush.msrb.mxu1 %v8779_v44  ;;  %1532 = vmatpush.msra.mxu3 %v15731_v37  ;;  %v8797_v37 = vld [vmem:[%s14865_s2 + $0x4f0] sm:$0xff] }
 0x1cb   :  { %1699 = vmatpush.msra.mxu0 %v15732_v53  ;;  %1739 = vmatpush.msrb.mxu2 %v15733_v50  ;;  %15738 = vst [vmem:[#allocation49_spill] sm:$0xff] %v8797_v37  ;;  %v15739_v50 = vld [vmem:[#allocation63_spill] sm:$0xff]  ;;  %v15740_v53 = vld [vmem:[#allocation76_spill] sm:$0xff]  ;;  %v15741_v44 = vld [vmem:[#allocation133_spill] sm:$0xff] }
 0x1cc   :  { %1493 = vmatpush.msrb.mxu1 %v8788_v34  ;;  %1533 = vmatpush.msra.mxu3 %v15735_v39  ;;  %v8806_v39 = vld [vmem:[%s14865_s2 + $0x4b0] sm:$0xff] }
 0x1cd   :  { %1700 = vmatpush.msra.mxu0 %v15736_v26  ;;  %1740 = vmatpush.msrb.mxu2 %v15737_v0  ;;  %15742 = vst [vmem:[#allocation64_spill] sm:$0xff] %v8806_v39  ;;  %v15743_v0 = vld [vmem:[#allocation67_spill] sm:$0xff]  ;;  %v15744_v26 = vld [vmem:[#allocation78_spill] sm:$0xff] }
 0x1ce   :  { %1494 = vmatpush.msrb.mxu1 %v8797_v37  ;;  %1534 = vmatpush.msra.mxu3 %v15739_v50  ;;  %v8815_v50 = vld [vmem:[%s14865_s2 + $0x470] sm:$0xff] }
 0x1cf   :  { %1701 = vmatpush.msra.mxu0 %v15740_v53  ;;  %1741 = vmatpush.msrb.mxu2 %v15741_v44  ;;  %15745 = vst [vmem:[#allocation117_spill] sm:$0xff] %v8815_v50  ;;  %v15746_v44 = vld [vmem:[#allocation71_spill] sm:$0xff] }
 0x1d0   :  { %1495 = vmatpush.msrb.mxu1 %v8806_v39  ;;  %1535 = vmatpush.msra.mxu3 %v15743_v0  ;;  %v15747_v53 = vld [vmem:[#allocation79_spill] sm:$0xff]  ;;  %v8823_v39 = vld [vmem:[%s14865_s2 + $0x3d8] sm:$0xff] }
 0x1d1   :  { %1702 = vmatpush.msra.mxu0 %v15744_v26  ;;  %1742 = vmatpush.msrb.mxu2 %v8034_v25  ;;  %15748 = vst [vmem:[#allocation55_spill] sm:$0xff] %v8823_v39  ;;  %v8829_v25 = vld [vmem:[%s14865_s2 + $0x430] sm:$0xff]  ;;  %v15750_v0 = vld [vmem:[#allocation74_spill] sm:$0xff]  ;;  %v8838_v26 = vld [vmem:[%s14865_s2 + $0x7c0] sm:$0xff] }
 0x1d2   :  { %1496 = vmatpush.msrb.mxu1 %v8815_v50  ;;  %1536 = vmatpush.msra.mxu3 %v15746_v44  ;;  %15749 = vst [vmem:[#allocation68_spill] sm:$0xff] %v8829_v25  ;;  %v15752_v44 = vld [vmem:[#allocation80_spill] sm:$0xff] }
 0x1d3   :  { %1767 = vmatpush.msrb.mxu0 %v15747_v53  ;;  %1807 = vmatpush.msra.mxu2 %v8823_v39  ;;  %15751 = vst [vmem:[#allocation58_spill] sm:$0xff] %v8838_v26  ;;  %v15753_v53 = vld [vmem:[#allocation84_spill] sm:$0xff]  ;;  %v8846_v39 = vld [vmem:[%s14865_s2 + $0x398] sm:$0xff] }
 0x1d4   :  { %1497 = vmatpush.msrb.mxu1 %v8829_v25  ;;  %1537 = vmatpush.msra.mxu3 %v15750_v0  ;;  %15754 = vst [vmem:[#allocation72_spill] sm:$0xff] %v8846_v39  ;;  %v15756_v0 = vld [vmem:[#allocation85_spill] sm:$0xff] }
 0x1d5   :  { %1498 = vmatmul.f32.vlgmr.msrb.gmra.mxu1 %v8347_v47  ;;  %1538 = vmatmul.f32.vlgmr.msra.gmra.mxu3 %v8347_v47  ;;  %v8852_v47 = vld [vmem:[%s14865_s2 + $0x780] sm:$0xff] }
 0x1d6   :  { %1707 = vmatpush.msra.mxu1 %v8838_v26  ;;  %1747 = vmatpush.msrb.mxu3 %v15752_v44  ;;  %15755 = vst [vmem:[#allocation126_spill] sm:$0xff] %v8852_v47  ;;  %v15757_v26 = vld [vmem:[#allocation87_spill] sm:$0xff]  ;;  %v8860_v44 = vld [vmem:[%s14865_s2 + $0x358] sm:$0xff] }
 0x1d7   :  { %1768 = vmatpush.msrb.mxu0 %v15753_v53  ;;  %1808 = vmatpush.msra.mxu2 %v8846_v39  ;;  %15758 = vst [vmem:[#allocation61_spill] sm:$0xff] %v8860_v44  ;;  %v8866_v53 = vld [vmem:[%s14865_s2 + $0x740] sm:$0xff]  ;;  %v15760_v39 = vld [vmem:[#allocation88_spill] sm:$0xff] }
 0x1d8   :  { %1708 = vmatpush.msra.mxu1 %v8852_v47  ;;  %1748 = vmatpush.msrb.mxu3 %v15756_v0  ;;  %15759 = vst [vmem:[#allocation75_spill] sm:$0xff] %v8866_v53  ;;  %v15761_v47 = vld [vmem:[#allocation90_spill] sm:$0xff]  ;;  %v8880_v0 = vld [vmem:[%s14865_s2 + $0x700] sm:$0xff] }
 0x1d9   :  { %1769 = vmatpush.msrb.mxu0 %v15757_v26  ;;  %1809 = vmatpush.msra.mxu2 %v8860_v44  ;;  %v8874_v26 = vld [vmem:[%s14865_s2 + $0x318] sm:$0xff]  ;;  %15763 = vst [vmem:[#allocation63_spill] sm:$0xff] %v8880_v0  ;;  %v15764_v44 = vld [vmem:[#allocation91_spill] sm:$0xff] }
 0x1da   :  { %1709 = vmatpush.msra.mxu1 %v8866_v53  ;;  %1749 = vmatpush.msrb.mxu3 %v15760_v39  ;;  %15762 = vst [vmem:[#allocation130_spill] sm:$0xff] %v8874_v26  ;;  %v15765_v53 = vld [vmem:[#allocation93_spill] sm:$0xff]  ;;  %v8888_v39 = vld [vmem:[%s14865_s2 + $0x2d8] sm:$0xff] }
 0x1db   :  { %1770 = vmatpush.msrb.mxu0 %v15761_v47  ;;  %1810 = vmatpush.msra.mxu2 %v8874_v26  ;;  %15766 = vst [vmem:[#allocation76_spill] sm:$0xff] %v8888_v39  ;;  %v8894_v47 = vld [vmem:[%s14865_s2 + $0x6c0] sm:$0xff]  ;;  %v15768_v26 = vld [vmem:[#allocation94_spill] sm:$0xff] }
 0x1dc   :  { %1710 = vmatpush.msra.mxu1 %v8880_v0  ;;  %1750 = vmatpush.msrb.mxu3 %v15764_v44  ;;  %15767 = vst [vmem:[#allocation133_spill] sm:$0xff] %v8894_v47  ;;  %v15769_v0 = vld [vmem:[#allocation98_spill] sm:$0xff] }
 0x1dd   :  { %1771 = vmatpush.msrb.mxu0 %v15765_v53  ;;  %1811 = vmatpush.msra.mxu2 %v8888_v39  ;;  %v8902_v44 = vld [vmem:[%s14865_s2 + $0x298] sm:$0xff]  ;;  %v8908_v53 = vld [vmem:[%s14865_s2 + $0x680] sm:$0xff] }
 0x1de   :  { %1711 = vmatpush.msra.mxu1 %v8894_v47  ;;  %1751 = vmatpush.msrb.mxu3 %v15768_v26  ;;  %15770 = vst [vmem:[#allocation67_spill] sm:$0xff] %v8902_v44  ;;  %v15772_v39 = vld [vmem:[#allocation99_spill] sm:$0xff]  ;;  %v8916_v26 = vld [vmem:[%s14865_s2 + $0x258] sm:$0xff] }
 0x1df   :  { %1772 = vmatpush.msrb.mxu0 %v15769_v0  ;;  %1812 = vmatpush.msra.mxu2 %v8902_v44  ;;  %15771 = vst [vmem:[#allocation78_spill] sm:$0xff] %v8908_v53  ;;  %v15773_v47 = vld [vmem:[#allocation103_spill] sm:$0xff]  ;;  %v15776_v44 = vld [vmem:[#allocation104_spill] sm:$0xff] }
 0x1e0   :  { %1712 = vmatpush.msra.mxu1 %v8908_v53  ;;  %1752 = vmatpush.msrb.mxu3 %v15772_v39  ;;  %15774 = vst [vmem:[#allocation71_spill] sm:$0xff] %v8916_v26  ;;  %v8922_v0 = vld [vmem:[%s14865_s2 + $0x640] sm:$0xff]  ;;  %v15777_v53 = vld [vmem:[#allocation106_spill] sm:$0xff] }
 0x1e1   :  { %1773 = vmatpush.msrb.mxu0 %v15773_v47  ;;  %1813 = vmatpush.msra.mxu2 %v8916_v26  ;;  %15775 = vst [vmem:[#allocation79_spill] sm:$0xff] %v8922_v0  ;;  %v8930_v39 = vld [vmem:[%s14865_s2 + $0x218] sm:$0xff]  ;;  %v8936_v47 = vld [vmem:[%s14865_s2 + $0x600] sm:$0xff] }
 0x1e2   :  { %1713 = vmatpush.msra.mxu1 %v8922_v0  ;;  %1753 = vmatpush.msrb.mxu3 %v15776_v44  ;;  %15778 = vst [vmem:[#allocation74_spill] sm:$0xff] %v8930_v39  ;;  %v15780_v26 = vld [vmem:[#allocation107_spill] sm:$0xff]  ;;  %v15781_v0 = vld [vmem:[#allocation109_spill] sm:$0xff]  ;;  %v8944_v44 = vld [vmem:[%s14865_s2 + $0x1d8] sm:$0xff] }
 0x1e3   :  { %1774 = vmatpush.msrb.mxu0 %v15777_v53  ;;  %1814 = vmatpush.msra.mxu2 %v8930_v39  ;;  %15779 = vst [vmem:[#allocation80_spill] sm:$0xff] %v8936_v47  ;;  %v8950_v53 = vld [vmem:[%s14865_s2 + $0x5c0] sm:$0xff]  ;;  %v15784_v39 = vld [vmem:[#allocation110_spill] sm:$0xff] }
 0x1e4   :  { %1714 = vmatpush.msra.mxu1 %v8936_v47  ;;  %1754 = vmatpush.msrb.mxu3 %v15780_v26  ;;  %15782 = vst [vmem:[#allocation84_spill] sm:$0xff] %v8944_v44  ;;  %v15785_v47 = vld [vmem:[#allocation113_spill] sm:$0xff]  ;;  %v8958_v26 = vld [vmem:[%s14865_s2 + $0x198] sm:$0xff] }
 0x1e5   :  { %1775 = vmatpush.msrb.mxu0 %v15781_v0  ;;  %1815 = vmatpush.msra.mxu2 %v8944_v44  ;;  %15783 = vst [vmem:[#allocation85_spill] sm:$0xff] %v8950_v53  ;;  %v8964_v0 = vld [vmem:[%s14865_s2 + $0x580] sm:$0xff]  ;;  %v15788_v44 = vld [vmem:[#allocation114_spill] sm:$0xff] }
 0x1e6   :  { %1715 = vmatpush.msra.mxu1 %v8950_v53  ;;  %1755 = vmatpush.msrb.mxu3 %v15784_v39  ;;  %15786 = vst [vmem:[#allocation87_spill] sm:$0xff] %v8958_v26  ;;  %v15789_v53 = vld [vmem:[#allocation119_spill] sm:$0xff]  ;;  %v8972_v39 = vld [vmem:[%s14865_s2 + $0x158] sm:$0xff] }
 0x1e7   :  { %1776 = vmatpush.msrb.mxu0 %v15785_v47  ;;  %1816 = vmatpush.msra.mxu2 %v8958_v26  ;;  %15787 = vst [vmem:[#allocation88_spill] sm:$0xff] %v8964_v0  ;;  %v8978_v47 = vld [vmem:[%s14865_s2 + $0x540] sm:$0xff]  ;;  %v15792_v26 = vld [vmem:[#allocation120_spill] sm:$0xff] }
 0x1e8   :  { %1716 = vmatpush.msra.mxu1 %v8964_v0  ;;  %1756 = vmatpush.msrb.mxu3 %v15788_v44  ;;  %15790 = vst [vmem:[#allocation90_spill] sm:$0xff] %v8972_v39  ;;  %v15793_v0 = vld [vmem:[#allocation124_spill] sm:$0xff]  ;;  %v8986_v44 = vld [vmem:[%s14865_s2 + $0x118] sm:$0xff] }
 0x1e9   :  { %1777 = vmatpush.msrb.mxu0 %v15789_v53  ;;  %1817 = vmatpush.msra.mxu2 %v8972_v39  ;;  %15791 = vst [vmem:[#allocation91_spill] sm:$0xff] %v8978_v47  ;;  %v8992_v53 = vld [vmem:[%s14865_s2 + $0x500] sm:$0xff]  ;;  %v15796_v39 = vld [vmem:[#allocation125_spill] sm:$0xff] }
 0x1ea   :  { %1717 = vmatpush.msra.mxu1 %v8978_v47  ;;  %1757 = vmatpush.msrb.mxu3 %v15792_v26  ;;  %15794 = vst [vmem:[#allocation93_spill] sm:$0xff] %v8986_v44  ;;  %v15797_v47 = vld [vmem:[#allocation128_spill] sm:$0xff]  ;;  %v9000_v26 = vld [vmem:[%s14865_s2 + $0xd8] sm:$0xff] }
 0x1eb   :  { %1778 = vmatpush.msrb.mxu0 %v15793_v0  ;;  %1818 = vmatpush.msra.mxu2 %v8986_v44  ;;  %15795 = vst [vmem:[#allocation94_spill] sm:$0xff] %v8992_v53  ;;  %v9006_v0 = vld [vmem:[%s14865_s2 + $0x4c0] sm:$0xff]  ;;  %v15800_v44 = vld [vmem:[#allocation129_spill] sm:$0xff] }
 0x1ec   :  { %1718 = vmatpush.msra.mxu1 %v8992_v53  ;;  %1758 = vmatpush.msrb.mxu3 %v15796_v39  ;;  %15798 = vst [vmem:[#allocation98_spill] sm:$0xff] %v9000_v26  ;;  %v9013_v39 = vld [vmem:[%s14865_s2 + $0x90] sm:$0xff] }
 0x1ed   :  { %1779 = vmatpush.msrb.mxu0 %v15797_v47  ;;  %1819 = vmatpush.msra.mxu2 %v9000_v26  ;;  %15799 = vst [vmem:[#allocation99_spill] sm:$0xff] %v9006_v0  ;;  %v9019_v47 = vld [vmem:[%s14865_s2 + $0x98] sm:$0xff]  ;;  %v9025_v26 = vld [vmem:[%s14865_s2 + $0x480] sm:$0xff] }
 0x1ee   :  { %1719 = vmatpush.msra.mxu1 %v9006_v0  ;;  %1759 = vmatpush.msrb.mxu3 %v15800_v44  ;;  %15801 = vst [vmem:[#allocation103_spill] sm:$0xff] %v9013_v39  ;;  %v15804_v44 = vld [vmem:[#allocation132_spill] sm:$0xff]  ;;  %v9207_v0 = vld [vmem:[%s14865_s2 + $0x410] sm:$0xff] }
 0x1ef   :  { %1780 = vmatpush.msrb.mxu0 %v9013_v39  ;;  %15802 = vst [vmem:[#allocation104_spill] sm:$0xff] %v9019_v47  ;;  %1820 = vmatpush.msra.mxu2 %v9019_v47  ;;  %v9032_v39 = vld [vmem:[%s14865_s2 + $0x50] sm:$0xff]  ;;  %v9038_v47 = vld [vmem:[%s14865_s2 + $0x58] sm:$0xff] }
 0x1f0   :  { %15803 = vst [vmem:[#allocation106_spill] sm:$0xff] %v9025_v26  ;;  %1720 = vmatpush.msra.mxu1 %v9025_v26  ;;  %1760 = vmatpush.msrb.mxu3 %v15804_v44  ;;  %v9044_v26 = vld [vmem:[%s14865_s2 + $0x440] sm:$0xff] }
 0x1f1   :  { %15805 = vst [vmem:[#allocation107_spill] sm:$0xff] %v9032_v39  ;;  %1781 = vmatpush.msrb.mxu0 %v9032_v39  ;;  %1821 = vmatpush.msra.mxu2 %v9038_v47  ;;  %v15808_v44 = vld [vmem:[#allocation135_spill] sm:$0xff]  ;;  %v9051_v39 = vld [vmem:[%s14865_s2 + $0x10] sm:$0xff] }
 0x1f2   :  { %15806 = vst [vmem:[#allocation109_spill] sm:$0xff] %v9038_v47  ;;  %1721 = vmatpush.msra.mxu1 %v9044_v26  ;;  %1761 = vmatpush.msrb.mxu3 %v15808_v44  ;;  %v9057_v47 = vld [vmem:[%s14865_s2 + $0x18] sm:$0xff]  ;;  %v9070_v44 = vld [vmem:[%s14865_s2 + $0x7d0] sm:$0xff] }
 0x1f3   :  { %15807 = vst [vmem:[#allocation110_spill] sm:$0xff] %v9044_v26  ;;  %1782 = vmatpush.msrb.mxu0 %v9051_v39  ;;  %1822 = vmatpush.msra.mxu2 %v9057_v47  ;;  %v9063_v26 = vld [vmem:[%s14865_s2 + $0x400] sm:$0xff] }
 0x1f4   :  { %15809 = vst [vmem:[#allocation113_spill] sm:$0xff] %v9051_v39  ;;  %1722 = vmatpush.msra.mxu1 %v9063_v26  ;;  %1762 = vmatpush.msrb.mxu3 %v8052_v4  ;;  %v9083_v4 = vld [vmem:[%s14865_s2 + $0x798] sm:$0xff]  ;;  %v9089_v39 = vld [vmem:[%s14865_s2 + $0x750] sm:$0xff] }
 0x1f5   :  { %15810 = vst [vmem:[#allocation114_spill] sm:$0xff] %v9057_v47  ;;  %v9077_v47 = vld [vmem:[%s14865_s2 + $0x790] sm:$0xff] }
 0x1f6   :  { %15811 = vst [vmem:[#allocation119_spill] sm:$0xff] %v9063_v26  ;;  %1787 = vmatpush.msrb.mxu1 %v9070_v44  ;;  %1827 = vmatpush.msra.mxu3 %v8065_v60  ;;  %v9095_v60 = vld [vmem:[%s14865_s2 + $0x758] sm:$0xff]  ;;  %v15829_v26 = vld [vmem:[#allocation123_spill] sm:$0xff] }
 0x1f7   :  { %15812 = vst [vmem:[#allocation120_spill] sm:$0xff] %v9070_v44  ;;  %v15827_v44 = vld [vmem:[#allocation118_spill] sm:$0xff] }
 0x1f8   :  { %15813 = vst [vmem:[#allocation124_spill] sm:$0xff] %v9077_v47  ;;  %1788 = vmatpush.msrb.mxu1 %v9077_v47  ;;  %1828 = vmatpush.msra.mxu3 %v9083_v4  ;;  %v9101_v47 = vld [vmem:[%s14865_s2 + $0x710] sm:$0xff] }
 0x1f9   :  { %15814 = vst [vmem:[#allocation125_spill] sm:$0xff] %v9083_v4  ;;  %v9107_v4 = vld [vmem:[%s14865_s2 + $0x718] sm:$0xff] }
 0x1fa   :  { %15815 = vst [vmem:[#allocation128_spill] sm:$0xff] %v9089_v39  ;;  %1789 = vmatpush.msrb.mxu1 %v9089_v39  ;;  %1829 = vmatpush.msra.mxu3 %v9095_v60  ;;  %v9113_v39 = vld [vmem:[%s14865_s2 + $0x6d0] sm:$0xff] }
 0x1fb   :  { %15816 = vst [vmem:[#allocation129_spill] sm:$0xff] %v9095_v60  ;;  %v9119_v60 = vld [vmem:[%s14865_s2 + $0x6d8] sm:$0xff] }
 0x1fc   :  { %15817 = vst [vmem:[#allocation132_spill] sm:$0xff] %v9101_v47  ;;  %1790 = vmatpush.msrb.mxu1 %v9101_v47  ;;  %1830 = vmatpush.msra.mxu3 %v9107_v4  ;;  %v9125_v47 = vld [vmem:[%s14865_s2 + $0x690] sm:$0xff] }
 0x1fd   :  { %15818 = vst [vmem:[#allocation135_spill] sm:$0xff] %v9107_v4  ;;  %v9131_v4 = vld [vmem:[%s14865_s2 + $0x698] sm:$0xff] }
 0x1fe   :  { %15819 = vst [vmem:[#allocation169_spill] sm:$0xff] %v9113_v39  ;;  %1791 = vmatpush.msrb.mxu1 %v9113_v39  ;;  %1831 = vmatpush.msra.mxu3 %v9119_v60  ;;  %v9137_v39 = vld [vmem:[%s14865_s2 + $0x650] sm:$0xff] }
 0x1ff   :  { %15820 = vst [vmem:[#allocation170_spill] sm:$0xff] %v9119_v60  ;;  %v9143_v60 = vld [vmem:[%s14865_s2 + $0x658] sm:$0xff] }
 0x200   :  { %15821 = vst [vmem:[#allocation171_spill] sm:$0xff] %v9125_v47  ;;  %1792 = vmatpush.msrb.mxu1 %v9125_v47  ;;  %1832 = vmatpush.msra.mxu3 %v9131_v4  ;;  %v15825_v47 = vld [vmem:[#allocation112_spill] sm:$0xff] }
 0x201   :  { %15822 = vst [vmem:[#allocation172_spill] sm:$0xff] %v9131_v4  ;;  %v9150_v4 = vld [vmem:[%s14865_s2 + $0x618] sm:$0xff] }
 0x202   :  { %15823 = vst [vmem:[#allocation173_spill] sm:$0xff] %v9137_v39  ;;  %1793 = vmatpush.msrb.mxu1 %v9137_v39  ;;  %1833 = vmatpush.msra.mxu3 %v9143_v60  ;;  %v9157_v39 = vld [vmem:[%s14865_s2 + $0x5d8] sm:$0xff] }
 0x203   :  { %15824 = vst [vmem:[#allocation174_spill] sm:$0xff] %v9143_v60  ;;  %v15831_v60 = vld [vmem:[#allocation127_spill] sm:$0xff] }
 0x204   :  { %1794 = vmatpush.msrb.mxu1 %v15825_v47  ;;  %15826 = vst [vmem:[#allocation112_spill] sm:$0xff] %v9150_v4  ;;  %1834 = vmatpush.msra.mxu3 %v9150_v4  ;;  %v9164_v47 = vld [vmem:[%s14865_s2 + $0x598] sm:$0xff]  ;;  %v15833_v4 = vld [vmem:[#allocation131_spill] sm:$0xff] }
 0x205   :  { %15828 = vst [vmem:[#allocation118_spill] sm:$0xff] %v9157_v39 }
 0x206   :  { %1795 = vmatpush.msrb.mxu1 %v15827_v44  ;;  %1835 = vmatpush.msra.mxu3 %v9157_v39  ;;  %15830 = vst [vmem:[#allocation123_spill] sm:$0xff] %v9164_v47  ;;  %v9171_v44 = vld [vmem:[%s14865_s2 + $0x558] sm:$0xff] }
 0x207   :  { %15832 = vst [vmem:[#allocation127_spill] sm:$0xff] %v9171_v44  ;;  %v15835_v39 = vld [vmem:[#allocation134_spill] sm:$0xff] }
 0x208   :  { %1796 = vmatpush.msrb.mxu1 %v15829_v26  ;;  %1836 = vmatpush.msra.mxu3 %v9164_v47  ;;  %v9178_v26 = vld [vmem:[%s14865_s2 + $0x518] sm:$0xff] }
 0x209   :  { %15834 = vst [vmem:[#allocation131_spill] sm:$0xff] %v9178_v26 }
 0x20a   :  { %1797 = vmatpush.msrb.mxu1 %v15831_v60  ;;  %1837 = vmatpush.msra.mxu3 %v9171_v44  ;;  %v9185_v60 = vld [vmem:[%s14865_s2 + $0x4d8] sm:$0xff]  ;;  %v1239_v44 = vpop.f32.mrf.mxu0 }
 0x20b   :  { %15836 = vst [vmem:[#allocation134_spill] sm:$0xff] %v9185_v60 }
 0x20c   :  { %1798 = vmatpush.msrb.mxu1 %v15833_v4  ;;  %1838 = vmatpush.msra.mxu3 %v9178_v26  ;;  %v9192_v4 = vld [vmem:[%s14865_s2 + $0x498] sm:$0xff] }
 0x20d   :  { %15837 = vst [vmem:[#allocation175_spill] sm:$0xff] %v9192_v4 }
 0x20e   :  { %1799 = vmatpush.msrb.mxu1 %v15835_v39  ;;  %1839 = vmatpush.msra.mxu3 %v9185_v60  ;;  %v9199_v39 = vld [vmem:[%s14865_s2 + $0x458] sm:$0xff] }
 0x20f   :  { %v1259_v26 = vpop.f32.mrf.mxu1  ;;  %15838 = vst [vmem:[#allocation176_spill] sm:$0xff] %v9199_v39 }
 0x210   :  { %1800 = vmatpush.msrb.mxu1 %v8040_v10  ;;  %1840 = vmatpush.msra.mxu3 %v9192_v4  ;;  %v15839_v10 = vld [vmem:[#allocation5_spill] sm:$0xff]  ;;  %v1260_v47 = vadd.f32 %v1259_v26, %v1239_v44  ;;  %v15842_v44 = vld [vmem:[#allocation6_spill] sm:$0xff] }
 0x211   :  { %v119_v60 = vadd.f32 %v15839_v10, %v8106_v9  ;;  %15840 = vst [vmem:[#allocation5_spill] sm:$0xff] %v9207_v0  ;;  %v160_v26 = vadd.f32 %v15842_v44, %v8141_v33  ;;  %v242_v44 = vadd.f32 %v15844_v5, %v8136_v18 }
 0x212   :  { %1801 = vmatpush.msrb.mxu1 %v8058_v55  ;;  %1841 = vmatpush.msra.mxu3 %v9199_v39  ;;  %v9213_v55 = vld [vmem:[%s14865_s2 + $0x418] sm:$0xff]  ;;  %v1279_v39 = vpop.f32.mrf.mxu2  ;;  %v1319_v9 = vpop.f32.mrf.mxu0 }
 0x213   :  { %15841 = vst [vmem:[#allocation177_spill] sm:$0xff] %v9213_v55  ;;  %v1542_v4 = vadd.f32 %v1260_v47, %v119_v60 }
 0x214   :  { %1802 = vmatpush.msrb.mxu1 %v9207_v0  ;;  %1842 = vmatpush.msra.mxu3 %v9213_v55  ;;  %v15843_v0 = vld [vmem:[#allocation13_spill] sm:$0xff] }
 0x215   :  { %v4937_v53 = vmul.f32 -1.442695, %v1542_v4  ;;  %v1299_v25 = vpop.f32.mrf.mxu3  ;;  %v201_v34 = vadd.f32 %v15843_v0, %v8101_v8 }
 0x216   :  { %v1300_v10 = vadd.f32 %v1299_v25, %v1279_v39 }
 0x217   :  { %5017 = vpow2.f32 %v4937_v53 }
 0x218   :  { %v1543_v50 = vadd.f32 %v1300_v10, %v160_v26 }
 0x219   :  { %v1339_v37 = vpop.f32.mrf.mxu1 }
 0x21a   :  { %v1340_v31 = vadd.f32 %v1339_v37, %v1319_v9  ;;  %v4938_v41 = vmul.f32 -1.442695, %v1543_v50  ;;  %v1359_v4 = vpop.f32.mrf.mxu2  ;;  %v1399_v10 = vpop.f32.mrf.mxu0 }
 0x21c   :  { %v1544_v14 = vadd.f32 %v1340_v31, %v201_v34  ;;  %5019 = vpow2.f32 %v4938_v41 }
 0x21d   :  { %v5018_v13 = vpop.eup %5017 }
 0x21e   :  { %v1556_v47 = vadd.f32 1.0, %v5018_v13  ;;  %v4939_v60 = vmul.f32 -1.442695, %v1544_v14 }
 0x21f   :  { %v1379_v55 = vpop.f32.mrf.mxu3 }
 0x220   :  { %5021 = vrcp.f32 %v1556_v47  ;;  %v1380_v25 = vadd.f32 %v1379_v55, %v1359_v4  ;;  %v1569_v8 = vand.u32 2147483648, %v1556_v47  ;;  %vm1563_vm11 = vweird.f32 %v1556_v47 }
 0x221   :  { %5023 = vpow2.f32 %v4939_v60 }
 0x222   :  { %v1545_v53 = vadd.f32 %v1380_v25, %v242_v44  ;;  %v5020_v39 = vpop.eup %5019  ;;  %v15845_v25 = vld [vmem:[#allocation32_spill] sm:$0xff] }
 0x223   :  { %v9222_v26 = vadd.f32 1.0, %v5020_v39 }
 0x224   :  { %v4940_v0 = vmul.f32 -1.442695, %v1545_v53  ;;  %v283_v53 = vadd.f32 %v15845_v25, %v8133_v6 }
 0x225   :  { %5025 = vrcp.f32 %v9222_v26  ;;  %vm1578_vm0 = vweird.f32 %v9222_v26 }
 0x226   :  { %v9224_v9 = vpop.eup %5021  ;;  %5027 = vpow2.f32 %v4940_v0  ;;  %v1567_v0 = vand.u32 2147483647, %v1556_v47 }
 0x227   :  { %v5024_v41 = vpop.eup %5023  ;;  %v1559_v14 = vmul.f32 %v9224_v9, %v1556_v47  ;;  %vm1564_vm9 = vweird.f32 %v9224_v9 }
 0x228   :  { %v1594_v13 = vadd.f32 1.0, %v5024_v41  ;;  %vm9242_vm12 = vcmp.eq.f32.partialorder %v1567_v0, 8.507059e+37  ;;  %vm9247_vm14 = vmor %vm1563_vm11, %vm1564_vm9 }
 0x229   :  { %v1560_v34 = vsub.f32 1.0, %v1559_v14 }
 0x22a   :  { %5029 = vrcp.f32 %v1594_v13  ;;  %v1605_v28 = vand.u32 2147483647, %v1594_v13  ;;  %vm1601_vm13 = vweird.f32 %v1594_v13 }
 0x22b   :  { %v9228_v31 = vpop.eup %5025  ;;  %v1561_v44 = vmul.f32 %v9224_v9, %v1560_v34  ;;  %v15846_v34 = vld [vmem:[#allocation35_spill] sm:$0xff] }
 0x22c   :  { %v5028_v5 = vpop.eup %5027  ;;  %v1574_v50 = vmul.f32 %v9228_v31, %v9222_v26  ;;  %v324_v59 = vadd.f32 %v15846_v34, %v8187_v19  ;;  %vm1606_vm1 = vcmp.eq.f32.partialorder %v1605_v28, 8.507059e+37  ;;  %vm1579_vm2 = vweird.f32 %v9228_v31 }
 0x22d   :  { %v9230_v37 = vadd.f32 1.0, %v5028_v5  ;;  %v1607_v5 = vand.u32 2147483648, %v1594_v13  ;;  %v1562_v46 = vadd.f32 %v9224_v9, %v1561_v44  ;;  %v1584_v28 = vand.u32 2147483648, %v9222_v26  ;;  %vm1580_vm5 = vmor %vm1578_vm0, %vm1579_vm2 }
 0x22e   :  { %v1575_v41 = vsub.f32 1.0, %v1574_v50  ;;  %v1439_v50 = vpop.f32.mrf.mxu2 }
 0x22f   :  { %5031 = vrcp.f32 %v9230_v37  ;;  %v1608_v47 = vor.u32 1.1754944e-38, %v1607_v5  ;;  %v1622_v34 = vand.u32 2147483648, %v9230_v37  ;;  %v1620_v5 = vand.u32 2147483647, %v9230_v37 }
 0x230   :  { %v5030_v55 = vpop.eup %5029  ;;  %vm1616_vm4 = vweird.f32 %v9230_v37 }
 0x231   :  { %v1597_v60 = vmul.f32 %v5030_v55, %v1594_v13  ;;  %vm1602_vm10 = vweird.f32 %v5030_v55  ;;  %v1566_v13 = vsel %vm9247_vm14, %v9224_v9, %v1562_v46  ;;  %v1582_v46 = vand.u32 2147483647, %v9222_v26  ;;  %v1479_v26 = vpop.f32.mrf.mxu0 }
 0x232   :  { %v1419_v4 = vpop.f32.mrf.mxu1  ;;  %vm1603_vm15 = vmor %vm1601_vm13, %vm1602_vm10  ;;  %vm1621_vm7 = vcmp.eq.f32.partialorder %v1620_v5, 8.507059e+37 }
 0x233   :  { %v1420_v39 = vadd.f32 %v1419_v4, %v1399_v10  ;;  %v1598_v14 = vsub.f32 1.0, %v1597_v60  ;;  %v1623_v4 = vor.u32 1.1754944e-38, %v1622_v34  ;;  %vm1583_vm8 = vcmp.eq.f32.partialorder %v1582_v46, 8.507059e+37 }
 0x235   :  { %v1546_v18 = vadd.f32 %v1420_v39, %v283_v53  ;;  %v1599_v33 = vmul.f32 %v5030_v55, %v1598_v14  ;;  %v5032_v40 = vpop.eup %5031  ;;  %v1576_v53 = vmul.f32 %v9228_v31, %v1575_v41  ;;  %v1570_v39 = vor.u32 1.1754944e-38, %v1569_v8 }
 0x236   :  { %v1612_v60 = vmul.f32 %v5032_v40, %v9230_v37  ;;  %vm1617_vm3 = vweird.f32 %v5032_v40 }
 0x237   :  { %5033 = vtanh.f32 %v1546_v18  ;;  %v1600_v44 = vadd.f32 %v5030_v55, %v1599_v33  ;;  %v1577_v8 = vadd.f32 %v9228_v31, %v1576_v53  ;;  %vm1618_vm6 = vmor %vm1616_vm4, %vm1617_vm3  ;;  %v1585_v53 = vor.u32 1.1754944e-38, %v1584_v28 }
 0x238   :  { %v1459_v25 = vpop.f32.mrf.mxu3  ;;  %v1613_v18 = vsub.f32 1.0, %v1612_v60  ;;  %v1571_v60 = vsel %vm9242_vm12, %v1570_v39, %v1566_v13  ;;  %v15851_v13 = vld [vmem:[#allocation95_spill] sm:$0xff] }
 0x239   :  { %v1460_v0 = vadd.f32 %v1459_v25, %v1439_v50  ;;  %v1604_v14 = vsel %vm1603_vm15, %v5030_v55, %v1600_v44  ;;  %v1581_v10 = vsel %vm1580_vm5, %v9228_v31, %v1577_v8  ;;  %v15852_v8 = vld [vmem:[#allocation96_spill] sm:$0xff] }
 0x23a   :  { %v1609_v33 = vsel %vm1606_vm1, %v1608_v47, %v1604_v14  ;;  %v1614_v41 = vmul.f32 %v5032_v40, %v1613_v18  ;;  %v1586_v37 = vsel %vm1583_vm8, %v1585_v53, %v1581_v10  ;;  %v365_v14 = vadd.f32 %v15851_v13, %v8130_v61 }
 0x23b   :  { %v1547_v19 = vadd.f32 %v1460_v0, %v324_v59  ;;  %v1666_v59 = vmul.f32 %v1609_v33, %v8155_v58  ;;  %v406_v5 = vadd.f32 %v15852_v8, %v8173_v30 }
 0x23c   :  { %v1615_v55 = vadd.f32 %v5032_v40, %v1614_v41 }
 0x23d   :  { %v5034_v50 = vpop.eup %5033  ;;  %5035 = vtanh.f32 %v1547_v19 }
 0x23e   :  { %v1668_v9 = vmul.f32 %v5034_v50, %v1571_v60  ;;  %v1619_v25 = vsel %vm1618_vm6, %v5032_v40, %v1615_v55  ;;  %v1519_v40 = vpop.f32.mrf.mxu2 }
 0x23f   :  { %v1624_v47 = vsel %vm1621_vm7, %v1623_v4, %v1619_v25 }
 0x240   :  { %v9269_v44 = vadd.f32 %v1668_v9, %v1666_v59  ;;  %v1667_v58 = vmul.f32 %v1624_v47, %v8307_v57 }
 0x243   :  { %v5036_v19 = vpop.eup %5035 }
 0x244   :  { %v1669_v39 = vmul.f32 %v5036_v19, %v1586_v37 }
 0x246   :  { %v9273_v0 = vadd.f32 %v1669_v39, %v1667_v58 }
 0x252   :  { %v1499_v18 = vpop.f32.mrf.mxu1 }
 0x253   :  { %v1500_v34 = vadd.f32 %v1499_v18, %v1479_v26 }
 0x255   :  { %v1548_v33 = vadd.f32 %v1500_v34, %v365_v14 }
 0x257   :  { %v4941_v31 = vmul.f32 -1.442695, %v1548_v33 }
 0x258   :  { %v1539_v41 = vpop.f32.mrf.mxu3 }
 0x259   :  { %5037 = vpow2.f32 %v4941_v31  ;;  %v1540_v50 = vadd.f32 %v1539_v41, %v1519_v40 }
 0x25b   :  { %v1549_v60 = vadd.f32 %v1540_v50, %v406_v5  ;;  %v9289_v5 = vld [vmem:[%s14865_s2 + $0x3e8] sm:$0xff] }
 0x25d   :  { %v4942_v57 = vmul.f32 -1.442695, %v1549_v60 }
 0x25f   :  { %v5038_v46 = vpop.eup %5037  ;;  %5039 = vpow2.f32 %v4942_v57 }
 0x260   :  { %v1634_v28 = vadd.f32 1.0, %v5038_v46  ;;  %v9296_v46 = vld [vmem:[%s14865_s2 + $0x3a8] sm:$0xff] }
 0x262   :  { %5041 = vrcp.f32 %v1634_v28  ;;  %v1647_v25 = vand.u32 2147483648, %v1634_v28  ;;  %v1645_v47 = vand.u32 2147483647, %v1634_v28  ;;  %vm1641_vm10 = vweird.f32 %v1634_v28 }
 0x264   :  { %v1648_v39 = vor.u32 1.1754944e-38, %v1647_v25  ;;  %vm1646_vm12 = vcmp.eq.f32.partialorder %v1645_v47, 8.507059e+37  ;;  %v15872_v25 = vld [vmem:[#allocation83_spill] sm:$0xff] }
 0x265   :  { %v5040_v59 = vpop.eup %5039  ;;  %v15874_v47 = vld [vmem:[#allocation167_spill] sm:$0xff] }
 0x266   :  { %v1635_v9 = vadd.f32 1.0, %v5040_v59  ;;  %v15868_v59 = vld [vmem:[#allocation31_spill] sm:$0xff] }
 0x268   :  { %v5042_v55 = vpop.eup %5041  ;;  %5043 = vrcp.f32 %v1635_v9  ;;  %v1662_v34 = vand.u32 2147483648, %v1635_v9  ;;  %v1660_v40 = vand.u32 2147483647, %v1635_v9  ;;  %vm1656_vm14 = vweird.f32 %v1635_v9 }
 0x269   :  { %v1637_v4 = vmul.f32 %v5042_v55, %v1634_v28  ;;  %5045 = vtanh.f32 %v9269_v44  ;;  %vm1642_vm9 = vweird.f32 %v5042_v55  ;;  %v9305_v28 = vld [vmem:[%s14865_s2 + $0x368] sm:$0xff] }
 0x26a   :  { %vm1643_vm11 = vmor %vm1641_vm10, %vm1642_vm9  ;;  %5047 = vtanh.f32 %v9273_v0  ;;  %v1663_v8 = vor.u32 1.1754944e-38, %v1662_v34  ;;  %vm1661_vm0 = vcmp.eq.f32.partialorder %v1660_v40, 8.507059e+37  ;;  %v9485_v34 = vld [vmem:[%s14865_s2 + $0x2b8] sm:$0xff]  ;;  %v15882_v40 = vld [vmem:[#allocation40_spill] sm:$0xff] }
 0x26b   :  { %v1638_v10 = vsub.f32 1.0, %v1637_v4  ;;  %v9455_v4 = vld [vmem:[%s14865_s2 + $0x378] sm:$0xff] }
 0x26d   :  { %v1639_v53 = vmul.f32 %v5042_v55, %v1638_v10  ;;  %v15871_v10 = vld [vmem:[#allocation34_spill] sm:$0xff] }
 0x26e   :  { %v5044_v19 = vpop.eup %5043 }
 0x26f   :  { %v1640_v37 = vadd.f32 %v5042_v55, %v1639_v53  ;;  %v1652_v58 = vmul.f32 %v5044_v19, %v1635_v9  ;;  %v5046_v13 = vpop.eup %5045  ;;  %vm1657_vm13 = vweird.f32 %v5044_v19  ;;  %v15869_v9 = vld [vmem:[#allocation77_spill] sm:$0xff]  ;;  %v15873_v53 = vld [vmem:[#allocation154_spill] sm:$0xff] }
 0x270   :  { %vm1658_vm15 = vmor %vm1656_vm14, %vm1657_vm13  ;;  %v5048_v60 = vpop.eup %5047 }
 0x271   :  { %v1644_v26 = vsel %vm1643_vm11, %v5042_v55, %v1640_v37  ;;  %v1653_v18 = vsub.f32 1.0, %v1652_v58  ;;  %v15870_v55 = vld [vmem:[#allocation30_spill] sm:$0xff]  ;;  %v15875_v37 = vld [vmem:[#allocation168_spill] sm:$0xff]  ;;  %v15876_v58 = vld [vmem:[#allocation33_spill] sm:$0xff] }
 0x272   :  { %v1649_v14 = vsel %vm1646_vm12, %v1648_v39, %v1644_v26  ;;  %v15877_v39 = vld [vmem:[#allocation39_spill] sm:$0xff]  ;;  %v9476_v26 = vld [vmem:[%s14865_s2 + $0x2f8] sm:$0xff] }
 0x273   :  { %v9281_v33 = vmul.f32 %v5046_v13, %v1649_v14  ;;  %v1654_v31 = vmul.f32 %v5044_v19, %v1653_v18  ;;  %v15878_v18 = vld [vmem:[#allocation86_spill] sm:$0xff]  ;;  %v15879_v13 = vld [vmem:[#allocation37_spill] sm:$0xff] }
 0x274   :  { %v15880_v14 = vld [vmem:[#allocation41_spill] sm:$0xff] }
 0x275   :  { %v1655_v41 = vadd.f32 %v5044_v19, %v1654_v31  ;;  %1703 = vmatmul.f32.vlgmr.msra.gmra.mxu0 %v9281_v33  ;;  %1743 = vmatmul.f32.vlgmr.msrb.gmra.mxu2 %v9281_v33  ;;  %v15881_v31 = vld [vmem:[#allocation89_spill] sm:$0xff] }
 0x276   :  { %1847 = vmatpush.msra.mxu0 %v8178_v36  ;;  %1887 = vmatpush.msrb.mxu2 %v9289_v5 }
 0x277   :  { %v1659_v50 = vsel %vm1658_vm15, %v5044_v19, %v1655_v41  ;;  %v9467_v19 = vld [vmem:[%s14865_s2 + $0x338] sm:$0xff]  ;;  %v15883_v41 = vld [vmem:[#allocation43_spill] sm:$0xff] }
 0x278   :  { %v1664_v57 = vsel %vm1661_vm0, %v1663_v8, %v1659_v50  ;;  %1848 = vmatpush.msra.mxu0 %v8192_v3  ;;  %1888 = vmatpush.msrb.mxu2 %v9296_v46  ;;  %v9315_v3 = vld [vmem:[%s14865_s2 + $0x328] sm:$0xff]  ;;  %v9494_v8 = vld [vmem:[%s14865_s2 + $0x278] sm:$0xff] }
 0x279   :  { %v9299_v36 = vmul.f32 %v5048_v60, %v1664_v57  ;;  %v15884_v50 = vld [vmem:[#allocation92_spill] sm:$0xff]  ;;  %v15885_v60 = vld [vmem:[#allocation42_spill] sm:$0xff] }
 0x27a   :  { %1849 = vmatpush.msra.mxu0 %v8201_v16  ;;  %1889 = vmatpush.msrb.mxu2 %v9305_v28  ;;  %v9326_v16 = vld [vmem:[%s14865_s2 + $0x2e8] sm:$0xff]  ;;  %v15886_v57 = vld [vmem:[#allocation46_spill] sm:$0xff] }
 0x27b   :  { %1723 = vmatmul.f32.vlgmr.msra.gmra.mxu1 %v9299_v36  ;;  %1763 = vmatmul.f32.vlgmr.msrb.gmra.mxu3 %v9299_v36 }
 0x27c   :  { %1850 = vmatpush.msra.mxu0 %v8210_v15  ;;  %1867 = vmatpush.msra.mxu1 %v8368_v11  ;;  %v9335_v15 = vld [vmem:[%s14865_s2 + $0x2a8] sm:$0xff]  ;;  %v15856_v11 = vld [vmem:[#allocation158_spill] sm:$0xff] }
 0x27d   :  { %1890 = vmatpush.msrb.mxu2 %v9315_v3  ;;  %1907 = vmatpush.msrb.mxu3 %v8374_v35  ;;  %v9409_v35 = vld [vmem:[%s14865_s2 + $0xa8] sm:$0xff] }
 0x27e   :  { %1783 = vmatmul.f32.vlgmr.msrb.gmra.mxu0 %v9281_v33  ;;  %1823 = vmatmul.f32.vlgmr.msra.gmra.mxu2 %v9281_v33 }
 0x27f   :  { %1851 = vmatpush.msra.mxu0 %v8219_v17  ;;  %1868 = vmatpush.msra.mxu1 %v8387_v56  ;;  %v9344_v17 = vld [vmem:[%s14865_s2 + $0x268] sm:$0xff] }
 0x280   :  { %1891 = vmatpush.msrb.mxu2 %v9326_v16  ;;  %1908 = vmatpush.msrb.mxu3 %v8393_v54  ;;  %v15858_v56 = vld [vmem:[#allocation24_spill] sm:$0xff]  ;;  %v15859_v54 = vld [vmem:[#allocation161_spill] sm:$0xff] }
 0x281   :  { %1852 = vmatpush.msra.mxu0 %v8228_v45  ;;  %1869 = vmatpush.msra.mxu1 %v8406_v48  ;;  %v9355_v45 = vld [vmem:[%s14865_s2 + $0x228] sm:$0xff] }
 0x282   :  { %1892 = vmatpush.msrb.mxu2 %v9335_v15  ;;  %1909 = vmatpush.msrb.mxu3 %v8412_v49  ;;  %v9418_v48 = vld [vmem:[%s14865_s2 + $0x68] sm:$0xff]  ;;  %v15860_v49 = vld [vmem:[#allocation162_spill] sm:$0xff] }
 0x283   :  { %1853 = vmatpush.msra.mxu0 %v8236_v51  ;;  %1870 = vmatpush.msra.mxu1 %v8425_v2  ;;  %v9364_v51 = vld [vmem:[%s14865_s2 + $0x1e8] sm:$0xff]  ;;  %v15861_v2 = vld [vmem:[#allocation25_spill] sm:$0xff] }
 0x284   :  { %1893 = vmatpush.msrb.mxu2 %v9344_v17  ;;  %1910 = vmatpush.msrb.mxu3 %v8431_v20  ;;  %v15862_v20 = vld [vmem:[#allocation73_spill] sm:$0xff] }
 0x285   :  { %1803 = vmatmul.f32.vlgmr.msrb.gmra.mxu1 %v9299_v36  ;;  %1843 = vmatmul.f32.vlgmr.msra.gmra.mxu3 %v9299_v36 }
 0x286   :  { %1854 = vmatpush.msra.mxu0 %v8249_v63  ;;  %1871 = vmatpush.msra.mxu1 %v8446_v7  ;;  %v9373_v63 = vld [vmem:[%s14865_s2 + $0x1a8] sm:$0xff] }
 0x287   :  { %1894 = vmatpush.msrb.mxu2 %v9355_v45  ;;  %1911 = vmatpush.msrb.mxu3 %v8452_v12  ;;  %v15863_v7 = vld [vmem:[#allocation164_spill] sm:$0xff]  ;;  %v15864_v12 = vld [vmem:[#allocation26_spill] sm:$0xff] }
 0x288   :  { %1855 = vmatpush.msra.mxu0 %v8269_v32  ;;  %1872 = vmatpush.msra.mxu1 %v8465_v24  ;;  %v9382_v32 = vld [vmem:[%s14865_s2 + $0x168] sm:$0xff]  ;;  %v15865_v24 = vld [vmem:[#allocation165_spill] sm:$0xff] }
 0x289   :  { %1895 = vmatpush.msrb.mxu2 %v9364_v51  ;;  %1912 = vmatpush.msrb.mxu3 %v8471_v23  ;;  %v15866_v23 = vld [vmem:[#allocation166_spill] sm:$0xff] }
 0x28a   :  { %1856 = vmatpush.msra.mxu0 %v8282_v27  ;;  %1873 = vmatpush.msra.mxu1 %v8484_v42  ;;  %v9400_v27 = vld [vmem:[%s14865_s2 + $0xe8] sm:$0xff]  ;;  %v9446_v42 = vld [vmem:[%s14865_s2 + $0x3b8] sm:$0xff] }
 0x28b   :  { %1896 = vmatpush.msrb.mxu2 %v9373_v63  ;;  %1913 = vmatpush.msrb.mxu3 %v8490_v1  ;;  %v9391_v1 = vld [vmem:[%s14865_s2 + $0x128] sm:$0xff] }
 0x28c   :  { %1857 = vmatpush.msra.mxu0 %v8289_v52  ;;  %1874 = vmatpush.msra.mxu1 %v8503_v62  ;;  %v15853_v62 = vld [vmem:[#allocation155_spill] sm:$0xff]  ;;  %v15854_v52 = vld [vmem:[#allocation156_spill] sm:$0xff] }
 0x28d   :  { %1897 = vmatpush.msrb.mxu2 %v9382_v32  ;;  %1914 = vmatpush.msrb.mxu3 %v8509_v29  ;;  %v15867_v29 = vld [vmem:[#allocation28_spill] sm:$0xff] }
 0x28e   :  { %1858 = vmatpush.msra.mxu0 %v8296_v43  ;;  %1875 = vmatpush.msra.mxu1 %v8522_v22  ;;  %v15855_v43 = vld [vmem:[#allocation21_spill] sm:$0xff]  ;;  %v9437_v22 = vld [vmem:[%s14865_s2 + $0x3f8] sm:$0xff] }
 0x28f   :  { %1898 = vmatpush.msrb.mxu2 %v9391_v1  ;;  %1915 = vmatpush.msrb.mxu3 %v8528_v21  ;;  %v9427_v21 = vld [vmem:[%s14865_s2 + $0x28] sm:$0xff] }
 0x290   :  { %1859 = vmatpush.msra.mxu0 %v8303_v38  ;;  %1876 = vmatpush.msra.mxu1 %v15853_v62  ;;  %v15857_v38 = vld [vmem:[#allocation159_spill] sm:$0xff]  ;;  %v9503_v62 = vld [vmem:[%s14865_s2 + $0x238] sm:$0xff] }
 0x291   :  { %1899 = vmatpush.msrb.mxu2 %v9400_v27  ;;  %1916 = vmatpush.msrb.mxu3 %v15854_v52  ;;  %v15887_v52 = vld [vmem:[#allocation97_spill] sm:$0xff] }
 0x292   :  { %1860 = vmatpush.msra.mxu0 %v15855_v43  ;;  %1877 = vmatpush.msra.mxu1 %v15856_v11  ;;  %v15888_v43 = vld [vmem:[#allocation44_spill] sm:$0xff]  ;;  %v15889_v11 = vld [vmem:[#allocation51_spill] sm:$0xff] }
 0x293   :  { %1900 = vmatpush.msrb.mxu2 %v9409_v35  ;;  %1917 = vmatpush.msrb.mxu3 %v15857_v38  ;;  %v9512_v38 = vld [vmem:[%s14865_s2 + $0x1f8] sm:$0xff] }
 0x294   :  { %1861 = vmatpush.msra.mxu0 %v15858_v56  ;;  %1878 = vmatpush.msra.mxu1 %v15859_v54  ;;  %v15890_v56 = vld [vmem:[#allocation102_spill] sm:$0xff]  ;;  %v15891_v54 = vld [vmem:[#allocation48_spill] sm:$0xff] }
 0x295   :  { %1901 = vmatpush.msrb.mxu2 %v9418_v48  ;;  %1918 = vmatpush.msrb.mxu3 %v15860_v49  ;;  %v15892_v49 = vld [vmem:[#allocation56_spill] sm:$0xff] }
 0x296   :  { %1862 = vmatpush.msra.mxu0 %v15861_v2  ;;  %1879 = vmatpush.msra.mxu1 %v15862_v20  ;;  %v9521_v2 = vld [vmem:[%s14865_s2 + $0x1b8] sm:$0xff]  ;;  %v15893_v20 = vld [vmem:[#allocation105_spill] sm:$0xff] }
 0x297   :  { %1902 = vmatpush.msrb.mxu2 %v9427_v21  ;;  %1919 = vmatpush.msrb.mxu3 %v15863_v7  ;;  %v15894_v7 = vld [vmem:[#allocation54_spill] sm:$0xff] }
 0x298   :  { %1863 = vmatmul.f32.vlgmr.msra.gmra.mxu0 %v9281_v33  ;;  %1903 = vmatmul.f32.vlgmr.msrb.gmra.mxu2 %v9281_v33 }
 0x299   :  { %1927 = vmatpush.msrb.mxu0 %v15864_v12  ;;  %1967 = vmatpush.msra.mxu2 %v9437_v22  ;;  %v15895_v12 = vld [vmem:[#allocation59_spill] sm:$0xff] }
 0x29a   :  { %1880 = vmatpush.msra.mxu1 %v15865_v24  ;;  %1920 = vmatpush.msrb.mxu3 %v15866_v23  ;;  %v9530_v24 = vld [vmem:[%s14865_s2 + $0x178] sm:$0xff] }
 0x29b   :  { %1928 = vmatpush.msrb.mxu0 %v15867_v29  ;;  %1968 = vmatpush.msra.mxu2 %v9446_v42  ;;  %v9536_v23 = vld [vmem:[%s14865_s2 + $0x638] sm:$0xff]  ;;  %v15896_v29 = vld [vmem:[#allocation57_spill] sm:$0xff] }
 0x29c   :  { %1881 = vmatpush.msra.mxu1 %v15868_v59  ;;  %1921 = vmatpush.msrb.mxu3 %v15869_v9  ;;  %v15897_v59 = vld [vmem:[#allocation108_spill] sm:$0xff]  ;;  %v9544_v9 = vld [vmem:[%s14865_s2 + $0x138] sm:$0xff] }
 0x29d   :  { %1929 = vmatpush.msrb.mxu0 %v15870_v55  ;;  %1969 = vmatpush.msra.mxu2 %v9455_v4  ;;  %v9550_v55 = vld [vmem:[%s14865_s2 + $0x5f8] sm:$0xff] }
 0x29e   :  { %1882 = vmatpush.msra.mxu1 %v15871_v10  ;;  %1922 = vmatpush.msrb.mxu3 %v15872_v25  ;;  %v15898_v10 = vld [vmem:[#allocation60_spill] sm:$0xff]  ;;  %v15899_v25 = vld [vmem:[#allocation45_spill] sm:$0xff] }
 0x29f   :  { %1883 = vmatmul.f32.vlgmr.msra.gmra.mxu1 %v9299_v36  ;;  %1923 = vmatmul.f32.vlgmr.msrb.gmra.mxu3 %v9299_v36 }
 0x2a0   :  { %1930 = vmatpush.msrb.mxu0 %v15873_v53  ;;  %1947 = vmatpush.msrb.mxu1 %v15874_v47  ;;  %v9558_v53 = vld [vmem:[%s14865_s2 + $0xf8] sm:$0xff] }
 0x2a1   :  { %1970 = vmatpush.msra.mxu2 %v9467_v19  ;;  %1987 = vmatpush.msra.mxu3 %v15875_v37  ;;  %v9564_v47 = vld [vmem:[%s14865_s2 + $0x5b8] sm:$0xff]  ;;  %v15900_v37 = vld [vmem:[#allocation157_spill] sm:$0xff] }
 0x2a2   :  { %1931 = vmatpush.msrb.mxu0 %v15876_v58  ;;  %1948 = vmatpush.msrb.mxu1 %v15877_v39  ;;  %v15901_v58 = vld [vmem:[#allocation62_spill] sm:$0xff] }
 0x2a3   :  { %1971 = vmatpush.msra.mxu2 %v9476_v26  ;;  %1988 = vmatpush.msra.mxu3 %v15878_v18  ;;  %v9572_v39 = vld [vmem:[%s14865_s2 + $0xb8] sm:$0xff] }
 0x2a4   :  { %1932 = vmatpush.msrb.mxu0 %v15879_v13  ;;  %1949 = vmatpush.msrb.mxu1 %v15880_v14  ;;  %15902 = vst [vmem:[#allocation6_spill] sm:$0xff] %v9572_v39  ;;  %v9578_v18 = vld [vmem:[%s14865_s2 + $0x578] sm:$0xff]  ;;  %v15904_v13 = vld [vmem:[#allocation160_spill] sm:$0xff]  ;;  %v15905_v14 = vld [vmem:[#allocation111_spill] sm:$0xff] }
 0x2a5   :  { %1972 = vmatpush.msra.mxu2 %v9485_v34  ;;  %1989 = vmatpush.msra.mxu3 %v15881_v31  ;;  %15903 = vst [vmem:[#allocation13_spill] sm:$0xff] %v9578_v18  ;;  %v9586_v31 = vld [vmem:[%s14865_s2 + $0x78] sm:$0xff] }
 0x2a6   :  { %1933 = vmatpush.msrb.mxu0 %v15882_v40  ;;  %1950 = vmatpush.msrb.mxu1 %v15883_v41  ;;  %15906 = vst [vmem:[#allocation14_spill] sm:$0xff] %v9586_v31  ;;  %v9592_v40 = vld [vmem:[%s14865_s2 + $0x538] sm:$0xff]  ;;  %v15908_v41 = vld [vmem:[#allocation163_spill] sm:$0xff] }
 0x2a7   :  { %1973 = vmatpush.msra.mxu2 %v9494_v8  ;;  %1990 = vmatpush.msra.mxu3 %v15884_v50  ;;  %15907 = vst [vmem:[#allocation32_spill] sm:$0xff] %v9592_v40  ;;  %v15909_v50 = vld [vmem:[#allocation49_spill] sm:$0xff] }
 0x2a8   :  { %1934 = vmatpush.msrb.mxu0 %v15885_v60  ;;  %1951 = vmatpush.msrb.mxu1 %v15886_v57  ;;  %v9600_v60 = vld [vmem:[%s14865_s2 + $0x38] sm:$0xff] }
 0x2a9   :  { %1974 = vmatpush.msra.mxu2 %v9503_v62  ;;  %1991 = vmatpush.msra.mxu3 %v15887_v52  ;;  %15910 = vst [vmem:[#allocation35_spill] sm:$0xff] %v9600_v60  ;;  %v9606_v57 = vld [vmem:[%s14865_s2 + $0x4f8] sm:$0xff]  ;;  %v15912_v52 = vld [vmem:[#allocation64_spill] sm:$0xff] }
 0x2aa   :  { %1935 = vmatpush.msrb.mxu0 %v15888_v43  ;;  %1952 = vmatpush.msrb.mxu1 %v15889_v11  ;;  %15911 = vst [vmem:[#allocation95_spill] sm:$0xff] %v9606_v57  ;;  %v9615_v43 = vld [vmem:[%s14865_s2 + $0x4b8] sm:$0xff]  ;;  %v9621_v11 = vld [vmem:[%s14865_s2 + $0x3c0] sm:$0xff] }
 0x2ab   :  { %1975 = vmatpush.msra.mxu2 %v9512_v38  ;;  %1992 = vmatpush.msra.mxu3 %v15890_v56  ;;  %15913 = vst [vmem:[#allocation96_spill] sm:$0xff] %v9615_v43  ;;  %v15916_v56 = vld [vmem:[#allocation117_spill] sm:$0xff] }
 0x2ac   :  { %1936 = vmatpush.msrb.mxu0 %v15891_v54  ;;  %1953 = vmatpush.msrb.mxu1 %v15892_v49  ;;  %15914 = vst [vmem:[#allocation155_spill] sm:$0xff] %v9621_v11  ;;  %v9634_v54 = vld [vmem:[%s14865_s2 + $0x478] sm:$0xff]  ;;  %v9640_v49 = vld [vmem:[%s14865_s2 + $0x380] sm:$0xff] }
 0x2ad   :  { %1976 = vmatpush.msra.mxu2 %v9521_v2  ;;  %1993 = vmatpush.msra.mxu3 %v15893_v20  ;;  %15917 = vst [vmem:[#allocation21_spill] sm:$0xff] %v9634_v54  ;;  %v9646_v20 = vld [vmem:[%s14865_s2 + $0x388] sm:$0xff] }
 0x2ae   :  { %1937 = vmatpush.msrb.mxu0 %v15894_v7  ;;  %1954 = vmatpush.msrb.mxu1 %v15895_v12  ;;  %15918 = vst [vmem:[#allocation158_spill] sm:$0xff] %v9640_v49  ;;  %v15920_v7 = vld [vmem:[#allocation68_spill] sm:$0xff]  ;;  %v9653_v12 = vld [vmem:[%s14865_s2 + $0x438] sm:$0xff] }
 0x2af   :  { %1977 = vmatpush.msra.mxu2 %v9530_v24  ;;  %1994 = vmatpush.msra.mxu3 %v9536_v23  ;;  %15919 = vst [vmem:[#allocation159_spill] sm:$0xff] %v9646_v20 }
 0x2b0   :  { %1938 = vmatpush.msrb.mxu0 %v15896_v29  ;;  %1955 = vmatpush.msrb.mxu1 %v15897_v59  ;;  %15921 = vst [vmem:[#allocation24_spill] sm:$0xff] %v9653_v12  ;;  %v9661_v29 = vld [vmem:[%s14865_s2 + $0x340] sm:$0xff]  ;;  %v9667_v59 = vld [vmem:[%s14865_s2 + $0x348] sm:$0xff] }
 0x2b1   :  { %1978 = vmatpush.msra.mxu2 %v9544_v9  ;;  %1995 = vmatpush.msra.mxu3 %v9550_v55  ;;  %15922 = vst [vmem:[#allocation161_spill] sm:$0xff] %v9661_v29 }
 0x2b2   :  { %1939 = vmatpush.msrb.mxu0 %v15898_v10  ;;  %1956 = vmatpush.msrb.mxu1 %v15899_v25  ;;  %15923 = vst [vmem:[#allocation162_spill] sm:$0xff] %v9667_v59  ;;  %v15924_v10 = vld [vmem:[#allocation58_spill] sm:$0xff]  ;;  %v9680_v25 = vld [vmem:[%s14865_s2 + $0x300] sm:$0xff] }
 0x2b3   :  { %1979 = vmatpush.msra.mxu2 %v9558_v53  ;;  %1996 = vmatpush.msra.mxu3 %v9564_v47  ;;  %15926 = vst [vmem:[#allocation73_spill] sm:$0xff] %v9680_v25 }
 0x2b4   :  { %1940 = vmatpush.msrb.mxu0 %v15900_v37  ;;  %1957 = vmatpush.msrb.mxu1 %v15901_v58  ;;  %v9686_v37 = vld [vmem:[%s14865_s2 + $0x308] sm:$0xff]  ;;  %v15928_v58 = vld [vmem:[#allocation126_spill] sm:$0xff] }
 0x2b5   :  { %1980 = vmatpush.msra.mxu2 %v9572_v39  ;;  %1997 = vmatpush.msra.mxu3 %v9578_v18  ;;  %15927 = vst [vmem:[#allocation164_spill] sm:$0xff] %v9686_v37 }
 0x2b6   :  { %1941 = vmatpush.msrb.mxu0 %v15904_v13  ;;  %1958 = vmatpush.msrb.mxu1 %v15905_v14  ;;  %v9693_v13 = vld [vmem:[%s14865_s2 + $0x788] sm:$0xff]  ;;  %v9699_v14 = vld [vmem:[%s14865_s2 + $0x2c0] sm:$0xff] }
 0x2b7   :  { %1981 = vmatpush.msra.mxu2 %v9586_v31  ;;  %1998 = vmatpush.msra.mxu3 %v9592_v40  ;;  %15929 = vst [vmem:[#allocation26_spill] sm:$0xff] %v9693_v13 }
 0x2b8   :  { %1942 = vmatpush.msrb.mxu0 %v15908_v41  ;;  %1959 = vmatpush.msrb.mxu1 %v15909_v50  ;;  %15930 = vst [vmem:[#allocation165_spill] sm:$0xff] %v9699_v14  ;;  %v9705_v41 = vld [vmem:[%s14865_s2 + $0x2c8] sm:$0xff]  ;;  %v15932_v50 = vld [vmem:[#allocation75_spill] sm:$0xff] }
 0x2b9   :  { %1982 = vmatpush.msra.mxu2 %v9600_v60  ;;  %1999 = vmatpush.msra.mxu3 %v9606_v57  ;;  %15931 = vst [vmem:[#allocation166_spill] sm:$0xff] %v9705_v41 }
 0x2ba   :  { %1943 = vmatmul.f32.vlgmr.msrb.gmra.mxu0 %v9281_v33  ;;  %1983 = vmatmul.f32.vlgmr.msra.gmra.mxu2 %v9281_v33  ;;  %v9627_v33 = vld [vmem:[%s14865_s2 + $0x3c8] sm:$0xff] }
 0x2bb   :  { %1960 = vmatpush.msrb.mxu1 %v15912_v52  ;;  %2000 = vmatpush.msra.mxu3 %v9615_v43  ;;  %15915 = vst [vmem:[#allocation156_spill] sm:$0xff] %v9627_v33  ;;  %v9712_v52 = vld [vmem:[%s14865_s2 + $0x748] sm:$0xff] }
 0x2bc   :  { %2152 = vmatpush.msra.mxu0 %v9621_v11  ;;  %2192 = vmatpush.msrb.mxu2 %v9627_v33  ;;  %15933 = vst [vmem:[#allocation28_spill] sm:$0xff] %v9712_v52 }
 0x2bd   :  { %1961 = vmatpush.msrb.mxu1 %v15916_v56  ;;  %2001 = vmatpush.msra.mxu3 %v9634_v54  ;;  %v9718_v56 = vld [vmem:[%s14865_s2 + $0x280] sm:$0xff] }
 0x2be   :  { %2153 = vmatpush.msra.mxu0 %v9640_v49  ;;  %2193 = vmatpush.msrb.mxu2 %v9646_v20  ;;  %15934 = vst [vmem:[#allocation31_spill] sm:$0xff] %v9718_v56  ;;  %v16051_v20 = vld [vmem:[#allocation17_spill] sm:$0xff] }
 0x2bf   :  { %1962 = vmatpush.msrb.mxu1 %v15920_v7  ;;  %2002 = vmatpush.msra.mxu3 %v9653_v12  ;;  %v9724_v7 = vld [vmem:[%s14865_s2 + $0x288] sm:$0xff] }
 0x2c0   :  { %1963 = vmatmul.f32.vlgmr.msrb.gmra.mxu1 %v9299_v36  ;;  %2003 = vmatmul.f32.vlgmr.msra.gmra.mxu3 %v9299_v36  ;;  %v9674_v36 = vld [vmem:[%s14865_s2 + $0x7c8] sm:$0xff]  ;;  %15935 = vst [vmem:[#allocation77_spill] sm:$0xff] %v9724_v7 }
 0x2c1   :  { %2154 = vmatpush.msra.mxu0 %v9661_v29  ;;  %2194 = vmatpush.msrb.mxu2 %v9667_v59  ;;  %15925 = vst [vmem:[#allocation25_spill] sm:$0xff] %v9674_v36  ;;  %v16040_v59 = vld [vmem:[#allocation114_spill] sm:$0xff]  ;;  %v16050_v12 = vld [vmem:[#allocation144_spill] sm:$0xff] }
 0x2c2   :  { %2172 = vmatpush.msra.mxu1 %v15924_v10  ;;  %2212 = vmatpush.msrb.mxu3 %v9674_v36  ;;  %v15936_v10 = vld [vmem:[#allocation63_spill] sm:$0xff]  ;;  %v204_v49 = vadd.f32 %v16051_v20, %v16050_v12 }
 0x2c3   :  { %2155 = vmatpush.msra.mxu0 %v9680_v25  ;;  %2195 = vmatpush.msrb.mxu2 %v9686_v37 }
 0x2c4   :  { %2173 = vmatpush.msra.mxu1 %v15928_v58  ;;  %2213 = vmatpush.msrb.mxu3 %v9693_v13  ;;  %v9731_v58 = vld [vmem:[%s14865_s2 + $0x708] sm:$0xff] }
 0x2c5   :  { %2156 = vmatpush.msra.mxu0 %v9699_v14  ;;  %2196 = vmatpush.msrb.mxu2 %v9705_v41  ;;  %15937 = vst [vmem:[#allocation30_spill] sm:$0xff] %v9731_v58  ;;  %v15998_v41 = vld [vmem:[#allocation67_spill] sm:$0xff]  ;;  %v15999_v14 = vld [vmem:[#allocation129_spill] sm:$0xff] }
 0x2c6   :  { %2174 = vmatpush.msra.mxu1 %v15932_v50  ;;  %2214 = vmatpush.msrb.mxu3 %v9712_v52  ;;  %v9737_v50 = vld [vmem:[%s14865_s2 + $0x240] sm:$0xff]  ;;  %v15981_v52 = vld [vmem:[#allocation72_spill] sm:$0xff] }
 0x2c7   :  { %2157 = vmatpush.msra.mxu0 %v9718_v56  ;;  %2197 = vmatpush.msrb.mxu2 %v9724_v7  ;;  %15938 = vst [vmem:[#allocation34_spill] sm:$0xff] %v9737_v50  ;;  %v9743_v7 = vld [vmem:[%s14865_s2 + $0x248] sm:$0xff]  ;;  %v15978_v56 = vld [vmem:[#allocation106_spill] sm:$0xff] }
 0x2c8   :  { %2175 = vmatpush.msra.mxu1 %v15936_v10  ;;  %2215 = vmatpush.msrb.mxu3 %v9731_v58  ;;  %15939 = vst [vmem:[#allocation83_spill] sm:$0xff] %v9743_v7  ;;  %v15940_v10 = vld [vmem:[#allocation133_spill] sm:$0xff]  ;;  %v9750_v58 = vld [vmem:[%s14865_s2 + $0x6c8] sm:$0xff] }
 0x2c9   :  { %2158 = vmatpush.msra.mxu0 %v9737_v50  ;;  %2198 = vmatpush.msrb.mxu2 %v9743_v7  ;;  %15941 = vst [vmem:[#allocation154_spill] sm:$0xff] %v9750_v58  ;;  %v9756_v50 = vld [vmem:[%s14865_s2 + $0x200] sm:$0xff]  ;;  %v9762_v7 = vld [vmem:[%s14865_s2 + $0x208] sm:$0xff] }
 0x2ca   :  { %2176 = vmatpush.msra.mxu1 %v15940_v10  ;;  %2216 = vmatpush.msrb.mxu3 %v9750_v58  ;;  %15942 = vst [vmem:[#allocation167_spill] sm:$0xff] %v9756_v50  ;;  %v15944_v10 = vld [vmem:[#allocation78_spill] sm:$0xff]  ;;  %v9769_v58 = vld [vmem:[%s14865_s2 + $0x688] sm:$0xff] }
 0x2cb   :  { %2159 = vmatpush.msra.mxu0 %v9756_v50  ;;  %15943 = vst [vmem:[#allocation168_spill] sm:$0xff] %v9762_v7  ;;  %2199 = vmatpush.msrb.mxu2 %v9762_v7  ;;  %v9775_v50 = vld [vmem:[%s14865_s2 + $0x1c0] sm:$0xff]  ;;  %v9781_v7 = vld [vmem:[%s14865_s2 + $0x1c8] sm:$0xff] }
 0x2cc   :  { %2177 = vmatpush.msra.mxu1 %v15944_v10  ;;  %15945 = vst [vmem:[#allocation33_spill] sm:$0xff] %v9769_v58  ;;  %2217 = vmatpush.msrb.mxu3 %v9769_v58  ;;  %v15948_v10 = vld [vmem:[#allocation79_spill] sm:$0xff]  ;;  %v9788_v58 = vld [vmem:[%s14865_s2 + $0x648] sm:$0xff] }
 0x2cd   :  { %15946 = vst [vmem:[#allocation39_spill] sm:$0xff] %v9775_v50  ;;  %2160 = vmatpush.msra.mxu0 %v9775_v50  ;;  %2200 = vmatpush.msrb.mxu2 %v9781_v7  ;;  %v9794_v50 = vld [vmem:[%s14865_s2 + $0x180] sm:$0xff] }
 0x2ce   :  { %15947 = vst [vmem:[#allocation86_spill] sm:$0xff] %v9781_v7  ;;  %2178 = vmatpush.msra.mxu1 %v15948_v10  ;;  %2218 = vmatpush.msrb.mxu3 %v9788_v58  ;;  %v9800_v7 = vld [vmem:[%s14865_s2 + $0x188] sm:$0xff] }
 0x2cf   :  { %15949 = vst [vmem:[#allocation37_spill] sm:$0xff] %v9788_v58  ;;  %2161 = vmatpush.msra.mxu0 %v9794_v50  ;;  %2201 = vmatpush.msrb.mxu2 %v9800_v7  ;;  %v15952_v10 = vld [vmem:[#allocation80_spill] sm:$0xff] }
 0x2d0   :  { %15950 = vst [vmem:[#allocation41_spill] sm:$0xff] %v9794_v50  ;;  %2179 = vmatpush.msra.mxu1 %v15952_v10  ;;  %v9807_v58 = vld [vmem:[%s14865_s2 + $0x608] sm:$0xff]  ;;  %v9813_v50 = vld [vmem:[%s14865_s2 + $0x140] sm:$0xff]  ;;  %v15956_v10 = vld [vmem:[#allocation85_spill] sm:$0xff] }
 0x2d1   :  { %15951 = vst [vmem:[#allocation89_spill] sm:$0xff] %v9800_v7  ;;  %2219 = vmatpush.msrb.mxu3 %v9807_v58  ;;  %2162 = vmatpush.msra.mxu0 %v9813_v50  ;;  %v9819_v7 = vld [vmem:[%s14865_s2 + $0x148] sm:$0xff] }
 0x2d2   :  { %15953 = vst [vmem:[#allocation40_spill] sm:$0xff] %v9807_v58  ;;  %2202 = vmatpush.msrb.mxu2 %v9819_v7  ;;  %2180 = vmatpush.msra.mxu1 %v15956_v10  ;;  %v9826_v58 = vld [vmem:[%s14865_s2 + $0x5c8] sm:$0xff] }
 0x2d3   :  { %15954 = vst [vmem:[#allocation43_spill] sm:$0xff] %v9813_v50  ;;  %2220 = vmatpush.msrb.mxu3 %v9826_v58  ;;  %v9832_v50 = vld [vmem:[%s14865_s2 + $0x100] sm:$0xff]  ;;  %v15960_v10 = vld [vmem:[#allocation88_spill] sm:$0xff] }
 0x2d4   :  { %15955 = vst [vmem:[#allocation92_spill] sm:$0xff] %v9819_v7  ;;  %2163 = vmatpush.msra.mxu0 %v9832_v50  ;;  %v9838_v7 = vld [vmem:[%s14865_s2 + $0x108] sm:$0xff]  ;;  %2181 = vmatpush.msra.mxu1 %v15960_v10  ;;  %v15964_v10 = vld [vmem:[#allocation91_spill] sm:$0xff] }
 0x2d5   :  { %15957 = vst [vmem:[#allocation42_spill] sm:$0xff] %v9826_v58  ;;  %2203 = vmatpush.msrb.mxu2 %v9838_v7  ;;  %v9845_v58 = vld [vmem:[%s14865_s2 + $0x588] sm:$0xff] }
 0x2d6   :  { %15958 = vst [vmem:[#allocation46_spill] sm:$0xff] %v9832_v50  ;;  %2221 = vmatpush.msrb.mxu3 %v9845_v58  ;;  %v9851_v50 = vld [vmem:[%s14865_s2 + $0xc0] sm:$0xff]  ;;  %2182 = vmatpush.msra.mxu1 %v15964_v10  ;;  %v15968_v10 = vld [vmem:[#allocation94_spill] sm:$0xff] }
 0x2d7   :  { %15959 = vst [vmem:[#allocation97_spill] sm:$0xff] %v9838_v7  ;;  %2164 = vmatpush.msra.mxu0 %v9851_v50  ;;  %v9857_v7 = vld [vmem:[%s14865_s2 + $0xc8] sm:$0xff] }
 0x2d8   :  { %15961 = vst [vmem:[#allocation44_spill] sm:$0xff] %v9845_v58  ;;  %2204 = vmatpush.msrb.mxu2 %v9857_v7  ;;  %v9864_v58 = vld [vmem:[%s14865_s2 + $0x548] sm:$0xff]  ;;  %2183 = vmatpush.msra.mxu1 %v15968_v10  ;;  %v15972_v10 = vld [vmem:[#allocation99_spill] sm:$0xff] }
 0x2d9   :  { %15962 = vst [vmem:[#allocation51_spill] sm:$0xff] %v9851_v50  ;;  %2222 = vmatpush.msrb.mxu3 %v9864_v58  ;;  %v9870_v50 = vld [vmem:[%s14865_s2 + $0x80] sm:$0xff] }
 0x2da   :  { %15963 = vst [vmem:[#allocation102_spill] sm:$0xff] %v9857_v7  ;;  %2165 = vmatpush.msra.mxu0 %v9870_v50  ;;  %v9876_v7 = vld [vmem:[%s14865_s2 + $0x88] sm:$0xff]  ;;  %2184 = vmatpush.msra.mxu1 %v15972_v10  ;;  %v9920_v10 = vld [vmem:[%s14865_s2 + $0x3d0] sm:$0xff] }
 0x2db   :  { %15965 = vst [vmem:[#allocation48_spill] sm:$0xff] %v9864_v58  ;;  %2205 = vmatpush.msrb.mxu2 %v9876_v7  ;;  %v9883_v58 = vld [vmem:[%s14865_s2 + $0x508] sm:$0xff] }
 0x2dc   :  { %15966 = vst [vmem:[#allocation56_spill] sm:$0xff] %v9870_v50  ;;  %2223 = vmatpush.msrb.mxu3 %v9883_v58  ;;  %v9889_v50 = vld [vmem:[%s14865_s2 + $0x40] sm:$0xff]  ;;  %2185 = vmatpush.msra.mxu1 %v15978_v56  ;;  %v9942_v56 = vld [vmem:[%s14865_s2 + $0x448] sm:$0xff] }
 0x2dd   :  { %15967 = vst [vmem:[#allocation105_spill] sm:$0xff] %v9876_v7  ;;  %2166 = vmatpush.msra.mxu0 %v9889_v50  ;;  %v9895_v7 = vld [vmem:[%s14865_s2 + $0x48] sm:$0xff] }
 0x2de   :  { %15969 = vst [vmem:[#allocation54_spill] sm:$0xff] %v9883_v58  ;;  %2206 = vmatpush.msrb.mxu2 %v9895_v7  ;;  %v9902_v58 = vld [vmem:[%s14865_s2 + $0x4c8] sm:$0xff] }
 0x2df   :  { %15970 = vst [vmem:[#allocation59_spill] sm:$0xff] %v9889_v50  ;;  %2224 = vmatpush.msrb.mxu3 %v9902_v58  ;;  %v9908_v50 = vld [vmem:[%s14865_s2] sm:$0xff] }
 0x2e0   :  { %15971 = vst [vmem:[#allocation57_spill] sm:$0xff] %v9895_v7  ;;  %2167 = vmatpush.msra.mxu0 %v9908_v50  ;;  %v9914_v7 = vld [vmem:[%s14865_s2 + $0x8] sm:$0xff] }
 0x2e1   :  { %15973 = vst [vmem:[#allocation108_spill] sm:$0xff] %v9902_v58  ;;  %2207 = vmatpush.msrb.mxu2 %v9914_v7  ;;  %v15977_v58 = vld [vmem:[#allocation55_spill] sm:$0xff] }
 0x2e2   :  { %15974 = vst [vmem:[#allocation60_spill] sm:$0xff] %v9908_v50  ;;  %2232 = vmatpush.msrb.mxu0 %v9920_v10  ;;  %v9928_v50 = vld [vmem:[%s14865_s2 + $0x488] sm:$0xff] }
 0x2e3   :  { %15975 = vst [vmem:[#allocation45_spill] sm:$0xff] %v9914_v7  ;;  %2272 = vmatpush.msra.mxu2 %v15977_v58  ;;  %2225 = vmatpush.msrb.mxu3 %v9928_v50  ;;  %v9934_v7 = vld [vmem:[%s14865_s2 + $0x390] sm:$0xff] }
 0x2e4   :  { %15976 = vst [vmem:[#allocation157_spill] sm:$0xff] %v9920_v10  ;;  %2233 = vmatpush.msrb.mxu0 %v9934_v7  ;;  %v15982_v10 = vld [vmem:[#allocation110_spill] sm:$0xff]  ;;  %v9948_v58 = vld [vmem:[%s14865_s2 + $0x350] sm:$0xff] }
 0x2e5   :  { %15979 = vst [vmem:[#allocation62_spill] sm:$0xff] %v9928_v50  ;;  %2273 = vmatpush.msra.mxu2 %v15981_v52  ;;  %2186 = vmatpush.msra.mxu1 %v15982_v10  ;;  %v15985_v50 = vld [vmem:[#allocation61_spill] sm:$0xff]  ;;  %v9956_v52 = vld [vmem:[%s14865_s2 + $0x408] sm:$0xff] }
 0x2e6   :  { %15980 = vst [vmem:[#allocation160_spill] sm:$0xff] %v9934_v7  ;;  %2226 = vmatpush.msrb.mxu3 %v9942_v56  ;;  %2234 = vmatpush.msrb.mxu0 %v9948_v58  ;;  %v15986_v7 = vld [vmem:[#allocation119_spill] sm:$0xff]  ;;  %v9962_v10 = vld [vmem:[%s14865_s2 + $0x310] sm:$0xff] }
 0x2e7   :  { %15983 = vst [vmem:[#allocation111_spill] sm:$0xff] %v9942_v56  ;;  %2274 = vmatpush.msra.mxu2 %v15985_v50  ;;  %2187 = vmatpush.msra.mxu1 %v15986_v7  ;;  %v15989_v56 = vld [vmem:[#allocation120_spill] sm:$0xff]  ;;  %v9970_v7 = vld [vmem:[%s14865_s2 + $0x7d8] sm:$0xff]  ;;  %v9976_v50 = vld [vmem:[%s14865_s2 + $0x2d0] sm:$0xff] }
 0x2e8   :  { %15984 = vst [vmem:[#allocation163_spill] sm:$0xff] %v9948_v58  ;;  %2227 = vmatpush.msrb.mxu3 %v9956_v52  ;;  %2235 = vmatpush.msrb.mxu0 %v9962_v10  ;;  %v15990_v58 = vld [vmem:[#allocation130_spill] sm:$0xff] }
 0x2e9   :  { %15987 = vst [vmem:[#allocation49_spill] sm:$0xff] %v9956_v52  ;;  %2252 = vmatpush.msrb.mxu1 %v15989_v56  ;;  %2275 = vmatpush.msra.mxu2 %v15990_v58  ;;  %v15993_v52 = vld [vmem:[#allocation124_spill] sm:$0xff]  ;;  %v15995_v56 = vld [vmem:[#allocation125_spill] sm:$0xff] }
 0x2ea   :  { %15988 = vst [vmem:[#allocation64_spill] sm:$0xff] %v9962_v10  ;;  %2292 = vmatpush.msra.mxu3 %v9970_v7  ;;  %2236 = vmatpush.msrb.mxu0 %v9976_v50  ;;  %v15994_v10 = vld [vmem:[#allocation76_spill] sm:$0xff]  ;;  %v9985_v58 = vld [vmem:[%s14865_s2 + $0x290] sm:$0xff] }
 0x2eb   :  { %15991 = vst [vmem:[#allocation117_spill] sm:$0xff] %v9970_v7  ;;  %2253 = vmatpush.msrb.mxu1 %v15993_v52  ;;  %2276 = vmatpush.msra.mxu2 %v15994_v10  ;;  %v15997_v7 = vld [vmem:[#allocation128_spill] sm:$0xff]  ;;  %v9994_v52 = vld [vmem:[%s14865_s2 + $0x250] sm:$0xff] }
 0x2ec   :  { %15992 = vst [vmem:[#allocation68_spill] sm:$0xff] %v9976_v50  ;;  %2293 = vmatpush.msra.mxu3 %v15995_v56  ;;  %2237 = vmatpush.msrb.mxu0 %v9985_v58  ;;  %v16001_v10 = vld [vmem:[#allocation132_spill] sm:$0xff]  ;;  %v16002_v56 = vld [vmem:[#allocation71_spill] sm:$0xff] }
 0x2ed   :  { %15996 = vst [vmem:[#allocation58_spill] sm:$0xff] %v9985_v58  ;;  %2254 = vmatpush.msrb.mxu1 %v15997_v7  ;;  %2277 = vmatpush.msra.mxu2 %v15998_v41  ;;  %v16003_v50 = vld [vmem:[#allocation135_spill] sm:$0xff]  ;;  %v10003_v7 = vld [vmem:[%s14865_s2 + $0x210] sm:$0xff]  ;;  %v16006_v41 = vld [vmem:[#allocation74_spill] sm:$0xff] }
 0x2ee   :  { %2294 = vmatpush.msra.mxu3 %v15999_v14  ;;  %16000 = vst [vmem:[#allocation126_spill] sm:$0xff] %v9994_v52  ;;  %2238 = vmatpush.msrb.mxu0 %v9994_v52  ;;  %v16005_v14 = vld [vmem:[#allocation169_spill] sm:$0xff]  ;;  %v16007_v58 = vld [vmem:[#allocation170_spill] sm:$0xff]  ;;  %v16011_v52 = vld [vmem:[#allocation172_spill] sm:$0xff] }
 0x2ef   :  { %2255 = vmatpush.msrb.mxu1 %v16001_v10  ;;  %2278 = vmatpush.msra.mxu2 %v16002_v56  ;;  %16004 = vst [vmem:[#allocation75_spill] sm:$0xff] %v10003_v7  ;;  %v10012_v10 = vld [vmem:[%s14865_s2 + $0x1d0] sm:$0xff]  ;;  %v16010_v56 = vld [vmem:[#allocation84_spill] sm:$0xff] }
 0x2f0   :  { %2295 = vmatpush.msra.mxu3 %v16003_v50  ;;  %2239 = vmatpush.msrb.mxu0 %v10003_v7  ;;  %16008 = vst [vmem:[#allocation63_spill] sm:$0xff] %v10012_v10  ;;  %v16009_v50 = vld [vmem:[#allocation171_spill] sm:$0xff]  ;;  %v16015_v7 = vld [vmem:[#allocation174_spill] sm:$0xff] }
 0x2f1   :  { %2256 = vmatpush.msrb.mxu1 %v16005_v14  ;;  %2279 = vmatpush.msra.mxu2 %v16006_v41  ;;  %v10021_v14 = vld [vmem:[%s14865_s2 + $0x190] sm:$0xff]  ;;  %v16014_v41 = vld [vmem:[#allocation87_spill] sm:$0xff] }
 0x2f2   :  { %2296 = vmatpush.msra.mxu3 %v16007_v58  ;;  %2240 = vmatpush.msrb.mxu0 %v10012_v10  ;;  %16012 = vst [vmem:[#allocation133_spill] sm:$0xff] %v10021_v14  ;;  %v16013_v58 = vld [vmem:[#allocation173_spill] sm:$0xff]  ;;  %v1704_v10 = vpop.f32.mrf.mxu0 }
 0x2f3   :  { %2257 = vmatpush.msrb.mxu1 %v16009_v50  ;;  %2280 = vmatpush.msra.mxu2 %v16010_v56  ;;  %v10030_v50 = vld [vmem:[%s14865_s2 + $0x150] sm:$0xff]  ;;  %v16018_v56 = vld [vmem:[#allocation90_spill] sm:$0xff] }
 0x2f4   :  { %2297 = vmatpush.msra.mxu3 %v16011_v52  ;;  %2241 = vmatpush.msrb.mxu0 %v10021_v14  ;;  %16016 = vst [vmem:[#allocation78_spill] sm:$0xff] %v10030_v50  ;;  %v10036_v52 = vld [vmem:[%s14865_s2 + $0x610] sm:$0xff]  ;;  %v16031_v14 = vld [vmem:[#allocation127_spill] sm:$0xff] }
 0x2f5   :  { %2258 = vmatpush.msrb.mxu1 %v16013_v58  ;;  %2281 = vmatpush.msra.mxu2 %v16014_v41  ;;  %16017 = vst [vmem:[#allocation79_spill] sm:$0xff] %v10036_v52  ;;  %v16019_v58 = vld [vmem:[#allocation112_spill] sm:$0xff]  ;;  %v10050_v41 = vld [vmem:[%s14865_s2 + $0x5d0] sm:$0xff] }
 0x2f6   :  { %2298 = vmatpush.msra.mxu3 %v16015_v7  ;;  %2242 = vmatpush.msrb.mxu0 %v10030_v50  ;;  %v10044_v7 = vld [vmem:[%s14865_s2 + $0x110] sm:$0xff]  ;;  %16021 = vst [vmem:[#allocation85_spill] sm:$0xff] %v10050_v41 }
 0x2f7   :  { %2259 = vmatpush.msrb.mxu1 %v10036_v52  ;;  %2282 = vmatpush.msra.mxu2 %v16018_v56  ;;  %16020 = vst [vmem:[#allocation80_spill] sm:$0xff] %v10044_v7  ;;  %v16022_v50 = vld [vmem:[#allocation93_spill] sm:$0xff]  ;;  %v16023_v52 = vld [vmem:[#allocation118_spill] sm:$0xff] }
 0x2f8   :  { %2299 = vmatpush.msra.mxu3 %v16019_v58  ;;  %2243 = vmatpush.msrb.mxu0 %v10044_v7  ;;  %v10058_v56 = vld [vmem:[%s14865_s2 + $0xd0] sm:$0xff]  ;;  %v16026_v7 = vld [vmem:[#allocation98_spill] sm:$0xff]  ;;  %v1724_v13 = vpop.f32.mrf.mxu1 }
 0x2f9   :  { %2260 = vmatpush.msrb.mxu1 %v10050_v41  ;;  %2283 = vmatpush.msra.mxu2 %v16022_v50  ;;  %16024 = vst [vmem:[#allocation88_spill] sm:$0xff] %v10058_v56  ;;  %v10064_v58 = vld [vmem:[%s14865_s2 + $0x590] sm:$0xff]  ;;  %v16027_v41 = vld [vmem:[#allocation123_spill] sm:$0xff]  ;;  %v1725_v25 = vadd.f32 %v1724_v13, %v1704_v10 }
 0x2fa   :  { %2300 = vmatpush.msra.mxu3 %v16023_v52  ;;  %2244 = vmatpush.msrb.mxu0 %v10058_v56  ;;  %16025 = vst [vmem:[#allocation91_spill] sm:$0xff] %v10064_v58  ;;  %v16028_v50 = vld [vmem:[#allocation103_spill] sm:$0xff]  ;;  %v10073_v52 = vld [vmem:[%s14865_s2 + $0x550] sm:$0xff]  ;;  %v16030_v56 = vld [vmem:[#allocation104_spill] sm:$0xff] }
 0x2fb   :  { %2261 = vmatpush.msrb.mxu1 %v10064_v58  ;;  %2284 = vmatpush.msra.mxu2 %v16026_v7  ;;  %16029 = vst [vmem:[#allocation94_spill] sm:$0xff] %v10073_v52  ;;  %v16032_v58 = vld [vmem:[#allocation107_spill] sm:$0xff]  ;;  %v10082_v7 = vld [vmem:[%s14865_s2 + $0x510] sm:$0xff] }
 0x2fc   :  { %2301 = vmatpush.msra.mxu3 %v16027_v41  ;;  %2245 = vmatpush.msrb.mxu0 %v16028_v50  ;;  %16033 = vst [vmem:[#allocation99_spill] sm:$0xff] %v10082_v7  ;;  %v16034_v41 = vld [vmem:[#allocation145_spill] sm:$0xff] }
 0x2fd   :  { %2262 = vmatpush.msrb.mxu1 %v10073_v52  ;;  %2285 = vmatpush.msra.mxu2 %v16030_v56  ;;  %v16035_v50 = vld [vmem:[#allocation9_spill] sm:$0xff]  ;;  %v16037_v56 = vld [vmem:[#allocation131_spill] sm:$0xff] }
 0x2fe   :  { %2302 = vmatpush.msra.mxu3 %v16031_v14  ;;  %2246 = vmatpush.msrb.mxu0 %v16032_v58  ;;  %v122_v37 = vadd.f32 %v16035_v50, %v16034_v41  ;;  %v16036_v52 = vld [vmem:[#allocation109_spill] sm:$0xff]  ;;  %v1744_v50 = vpop.f32.mrf.mxu2  ;;  %v1784_v41 = vpop.f32.mrf.mxu0 }
 0x2ff   :  { %2263 = vmatpush.msrb.mxu1 %v10082_v7  ;;  %2286 = vmatpush.msra.mxu2 %v16036_v52  ;;  %v16038_v14 = vld [vmem:[#allocation113_spill] sm:$0xff]  ;;  %v16041_v7 = vld [vmem:[#allocation134_spill] sm:$0xff]  ;;  %v16043_v52 = vld [vmem:[#allocation175_spill] sm:$0xff] }
 0x300   :  { %2303 = vmatpush.msra.mxu3 %v16037_v56  ;;  %2247 = vmatpush.msrb.mxu0 %v16038_v14  ;;  %v10093_v58 = vld [vmem:[%s14865_s2 + $0x4d0] sm:$0xff]  ;;  %v2007_v36 = vadd.f32 %v1725_v25, %v122_v37  ;;  %v1764_v56 = vpop.f32.mrf.mxu3  ;;  %v16046_v37 = vld [vmem:[#allocation10_spill] sm:$0xff] }
 0x301   :  { %16039 = vst [vmem:[#allocation55_spill] sm:$0xff] %v10093_v58  ;;  %2264 = vmatpush.msrb.mxu1 %v10093_v58  ;;  %2287 = vmatpush.msra.mxu2 %v16040_v59  ;;  %v10101_v13 = vld [vmem:[%s14865_s2 + $0x490] sm:$0xff]  ;;  %v16045_v59 = vld [vmem:[#allocation152_spill] sm:$0xff]  ;;  %v1765_v14 = vadd.f32 %v1764_v56, %v1744_v50  ;;  %v16052_v56 = vld [vmem:[#allocation151_spill] sm:$0xff] }
 0x302   :  { %2304 = vmatpush.msra.mxu3 %v16041_v7  ;;  %16042 = vst [vmem:[#allocation106_spill] sm:$0xff] %v10101_v13  ;;  %v4943_v10 = vmul.f32 -1.442695, %v2007_v36  ;;  %v10108_v25 = vld [vmem:[%s14865_s2 + $0x450] sm:$0xff]  ;;  %v163_v7 = vadd.f32 %v16046_v37, %v16045_v59  ;;  %v16047_v58 = vld [vmem:[#allocation176_spill] sm:$0xff]  ;;  %v1804_v29 = vpop.f32.mrf.mxu1 }
 0x303   :  { %2265 = vmatpush.msrb.mxu1 %v10101_v13  ;;  %16044 = vst [vmem:[#allocation72_spill] sm:$0xff] %v10108_v25  ;;  %v16048_v13 = vld [vmem:[#allocation5_spill] sm:$0xff]  ;;  %v1805_v33 = vadd.f32 %v1804_v29, %v1784_v41 }
 0x304   :  { %2305 = vmatpush.msra.mxu3 %v16043_v52  ;;  %5049 = vpow2.f32 %v4943_v10  ;;  %v2008_v36 = vadd.f32 %v1765_v14, %v163_v7  ;;  %v16049_v52 = vld [vmem:[#allocation177_spill] sm:$0xff] }
 0x305   :  { %2266 = vmatpush.msrb.mxu1 %v10108_v25  ;;  %v2009_v11 = vadd.f32 %v1805_v33, %v204_v49 }
 0x306   :  { %2306 = vmatpush.msra.mxu3 %v16047_v58  ;;  %v4944_v54 = vmul.f32 -1.442695, %v2008_v36  ;;  %v1824_v50 = vpop.f32.mrf.mxu2 }
 0x307   :  { %2267 = vmatpush.msrb.mxu1 %v16048_v13  ;;  %v4945_v10 = vmul.f32 -1.442695, %v2009_v11  ;;  %v16053_v13 = vld [vmem:[#allocation18_spill] sm:$0xff] }
 0x308   :  { %2307 = vmatpush.msra.mxu3 %v16049_v52  ;;  %5051 = vpow2.f32 %v4944_v54  ;;  %v1844_v58 = vpop.f32.mrf.mxu3  ;;  %v245_v7 = vadd.f32 %v16053_v13, %v16052_v56 }
 0x309   :  { %5053 = vpow2.f32 %v4945_v10  ;;  %v1845_v14 = vadd.f32 %v1844_v58, %v1824_v50 }
 0x30a   :  { %v5050_v25 = vpop.eup %5049 }
 0x30b   :  { %v10118_v37 = vadd.f32 1.0, %v5050_v25  ;;  %v2010_v59 = vadd.f32 %v1845_v14, %v245_v7 }
 0x30d   :  { %5055 = vrcp.f32 %v10118_v37  ;;  %v4946_v29 = vmul.f32 -1.442695, %v2010_v59  ;;  %v2034_v57 = vand.u32 2147483648, %v10118_v37  ;;  %vm2028_vm5 = vweird.f32 %v10118_v37 }
 0x30e   :  { %v5052_v52 = vpop.eup %5051 }
 0x30f   :  { %v10123_v20 = vadd.f32 1.0, %v5052_v52  ;;  %v5054_v41 = vpop.eup %5053  ;;  %5057 = vpow2.f32 %v4946_v29  ;;  %v16054_v29 = vld [vmem:[#allocation52_spill] sm:$0xff] }
 0x310   :  { %v2059_v33 = vadd.f32 1.0, %v5054_v41  ;;  %v286_v41 = vadd.f32 %v16054_v29, %v8133_v6 }
 0x311   :  { %5059 = vrcp.f32 %v10123_v20  ;;  %vm2043_vm12 = vweird.f32 %v10123_v20  ;;  %v2049_v39 = vand.u32 2147483648, %v10123_v20 }
 0x312   :  { %5061 = vrcp.f32 %v2059_v33  ;;  %v2072_v60 = vand.u32 2147483648, %v2059_v33  ;;  %vm2066_vm2 = vweird.f32 %v2059_v33 }
 0x313   :  { %v5056_v54 = vpop.eup %5055 }
 0x314   :  { %v2024_v11 = vmul.f32 %v5056_v54, %v10118_v37  ;;  %vm2029_vm3 = vweird.f32 %v5056_v54 }
 0x315   :  { %v5058_v49 = vpop.eup %5057  ;;  %v1864_v7 = vpop.f32.mrf.mxu0  ;;  %vm10149_vm6 = vmor %vm2028_vm5, %vm2029_vm3 }
 0x316   :  { %v10127_v25 = vadd.f32 1.0, %v5058_v49  ;;  %v2025_v50 = vsub.f32 1.0, %v2024_v11  ;;  %v2032_v11 = vand.u32 2147483647, %v10118_v37 }
 0x317   :  { %v10129_v36 = vpop.eup %5059 }
 0x318   :  { %v5062_v10 = vpop.eup %5061  ;;  %5063 = vrcp.f32 %v10127_v25  ;;  %v2039_v59 = vmul.f32 %v10129_v36, %v10123_v20  ;;  %v2026_v52 = vmul.f32 %v5056_v54, %v2025_v50  ;;  %v2070_v50 = vand.u32 2147483647, %v2059_v33 }
 0x319   :  { %v2062_v58 = vmul.f32 %v5062_v10, %v2059_v33  ;;  %vm2067_vm1 = vweird.f32 %v5062_v10  ;;  %vm2033_vm7 = vcmp.eq.f32.partialorder %v2032_v11, 8.507059e+37  ;;  %v2087_v37 = vand.u32 2147483648, %v10127_v25 }
 0x31a   :  { %v2040_v43 = vsub.f32 1.0, %v2039_v59  ;;  %v2027_v18 = vadd.f32 %v5056_v54, %v2026_v52  ;;  %vm10139_vm4 = vmor %vm2066_vm2, %vm2067_vm1  ;;  %v16057_v59 = vld [vmem:[#allocation153_spill] sm:$0xff]  ;;  %vm2071_vm8 = vcmp.eq.f32.partialorder %v2070_v50, 8.507059e+37  ;;  %vm2081_vm10 = vweird.f32 %v10127_v25 }
 0x31b   :  { %v2063_v13 = vsub.f32 1.0, %v2062_v58  ;;  %vm2044_vm11 = vweird.f32 %v10129_v36  ;;  %v2088_v50 = vor.u32 1.1754944e-38, %v2087_v37 }
 0x31c   :  { %v1884_v14 = vpop.f32.mrf.mxu1  ;;  %v2041_v52 = vmul.f32 %v10129_v36, %v2040_v43  ;;  %v2085_v43 = vand.u32 2147483647, %v10127_v25  ;;  %vm2045_vm14 = vmor %vm2043_vm12, %vm2044_vm11 }
 0x31d   :  { %v2064_v56 = vmul.f32 %v5062_v10, %v2063_v13  ;;  %v1885_v49 = vadd.f32 %v1884_v14, %v1864_v7  ;;  %v16058_v7 = vld [vmem:[#allocation53_spill] sm:$0xff] }
 0x31e   :  { %v5064_v12 = vpop.eup %5063  ;;  %v327_v14 = vadd.f32 %v16058_v7, %v16057_v59  ;;  %v2035_v7 = vor.u32 1.1754944e-38, %v2034_v57  ;;  %v2047_v57 = vand.u32 2147483647, %v10123_v20  ;;  %vm2086_vm15 = vcmp.eq.f32.partialorder %v2085_v43, 8.507059e+37 }
 0x31f   :  { %v2077_v40 = vmul.f32 %v5064_v12, %v10127_v25  ;;  %v2011_v31 = vadd.f32 %v1885_v49, %v286_v41  ;;  %v2065_v58 = vadd.f32 %v5062_v10, %v2064_v56  ;;  %v1904_v41 = vpop.f32.mrf.mxu2  ;;  %v2073_v49 = vor.u32 1.1754944e-38, %v2072_v60 }
 0x320   :  { %vm2082_vm9 = vweird.f32 %v5064_v12  ;;  %v2042_v60 = vadd.f32 %v10129_v36, %v2041_v52  ;;  %vm2048_vm0 = vcmp.eq.f32.partialorder %v2047_v57, 8.507059e+37 }
 0x321   :  { %v2078_v13 = vsub.f32 1.0, %v2077_v40  ;;  %5065 = vtanh.f32 %v2011_v31  ;;  %v2069_v6 = vsel %vm10139_vm4, %v5062_v10, %v2065_v58  ;;  %v2031_v40 = vsel %vm10149_vm6, %v5056_v54, %v2027_v18  ;;  %vm2083_vm13 = vmor %vm2081_vm10, %vm2082_vm9 }
 0x322   :  { %v1924_v56 = vpop.f32.mrf.mxu3  ;;  %v2074_v10 = vsel %vm2071_vm8, %v2073_v49, %v2069_v6  ;;  %v2046_v25 = vsel %vm2045_vm14, %v10129_v36, %v2042_v60  ;;  %v16062_v60 = vld [vmem:[#allocation116_spill] sm:$0xff] }
 0x323   :  { %v2079_v33 = vmul.f32 %v5064_v12, %v2078_v13  ;;  %v1925_v31 = vadd.f32 %v1924_v56, %v1904_v41  ;;  %v2036_v13 = vsel %vm2033_vm7, %v2035_v7, %v2031_v40  ;;  %v2131_v6 = vmul.f32 %v2074_v10, %v9269_v44 }
 0x324   :  { %v2050_v41 = vor.u32 1.1754944e-38, %v2049_v39  ;;  %v409_v43 = vadd.f32 %v16062_v60, %v8173_v30 }
 0x325   :  { %v2012_v58 = vadd.f32 %v1925_v31, %v327_v14  ;;  %v2080_v29 = vadd.f32 %v5064_v12, %v2079_v33 }
 0x326   :  { %v2051_v49 = vsel %vm2048_vm0, %v2050_v41, %v2046_v25 }
 0x327   :  { %v5066_v11 = vpop.eup %5065  ;;  %5067 = vtanh.f32 %v2012_v58  ;;  %v2084_v54 = vsel %vm2083_vm13, %v5064_v12, %v2080_v29  ;;  %v16061_v12 = vld [vmem:[#allocation115_spill] sm:$0xff] }
 0x328   :  { %v2133_v18 = vmul.f32 %v5066_v11, %v2036_v13  ;;  %v2089_v56 = vsel %vm2086_vm15, %v2088_v50, %v2084_v54  ;;  %v368_v7 = vadd.f32 %v16061_v12, %v8130_v61 }
 0x329   :  { %v2132_v33 = vmul.f32 %v2089_v56, %v9273_v0 }
 0x32a   :  { %v10164_v14 = vadd.f32 %v2133_v18, %v2131_v6 }
 0x32d   :  { %v5068_v52 = vpop.eup %5067 }
 0x32e   :  { %v2134_v31 = vmul.f32 %v5068_v52, %v2051_v49 }
 0x330   :  { %v10168_v44 = vadd.f32 %v2134_v31, %v2132_v33 }
 0x337   :  { %v1944_v40 = vpop.f32.mrf.mxu0 }
 0x33d   :  { %v1964_v20 = vpop.f32.mrf.mxu1  ;;  %v1984_v36 = vpop.f32.mrf.mxu2 }
 0x33e   :  { %v1965_v37 = vadd.f32 %v1964_v20, %v1944_v40 }
 0x340   :  { %v2013_v10 = vadd.f32 %v1965_v37, %v368_v7 }
 0x342   :  { %v4947_v58 = vmul.f32 -1.442695, %v2013_v10 }
 0x343   :  { %v2004_v29 = vpop.f32.mrf.mxu3 }
 0x344   :  { %5069 = vpow2.f32 %v4947_v58  ;;  %v2005_v11 = vadd.f32 %v2004_v29, %v1984_v36 }
 0x346   :  { %v2014_v13 = vadd.f32 %v2005_v11, %v409_v43  ;;  %v10183_v11 = vld [vmem:[%s14865_s2 + $0x3e0] sm:$0xff] }
 0x348   :  { %v4948_v0 = vmul.f32 -1.442695, %v2014_v13 }
 0x34a   :  { %v5070_v39 = vpop.eup %5069  ;;  %5071 = vpow2.f32 %v4948_v0 }
 0x34b   :  { %v2099_v6 = vadd.f32 1.0, %v5070_v39 }
 0x34d   :  { %5073 = vrcp.f32 %v2099_v6  ;;  %v2112_v41 = vand.u32 2147483648, %v2099_v6  ;;  %v2110_v52 = vand.u32 2147483647, %v2099_v6  ;;  %vm2106_vm2 = vweird.f32 %v2099_v6 }
 0x34f   :  { %v2113_v40 = vor.u32 1.1754944e-38, %v2112_v41  ;;  %vm2111_vm4 = vcmp.eq.f32.partialorder %v2110_v52, 8.507059e+37  ;;  %v10254_v41 = vld [vmem:[%s14865_s2 + $0x760] sm:$0xff] }
 0x350   :  { %v5072_v18 = vpop.eup %5071  ;;  %v10273_v52 = vld [vmem:[%s14865_s2 + $0x720] sm:$0xff] }
 0x351   :  { %v2100_v57 = vadd.f32 1.0, %v5072_v18 }
 0x353   :  { %v5074_v54 = vpop.eup %5073  ;;  %5075 = vrcp.f32 %v2100_v57  ;;  %v2127_v10 = vand.u32 2147483648, %v2100_v57  ;;  %v2125_v29 = vand.u32 2147483647, %v2100_v57  ;;  %vm2121_vm6 = vweird.f32 %v2100_v57 }
 0x354   :  { %v2102_v50 = vmul.f32 %v5074_v54, %v2099_v6  ;;  %5077 = vtanh.f32 %v10164_v14  ;;  %vm2107_vm1 = vweird.f32 %v5074_v54  ;;  %v10190_v6 = vld [vmem:[%s14865_s2 + $0x3a0] sm:$0xff] }
 0x355   :  { %vm2108_vm3 = vmor %vm2106_vm2, %vm2107_vm1  ;;  %5079 = vtanh.f32 %v10168_v44  ;;  %v2128_v43 = vor.u32 1.1754944e-38, %v2127_v10  ;;  %vm2126_vm8 = vcmp.eq.f32.partialorder %v2125_v29, 8.507059e+37  ;;  %v10364_v10 = vld [vmem:[%s14865_s2 + $0x120] sm:$0xff] }
 0x356   :  { %v2103_v25 = vsub.f32 1.0, %v2102_v50  ;;  %v10242_v50 = vld [vmem:[%s14865_s2 + $0x7a8] sm:$0xff]  ;;  %v10383_v29 = vld [vmem:[%s14865_s2 + $0xe0] sm:$0xff] }
 0x358   :  { %v2104_v56 = vmul.f32 %v5074_v54, %v2103_v25  ;;  %v10248_v25 = vld [vmem:[%s14865_s2 + $0x2a0] sm:$0xff] }
 0x359   :  { %v5076_v49 = vpop.eup %5075 }
 0x35a   :  { %v2105_v33 = vadd.f32 %v5074_v54, %v2104_v56  ;;  %v2117_v31 = vmul.f32 %v5076_v49, %v2100_v57  ;;  %v5078_v7 = vpop.eup %5077  ;;  %vm2122_vm5 = vweird.f32 %v5076_v49  ;;  %v10199_v57 = vld [vmem:[%s14865_s2 + $0x360] sm:$0xff] }
 0x35b   :  { %vm2123_vm7 = vmor %vm2121_vm6, %vm2122_vm5  ;;  %v5080_v0 = vpop.eup %5079  ;;  %v10267_v56 = vld [vmem:[%s14865_s2 + $0x260] sm:$0xff] }
 0x35c   :  { %v2109_v20 = vsel %vm2108_vm3, %v5074_v54, %v2105_v33  ;;  %v2118_v12 = vsub.f32 1.0, %v2117_v31  ;;  %v10229_v54 = vld [vmem:[%s14865_s2 + $0x2e0] sm:$0xff]  ;;  %v10301_v33 = vld [vmem:[%s14865_s2 + $0x6e8] sm:$0xff] }
 0x35d   :  { %v2114_v37 = vsel %vm2111_vm4, %v2113_v40, %v2109_v20  ;;  %v10307_v31 = vld [vmem:[%s14865_s2 + $0x1e0] sm:$0xff] }
 0x35e   :  { %v10176_v58 = vmul.f32 %v5078_v7, %v2114_v37  ;;  %v2119_v36 = vmul.f32 %v5076_v49, %v2118_v12  ;;  %v10313_v40 = vld [vmem:[%s14865_s2 + $0x6a0] sm:$0xff] }
 0x35f   :  { %v10326_v20 = vld [vmem:[%s14865_s2 + $0x1a0] sm:$0xff] }
 0x360   :  { %v2120_v60 = vadd.f32 %v5076_v49, %v2119_v36  ;;  %2168 = vmatmul.f32.vlgmr.msra.gmra.mxu0 %v10176_v58  ;;  %2208 = vmatmul.f32.vlgmr.msrb.gmra.mxu2 %v10176_v58  ;;  %v10332_v12 = vld [vmem:[%s14865_s2 + $0x660] sm:$0xff] }
 0x361   :  { %2312 = vmatpush.msra.mxu0 %v10183_v11  ;;  %2352 = vmatpush.msrb.mxu2 %v9289_v5  ;;  %v10208_v5 = vld [vmem:[%s14865_s2 + $0x320] sm:$0xff] }
 0x362   :  { %v2124_v13 = vsel %vm2123_vm7, %v5076_v49, %v2120_v60  ;;  %v10288_v49 = vld [vmem:[%s14865_s2 + $0x220] sm:$0xff] }
 0x363   :  { %v2129_v39 = vsel %vm2126_vm8, %v2128_v43, %v2124_v13  ;;  %2313 = vmatpush.msra.mxu0 %v10190_v6  ;;  %2353 = vmatpush.msrb.mxu2 %v9296_v46  ;;  %v10214_v46 = vld [vmem:[%s14865_s2 + $0x7e0] sm:$0xff] }
 0x364   :  { %v10194_v18 = vmul.f32 %v5080_v0, %v2129_v39  ;;  %v10345_v7 = vld [vmem:[%s14865_s2 + $0x160] sm:$0xff] }
 0x365   :  { %2314 = vmatpush.msra.mxu0 %v10199_v57  ;;  %2354 = vmatpush.msrb.mxu2 %v9305_v28  ;;  %v10221_v28 = vld [vmem:[%s14865_s2 + $0x7e8] sm:$0xff]  ;;  %v10351_v37 = vld [vmem:[%s14865_s2 + $0x620] sm:$0xff] }
 0x366   :  { %2188 = vmatmul.f32.vlgmr.msra.gmra.mxu1 %v10194_v18  ;;  %2228 = vmatmul.f32.vlgmr.msrb.gmra.mxu3 %v10194_v18  ;;  %v10370_v36 = vld [vmem:[%s14865_s2 + $0x5e0] sm:$0xff] }
 0x367   :  { %2315 = vmatpush.msra.mxu0 %v10208_v5  ;;  %2332 = vmatpush.msra.mxu1 %v10214_v46  ;;  %v10389_v60 = vld [vmem:[%s14865_s2 + $0x5a0] sm:$0xff] }
 0x368   :  { %2355 = vmatpush.msrb.mxu2 %v9315_v3  ;;  %2372 = vmatpush.msrb.mxu3 %v10221_v28  ;;  %v10235_v3 = vld [vmem:[%s14865_s2 + $0x7a0] sm:$0xff] }
 0x369   :  { %2248 = vmatmul.f32.vlgmr.msrb.gmra.mxu0 %v10176_v58  ;;  %2288 = vmatmul.f32.vlgmr.msra.gmra.mxu2 %v10176_v58  ;;  %v10402_v43 = vld [vmem:[%s14865_s2 + $0xa0] sm:$0xff] }
 0x36a   :  { %2316 = vmatpush.msra.mxu0 %v10229_v54  ;;  %2333 = vmatpush.msra.mxu1 %v10235_v3  ;;  %16064 = vst [vmem:[#allocation61_spill] sm:$0xff] %v10402_v43  ;;  %v10408_v13 = vld [vmem:[%s14865_s2 + $0x560] sm:$0xff] }
 0x36b   :  { %2356 = vmatpush.msrb.mxu2 %v9326_v16  ;;  %2373 = vmatpush.msrb.mxu3 %v10242_v50  ;;  %v10261_v16 = vld [vmem:[%s14865_s2 + $0x768] sm:$0xff]  ;;  %16065 = vst [vmem:[#allocation119_spill] sm:$0xff] %v10408_v13  ;;  %v10421_v0 = vld [vmem:[%s14865_s2 + $0x60] sm:$0xff] }
 0x36c   :  { %2317 = vmatpush.msra.mxu0 %v10248_v25  ;;  %2334 = vmatpush.msra.mxu1 %v10254_v41  ;;  %16067 = vst [vmem:[#allocation130_spill] sm:$0xff] %v10421_v0  ;;  %v10427_v39 = vld [vmem:[%s14865_s2 + $0x520] sm:$0xff] }
 0x36d   :  { %2357 = vmatpush.msrb.mxu2 %v9335_v15  ;;  %2374 = vmatpush.msrb.mxu3 %v10261_v16  ;;  %v10280_v15 = vld [vmem:[%s14865_s2 + $0x728] sm:$0xff]  ;;  %16068 = vst [vmem:[#allocation124_spill] sm:$0xff] %v10427_v39 }
 0x36e   :  { %2318 = vmatpush.msra.mxu0 %v10267_v56  ;;  %2335 = vmatpush.msra.mxu1 %v10273_v52 }
 0x36f   :  { %2358 = vmatpush.msrb.mxu2 %v9344_v17  ;;  %2375 = vmatpush.msrb.mxu3 %v10280_v15  ;;  %v10294_v17 = vld [vmem:[%s14865_s2 + $0x6e0] sm:$0xff] }
 0x370   :  { %2268 = vmatmul.f32.vlgmr.msrb.gmra.mxu1 %v10194_v18  ;;  %2308 = vmatmul.f32.vlgmr.msra.gmra.mxu3 %v10194_v18 }
 0x371   :  { %2319 = vmatpush.msra.mxu0 %v10288_v49  ;;  %2336 = vmatpush.msra.mxu1 %v10294_v17 }
 0x372   :  { %2359 = vmatpush.msrb.mxu2 %v9355_v45  ;;  %2376 = vmatpush.msrb.mxu3 %v10301_v33  ;;  %v10320_v45 = vld [vmem:[%s14865_s2 + $0x6a8] sm:$0xff] }
 0x373   :  { %2320 = vmatpush.msra.mxu0 %v10307_v31  ;;  %2337 = vmatpush.msra.mxu1 %v10313_v40 }
 0x374   :  { %2360 = vmatpush.msrb.mxu2 %v9364_v51  ;;  %2377 = vmatpush.msrb.mxu3 %v10320_v45  ;;  %v10339_v51 = vld [vmem:[%s14865_s2 + $0x668] sm:$0xff] }
 0x375   :  { %2321 = vmatpush.msra.mxu0 %v10326_v20  ;;  %2338 = vmatpush.msra.mxu1 %v10332_v12 }
 0x376   :  { %2361 = vmatpush.msrb.mxu2 %v9373_v63  ;;  %2378 = vmatpush.msrb.mxu3 %v10339_v51  ;;  %v10358_v63 = vld [vmem:[%s14865_s2 + $0x628] sm:$0xff] }
 0x377   :  { %2322 = vmatpush.msra.mxu0 %v10345_v7  ;;  %2339 = vmatpush.msra.mxu1 %v10351_v37 }
 0x378   :  { %2362 = vmatpush.msrb.mxu2 %v9382_v32  ;;  %2379 = vmatpush.msrb.mxu3 %v10358_v63  ;;  %v10377_v32 = vld [vmem:[%s14865_s2 + $0x5e8] sm:$0xff] }
 0x379   :  { %2323 = vmatpush.msra.mxu0 %v10364_v10  ;;  %2340 = vmatpush.msra.mxu1 %v10370_v36 }
 0x37a   :  { %2363 = vmatpush.msrb.mxu2 %v9391_v1  ;;  %2380 = vmatpush.msrb.mxu3 %v10377_v32  ;;  %v10396_v1 = vld [vmem:[%s14865_s2 + $0x5a8] sm:$0xff] }
 0x37b   :  { %2324 = vmatpush.msra.mxu0 %v10383_v29  ;;  %2341 = vmatpush.msra.mxu1 %v10389_v60  ;;  %16063 = vst [vmem:[#allocation110_spill] sm:$0xff] %v10396_v1 }
 0x37c   :  { %2364 = vmatpush.msrb.mxu2 %v9400_v27  ;;  %2381 = vmatpush.msrb.mxu3 %v10396_v1  ;;  %v10415_v27 = vld [vmem:[%s14865_s2 + $0x568] sm:$0xff] }
 0x37d   :  { %2325 = vmatpush.msra.mxu0 %v10402_v43  ;;  %2342 = vmatpush.msra.mxu1 %v10408_v13  ;;  %16066 = vst [vmem:[#allocation120_spill] sm:$0xff] %v10415_v27 }
 0x37e   :  { %2365 = vmatpush.msrb.mxu2 %v9409_v35  ;;  %2382 = vmatpush.msrb.mxu3 %v10415_v27  ;;  %v10434_v35 = vld [vmem:[%s14865_s2 + $0x528] sm:$0xff] }
 0x37f   :  { %2326 = vmatpush.msra.mxu0 %v10421_v0  ;;  %2343 = vmatpush.msra.mxu1 %v10427_v39  ;;  %16069 = vst [vmem:[#allocation76_spill] sm:$0xff] %v10434_v35  ;;  %v10440_v0 = vld [vmem:[%s14865_s2 + $0x20] sm:$0xff] }
 0x380   :  { %2366 = vmatpush.msrb.mxu2 %v9418_v48  ;;  %2383 = vmatpush.msrb.mxu3 %v10434_v35  ;;  %16070 = vst [vmem:[#allocation125_spill] sm:$0xff] %v10440_v0  ;;  %v10446_v39 = vld [vmem:[%s14865_s2 + $0x4e0] sm:$0xff]  ;;  %v10453_v48 = vld [vmem:[%s14865_s2 + $0x4e8] sm:$0xff] }
 0x381   :  { %2327 = vmatpush.msra.mxu0 %v10440_v0  ;;  %16071 = vst [vmem:[#allocation128_spill] sm:$0xff] %v10446_v39  ;;  %2344 = vmatpush.msra.mxu1 %v10446_v39  ;;  %v10461_v0 = vld [vmem:[%s14865_s2 + $0x3f0] sm:$0xff] }
 0x382   :  { %2367 = vmatpush.msrb.mxu2 %v9427_v21  ;;  %16072 = vst [vmem:[#allocation67_spill] sm:$0xff] %v10453_v48  ;;  %2384 = vmatpush.msrb.mxu3 %v10453_v48  ;;  %v10468_v21 = vld [vmem:[%s14865_s2 + $0x4a0] sm:$0xff]  ;;  %v10474_v48 = vld [vmem:[%s14865_s2 + $0x4a8] sm:$0xff] }
 0x383   :  { %2328 = vmatmul.f32.vlgmr.msra.gmra.mxu0 %v10176_v58  ;;  %2368 = vmatmul.f32.vlgmr.msrb.gmra.mxu2 %v10176_v58  ;;  %16073 = vst [vmem:[#allocation129_spill] sm:$0xff] %v10461_v0 }
 0x384   :  { %2392 = vmatpush.msrb.mxu0 %v10461_v0  ;;  %2432 = vmatpush.msra.mxu2 %v9437_v22  ;;  %16074 = vst [vmem:[#allocation132_spill] sm:$0xff] %v10468_v21  ;;  %v10480_v0 = vld [vmem:[%s14865_s2 + $0x3b0] sm:$0xff]  ;;  %v10487_v22 = vld [vmem:[%s14865_s2 + $0x460] sm:$0xff] }
 0x385   :  { %2345 = vmatpush.msra.mxu1 %v10468_v21  ;;  %16075 = vst [vmem:[#allocation71_spill] sm:$0xff] %v10474_v48  ;;  %2385 = vmatpush.msrb.mxu3 %v10474_v48  ;;  %v10493_v48 = vld [vmem:[%s14865_s2 + $0x468] sm:$0xff] }
 0x386   :  { %16076 = vst [vmem:[#allocation135_spill] sm:$0xff] %v10480_v0  ;;  %2393 = vmatpush.msrb.mxu0 %v10480_v0  ;;  %2433 = vmatpush.msra.mxu2 %v9446_v42  ;;  %v10499_v0 = vld [vmem:[%s14865_s2 + $0x370] sm:$0xff]  ;;  %v10506_v42 = vld [vmem:[%s14865_s2 + $0x420] sm:$0xff] }
 0x387   :  { %16077 = vst [vmem:[#allocation169_spill] sm:$0xff] %v10487_v22  ;;  %2346 = vmatpush.msra.mxu1 %v10487_v22  ;;  %2386 = vmatpush.msrb.mxu3 %v10493_v48 }
 0x388   :  { %16078 = vst [vmem:[#allocation74_spill] sm:$0xff] %v10493_v48  ;;  %2394 = vmatpush.msrb.mxu0 %v10499_v0  ;;  %2434 = vmatpush.msra.mxu2 %v9455_v4  ;;  %v10512_v48 = vld [vmem:[%s14865_s2 + $0x428] sm:$0xff]  ;;  %v10520_v4 = vld [vmem:[%s14865_s2 + $0x330] sm:$0xff] }
 0x389   :  { %16079 = vst [vmem:[#allocation170_spill] sm:$0xff] %v10499_v0  ;;  %2347 = vmatpush.msra.mxu1 %v10506_v42  ;;  %2387 = vmatpush.msrb.mxu3 %v10512_v48 }
 0x38a   :  { %16080 = vst [vmem:[#allocation171_spill] sm:$0xff] %v10506_v42  ;;  %2348 = vmatmul.f32.vlgmr.msra.gmra.mxu1 %v10194_v18  ;;  %2388 = vmatmul.f32.vlgmr.msrb.gmra.mxu3 %v10194_v18  ;;  %v10526_v42 = vld [vmem:[%s14865_s2 + $0x7f0] sm:$0xff] }
 0x38b   :  { %16081 = vst [vmem:[#allocation84_spill] sm:$0xff] %v10512_v48  ;;  %2395 = vmatpush.msrb.mxu0 %v10520_v4  ;;  %2412 = vmatpush.msrb.mxu1 %v10526_v42  ;;  %v10533_v48 = vld [vmem:[%s14865_s2 + $0x7f8] sm:$0xff] }
 0x38c   :  { %16082 = vst [vmem:[#allocation172_spill] sm:$0xff] %v10520_v4  ;;  %2435 = vmatpush.msra.mxu2 %v9467_v19  ;;  %2452 = vmatpush.msra.mxu3 %v10533_v48  ;;  %v10539_v4 = vld [vmem:[%s14865_s2 + $0x2f0] sm:$0xff]  ;;  %v10552_v19 = vld [vmem:[%s14865_s2 + $0x7b8] sm:$0xff] }
 0x38d   :  { %16083 = vst [vmem:[#allocation173_spill] sm:$0xff] %v10526_v42  ;;  %2396 = vmatpush.msrb.mxu0 %v10539_v4  ;;  %v10545_v42 = vld [vmem:[%s14865_s2 + $0x7b0] sm:$0xff] }
 0x38e   :  { %16084 = vst [vmem:[#allocation87_spill] sm:$0xff] %v10533_v48  ;;  %2413 = vmatpush.msrb.mxu1 %v10545_v42  ;;  %2436 = vmatpush.msra.mxu2 %v9476_v26  ;;  %v10571_v26 = vld [vmem:[%s14865_s2 + $0x778] sm:$0xff] }
 0x38f   :  { %16085 = vst [vmem:[#allocation174_spill] sm:$0xff] %v10539_v4  ;;  %2453 = vmatpush.msra.mxu3 %v10552_v19  ;;  %v10558_v4 = vld [vmem:[%s14865_s2 + $0x2b0] sm:$0xff] }
 0x390   :  { %16086 = vst [vmem:[#allocation90_spill] sm:$0xff] %v10545_v42  ;;  %2397 = vmatpush.msrb.mxu0 %v10558_v4  ;;  %v10564_v42 = vld [vmem:[%s14865_s2 + $0x770] sm:$0xff]  ;;  %2437 = vmatpush.msra.mxu2 %v9485_v34  ;;  %v10590_v34 = vld [vmem:[%s14865_s2 + $0x738] sm:$0xff] }
 0x391   :  { %16087 = vst [vmem:[#allocation112_spill] sm:$0xff] %v10552_v19  ;;  %2414 = vmatpush.msrb.mxu1 %v10564_v42  ;;  %2454 = vmatpush.msra.mxu3 %v10571_v26  ;;  %v16262_v19 = vld [vmem:[#allocation23_spill] sm:$0xff] }
 0x392   :  { %16088 = vst [vmem:[#allocation93_spill] sm:$0xff] %v10558_v4  ;;  %v10577_v4 = vld [vmem:[%s14865_s2 + $0x270] sm:$0xff]  ;;  %2438 = vmatpush.msra.mxu2 %v9494_v8  ;;  %v10609_v8 = vld [vmem:[%s14865_s2 + $0x6f8] sm:$0xff] }
 0x393   :  { %16089 = vst [vmem:[#allocation118_spill] sm:$0xff] %v10564_v42  ;;  %2398 = vmatpush.msrb.mxu0 %v10577_v4  ;;  %v10583_v42 = vld [vmem:[%s14865_s2 + $0x730] sm:$0xff]  ;;  %2455 = vmatpush.msra.mxu3 %v10590_v34 }
 0x394   :  { %16090 = vst [vmem:[#allocation98_spill] sm:$0xff] %v10571_v26  ;;  %2415 = vmatpush.msrb.mxu1 %v10583_v42  ;;  %2439 = vmatpush.msra.mxu2 %v9503_v62  ;;  %v10628_v62 = vld [vmem:[%s14865_s2 + $0x6b8] sm:$0xff]  ;;  %v16261_v26 = vld [vmem:[#allocation151_spill] sm:$0xff] }
 0x395   :  { %16091 = vst [vmem:[#allocation123_spill] sm:$0xff] %v10577_v4  ;;  %v10596_v4 = vld [vmem:[%s14865_s2 + $0x230] sm:$0xff]  ;;  %2456 = vmatpush.msra.mxu3 %v10609_v8  ;;  %v248_v48 = vadd.f32 %v16262_v19, %v16261_v26 }
 0x396   :  { %16092 = vst [vmem:[#allocation103_spill] sm:$0xff] %v10583_v42  ;;  %2399 = vmatpush.msrb.mxu0 %v10596_v4  ;;  %v10602_v42 = vld [vmem:[%s14865_s2 + $0x6f0] sm:$0xff]  ;;  %2440 = vmatpush.msra.mxu2 %v9512_v38  ;;  %v10647_v38 = vld [vmem:[%s14865_s2 + $0x678] sm:$0xff] }
 0x397   :  { %16093 = vst [vmem:[#allocation104_spill] sm:$0xff] %v10590_v34  ;;  %2416 = vmatpush.msrb.mxu1 %v10602_v42  ;;  %2457 = vmatpush.msra.mxu3 %v10628_v62 }
 0x398   :  { %16094 = vst [vmem:[#allocation127_spill] sm:$0xff] %v10596_v4  ;;  %v10615_v4 = vld [vmem:[%s14865_s2 + $0x1f0] sm:$0xff]  ;;  %2441 = vmatpush.msra.mxu2 %v9521_v2 }
 0x399   :  { %16095 = vst [vmem:[#allocation107_spill] sm:$0xff] %v10602_v42  ;;  %2400 = vmatpush.msrb.mxu0 %v10615_v4  ;;  %v10621_v42 = vld [vmem:[%s14865_s2 + $0x6b0] sm:$0xff]  ;;  %2458 = vmatpush.msra.mxu3 %v10647_v38 }
 0x39a   :  { %16096 = vst [vmem:[#allocation9_spill] sm:$0xff] %v10609_v8  ;;  %2417 = vmatpush.msrb.mxu1 %v10621_v42  ;;  %2442 = vmatpush.msra.mxu2 %v9530_v24  ;;  %v10667_v2 = vld [vmem:[%s14865_s2 + $0x130] sm:$0xff] }
 0x39b   :  { %16097 = vst [vmem:[#allocation109_spill] sm:$0xff] %v10615_v4  ;;  %v10634_v4 = vld [vmem:[%s14865_s2 + $0x1b0] sm:$0xff]  ;;  %2459 = vmatpush.msra.mxu3 %v9536_v23 }
 0x39c   :  { %16098 = vst [vmem:[#allocation131_spill] sm:$0xff] %v10621_v42  ;;  %2401 = vmatpush.msrb.mxu0 %v10634_v4  ;;  %v10640_v42 = vld [vmem:[%s14865_s2 + $0x670] sm:$0xff]  ;;  %2443 = vmatpush.msra.mxu2 %v9544_v9 }
 0x39d   :  { %16099 = vst [vmem:[#allocation113_spill] sm:$0xff] %v10628_v62  ;;  %2418 = vmatpush.msrb.mxu1 %v10640_v42  ;;  %2460 = vmatpush.msra.mxu3 %v9550_v55  ;;  %v10681_v24 = vld [vmem:[%s14865_s2 + $0xf0] sm:$0xff] }
 0x39e   :  { %16100 = vst [vmem:[#allocation114_spill] sm:$0xff] %v10634_v4  ;;  %v10653_v4 = vld [vmem:[%s14865_s2 + $0x170] sm:$0xff]  ;;  %2444 = vmatpush.msra.mxu2 %v9558_v53 }
 0x39f   :  { %16101 = vst [vmem:[#allocation134_spill] sm:$0xff] %v10640_v42  ;;  %2402 = vmatpush.msrb.mxu0 %v10653_v4  ;;  %v10659_v42 = vld [vmem:[%s14865_s2 + $0x630] sm:$0xff]  ;;  %2461 = vmatpush.msra.mxu3 %v9564_v47 }
 0x3a0   :  { %16102 = vst [vmem:[#allocation175_spill] sm:$0xff] %v10647_v38  ;;  %2419 = vmatpush.msrb.mxu1 %v10659_v42  ;;  %v10687_v23 = vld [vmem:[%s14865_s2 + $0x5b0] sm:$0xff] }
 0x3a1   :  { %16103 = vst [vmem:[#allocation10_spill] sm:$0xff] %v10653_v4  ;;  %2403 = vmatpush.msrb.mxu0 %v10667_v2  ;;  %v10673_v4 = vld [vmem:[%s14865_s2 + $0x5f0] sm:$0xff] }
 0x3a2   :  { %16104 = vst [vmem:[#allocation176_spill] sm:$0xff] %v10659_v42  ;;  %2420 = vmatpush.msrb.mxu1 %v10673_v4  ;;  %v10695_v9 = vld [vmem:[%s14865_s2 + $0xb0] sm:$0xff] }
 0x3a3   :  { %16105 = vst [vmem:[#allocation5_spill] sm:$0xff] %v10667_v2  ;;  %2404 = vmatpush.msrb.mxu0 %v10681_v24  ;;  %v10701_v55 = vld [vmem:[%s14865_s2 + $0x570] sm:$0xff]  ;;  %v11125_v2 = vld [vmem:[%s14865_s2 + $0x58] sm:$0xff] }
 0x3a4   :  { %16106 = vst [vmem:[#allocation177_spill] sm:$0xff] %v10673_v4  ;;  %2421 = vmatpush.msrb.mxu1 %v10687_v23  ;;  %v10709_v53 = vld [vmem:[%s14865_s2 + $0x70] sm:$0xff]  ;;  %v16128_v4 = vld [vmem:[#allocation159_spill] sm:$0xff] }
 0x3a5   :  { %16107 = vst [vmem:[#allocation17_spill] sm:$0xff] %v10681_v24  ;;  %2405 = vmatpush.msrb.mxu0 %v10695_v9  ;;  %v16111_v24 = vld [vmem:[#allocation6_spill] sm:$0xff]  ;;  %v10715_v47 = vld [vmem:[%s14865_s2 + $0x530] sm:$0xff] }
 0x3a6   :  { %16108 = vst [vmem:[#allocation18_spill] sm:$0xff] %v10687_v23  ;;  %2422 = vmatpush.msrb.mxu1 %v10701_v55  ;;  %2445 = vmatpush.msra.mxu2 %v16111_v24  ;;  %v16112_v23 = vld [vmem:[#allocation13_spill] sm:$0xff] }
 0x3a7   :  { %16109 = vst [vmem:[#allocation52_spill] sm:$0xff] %v10695_v9  ;;  %2462 = vmatpush.msra.mxu3 %v16112_v23  ;;  %2406 = vmatpush.msrb.mxu0 %v10709_v53  ;;  %v16115_v9 = vld [vmem:[#allocation14_spill] sm:$0xff]  ;;  %v10723_v24 = vld [vmem:[%s14865_s2 + $0x30] sm:$0xff] }
 0x3a8   :  { %16110 = vst [vmem:[#allocation153_spill] sm:$0xff] %v10701_v55  ;;  %2423 = vmatpush.msrb.mxu1 %v10715_v47  ;;  %2446 = vmatpush.msra.mxu2 %v16115_v9  ;;  %v16116_v55 = vld [vmem:[#allocation32_spill] sm:$0xff]  ;;  %v10729_v23 = vld [vmem:[%s14865_s2 + $0x4f0] sm:$0xff] }
 0x3a9   :  { %16113 = vst [vmem:[#allocation53_spill] sm:$0xff] %v10709_v53  ;;  %2463 = vmatpush.msra.mxu3 %v16116_v55  ;;  %2407 = vmatpush.msrb.mxu0 %v10723_v24  ;;  %v16119_v53 = vld [vmem:[#allocation35_spill] sm:$0xff]  ;;  %v10739_v9 = vld [vmem:[%s14865_s2 + $0x4b0] sm:$0xff]  ;;  %v16122_v55 = vld [vmem:[#allocation96_spill] sm:$0xff] }
 0x3aa   :  { %16114 = vst [vmem:[#allocation115_spill] sm:$0xff] %v10715_v47  ;;  %2424 = vmatpush.msrb.mxu1 %v10729_v23  ;;  %2447 = vmatpush.msra.mxu2 %v16119_v53  ;;  %v16120_v47 = vld [vmem:[#allocation95_spill] sm:$0xff]  ;;  %v10748_v53 = vld [vmem:[%s14865_s2 + $0x470] sm:$0xff] }
 0x3ab   :  { %16117 = vst [vmem:[#allocation116_spill] sm:$0xff] %v10723_v24  ;;  %2464 = vmatpush.msra.mxu3 %v16120_v47  ;;  %2408 = vmatmul.f32.vlgmr.msrb.gmra.mxu0 %v10176_v58  ;;  %v16123_v24 = vld [vmem:[#allocation155_spill] sm:$0xff]  ;;  %v16127_v47 = vld [vmem:[#allocation158_spill] sm:$0xff] }
 0x3ac   :  { %16118 = vst [vmem:[#allocation6_spill] sm:$0xff] %v10729_v23  ;;  %2448 = vmatmul.f32.vlgmr.msra.gmra.mxu2 %v10176_v58  ;;  %2425 = vmatpush.msrb.mxu1 %v10739_v9  ;;  %v16124_v23 = vld [vmem:[#allocation156_spill] sm:$0xff]  ;;  %v16126_v58 = vld [vmem:[#allocation21_spill] sm:$0xff] }
 0x3ad   :  { %16121 = vst [vmem:[#allocation13_spill] sm:$0xff] %v10739_v9  ;;  %2465 = vmatpush.msra.mxu3 %v16122_v55  ;;  %2617 = vmatpush.msra.mxu0 %v16123_v24  ;;  %v10757_v55 = vld [vmem:[%s14865_s2 + $0x430] sm:$0xff]  ;;  %v16130_v24 = vld [vmem:[#allocation24_spill] sm:$0xff] }
 0x3ae   :  { %2657 = vmatpush.msrb.mxu2 %v16124_v23  ;;  %16125 = vst [vmem:[#allocation14_spill] sm:$0xff] %v10748_v53  ;;  %2426 = vmatpush.msrb.mxu1 %v10748_v53  ;;  %v16131_v23 = vld [vmem:[#allocation161_spill] sm:$0xff]  ;;  %v16140_v53 = vld [vmem:[#allocation166_spill] sm:$0xff] }
 0x3af   :  { %2466 = vmatpush.msra.mxu3 %v16126_v58  ;;  %2618 = vmatpush.msra.mxu0 %v16127_v47  ;;  %16129 = vst [vmem:[#allocation32_spill] sm:$0xff] %v10757_v55  ;;  %v16132_v58 = vld [vmem:[#allocation162_spill] sm:$0xff]  ;;  %v16134_v47 = vld [vmem:[#allocation25_spill] sm:$0xff] }
 0x3b0   :  { %2658 = vmatpush.msrb.mxu2 %v16128_v4  ;;  %2427 = vmatpush.msrb.mxu1 %v10757_v55  ;;  %v10768_v4 = vld [vmem:[%s14865_s2 + $0x7c0] sm:$0xff]  ;;  %v16135_v55 = vld [vmem:[#allocation73_spill] sm:$0xff] }
 0x3b1   :  { %2467 = vmatpush.msra.mxu3 %v16130_v24  ;;  %2428 = vmatmul.f32.vlgmr.msrb.gmra.mxu1 %v10194_v18  ;;  %16133 = vst [vmem:[#allocation35_spill] sm:$0xff] %v10768_v4  ;;  %v16136_v24 = vld [vmem:[#allocation164_spill] sm:$0xff] }
 0x3b2   :  { %2468 = vmatmul.f32.vlgmr.msra.gmra.mxu3 %v10194_v18  ;;  %2619 = vmatpush.msra.mxu0 %v16131_v23  ;;  %v10777_v18 = vld [vmem:[%s14865_s2 + $0x780] sm:$0xff]  ;;  %v16138_v23 = vld [vmem:[#allocation26_spill] sm:$0xff] }
 0x3b3   :  { %2659 = vmatpush.msrb.mxu2 %v16132_v58  ;;  %2637 = vmatpush.msra.mxu1 %v10768_v4  ;;  %16137 = vst [vmem:[#allocation95_spill] sm:$0xff] %v10777_v18  ;;  %v16139_v58 = vld [vmem:[#allocation165_spill] sm:$0xff] }
 0x3b4   :  { %2677 = vmatpush.msrb.mxu3 %v16134_v47  ;;  %2620 = vmatpush.msra.mxu0 %v16135_v55  ;;  %v10786_v47 = vld [vmem:[%s14865_s2 + $0x740] sm:$0xff]  ;;  %v16142_v55 = vld [vmem:[#allocation28_spill] sm:$0xff]  ;;  %v16144_v4 = vld [vmem:[#allocation77_spill] sm:$0xff] }
 0x3b5   :  { %2660 = vmatpush.msrb.mxu2 %v16136_v24  ;;  %2638 = vmatpush.msra.mxu1 %v10777_v18  ;;  %16141 = vst [vmem:[#allocation96_spill] sm:$0xff] %v10786_v47  ;;  %v16143_v24 = vld [vmem:[#allocation31_spill] sm:$0xff] }
 0x3b6   :  { %2678 = vmatpush.msrb.mxu3 %v16138_v23  ;;  %2621 = vmatpush.msra.mxu0 %v16139_v58  ;;  %v10795_v23 = vld [vmem:[%s14865_s2 + $0x700] sm:$0xff]  ;;  %v16147_v58 = vld [vmem:[#allocation34_spill] sm:$0xff] }
 0x3b7   :  { %2661 = vmatpush.msrb.mxu2 %v16140_v53  ;;  %2639 = vmatpush.msra.mxu1 %v10786_v47  ;;  %16145 = vst [vmem:[#allocation155_spill] sm:$0xff] %v10795_v23  ;;  %v16146_v53 = vld [vmem:[#allocation30_spill] sm:$0xff]  ;;  %v16148_v18 = vld [vmem:[#allocation83_spill] sm:$0xff]  ;;  %v16152_v47 = vld [vmem:[#allocation168_spill] sm:$0xff] }
 0x3b8   :  { %2679 = vmatpush.msrb.mxu3 %v16142_v55  ;;  %2622 = vmatpush.msra.mxu0 %v16143_v24  ;;  %v10804_v55 = vld [vmem:[%s14865_s2 + $0x6c0] sm:$0xff] }
 0x3b9   :  { %2662 = vmatpush.msrb.mxu2 %v16144_v4  ;;  %2640 = vmatpush.msra.mxu1 %v10795_v23  ;;  %16149 = vst [vmem:[#allocation156_spill] sm:$0xff] %v10804_v55  ;;  %v16150_v4 = vld [vmem:[#allocation154_spill] sm:$0xff]  ;;  %v16151_v24 = vld [vmem:[#allocation167_spill] sm:$0xff] }
 0x3ba   :  { %2680 = vmatpush.msrb.mxu3 %v16146_v53  ;;  %2623 = vmatpush.msra.mxu0 %v16147_v58  ;;  %v10813_v53 = vld [vmem:[%s14865_s2 + $0x680] sm:$0xff]  ;;  %v16156_v23 = vld [vmem:[#allocation86_spill] sm:$0xff] }
 0x3bb   :  { %2663 = vmatpush.msrb.mxu2 %v16148_v18  ;;  %2641 = vmatpush.msra.mxu1 %v10804_v55  ;;  %16153 = vst [vmem:[#allocation21_spill] sm:$0xff] %v10813_v53  ;;  %v16154_v18 = vld [vmem:[#allocation33_spill] sm:$0xff]  ;;  %v16155_v58 = vld [vmem:[#allocation39_spill] sm:$0xff] }
 0x3bc   :  { %2681 = vmatpush.msrb.mxu3 %v16150_v4  ;;  %2624 = vmatpush.msra.mxu0 %v16151_v24  ;;  %v10822_v4 = vld [vmem:[%s14865_s2 + $0x640] sm:$0xff]  ;;  %v16159_v24 = vld [vmem:[#allocation41_spill] sm:$0xff] }
 0x3bd   :  { %2664 = vmatpush.msrb.mxu2 %v16152_v47  ;;  %2642 = vmatpush.msra.mxu1 %v10813_v53  ;;  %16157 = vst [vmem:[#allocation158_spill] sm:$0xff] %v10822_v4  ;;  %v16158_v47 = vld [vmem:[#allocation37_spill] sm:$0xff]  ;;  %v16164_v53 = vld [vmem:[#allocation92_spill] sm:$0xff] }
 0x3be   :  { %2682 = vmatpush.msrb.mxu3 %v16154_v18  ;;  %2625 = vmatpush.msra.mxu0 %v16155_v58  ;;  %v16160_v55 = vld [vmem:[#allocation89_spill] sm:$0xff]  ;;  %v10831_v18 = vld [vmem:[%s14865_s2 + $0x600] sm:$0xff] }
 0x3bf   :  { %2665 = vmatpush.msrb.mxu2 %v16156_v23  ;;  %2643 = vmatpush.msra.mxu1 %v10822_v4  ;;  %16161 = vst [vmem:[#allocation159_spill] sm:$0xff] %v10831_v18  ;;  %v16162_v23 = vld [vmem:[#allocation40_spill] sm:$0xff]  ;;  %v16163_v58 = vld [vmem:[#allocation43_spill] sm:$0xff]  ;;  %v16168_v4 = vld [vmem:[#allocation97_spill] sm:$0xff] }
 0x3c0   :  { %2683 = vmatpush.msrb.mxu3 %v16158_v47  ;;  %2626 = vmatpush.msra.mxu0 %v16159_v24  ;;  %v10840_v47 = vld [vmem:[%s14865_s2 + $0x5c0] sm:$0xff]  ;;  %v16167_v24 = vld [vmem:[#allocation46_spill] sm:$0xff] }
 0x3c1   :  { %2666 = vmatpush.msrb.mxu2 %v16160_v55  ;;  %2644 = vmatpush.msra.mxu1 %v10831_v18  ;;  %16165 = vst [vmem:[#allocation24_spill] sm:$0xff] %v10840_v47  ;;  %v16166_v55 = vld [vmem:[#allocation42_spill] sm:$0xff] }
 0x3c2   :  { %2684 = vmatpush.msrb.mxu3 %v16162_v23  ;;  %2627 = vmatpush.msra.mxu0 %v16163_v58  ;;  %v10849_v23 = vld [vmem:[%s14865_s2 + $0x580] sm:$0xff]  ;;  %v16172_v18 = vld [vmem:[#allocation102_spill] sm:$0xff] }
 0x3c3   :  { %2667 = vmatpush.msrb.mxu2 %v16164_v53  ;;  %2645 = vmatpush.msra.mxu1 %v10840_v47  ;;  %16169 = vst [vmem:[#allocation161_spill] sm:$0xff] %v10849_v23  ;;  %v16170_v53 = vld [vmem:[#allocation44_spill] sm:$0xff]  ;;  %v16171_v58 = vld [vmem:[#allocation51_spill] sm:$0xff]  ;;  %v16176_v47 = vld [vmem:[#allocation105_spill] sm:$0xff] }
 0x3c4   :  { %2685 = vmatpush.msrb.mxu3 %v16166_v55  ;;  %2628 = vmatpush.msra.mxu0 %v16167_v24  ;;  %v10858_v55 = vld [vmem:[%s14865_s2 + $0x540] sm:$0xff]  ;;  %v16175_v24 = vld [vmem:[#allocation56_spill] sm:$0xff] }
 0x3c5   :  { %2668 = vmatpush.msrb.mxu2 %v16168_v4  ;;  %2646 = vmatpush.msra.mxu1 %v10849_v23  ;;  %16173 = vst [vmem:[#allocation162_spill] sm:$0xff] %v10858_v55  ;;  %v16174_v4 = vld [vmem:[#allocation48_spill] sm:$0xff]  ;;  %v16180_v23 = vld [vmem:[#allocation57_spill] sm:$0xff] }
 0x3c6   :  { %2686 = vmatpush.msrb.mxu3 %v16170_v53  ;;  %2629 = vmatpush.msra.mxu0 %v16171_v58  ;;  %v10867_v53 = vld [vmem:[%s14865_s2 + $0x500] sm:$0xff] }
 0x3c7   :  { %2669 = vmatpush.msrb.mxu2 %v16172_v18  ;;  %2647 = vmatpush.msra.mxu1 %v10858_v55  ;;  %16177 = vst [vmem:[#allocation25_spill] sm:$0xff] %v10867_v53  ;;  %v16178_v18 = vld [vmem:[#allocation54_spill] sm:$0xff]  ;;  %v16179_v58 = vld [vmem:[#allocation59_spill] sm:$0xff]  ;;  %v16184_v55 = vld [vmem:[#allocation45_spill] sm:$0xff] }
 0x3c8   :  { %2687 = vmatpush.msrb.mxu3 %v16174_v4  ;;  %2630 = vmatpush.msra.mxu0 %v16175_v24  ;;  %v10876_v4 = vld [vmem:[%s14865_s2 + $0x4c0] sm:$0xff]  ;;  %v16183_v24 = vld [vmem:[#allocation60_spill] sm:$0xff]  ;;  %16245 = vst [vmem:[#allocation45_spill] sm:$0xff] %v11125_v2 }
 0x3c9   :  { %2670 = vmatpush.msrb.mxu2 %v16176_v47  ;;  %2648 = vmatpush.msra.mxu1 %v10867_v53  ;;  %16181 = vst [vmem:[#allocation73_spill] sm:$0xff] %v10876_v4  ;;  %v16182_v47 = vld [vmem:[#allocation108_spill] sm:$0xff]  ;;  %v16185_v53 = vld [vmem:[#allocation157_spill] sm:$0xff] }
 0x3ca   :  { %2688 = vmatpush.msrb.mxu3 %v16178_v18  ;;  %2631 = vmatpush.msra.mxu0 %v16179_v58  ;;  %v10886_v18 = vld [vmem:[%s14865_s2 + $0x3d8] sm:$0xff] }
 0x3cb   :  { %2671 = vmatpush.msrb.mxu2 %v16180_v23  ;;  %2649 = vmatpush.msra.mxu1 %v10876_v4  ;;  %16186 = vst [vmem:[#allocation164_spill] sm:$0xff] %v10886_v18  ;;  %v10892_v23 = vld [vmem:[%s14865_s2 + $0x480] sm:$0xff]  ;;  %v16188_v58 = vld [vmem:[#allocation62_spill] sm:$0xff] }
 0x3cc   :  { %2689 = vmatpush.msrb.mxu3 %v16182_v47  ;;  %2632 = vmatpush.msra.mxu0 %v16183_v24  ;;  %16187 = vst [vmem:[#allocation26_spill] sm:$0xff] %v10892_v23  ;;  %v16189_v47 = vld [vmem:[#allocation160_spill] sm:$0xff]  ;;  %v16192_v24 = vld [vmem:[#allocation111_spill] sm:$0xff] }
 0x3cd   :  { %2672 = vmatpush.msrb.mxu2 %v16184_v55  ;;  %2650 = vmatpush.msra.mxu1 %v10892_v23  ;;  %v10900_v55 = vld [vmem:[%s14865_s2 + $0x398] sm:$0xff]  ;;  %v16193_v23 = vld [vmem:[#allocation163_spill] sm:$0xff] }
 0x3ce   :  { %2697 = vmatpush.msrb.mxu0 %v16185_v53  ;;  %2690 = vmatpush.msrb.mxu3 %v16188_v58  ;;  %16190 = vst [vmem:[#allocation165_spill] sm:$0xff] %v10900_v55  ;;  %v10906_v53 = vld [vmem:[%s14865_s2 + $0x440] sm:$0xff]  ;;  %v10914_v58 = vld [vmem:[%s14865_s2 + $0x358] sm:$0xff] }
 0x3cf   :  { %2737 = vmatpush.msra.mxu2 %v10886_v18  ;;  %16191 = vst [vmem:[#allocation166_spill] sm:$0xff] %v10906_v53  ;;  %2651 = vmatpush.msra.mxu1 %v10906_v53  ;;  %v16197_v53 = vld [vmem:[#allocation64_spill] sm:$0xff]  ;;  %v16243_v18 = vld [vmem:[#allocation145_spill] sm:$0xff] }
 0x3d0   :  { %2698 = vmatpush.msrb.mxu0 %v16189_v47  ;;  %2691 = vmatpush.msrb.mxu3 %v16192_v24  ;;  %16194 = vst [vmem:[#allocation28_spill] sm:$0xff] %v10914_v58  ;;  %v10920_v47 = vld [vmem:[%s14865_s2 + $0x400] sm:$0xff]  ;;  %v10934_v24 = vld [vmem:[%s14865_s2 + $0x318] sm:$0xff] }
 0x3d1   :  { %2738 = vmatpush.msra.mxu2 %v10900_v55  ;;  %16195 = vst [vmem:[#allocation31_spill] sm:$0xff] %v10920_v47  ;;  %2652 = vmatpush.msra.mxu1 %v10920_v47  ;;  %v16196_v55 = vld [vmem:[#allocation49_spill] sm:$0xff]  ;;  %v16201_v47 = vld [vmem:[#allocation68_spill] sm:$0xff] }
 0x3d2   :  { %2699 = vmatpush.msrb.mxu0 %v16193_v23  ;;  %2692 = vmatpush.msrb.mxu3 %v16196_v55  ;;  %v10928_v23 = vld [vmem:[%s14865_s2 + $0x7d0] sm:$0xff]  ;;  %16199 = vst [vmem:[#allocation30_spill] sm:$0xff] %v10934_v24 }
 0x3d3   :  { %2739 = vmatpush.msra.mxu2 %v10914_v58  ;;  %16198 = vst [vmem:[#allocation77_spill] sm:$0xff] %v10928_v23  ;;  %2717 = vmatpush.msrb.mxu1 %v10928_v23  ;;  %v16200_v58 = vld [vmem:[#allocation117_spill] sm:$0xff]  ;;  %v16229_v23 = vld [vmem:[#allocation80_spill] sm:$0xff] }
 0x3d4   :  { %2700 = vmatpush.msrb.mxu0 %v16197_v53  ;;  %2757 = vmatpush.msra.mxu3 %v16200_v58  ;;  %v10942_v55 = vld [vmem:[%s14865_s2 + $0x790] sm:$0xff]  ;;  %v10948_v53 = vld [vmem:[%s14865_s2 + $0x2d8] sm:$0xff] }
 0x3d5   :  { %2740 = vmatpush.msra.mxu2 %v10934_v24  ;;  %16202 = vst [vmem:[#allocation34_spill] sm:$0xff] %v10942_v55  ;;  %2718 = vmatpush.msrb.mxu1 %v10942_v55  ;;  %v10954_v58 = vld [vmem:[%s14865_s2 + $0x798] sm:$0xff]  ;;  %v10961_v55 = vld [vmem:[%s14865_s2 + $0x750] sm:$0xff]  ;;  %v16226_v24 = vld [vmem:[#allocation79_spill] sm:$0xff] }
 0x3d6   :  { %2701 = vmatpush.msrb.mxu0 %v16201_v47  ;;  %16203 = vst [vmem:[#allocation83_spill] sm:$0xff] %v10948_v53  ;;  %2758 = vmatpush.msra.mxu3 %v10954_v58  ;;  %v16205_v47 = vld [vmem:[#allocation58_spill] sm:$0xff] }
 0x3d7   :  { %2741 = vmatpush.msra.mxu2 %v10948_v53  ;;  %16204 = vst [vmem:[#allocation154_spill] sm:$0xff] %v10954_v58  ;;  %2719 = vmatpush.msrb.mxu1 %v10961_v55  ;;  %v10967_v53 = vld [vmem:[%s14865_s2 + $0x298] sm:$0xff] }
 0x3d8   :  { %2702 = vmatpush.msrb.mxu0 %v16205_v47  ;;  %16206 = vst [vmem:[#allocation167_spill] sm:$0xff] %v10961_v55  ;;  %v10973_v58 = vld [vmem:[%s14865_s2 + $0x758] sm:$0xff]  ;;  %v10980_v55 = vld [vmem:[%s14865_s2 + $0x710] sm:$0xff] }
 0x3d9   :  { %16207 = vst [vmem:[#allocation168_spill] sm:$0xff] %v10967_v53  ;;  %2742 = vmatpush.msra.mxu2 %v10967_v53  ;;  %2759 = vmatpush.msra.mxu3 %v10973_v58  ;;  %v16209_v47 = vld [vmem:[#allocation126_spill] sm:$0xff] }
 0x3da   :  { %16208 = vst [vmem:[#allocation33_spill] sm:$0xff] %v10973_v58  ;;  %2703 = vmatpush.msrb.mxu0 %v16209_v47  ;;  %2720 = vmatpush.msrb.mxu1 %v10980_v55  ;;  %v10986_v53 = vld [vmem:[%s14865_s2 + $0x258] sm:$0xff]  ;;  %v16213_v47 = vld [vmem:[#allocation75_spill] sm:$0xff] }
 0x3db   :  { %16210 = vst [vmem:[#allocation39_spill] sm:$0xff] %v10980_v55  ;;  %2743 = vmatpush.msra.mxu2 %v10986_v53  ;;  %v10992_v58 = vld [vmem:[%s14865_s2 + $0x718] sm:$0xff]  ;;  %v10999_v55 = vld [vmem:[%s14865_s2 + $0x6d0] sm:$0xff] }
 0x3dc   :  { %16211 = vst [vmem:[#allocation86_spill] sm:$0xff] %v10986_v53  ;;  %2760 = vmatpush.msra.mxu3 %v10992_v58  ;;  %2704 = vmatpush.msrb.mxu0 %v16213_v47  ;;  %v11005_v53 = vld [vmem:[%s14865_s2 + $0x218] sm:$0xff]  ;;  %v16217_v47 = vld [vmem:[#allocation63_spill] sm:$0xff] }
 0x3dd   :  { %16212 = vst [vmem:[#allocation37_spill] sm:$0xff] %v10992_v58  ;;  %2721 = vmatpush.msrb.mxu1 %v10999_v55  ;;  %2744 = vmatpush.msra.mxu2 %v11005_v53  ;;  %v11011_v58 = vld [vmem:[%s14865_s2 + $0x6d8] sm:$0xff] }
 0x3de   :  { %16214 = vst [vmem:[#allocation41_spill] sm:$0xff] %v10999_v55  ;;  %2761 = vmatpush.msra.mxu3 %v11011_v58  ;;  %2705 = vmatpush.msrb.mxu0 %v16217_v47  ;;  %v11018_v55 = vld [vmem:[%s14865_s2 + $0x690] sm:$0xff] }
 0x3df   :  { %16215 = vst [vmem:[#allocation89_spill] sm:$0xff] %v11005_v53  ;;  %2722 = vmatpush.msrb.mxu1 %v11018_v55  ;;  %v11024_v53 = vld [vmem:[%s14865_s2 + $0x1d8] sm:$0xff]  ;;  %v16221_v47 = vld [vmem:[#allocation133_spill] sm:$0xff] }
 0x3e0   :  { %16216 = vst [vmem:[#allocation40_spill] sm:$0xff] %v11011_v58  ;;  %2745 = vmatpush.msra.mxu2 %v11024_v53  ;;  %v11030_v58 = vld [vmem:[%s14865_s2 + $0x698] sm:$0xff]  ;;  %2706 = vmatpush.msrb.mxu0 %v16221_v47 }
 0x3e1   :  { %16218 = vst [vmem:[#allocation43_spill] sm:$0xff] %v11018_v55  ;;  %2762 = vmatpush.msra.mxu3 %v11030_v58  ;;  %v11037_v55 = vld [vmem:[%s14865_s2 + $0x650] sm:$0xff]  ;;  %v16225_v47 = vld [vmem:[#allocation78_spill] sm:$0xff] }
 0x3e2   :  { %16219 = vst [vmem:[#allocation92_spill] sm:$0xff] %v11024_v53  ;;  %2723 = vmatpush.msrb.mxu1 %v11037_v55  ;;  %v11043_v53 = vld [vmem:[%s14865_s2 + $0x198] sm:$0xff]  ;;  %2707 = vmatpush.msrb.mxu0 %v16225_v47 }
 0x3e3   :  { %16220 = vst [vmem:[#allocation42_spill] sm:$0xff] %v11030_v58  ;;  %2746 = vmatpush.msra.mxu2 %v11043_v53  ;;  %v11049_v58 = vld [vmem:[%s14865_s2 + $0x658] sm:$0xff] }
 0x3e4   :  { %16222 = vst [vmem:[#allocation46_spill] sm:$0xff] %v11037_v55  ;;  %2763 = vmatpush.msra.mxu3 %v11049_v58  ;;  %2724 = vmatpush.msrb.mxu1 %v16226_v24  ;;  %v11057_v55 = vld [vmem:[%s14865_s2 + $0x158] sm:$0xff] }
 0x3e5   :  { %16223 = vst [vmem:[#allocation97_spill] sm:$0xff] %v11043_v53  ;;  %2747 = vmatpush.msra.mxu2 %v11057_v55  ;;  %v11063_v53 = vld [vmem:[%s14865_s2 + $0x618] sm:$0xff]  ;;  %2708 = vmatpush.msrb.mxu0 %v16229_v23 }
 0x3e6   :  { %16224 = vst [vmem:[#allocation44_spill] sm:$0xff] %v11049_v58  ;;  %2764 = vmatpush.msra.mxu3 %v11063_v53  ;;  %v16230_v58 = vld [vmem:[#allocation85_spill] sm:$0xff]  ;;  %v11071_v24 = vld [vmem:[%s14865_s2 + $0x118] sm:$0xff] }
 0x3e7   :  { %16227 = vst [vmem:[#allocation51_spill] sm:$0xff] %v11057_v55  ;;  %2725 = vmatpush.msrb.mxu1 %v16230_v58  ;;  %2748 = vmatpush.msra.mxu2 %v11071_v24  ;;  %v11077_v47 = vld [vmem:[%s14865_s2 + $0x5d8] sm:$0xff]  ;;  %v16233_v55 = vld [vmem:[#allocation88_spill] sm:$0xff] }
 0x3e8   :  { %16228 = vst [vmem:[#allocation102_spill] sm:$0xff] %v11063_v53  ;;  %2765 = vmatpush.msra.mxu3 %v11077_v47  ;;  %2709 = vmatpush.msrb.mxu0 %v16233_v55  ;;  %v16234_v53 = vld [vmem:[#allocation91_spill] sm:$0xff]  ;;  %v11085_v23 = vld [vmem:[%s14865_s2 + $0xd8] sm:$0xff]  ;;  %v11097_v55 = vld [vmem:[%s14865_s2 + $0x90] sm:$0xff] }
 0x3e9   :  { %16231 = vst [vmem:[#allocation48_spill] sm:$0xff] %v11071_v24  ;;  %2726 = vmatpush.msrb.mxu1 %v16234_v53  ;;  %2749 = vmatpush.msra.mxu2 %v11085_v23  ;;  %v11091_v58 = vld [vmem:[%s14865_s2 + $0x598] sm:$0xff]  ;;  %v2189_v24 = vpop.f32.mrf.mxu1 }
 0x3ea   :  { %16232 = vst [vmem:[#allocation56_spill] sm:$0xff] %v11077_v47  ;;  %2766 = vmatpush.msra.mxu3 %v11091_v58  ;;  %2710 = vmatpush.msrb.mxu0 %v11097_v55  ;;  %v16238_v53 = vld [vmem:[#allocation94_spill] sm:$0xff]  ;;  %v2169_v47 = vpop.f32.mrf.mxu0 }
 0x3eb   :  { %16235 = vst [vmem:[#allocation105_spill] sm:$0xff] %v11085_v23  ;;  %2727 = vmatpush.msrb.mxu1 %v16238_v53  ;;  %v11104_v23 = vld [vmem:[%s14865_s2 + $0x98] sm:$0xff]  ;;  %v11116_v53 = vld [vmem:[%s14865_s2 + $0x50] sm:$0xff]  ;;  %v2190_v9 = vadd.f32 %v2189_v24, %v2169_v47  ;;  %v16248_v24 = vld [vmem:[#allocation55_spill] sm:$0xff] }
 0x3ec   :  { %16236 = vst [vmem:[#allocation54_spill] sm:$0xff] %v11091_v58  ;;  %2750 = vmatpush.msra.mxu2 %v11104_v23  ;;  %v11110_v58 = vld [vmem:[%s14865_s2 + $0x558] sm:$0xff]  ;;  %2711 = vmatpush.msrb.mxu0 %v11116_v53 }
 0x3ed   :  { %16237 = vst [vmem:[#allocation59_spill] sm:$0xff] %v11097_v55  ;;  %2767 = vmatpush.msra.mxu3 %v11110_v58  ;;  %v16242_v55 = vld [vmem:[#allocation99_spill] sm:$0xff] }
 0x3ee   :  { %16239 = vst [vmem:[#allocation57_spill] sm:$0xff] %v11104_v23  ;;  %2728 = vmatpush.msrb.mxu1 %v16242_v55  ;;  %v16244_v23 = vld [vmem:[#allocation11_spill] sm:$0xff]  ;;  %2751 = vmatpush.msra.mxu2 %v11125_v2  ;;  %v11137_v55 = vld [vmem:[%s14865_s2 + $0x10] sm:$0xff]  ;;  %v16251_v2 = vld [vmem:[#allocation106_spill] sm:$0xff] }
 0x3ef   :  { %16240 = vst [vmem:[#allocation108_spill] sm:$0xff] %v11110_v58  ;;  %v125_v4 = vadd.f32 %v16244_v23, %v16243_v18  ;;  %v11131_v58 = vld [vmem:[%s14865_s2 + $0x518] sm:$0xff]  ;;  %2712 = vmatpush.msrb.mxu0 %v11137_v55  ;;  %v16254_v18 = vld [vmem:[#allocation152_spill] sm:$0xff] }
 0x3f0   :  { %16241 = vst [vmem:[#allocation60_spill] sm:$0xff] %v11116_v53  ;;  %2768 = vmatpush.msra.mxu3 %v11131_v58  ;;  %2729 = vmatpush.msrb.mxu1 %v16248_v24  ;;  %v11144_v23 = vld [vmem:[%s14865_s2 + $0x18] sm:$0xff]  ;;  %v2229_v24 = vpop.f32.mrf.mxu3  ;;  %v16255_v53 = vld [vmem:[#allocation12_spill] sm:$0xff] }
 0x3f1   :  { %16246 = vst [vmem:[#allocation157_spill] sm:$0xff] %v11131_v58  ;;  %v2472_v47 = vadd.f32 %v2190_v9, %v125_v4  ;;  %2752 = vmatpush.msra.mxu2 %v11144_v23  ;;  %v11150_v58 = vld [vmem:[%s14865_s2 + $0x4d8] sm:$0xff]  ;;  %v2209_v4 = vpop.f32.mrf.mxu2  ;;  %v166_v42 = vadd.f32 %v16255_v53, %v16254_v18 }
 0x3f2   :  { %16247 = vst [vmem:[#allocation62_spill] sm:$0xff] %v11137_v55  ;;  %2769 = vmatpush.msra.mxu3 %v11150_v58  ;;  %2730 = vmatpush.msrb.mxu1 %v16251_v2  ;;  %v11157_v9 = vld [vmem:[%s14865_s2 + $0x498] sm:$0xff]  ;;  %v2230_v38 = vadd.f32 %v2229_v24, %v2209_v4  ;;  %v2269_v4 = vpop.f32.mrf.mxu1  ;;  %v16259_v24 = vld [vmem:[#allocation144_spill] sm:$0xff] }
 0x3f3   :  { %16249 = vst [vmem:[#allocation160_spill] sm:$0xff] %v11144_v23  ;;  %v4949_v55 = vmul.f32 -1.442695, %v2472_v47  ;;  %v16253_v23 = vld [vmem:[#allocation72_spill] sm:$0xff]  ;;  %v11166_v2 = vld [vmem:[%s14865_s2 + $0x458] sm:$0xff]  ;;  %v11172_v47 = vld [vmem:[%s14865_s2 + $0x410] sm:$0xff] }
 0x3f4   :  { %16250 = vst [vmem:[#allocation111_spill] sm:$0xff] %v11150_v58  ;;  %2770 = vmatpush.msra.mxu3 %v11157_v9  ;;  %2731 = vmatpush.msrb.mxu1 %v16253_v23  ;;  %v2473_v23 = vadd.f32 %v2230_v38, %v166_v42  ;;  %v11178_v53 = vld [vmem:[%s14865_s2 + $0x418] sm:$0xff] }
 0x3f5   :  { %16252 = vst [vmem:[#allocation163_spill] sm:$0xff] %v11157_v9  ;;  %5081 = vpow2.f32 %v4949_v55  ;;  %v2249_v55 = vpop.f32.mrf.mxu0  ;;  %v16260_v18 = vld [vmem:[#allocation22_spill] sm:$0xff] }
 0x3f6   :  { %16256 = vst [vmem:[#allocation49_spill] sm:$0xff] %v11166_v2  ;;  %2771 = vmatpush.msra.mxu3 %v11166_v2  ;;  %2732 = vmatpush.msrb.mxu1 %v11172_v47  ;;  %v207_v2 = vadd.f32 %v16260_v18, %v16259_v24  ;;  %v4950_v9 = vmul.f32 -1.442695, %v2473_v23  ;;  %v2270_v58 = vadd.f32 %v2269_v4, %v2249_v55 }
 0x3f7   :  { %16257 = vst [vmem:[#allocation64_spill] sm:$0xff] %v11172_v47 }
 0x3f8   :  { %16258 = vst [vmem:[#allocation117_spill] sm:$0xff] %v11178_v53  ;;  %2772 = vmatpush.msra.mxu3 %v11178_v53  ;;  %5083 = vpow2.f32 %v4950_v9  ;;  %v2474_v8 = vadd.f32 %v2270_v58, %v207_v2  ;;  %v2309_v47 = vpop.f32.mrf.mxu3 }
 0x3f9   :  { %v2289_v38 = vpop.f32.mrf.mxu2 }
 0x3fa   :  { %v4951_v42 = vmul.f32 -1.442695, %v2474_v8  ;;  %v2310_v53 = vadd.f32 %v2309_v47, %v2289_v38 }
 0x3fb   :  { %v5082_v62 = vpop.eup %5081 }
 0x3fc   :  { %v11183_v34 = vadd.f32 1.0, %v5082_v62  ;;  %5085 = vpow2.f32 %v4951_v42  ;;  %v2475_v22 = vadd.f32 %v2310_v53, %v248_v48 }
 0x3fe   :  { %v5084_v0 = vpop.eup %5083  ;;  %5087 = vrcp.f32 %v11183_v34  ;;  %v4952_v23 = vmul.f32 -1.442695, %v2475_v22  ;;  %v2499_v35 = vand.u32 2147483648, %v11183_v34  ;;  %vm2493_vm13 = vweird.f32 %v11183_v34 }
 0x3ff   :  { %v11188_v18 = vadd.f32 1.0, %v5084_v0 }
 0x400   :  { %5089 = vpow2.f32 %v4952_v23  ;;  %v2329_v53 = vpop.f32.mrf.mxu0  ;;  %v16263_v23 = vld [vmem:[#allocation150_spill] sm:$0xff] }
 0x401   :  { %5091 = vrcp.f32 %v11188_v18  ;;  %vm2508_vm5 = vweird.f32 %v11188_v18 }
 0x402   :  { %v5086_v55 = vpop.eup %5085 }
 0x403   :  { %v2524_v58 = vadd.f32 1.0, %v5086_v55  ;;  %v16264_v55 = vld [vmem:[#allocation69_spill] sm:$0xff] }
 0x404   :  { %v5088_v62 = vpop.eup %5087  ;;  %v289_v26 = vadd.f32 %v16264_v55, %v16263_v23 }
 0x405   :  { %5093 = vrcp.f32 %v2524_v58  ;;  %v2489_v8 = vmul.f32 %v5088_v62, %v11183_v34  ;;  %v2537_v27 = vand.u32 2147483648, %v2524_v58  ;;  %vm2531_vm10 = vweird.f32 %v2524_v58 }
 0x406   :  { %v5090_v9 = vpop.eup %5089  ;;  %vm2494_vm11 = vweird.f32 %v5088_v62 }
 0x407   :  { %v11192_v19 = vadd.f32 1.0, %v5090_v9  ;;  %v11194_v2 = vpop.eup %5091  ;;  %v2490_v4 = vsub.f32 1.0, %v2489_v8  ;;  %v2349_v42 = vpop.f32.mrf.mxu1  ;;  %v2497_v8 = vand.u32 2147483647, %v11183_v34  ;;  %vm11214_vm14 = vmor %vm2493_vm13, %vm2494_vm11 }
 0x408   :  { %v2504_v48 = vmul.f32 %v11194_v2, %v11188_v18  ;;  %v2350_v9 = vadd.f32 %v2349_v42, %v2329_v53  ;;  %vm2509_vm3 = vweird.f32 %v11194_v2 }
 0x409   :  { %5095 = vrcp.f32 %v11192_v19  ;;  %v2491_v38 = vmul.f32 %v5088_v62, %v2490_v4  ;;  %v2535_v4 = vand.u32 2147483647, %v2524_v58  ;;  %vm11218_vm15 = vcmp.eq.f32.partialorder %v2497_v8, 8.507059e+37  ;;  %vm2510_vm6 = vmor %vm2508_vm5, %vm2509_vm3 }
 0x40a   :  { %v2505_v39 = vsub.f32 1.0, %v2504_v48  ;;  %v2476_v43 = vadd.f32 %v2350_v9, %v289_v26  ;;  %v16267_v48 = vld [vmem:[#allocation70_spill] sm:$0xff]  ;;  %v2369_v26 = vpop.f32.mrf.mxu2  ;;  %v2538_v9 = vor.u32 1.1754944e-38, %v2537_v27  ;;  %vm2546_vm2 = vweird.f32 %v11192_v19 }
 0x40b   :  { %v5094_v47 = vpop.eup %5093  ;;  %v2492_v1 = vadd.f32 %v5088_v62, %v2491_v38  ;;  %v330_v53 = vadd.f32 %v16267_v48, %v16057_v59  ;;  %vm2536_vm1 = vcmp.eq.f32.partialorder %v2535_v4, 8.507059e+37  ;;  %v2550_v8 = vand.u32 2147483647, %v11192_v19 }
 0x40c   :  { %v2527_v0 = vmul.f32 %v5094_v47, %v2524_v58  ;;  %vm2532_vm9 = vweird.f32 %v5094_v47  ;;  %5097 = vtanh.f32 %v2476_v43  ;;  %v2506_v38 = vmul.f32 %v11194_v2, %v2505_v39 }
 0x40d   :  { %vm11204_vm12 = vmor %vm2531_vm10, %vm2532_vm9  ;;  %v2496_v34 = vsel %vm11214_vm14, %v5088_v62, %v2492_v1  ;;  %v2512_v4 = vand.u32 2147483647, %v11188_v18  ;;  %vm2551_vm7 = vcmp.eq.f32.partialorder %v2550_v8, 8.507059e+37  ;;  %v16275_v8 = vld [vmem:[#allocation137_spill] sm:$0xff] }
 0x40e   :  { %v2528_v22 = vsub.f32 1.0, %v2527_v0 }
 0x40f   :  { %v5096_v21 = vpop.eup %5095  ;;  %vm2513_vm8 = vcmp.eq.f32.partialorder %v2512_v4, 8.507059e+37 }
 0x410   :  { %v2529_v24 = vmul.f32 %v5094_v47, %v2528_v22  ;;  %v2542_v13 = vmul.f32 %v5096_v21, %v11192_v19  ;;  %vm2547_vm0 = vweird.f32 %v5096_v21 }
 0x411   :  { %vm11229_vm4 = vmor %vm2546_vm2, %vm2547_vm0 }
 0x412   :  { %v2530_v0 = vadd.f32 %v5094_v47, %v2529_v24  ;;  %v2543_v22 = vsub.f32 1.0, %v2542_v13  ;;  %v2389_v24 = vpop.f32.mrf.mxu3  ;;  %v5098_v48 = vpop.eup %5097 }
 0x413   :  { %v2390_v13 = vadd.f32 %v2389_v24, %v2369_v26 }
 0x414   :  { %v2534_v42 = vsel %vm11204_vm12, %v5094_v47, %v2530_v0  ;;  %v2544_v58 = vmul.f32 %v5096_v21, %v2543_v22  ;;  %v2500_v47 = vor.u32 1.1754944e-38, %v2499_v35  ;;  %v2552_v0 = vand.u32 2147483648, %v11192_v19 }
 0x415   :  { %v2539_v39 = vsel %vm2536_vm1, %v2538_v9, %v2534_v42  ;;  %v2477_v27 = vadd.f32 %v2390_v13, %v330_v53  ;;  %v2507_v22 = vadd.f32 %v11194_v2, %v2506_v38  ;;  %v2514_v35 = vand.u32 2147483648, %v11188_v18 }
 0x416   :  { %v2545_v55 = vadd.f32 %v5096_v21, %v2544_v58  ;;  %v2501_v1 = vsel %vm11218_vm15, %v2500_v47, %v2496_v34  ;;  %v2596_v62 = vmul.f32 %v2539_v39, %v10164_v14  ;;  %v2553_v53 = vor.u32 1.1754944e-38, %v2552_v0 }
 0x417   :  { %5099 = vtanh.f32 %v2477_v27  ;;  %v2598_v23 = vmul.f32 %v5098_v48, %v2501_v1  ;;  %v2511_v24 = vsel %vm2510_vm6, %v11194_v2, %v2507_v22  ;;  %v2515_v38 = vor.u32 1.1754944e-38, %v2514_v35 }
 0x418   :  { %v2549_v19 = vsel %vm11229_vm4, %v5096_v21, %v2545_v55  ;;  %v16274_v21 = vld [vmem:[#allocation136_spill] sm:$0xff]  ;;  %v412_v48 = vadd.f32 %v16275_v8, %v8173_v30 }
 0x419   :  { %v11241_v42 = vadd.f32 %v2598_v23, %v2596_v62  ;;  %v2554_v9 = vsel %vm2551_vm7, %v2553_v53, %v2549_v19  ;;  %v2516_v43 = vsel %vm2513_vm8, %v2515_v38, %v2511_v24  ;;  %v371_v0 = vadd.f32 %v16274_v21, %v8130_v61 }
 0x41a   :  { %v2597_v14 = vmul.f32 %v2554_v9, %v10168_v44 }
 0x41d   :  { %v5100_v58 = vpop.eup %5099 }
 0x41e   :  { %v2599_v13 = vmul.f32 %v5100_v58, %v2516_v43 }
 0x420   :  { %v11245_v34 = vadd.f32 %v2599_v13, %v2597_v14 }
 0x428   :  { %v2409_v18 = vpop.f32.mrf.mxu0 }
 0x42e   :  { %v2429_v47 = vpop.f32.mrf.mxu1 }
 0x42f   :  { %v2430_v39 = vadd.f32 %v2429_v47, %v2409_v18  ;;  %v2449_v2 = vpop.f32.mrf.mxu2 }
 0x431   :  { %v2478_v27 = vadd.f32 %v2430_v39, %v371_v0 }
 0x433   :  { %v4953_v55 = vmul.f32 -1.442695, %v2478_v27 }
 0x435   :  { %v2469_v22 = vpop.f32.mrf.mxu3  ;;  %5101 = vpow2.f32 %v4953_v55 }
 0x436   :  { %v2470_v26 = vadd.f32 %v2469_v22, %v2449_v2 }
 0x438   :  { %v2479_v1 = vadd.f32 %v2470_v26, %v412_v48  ;;  %v11261_v26 = vld [vmem:[%s14865_s2 + $0x3e8] sm:$0xff] }
 0x43a   :  { %v4954_v44 = vmul.f32 -1.442695, %v2479_v1 }
 0x43b   :  { %v5102_v35 = vpop.eup %5101 }
 0x43c   :  { %5103 = vpow2.f32 %v4954_v44  ;;  %v2564_v62 = vadd.f32 1.0, %v5102_v35 }
 0x43e   :  { %5105 = vrcp.f32 %v2564_v62  ;;  %v2577_v38 = vand.u32 2147483648, %v2564_v62  ;;  %v2575_v58 = vand.u32 2147483647, %v2564_v62  ;;  %vm2571_vm10 = vweird.f32 %v2564_v62 }
 0x440   :  { %v2578_v18 = vor.u32 1.1754944e-38, %v2577_v38  ;;  %vm2576_vm12 = vcmp.eq.f32.partialorder %v2575_v58, 8.507059e+37  ;;  %v16295_v38 = vld [vmem:[#allocation172_spill] sm:$0xff]  ;;  %v11439_v58 = vld [vmem:[%s14865_s2 + $0x338] sm:$0xff] }
 0x442   :  { %v5104_v23 = vpop.eup %5103 }
 0x443   :  { %v2565_v4 = vadd.f32 1.0, %v5104_v23  ;;  %v11277_v23 = vld [vmem:[%s14865_s2 + $0x368] sm:$0xff] }
 0x444   :  { %v5106_v19 = vpop.eup %5105 }
 0x445   :  { %5107 = vrcp.f32 %v2565_v4  ;;  %v2567_v53 = vmul.f32 %v5106_v19, %v2564_v62  ;;  %vm2572_vm9 = vweird.f32 %v5106_v19  ;;  %v2592_v27 = vand.u32 2147483648, %v2565_v4  ;;  %v11268_v62 = vld [vmem:[%s14865_s2 + $0x3a8] sm:$0xff] }
 0x446   :  { %5109 = vtanh.f32 %v11241_v42  ;;  %vm2573_vm11 = vmor %vm2571_vm10, %vm2572_vm9  ;;  %v2590_v22 = vand.u32 2147483647, %v2565_v4  ;;  %vm2586_vm14 = vweird.f32 %v2565_v4 }
 0x447   :  { %v2568_v24 = vsub.f32 1.0, %v2567_v53  ;;  %5111 = vtanh.f32 %v11245_v34  ;;  %v2593_v48 = vor.u32 1.1754944e-38, %v2592_v27  ;;  %v16293_v53 = vld [vmem:[#allocation171_spill] sm:$0xff]  ;;  %v16303_v27 = vld [vmem:[#allocation98_spill] sm:$0xff] }
 0x448   :  { %vm2591_vm0 = vcmp.eq.f32.partialorder %v2590_v22, 8.507059e+37  ;;  %v16305_v22 = vld [vmem:[#allocation103_spill] sm:$0xff] }
 0x449   :  { %v2569_v9 = vmul.f32 %v5106_v19, %v2568_v24  ;;  %v16294_v24 = vld [vmem:[#allocation84_spill] sm:$0xff] }
 0x44b   :  { %v5108_v43 = vpop.eup %5107  ;;  %v2570_v14 = vadd.f32 %v5106_v19, %v2569_v9  ;;  %v16296_v9 = vld [vmem:[#allocation173_spill] sm:$0xff] }
 0x44c   :  { %v2582_v13 = vmul.f32 %v5108_v43, %v2565_v4  ;;  %v5110_v0 = vpop.eup %5109  ;;  %vm2587_vm13 = vweird.f32 %v5108_v43  ;;  %v16292_v4 = vld [vmem:[#allocation170_spill] sm:$0xff] }
 0x44d   :  { %v2574_v47 = vsel %vm2573_vm11, %v5106_v19, %v2570_v14  ;;  %vm2588_vm15 = vmor %vm2586_vm14, %vm2587_vm13  ;;  %v5112_v44 = vpop.eup %5111  ;;  %v11427_v19 = vld [vmem:[%s14865_s2 + $0x378] sm:$0xff] }
 0x44e   :  { %v2583_v21 = vsub.f32 1.0, %v2582_v13  ;;  %v2579_v39 = vsel %vm2576_vm12, %v2578_v18, %v2574_v47  ;;  %v16298_v14 = vld [vmem:[#allocation174_spill] sm:$0xff]  ;;  %v16300_v47 = vld [vmem:[#allocation112_spill] sm:$0xff] }
 0x44f   :  { %v11253_v55 = vmul.f32 %v5110_v0, %v2579_v39  ;;  %v16299_v13 = vld [vmem:[#allocation90_spill] sm:$0xff] }
 0x450   :  { %v2584_v2 = vmul.f32 %v5108_v43, %v2583_v21  ;;  %v11448_v18 = vld [vmem:[%s14865_s2 + $0x2f8] sm:$0xff]  ;;  %v16301_v21 = vld [vmem:[#allocation93_spill] sm:$0xff] }
 0x451   :  { %2633 = vmatmul.f32.vlgmr.msra.gmra.mxu0 %v11253_v55  ;;  %2673 = vmatmul.f32.vlgmr.msrb.gmra.mxu2 %v11253_v55  ;;  %v16302_v0 = vld [vmem:[#allocation118_spill] sm:$0xff] }
 0x452   :  { %v2585_v8 = vadd.f32 %v5108_v43, %v2584_v2  ;;  %2777 = vmatpush.msra.mxu0 %v10183_v11  ;;  %2817 = vmatpush.msrb.mxu2 %v11261_v26  ;;  %v11457_v39 = vld [vmem:[%s14865_s2 + $0x2b8] sm:$0xff]  ;;  %v16304_v2 = vld [vmem:[#allocation123_spill] sm:$0xff] }
 0x454   :  { %v2589_v1 = vsel %vm2588_vm15, %v5108_v43, %v2585_v8  ;;  %2778 = vmatpush.msra.mxu0 %v10190_v6  ;;  %2818 = vmatpush.msrb.mxu2 %v11268_v62  ;;  %v11287_v6 = vld [vmem:[%s14865_s2 + $0x328] sm:$0xff]  ;;  %v16297_v43 = vld [vmem:[#allocation87_spill] sm:$0xff]  ;;  %v11466_v8 = vld [vmem:[%s14865_s2 + $0x278] sm:$0xff] }
 0x455   :  { %v2594_v35 = vsel %vm2591_vm0, %v2593_v48, %v2589_v1  ;;  %v16306_v48 = vld [vmem:[#allocation104_spill] sm:$0xff]  ;;  %v16307_v1 = vld [vmem:[#allocation127_spill] sm:$0xff] }
 0x456   :  { %v11271_v11 = vmul.f32 %v5112_v44, %v2594_v35  ;;  %2779 = vmatpush.msra.mxu0 %v10199_v57  ;;  %2819 = vmatpush.msrb.mxu2 %v11277_v23  ;;  %v11298_v57 = vld [vmem:[%s14865_s2 + $0x2e8] sm:$0xff]  ;;  %v16308_v44 = vld [vmem:[#allocation107_spill] sm:$0xff]  ;;  %v11475_v35 = vld [vmem:[%s14865_s2 + $0x238] sm:$0xff] }
 0x458   :  { %2653 = vmatmul.f32.vlgmr.msra.gmra.mxu1 %v11271_v11  ;;  %2693 = vmatmul.f32.vlgmr.msrb.gmra.mxu3 %v11271_v11 }
 0x459   :  { %2780 = vmatpush.msra.mxu0 %v10208_v5  ;;  %2797 = vmatpush.msra.mxu1 %v10214_v46  ;;  %v11307_v5 = vld [vmem:[%s14865_s2 + $0x2a8] sm:$0xff] }
 0x45a   :  { %2820 = vmatpush.msrb.mxu2 %v11287_v6  ;;  %2837 = vmatpush.msrb.mxu3 %v10221_v28  ;;  %v11316_v46 = vld [vmem:[%s14865_s2 + $0x268] sm:$0xff] }
 0x45b   :  { %2713 = vmatmul.f32.vlgmr.msrb.gmra.mxu0 %v11253_v55  ;;  %2753 = vmatmul.f32.vlgmr.msra.gmra.mxu2 %v11253_v55  ;;  %v11327_v28 = vld [vmem:[%s14865_s2 + $0x228] sm:$0xff] }
 0x45c   :  { %2781 = vmatpush.msra.mxu0 %v10229_v54  ;;  %2798 = vmatpush.msra.mxu1 %v10235_v3  ;;  %v11336_v54 = vld [vmem:[%s14865_s2 + $0x1e8] sm:$0xff] }
 0x45d   :  { %2821 = vmatpush.msrb.mxu2 %v11298_v57  ;;  %2838 = vmatpush.msrb.mxu3 %v10242_v50  ;;  %v11345_v3 = vld [vmem:[%s14865_s2 + $0x1a8] sm:$0xff] }
 0x45e   :  { %2782 = vmatpush.msra.mxu0 %v10248_v25  ;;  %2799 = vmatpush.msra.mxu1 %v10254_v41  ;;  %v11354_v50 = vld [vmem:[%s14865_s2 + $0x168] sm:$0xff] }
 0x45f   :  { %2822 = vmatpush.msrb.mxu2 %v11307_v5  ;;  %2839 = vmatpush.msrb.mxu3 %v10261_v16  ;;  %v11363_v25 = vld [vmem:[%s14865_s2 + $0x128] sm:$0xff]  ;;  %v16276_v16 = vld [vmem:[#allocation110_spill] sm:$0xff] }
 0x460   :  { %2783 = vmatpush.msra.mxu0 %v10267_v56  ;;  %2800 = vmatpush.msra.mxu1 %v10273_v52  ;;  %v11372_v41 = vld [vmem:[%s14865_s2 + $0xe8] sm:$0xff]  ;;  %v16277_v56 = vld [vmem:[#allocation61_spill] sm:$0xff]  ;;  %v16278_v52 = vld [vmem:[#allocation119_spill] sm:$0xff] }
 0x461   :  { %2823 = vmatpush.msrb.mxu2 %v11316_v46  ;;  %2840 = vmatpush.msrb.mxu3 %v10280_v15  ;;  %v11381_v15 = vld [vmem:[%s14865_s2 + $0xa8] sm:$0xff] }
 0x462   :  { %2733 = vmatmul.f32.vlgmr.msrb.gmra.mxu1 %v11271_v11  ;;  %2773 = vmatmul.f32.vlgmr.msra.gmra.mxu3 %v11271_v11 }
 0x463   :  { %2784 = vmatpush.msra.mxu0 %v10288_v49  ;;  %2801 = vmatpush.msra.mxu1 %v10294_v17  ;;  %v16279_v49 = vld [vmem:[#allocation120_spill] sm:$0xff]  ;;  %v16280_v17 = vld [vmem:[#allocation130_spill] sm:$0xff] }
 0x464   :  { %2824 = vmatpush.msrb.mxu2 %v11327_v28  ;;  %2841 = vmatpush.msrb.mxu3 %v10301_v33  ;;  %v16281_v33 = vld [vmem:[#allocation124_spill] sm:$0xff] }
 0x465   :  { %2785 = vmatpush.msra.mxu0 %v10307_v31  ;;  %2802 = vmatpush.msra.mxu1 %v10313_v40  ;;  %v11390_v31 = vld [vmem:[%s14865_s2 + $0x68] sm:$0xff] }
 0x466   :  { %2825 = vmatpush.msrb.mxu2 %v11336_v54  ;;  %2842 = vmatpush.msrb.mxu3 %v10320_v45  ;;  %v16282_v40 = vld [vmem:[#allocation76_spill] sm:$0xff]  ;;  %v16283_v45 = vld [vmem:[#allocation125_spill] sm:$0xff] }
 0x467   :  { %2786 = vmatpush.msra.mxu0 %v10326_v20  ;;  %2803 = vmatpush.msra.mxu1 %v10332_v12  ;;  %v16284_v20 = vld [vmem:[#allocation128_spill] sm:$0xff] }
 0x468   :  { %2826 = vmatpush.msrb.mxu2 %v11345_v3  ;;  %2843 = vmatpush.msrb.mxu3 %v10339_v51  ;;  %v11399_v12 = vld [vmem:[%s14865_s2 + $0x28] sm:$0xff]  ;;  %v16285_v51 = vld [vmem:[#allocation67_spill] sm:$0xff] }
 0x469   :  { %2787 = vmatpush.msra.mxu0 %v10345_v7  ;;  %2804 = vmatpush.msra.mxu1 %v10351_v37  ;;  %v16286_v7 = vld [vmem:[#allocation129_spill] sm:$0xff]  ;;  %v11409_v37 = vld [vmem:[%s14865_s2 + $0x3f8] sm:$0xff] }
 0x46a   :  { %2827 = vmatpush.msrb.mxu2 %v11354_v50  ;;  %2844 = vmatpush.msrb.mxu3 %v10358_v63  ;;  %v16287_v63 = vld [vmem:[#allocation132_spill] sm:$0xff] }
 0x46b   :  { %2788 = vmatpush.msra.mxu0 %v10364_v10  ;;  %2805 = vmatpush.msra.mxu1 %v10370_v36  ;;  %v16288_v10 = vld [vmem:[#allocation71_spill] sm:$0xff] }
 0x46c   :  { %2828 = vmatpush.msrb.mxu2 %v11363_v25  ;;  %2845 = vmatpush.msrb.mxu3 %v10377_v32  ;;  %v16289_v36 = vld [vmem:[#allocation135_spill] sm:$0xff]  ;;  %v11418_v32 = vld [vmem:[%s14865_s2 + $0x3b8] sm:$0xff] }
 0x46d   :  { %2789 = vmatpush.msra.mxu0 %v10383_v29  ;;  %2806 = vmatpush.msra.mxu1 %v10389_v60  ;;  %v16290_v29 = vld [vmem:[#allocation169_spill] sm:$0xff]  ;;  %v16291_v60 = vld [vmem:[#allocation74_spill] sm:$0xff] }
 0x46e   :  { %2829 = vmatpush.msrb.mxu2 %v11372_v41  ;;  %2846 = vmatpush.msrb.mxu3 %v16276_v16  ;;  %v16309_v16 = vld [vmem:[#allocation9_spill] sm:$0xff] }
 0x46f   :  { %2790 = vmatpush.msra.mxu0 %v16277_v56  ;;  %2807 = vmatpush.msra.mxu1 %v16278_v52  ;;  %v16310_v56 = vld [vmem:[#allocation109_spill] sm:$0xff]  ;;  %v16311_v52 = vld [vmem:[#allocation131_spill] sm:$0xff] }
 0x470   :  { %2830 = vmatpush.msrb.mxu2 %v11381_v15  ;;  %2847 = vmatpush.msrb.mxu3 %v16279_v49  ;;  %v11484_v49 = vld [vmem:[%s14865_s2 + $0x1f8] sm:$0xff] }
 0x471   :  { %2791 = vmatpush.msra.mxu0 %v16280_v17  ;;  %2808 = vmatpush.msra.mxu1 %v16281_v33  ;;  %v16312_v17 = vld [vmem:[#allocation113_spill] sm:$0xff]  ;;  %v16313_v33 = vld [vmem:[#allocation114_spill] sm:$0xff] }
 0x472   :  { %2831 = vmatpush.msrb.mxu2 %v11390_v31  ;;  %2848 = vmatpush.msrb.mxu3 %v16282_v40  ;;  %v16314_v40 = vld [vmem:[#allocation134_spill] sm:$0xff] }
 0x473   :  { %2792 = vmatpush.msra.mxu0 %v16283_v45  ;;  %2809 = vmatpush.msra.mxu1 %v16284_v20  ;;  %v11493_v45 = vld [vmem:[%s14865_s2 + $0x1b8] sm:$0xff]  ;;  %v16315_v20 = vld [vmem:[#allocation175_spill] sm:$0xff] }
 0x474   :  { %2832 = vmatpush.msrb.mxu2 %v11399_v12  ;;  %2849 = vmatpush.msrb.mxu3 %v16285_v51  ;;  %v16316_v51 = vld [vmem:[#allocation10_spill] sm:$0xff] }
 0x475   :  { %2793 = vmatmul.f32.vlgmr.msra.gmra.mxu0 %v11253_v55  ;;  %2833 = vmatmul.f32.vlgmr.msrb.gmra.mxu2 %v11253_v55 }
 0x476   :  { %2857 = vmatpush.msrb.mxu0 %v16286_v7  ;;  %2897 = vmatpush.msra.mxu2 %v11409_v37  ;;  %v16317_v7 = vld [vmem:[#allocation176_spill] sm:$0xff] }
 0x477   :  { %2810 = vmatpush.msra.mxu1 %v16287_v63  ;;  %2850 = vmatpush.msrb.mxu3 %v16288_v10  ;;  %v11502_v63 = vld [vmem:[%s14865_s2 + $0x178] sm:$0xff] }
 0x478   :  { %2858 = vmatpush.msrb.mxu0 %v16289_v36  ;;  %2898 = vmatpush.msra.mxu2 %v11418_v32  ;;  %v11508_v10 = vld [vmem:[%s14865_s2 + $0x638] sm:$0xff]  ;;  %v16318_v36 = vld [vmem:[#allocation5_spill] sm:$0xff] }
 0x479   :  { %2811 = vmatpush.msra.mxu1 %v16290_v29  ;;  %2851 = vmatpush.msrb.mxu3 %v16291_v60  ;;  %v16319_v29 = vld [vmem:[#allocation177_spill] sm:$0xff]  ;;  %v11516_v60 = vld [vmem:[%s14865_s2 + $0x138] sm:$0xff] }
 0x47a   :  { %2859 = vmatpush.msrb.mxu0 %v16292_v4  ;;  %2899 = vmatpush.msra.mxu2 %v11427_v19  ;;  %v11522_v4 = vld [vmem:[%s14865_s2 + $0x5f8] sm:$0xff] }
 0x47b   :  { %2812 = vmatpush.msra.mxu1 %v16293_v53  ;;  %2852 = vmatpush.msrb.mxu3 %v16294_v24  ;;  %v16320_v53 = vld [vmem:[#allocation17_spill] sm:$0xff]  ;;  %v16321_v24 = vld [vmem:[#allocation18_spill] sm:$0xff] }
 0x47c   :  { %2813 = vmatmul.f32.vlgmr.msra.gmra.mxu1 %v11271_v11  ;;  %2853 = vmatmul.f32.vlgmr.msrb.gmra.mxu3 %v11271_v11 }
 0x47d   :  { %2860 = vmatpush.msrb.mxu0 %v16295_v38  ;;  %2877 = vmatpush.msrb.mxu1 %v16296_v9  ;;  %v11530_v38 = vld [vmem:[%s14865_s2 + $0xf8] sm:$0xff] }
 0x47e   :  { %2900 = vmatpush.msra.mxu2 %v11439_v58  ;;  %2917 = vmatpush.msra.mxu3 %v16297_v43  ;;  %v11536_v9 = vld [vmem:[%s14865_s2 + $0x5b8] sm:$0xff]  ;;  %v16322_v43 = vld [vmem:[#allocation52_spill] sm:$0xff] }
 0x47f   :  { %2861 = vmatpush.msrb.mxu0 %v16298_v14  ;;  %2878 = vmatpush.msrb.mxu1 %v16299_v13  ;;  %v16323_v14 = vld [vmem:[#allocation153_spill] sm:$0xff]  ;;  %v11544_v13 = vld [vmem:[%s14865_s2 + $0xb8] sm:$0xff] }
 0x480   :  { %2901 = vmatpush.msra.mxu2 %v11448_v18  ;;  %2918 = vmatpush.msra.mxu3 %v16300_v47  ;;  %16324 = vst [vmem:[#allocation68_spill] sm:$0xff] %v11544_v13  ;;  %v11550_v47 = vld [vmem:[%s14865_s2 + $0x578] sm:$0xff] }
 0x481   :  { %2862 = vmatpush.msrb.mxu0 %v16301_v21  ;;  %2879 = vmatpush.msrb.mxu1 %v16302_v0  ;;  %16325 = vst [vmem:[#allocation58_spill] sm:$0xff] %v11550_v47  ;;  %v16326_v21 = vld [vmem:[#allocation53_spill] sm:$0xff]  ;;  %v16327_v0 = vld [vmem:[#allocation115_spill] sm:$0xff] }
 0x482   :  { %2902 = vmatpush.msra.mxu2 %v11457_v39  ;;  %2919 = vmatpush.msra.mxu3 %v16303_v27  ;;  %v11558_v27 = vld [vmem:[%s14865_s2 + $0x78] sm:$0xff] }
 0x483   :  { %2863 = vmatpush.msrb.mxu0 %v16304_v2  ;;  %2880 = vmatpush.msrb.mxu1 %v16305_v22  ;;  %16328 = vst [vmem:[#allocation126_spill] sm:$0xff] %v11558_v27  ;;  %v11564_v2 = vld [vmem:[%s14865_s2 + $0x538] sm:$0xff]  ;;  %v16330_v22 = vld [vmem:[#allocation116_spill] sm:$0xff] }
 0x484   :  { %2903 = vmatpush.msra.mxu2 %v11466_v8  ;;  %2920 = vmatpush.msra.mxu3 %v16306_v48  ;;  %16329 = vst [vmem:[#allocation75_spill] sm:$0xff] %v11564_v2  ;;  %v16331_v48 = vld [vmem:[#allocation6_spill] sm:$0xff] }
 0x485   :  { %2864 = vmatpush.msrb.mxu0 %v16307_v1  ;;  %2881 = vmatpush.msrb.mxu1 %v16308_v44  ;;  %v11572_v1 = vld [vmem:[%s14865_s2 + $0x38] sm:$0xff] }
 0x486   :  { %2904 = vmatpush.msra.mxu2 %v11475_v35  ;;  %2921 = vmatpush.msra.mxu3 %v16309_v16  ;;  %16332 = vst [vmem:[#allocation63_spill] sm:$0xff] %v11572_v1  ;;  %v11578_v44 = vld [vmem:[%s14865_s2 + $0x4f8] sm:$0xff]  ;;  %v16334_v16 = vld [vmem:[#allocation13_spill] sm:$0xff] }
 0x487   :  { %2865 = vmatpush.msrb.mxu0 %v16310_v56  ;;  %2882 = vmatpush.msrb.mxu1 %v16311_v52  ;;  %16333 = vst [vmem:[#allocation133_spill] sm:$0xff] %v11578_v44  ;;  %v11587_v56 = vld [vmem:[%s14865_s2 + $0x4b8] sm:$0xff]  ;;  %v11593_v52 = vld [vmem:[%s14865_s2 + $0x3c0] sm:$0xff] }
 0x488   :  { %2905 = vmatpush.msra.mxu2 %v11484_v49  ;;  %2922 = vmatpush.msra.mxu3 %v16312_v17  ;;  %16335 = vst [vmem:[#allocation78_spill] sm:$0xff] %v11587_v56  ;;  %v16338_v17 = vld [vmem:[#allocation14_spill] sm:$0xff] }
 0x489   :  { %2866 = vmatpush.msrb.mxu0 %v16313_v33  ;;  %2883 = vmatpush.msrb.mxu1 %v16314_v40  ;;  %16336 = vst [vmem:[#allocation79_spill] sm:$0xff] %v11593_v52  ;;  %v11606_v33 = vld [vmem:[%s14865_s2 + $0x478] sm:$0xff]  ;;  %v11612_v40 = vld [vmem:[%s14865_s2 + $0x380] sm:$0xff] }
 0x48a   :  { %2906 = vmatpush.msra.mxu2 %v11493_v45  ;;  %2923 = vmatpush.msra.mxu3 %v16315_v20  ;;  %16339 = vst [vmem:[#allocation85_spill] sm:$0xff] %v11606_v33  ;;  %v11618_v20 = vld [vmem:[%s14865_s2 + $0x388] sm:$0xff] }
 0x48b   :  { %2867 = vmatpush.msrb.mxu0 %v16316_v51  ;;  %2884 = vmatpush.msrb.mxu1 %v16317_v7  ;;  %16340 = vst [vmem:[#allocation88_spill] sm:$0xff] %v11612_v40  ;;  %v16342_v51 = vld [vmem:[#allocation32_spill] sm:$0xff]  ;;  %v11625_v7 = vld [vmem:[%s14865_s2 + $0x438] sm:$0xff] }
 0x48c   :  { %2907 = vmatpush.msra.mxu2 %v11502_v63  ;;  %2924 = vmatpush.msra.mxu3 %v11508_v10  ;;  %16341 = vst [vmem:[#allocation91_spill] sm:$0xff] %v11618_v20 }
 0x48d   :  { %2868 = vmatpush.msrb.mxu0 %v16318_v36  ;;  %2885 = vmatpush.msrb.mxu1 %v16319_v29  ;;  %16343 = vst [vmem:[#allocation94_spill] sm:$0xff] %v11625_v7  ;;  %v11633_v36 = vld [vmem:[%s14865_s2 + $0x340] sm:$0xff]  ;;  %v11639_v29 = vld [vmem:[%s14865_s2 + $0x348] sm:$0xff] }
 0x48e   :  { %2908 = vmatpush.msra.mxu2 %v11516_v60  ;;  %2925 = vmatpush.msra.mxu3 %v11522_v4  ;;  %16344 = vst [vmem:[#allocation99_spill] sm:$0xff] %v11633_v36 }
 0x48f   :  { %2869 = vmatpush.msrb.mxu0 %v16320_v53  ;;  %2886 = vmatpush.msrb.mxu1 %v16321_v24  ;;  %16345 = vst [vmem:[#allocation11_spill] sm:$0xff] %v11639_v29  ;;  %v16346_v53 = vld [vmem:[#allocation35_spill] sm:$0xff] }
 0x490   :  { %2909 = vmatpush.msra.mxu2 %v11530_v38  ;;  %2926 = vmatpush.msra.mxu3 %v11536_v9  ;;  %v11652_v24 = vld [vmem:[%s14865_s2 + $0x300] sm:$0xff] }
 0x491   :  { %2870 = vmatpush.msrb.mxu0 %v16322_v43  ;;  %2887 = vmatpush.msrb.mxu1 %v16323_v14  ;;  %16348 = vst [vmem:[#allocation106_spill] sm:$0xff] %v11652_v24  ;;  %v11658_v43 = vld [vmem:[%s14865_s2 + $0x308] sm:$0xff]  ;;  %v16350_v14 = vld [vmem:[#allocation95_spill] sm:$0xff] }
 0x492   :  { %2910 = vmatpush.msra.mxu2 %v11544_v13  ;;  %2927 = vmatpush.msra.mxu3 %v11550_v47  ;;  %16349 = vst [vmem:[#allocation72_spill] sm:$0xff] %v11658_v43 }
 0x493   :  { %2871 = vmatpush.msrb.mxu0 %v16326_v21  ;;  %2888 = vmatpush.msrb.mxu1 %v16327_v0  ;;  %v11665_v21 = vld [vmem:[%s14865_s2 + $0x788] sm:$0xff]  ;;  %v11671_v0 = vld [vmem:[%s14865_s2 + $0x2c0] sm:$0xff] }
 0x494   :  { %2911 = vmatpush.msra.mxu2 %v11558_v27  ;;  %2928 = vmatpush.msra.mxu3 %v11564_v2  ;;  %16351 = vst [vmem:[#allocation12_spill] sm:$0xff] %v11665_v21 }
 0x495   :  { %2872 = vmatpush.msrb.mxu0 %v16330_v22  ;;  %2889 = vmatpush.msrb.mxu1 %v16331_v48  ;;  %16352 = vst [vmem:[#allocation22_spill] sm:$0xff] %v11671_v0  ;;  %v11677_v22 = vld [vmem:[%s14865_s2 + $0x2c8] sm:$0xff] }
 0x496   :  { %2912 = vmatpush.msra.mxu2 %v11572_v1  ;;  %2929 = vmatpush.msra.mxu3 %v11578_v44  ;;  %16353 = vst [vmem:[#allocation23_spill] sm:$0xff] %v11677_v22  ;;  %v16354_v48 = vld [vmem:[#allocation96_spill] sm:$0xff] }
 0x497   :  { %2873 = vmatmul.f32.vlgmr.msrb.gmra.mxu0 %v11253_v55  ;;  %2913 = vmatmul.f32.vlgmr.msra.gmra.mxu2 %v11253_v55  ;;  %v11599_v55 = vld [vmem:[%s14865_s2 + $0x3c8] sm:$0xff] }
 0x498   :  { %2890 = vmatpush.msrb.mxu1 %v16334_v16  ;;  %2930 = vmatpush.msra.mxu3 %v11587_v56  ;;  %16337 = vst [vmem:[#allocation80_spill] sm:$0xff] %v11599_v55  ;;  %v11684_v16 = vld [vmem:[%s14865_s2 + $0x748] sm:$0xff] }
 0x499   :  { %3082 = vmatpush.msra.mxu0 %v11593_v52  ;;  %3122 = vmatpush.msrb.mxu2 %v11599_v55  ;;  %16355 = vst [vmem:[#allocation69_spill] sm:$0xff] %v11684_v16 }
 0x49a   :  { %2891 = vmatpush.msrb.mxu1 %v16338_v17  ;;  %2931 = vmatpush.msra.mxu3 %v11606_v33  ;;  %v11690_v17 = vld [vmem:[%s14865_s2 + $0x280] sm:$0xff] }
 0x49b   :  { %3083 = vmatpush.msra.mxu0 %v11612_v40  ;;  %3123 = vmatpush.msrb.mxu2 %v11618_v20  ;;  %16356 = vst [vmem:[#allocation70_spill] sm:$0xff] %v11690_v17  ;;  %v16473_v20 = vld [vmem:[#allocation27_spill] sm:$0xff] }
 0x49c   :  { %2892 = vmatpush.msrb.mxu1 %v16342_v51  ;;  %2932 = vmatpush.msra.mxu3 %v11625_v7  ;;  %v11696_v51 = vld [vmem:[%s14865_s2 + $0x288] sm:$0xff] }
 0x49d   :  { %2893 = vmatmul.f32.vlgmr.msrb.gmra.mxu1 %v11271_v11  ;;  %2933 = vmatmul.f32.vlgmr.msra.gmra.mxu3 %v11271_v11  ;;  %v11646_v11 = vld [vmem:[%s14865_s2 + $0x7c8] sm:$0xff]  ;;  %16357 = vst [vmem:[#allocation136_spill] sm:$0xff] %v11696_v51 }
 0x49e   :  { %3084 = vmatpush.msra.mxu0 %v11633_v36  ;;  %3124 = vmatpush.msrb.mxu2 %v11639_v29  ;;  %16347 = vst [vmem:[#allocation55_spill] sm:$0xff] %v11646_v11  ;;  %v16462_v29 = vld [vmem:[#allocation160_spill] sm:$0xff] }
 0x49f   :  { %3102 = vmatpush.msra.mxu1 %v16346_v53  ;;  %3142 = vmatpush.msrb.mxu3 %v11646_v11  ;;  %v16358_v53 = vld [vmem:[#allocation155_spill] sm:$0xff]  ;;  %v16472_v7 = vld [vmem:[#allocation144_spill] sm:$0xff] }
 0x4a0   :  { %3085 = vmatpush.msra.mxu0 %v11652_v24  ;;  %3125 = vmatpush.msrb.mxu2 %v11658_v43  ;;  %v210_v40 = vadd.f32 %v16473_v20, %v16472_v7 }
 0x4a1   :  { %3103 = vmatpush.msra.mxu1 %v16350_v14  ;;  %3143 = vmatpush.msrb.mxu3 %v11665_v21  ;;  %v11703_v14 = vld [vmem:[%s14865_s2 + $0x708] sm:$0xff] }
 0x4a2   :  { %3086 = vmatpush.msra.mxu0 %v11671_v0  ;;  %3126 = vmatpush.msrb.mxu2 %v11677_v22  ;;  %16359 = vst [vmem:[#allocation137_spill] sm:$0xff] %v11703_v14  ;;  %v16420_v22 = vld [vmem:[#allocation168_spill] sm:$0xff]  ;;  %v16421_v0 = vld [vmem:[#allocation33_spill] sm:$0xff] }
 0x4a3   :  { %3104 = vmatpush.msra.mxu1 %v16354_v48  ;;  %3144 = vmatpush.msrb.mxu3 %v11684_v16  ;;  %v11709_v48 = vld [vmem:[%s14865_s2 + $0x240] sm:$0xff]  ;;  %v16403_v16 = vld [vmem:[#allocation165_spill] sm:$0xff] }
 0x4a4   :  { %3087 = vmatpush.msra.mxu0 %v11690_v17  ;;  %3127 = vmatpush.msrb.mxu2 %v11696_v51  ;;  %16360 = vst [vmem:[#allocation110_spill] sm:$0xff] %v11709_v48  ;;  %v11715_v51 = vld [vmem:[%s14865_s2 + $0x248] sm:$0xff]  ;;  %v16400_v17 = vld [vmem:[#allocation26_spill] sm:$0xff] }
 0x4a5   :  { %3105 = vmatpush.msra.mxu1 %v16358_v53  ;;  %3145 = vmatpush.msrb.mxu3 %v11703_v14  ;;  %16361 = vst [vmem:[#allocation61_spill] sm:$0xff] %v11715_v51  ;;  %v16362_v53 = vld [vmem:[#allocation156_spill] sm:$0xff] }
 0x4a6   :  { %3088 = vmatpush.msra.mxu0 %v11709_v48  ;;  %3128 = vmatpush.msrb.mxu2 %v11715_v51  ;;  %v11722_v14 = vld [vmem:[%s14865_s2 + $0x6c8] sm:$0xff]  ;;  %v11728_v48 = vld [vmem:[%s14865_s2 + $0x200] sm:$0xff] }
 0x4a7   :  { %3106 = vmatpush.msra.mxu1 %v16362_v53  ;;  %16363 = vst [vmem:[#allocation119_spill] sm:$0xff] %v11722_v14  ;;  %3146 = vmatpush.msrb.mxu3 %v11722_v14  ;;  %v11734_v51 = vld [vmem:[%s14865_s2 + $0x208] sm:$0xff]  ;;  %v16366_v53 = vld [vmem:[#allocation21_spill] sm:$0xff] }
 0x4a8   :  { %16364 = vst [vmem:[#allocation120_spill] sm:$0xff] %v11728_v48  ;;  %3089 = vmatpush.msra.mxu0 %v11728_v48  ;;  %3129 = vmatpush.msrb.mxu2 %v11734_v51  ;;  %v11741_v14 = vld [vmem:[%s14865_s2 + $0x688] sm:$0xff]  ;;  %v11747_v48 = vld [vmem:[%s14865_s2 + $0x1c0] sm:$0xff] }
 0x4a9   :  { %16365 = vst [vmem:[#allocation130_spill] sm:$0xff] %v11734_v51  ;;  %3107 = vmatpush.msra.mxu1 %v16366_v53  ;;  %3147 = vmatpush.msrb.mxu3 %v11741_v14  ;;  %v11753_v51 = vld [vmem:[%s14865_s2 + $0x1c8] sm:$0xff]  ;;  %v16370_v53 = vld [vmem:[#allocation158_spill] sm:$0xff] }
 0x4aa   :  { %16367 = vst [vmem:[#allocation124_spill] sm:$0xff] %v11741_v14  ;;  %3090 = vmatpush.msra.mxu0 %v11747_v48  ;;  %3130 = vmatpush.msrb.mxu2 %v11753_v51  ;;  %v11760_v14 = vld [vmem:[%s14865_s2 + $0x648] sm:$0xff] }
 0x4ab   :  { %16368 = vst [vmem:[#allocation76_spill] sm:$0xff] %v11747_v48  ;;  %3108 = vmatpush.msra.mxu1 %v16370_v53  ;;  %3148 = vmatpush.msrb.mxu3 %v11760_v14  ;;  %v11766_v48 = vld [vmem:[%s14865_s2 + $0x180] sm:$0xff] }
 0x4ac   :  { %16369 = vst [vmem:[#allocation125_spill] sm:$0xff] %v11753_v51  ;;  %3091 = vmatpush.msra.mxu0 %v11766_v48  ;;  %v11772_v51 = vld [vmem:[%s14865_s2 + $0x188] sm:$0xff]  ;;  %v16374_v53 = vld [vmem:[#allocation159_spill] sm:$0xff] }
 0x4ad   :  { %16371 = vst [vmem:[#allocation128_spill] sm:$0xff] %v11760_v14  ;;  %3131 = vmatpush.msrb.mxu2 %v11772_v51  ;;  %3109 = vmatpush.msra.mxu1 %v16374_v53  ;;  %v11779_v14 = vld [vmem:[%s14865_s2 + $0x608] sm:$0xff] }
 0x4ae   :  { %16372 = vst [vmem:[#allocation67_spill] sm:$0xff] %v11766_v48  ;;  %3149 = vmatpush.msrb.mxu3 %v11779_v14  ;;  %v11785_v48 = vld [vmem:[%s14865_s2 + $0x140] sm:$0xff]  ;;  %v16378_v53 = vld [vmem:[#allocation24_spill] sm:$0xff] }
 0x4af   :  { %16373 = vst [vmem:[#allocation129_spill] sm:$0xff] %v11772_v51  ;;  %3092 = vmatpush.msra.mxu0 %v11785_v48  ;;  %v11791_v51 = vld [vmem:[%s14865_s2 + $0x148] sm:$0xff]  ;;  %3110 = vmatpush.msra.mxu1 %v16378_v53  ;;  %v16382_v53 = vld [vmem:[#allocation161_spill] sm:$0xff] }
 0x4b0   :  { %16375 = vst [vmem:[#allocation132_spill] sm:$0xff] %v11779_v14  ;;  %3132 = vmatpush.msrb.mxu2 %v11791_v51  ;;  %v11798_v14 = vld [vmem:[%s14865_s2 + $0x5c8] sm:$0xff] }
 0x4b1   :  { %16376 = vst [vmem:[#allocation71_spill] sm:$0xff] %v11785_v48  ;;  %3150 = vmatpush.msrb.mxu3 %v11798_v14  ;;  %v11804_v48 = vld [vmem:[%s14865_s2 + $0x100] sm:$0xff]  ;;  %3111 = vmatpush.msra.mxu1 %v16382_v53  ;;  %v16386_v53 = vld [vmem:[#allocation162_spill] sm:$0xff] }
 0x4b2   :  { %16377 = vst [vmem:[#allocation135_spill] sm:$0xff] %v11791_v51  ;;  %3093 = vmatpush.msra.mxu0 %v11804_v48  ;;  %v11810_v51 = vld [vmem:[%s14865_s2 + $0x108] sm:$0xff] }
 0x4b3   :  { %16379 = vst [vmem:[#allocation169_spill] sm:$0xff] %v11798_v14  ;;  %3133 = vmatpush.msrb.mxu2 %v11810_v51  ;;  %v11817_v14 = vld [vmem:[%s14865_s2 + $0x588] sm:$0xff]  ;;  %3112 = vmatpush.msra.mxu1 %v16386_v53  ;;  %v16390_v53 = vld [vmem:[#allocation25_spill] sm:$0xff] }
 0x4b4   :  { %16380 = vst [vmem:[#allocation74_spill] sm:$0xff] %v11804_v48  ;;  %3151 = vmatpush.msrb.mxu3 %v11817_v14  ;;  %v11823_v48 = vld [vmem:[%s14865_s2 + $0xc0] sm:$0xff] }
 0x4b5   :  { %16381 = vst [vmem:[#allocation170_spill] sm:$0xff] %v11810_v51  ;;  %3094 = vmatpush.msra.mxu0 %v11823_v48  ;;  %v11829_v51 = vld [vmem:[%s14865_s2 + $0xc8] sm:$0xff]  ;;  %3113 = vmatpush.msra.mxu1 %v16390_v53  ;;  %v16394_v53 = vld [vmem:[#allocation73_spill] sm:$0xff] }
 0x4b6   :  { %16383 = vst [vmem:[#allocation171_spill] sm:$0xff] %v11817_v14  ;;  %3134 = vmatpush.msrb.mxu2 %v11829_v51  ;;  %v11836_v14 = vld [vmem:[%s14865_s2 + $0x548] sm:$0xff] }
 0x4b7   :  { %16384 = vst [vmem:[#allocation84_spill] sm:$0xff] %v11823_v48  ;;  %3152 = vmatpush.msrb.mxu3 %v11836_v14  ;;  %v11842_v48 = vld [vmem:[%s14865_s2 + $0x80] sm:$0xff]  ;;  %3114 = vmatpush.msra.mxu1 %v16394_v53  ;;  %v11892_v53 = vld [vmem:[%s14865_s2 + $0x3d0] sm:$0xff] }
 0x4b8   :  { %16385 = vst [vmem:[#allocation172_spill] sm:$0xff] %v11829_v51  ;;  %3095 = vmatpush.msra.mxu0 %v11842_v48  ;;  %v11848_v51 = vld [vmem:[%s14865_s2 + $0x88] sm:$0xff] }
 0x4b9   :  { %16387 = vst [vmem:[#allocation173_spill] sm:$0xff] %v11836_v14  ;;  %3135 = vmatpush.msrb.mxu2 %v11848_v51  ;;  %v11855_v14 = vld [vmem:[%s14865_s2 + $0x508] sm:$0xff]  ;;  %3115 = vmatpush.msra.mxu1 %v16400_v17 }
 0x4ba   :  { %16388 = vst [vmem:[#allocation87_spill] sm:$0xff] %v11842_v48  ;;  %3153 = vmatpush.msrb.mxu3 %v11855_v14  ;;  %v11861_v48 = vld [vmem:[%s14865_s2 + $0x40] sm:$0xff]  ;;  %v11914_v17 = vld [vmem:[%s14865_s2 + $0x448] sm:$0xff] }
 0x4bb   :  { %16389 = vst [vmem:[#allocation174_spill] sm:$0xff] %v11848_v51  ;;  %3096 = vmatpush.msra.mxu0 %v11861_v48  ;;  %v11867_v51 = vld [vmem:[%s14865_s2 + $0x48] sm:$0xff] }
 0x4bc   :  { %16391 = vst [vmem:[#allocation90_spill] sm:$0xff] %v11855_v14  ;;  %3136 = vmatpush.msrb.mxu2 %v11867_v51  ;;  %v11874_v14 = vld [vmem:[%s14865_s2 + $0x4c8] sm:$0xff] }
 0x4bd   :  { %16392 = vst [vmem:[#allocation112_spill] sm:$0xff] %v11861_v48  ;;  %3154 = vmatpush.msrb.mxu3 %v11874_v14  ;;  %v11880_v48 = vld [vmem:[%s14865_s2] sm:$0xff] }
 0x4be   :  { %16393 = vst [vmem:[#allocation93_spill] sm:$0xff] %v11867_v51  ;;  %3097 = vmatpush.msra.mxu0 %v11880_v48  ;;  %v11886_v51 = vld [vmem:[%s14865_s2 + $0x8] sm:$0xff] }
 0x4bf   :  { %16395 = vst [vmem:[#allocation118_spill] sm:$0xff] %v11874_v14  ;;  %3137 = vmatpush.msrb.mxu2 %v11886_v51  ;;  %v16399_v14 = vld [vmem:[#allocation164_spill] sm:$0xff] }
 0x4c0   :  { %16396 = vst [vmem:[#allocation98_spill] sm:$0xff] %v11880_v48  ;;  %3162 = vmatpush.msrb.mxu0 %v11892_v53  ;;  %v11900_v48 = vld [vmem:[%s14865_s2 + $0x488] sm:$0xff] }
 0x4c1   :  { %16397 = vst [vmem:[#allocation123_spill] sm:$0xff] %v11886_v51  ;;  %3202 = vmatpush.msra.mxu2 %v16399_v14  ;;  %3155 = vmatpush.msrb.mxu3 %v11900_v48  ;;  %v11906_v51 = vld [vmem:[%s14865_s2 + $0x390] sm:$0xff] }
 0x4c2   :  { %16398 = vst [vmem:[#allocation103_spill] sm:$0xff] %v11892_v53  ;;  %3163 = vmatpush.msrb.mxu0 %v11906_v51  ;;  %v16404_v53 = vld [vmem:[#allocation166_spill] sm:$0xff]  ;;  %v11920_v14 = vld [vmem:[%s14865_s2 + $0x350] sm:$0xff] }
 0x4c3   :  { %16401 = vst [vmem:[#allocation104_spill] sm:$0xff] %v11900_v48  ;;  %3203 = vmatpush.msra.mxu2 %v16403_v16  ;;  %3116 = vmatpush.msra.mxu1 %v16404_v53  ;;  %v16407_v48 = vld [vmem:[#allocation28_spill] sm:$0xff]  ;;  %v11934_v53 = vld [vmem:[%s14865_s2 + $0x310] sm:$0xff] }
 0x4c4   :  { %16402 = vst [vmem:[#allocation127_spill] sm:$0xff] %v11906_v51  ;;  %3156 = vmatpush.msrb.mxu3 %v11914_v17  ;;  %3164 = vmatpush.msrb.mxu0 %v11920_v14  ;;  %v16408_v51 = vld [vmem:[#allocation31_spill] sm:$0xff]  ;;  %v11928_v16 = vld [vmem:[%s14865_s2 + $0x408] sm:$0xff] }
 0x4c5   :  { %16405 = vst [vmem:[#allocation107_spill] sm:$0xff] %v11914_v17  ;;  %3204 = vmatpush.msra.mxu2 %v16407_v48  ;;  %3117 = vmatpush.msra.mxu1 %v16408_v51  ;;  %v16411_v17 = vld [vmem:[#allocation77_spill] sm:$0xff]  ;;  %v11942_v51 = vld [vmem:[%s14865_s2 + $0x7d8] sm:$0xff] }
 0x4c6   :  { %16406 = vst [vmem:[#allocation9_spill] sm:$0xff] %v11920_v14  ;;  %3157 = vmatpush.msrb.mxu3 %v11928_v16  ;;  %3165 = vmatpush.msrb.mxu0 %v11934_v53  ;;  %v16412_v14 = vld [vmem:[#allocation30_spill] sm:$0xff]  ;;  %v11948_v48 = vld [vmem:[%s14865_s2 + $0x2d0] sm:$0xff] }
 0x4c7   :  { %16409 = vst [vmem:[#allocation109_spill] sm:$0xff] %v11928_v16  ;;  %3182 = vmatpush.msrb.mxu1 %v16411_v17  ;;  %3205 = vmatpush.msra.mxu2 %v16412_v14  ;;  %v16415_v16 = vld [vmem:[#allocation34_spill] sm:$0xff]  ;;  %v11957_v14 = vld [vmem:[%s14865_s2 + $0x290] sm:$0xff] }
 0x4c8   :  { %16410 = vst [vmem:[#allocation131_spill] sm:$0xff] %v11934_v53  ;;  %3222 = vmatpush.msra.mxu3 %v11942_v51  ;;  %3166 = vmatpush.msrb.mxu0 %v11948_v48  ;;  %v16416_v53 = vld [vmem:[#allocation83_spill] sm:$0xff]  ;;  %v16417_v17 = vld [vmem:[#allocation154_spill] sm:$0xff] }
 0x4c9   :  { %16413 = vst [vmem:[#allocation113_spill] sm:$0xff] %v11942_v51  ;;  %3183 = vmatpush.msrb.mxu1 %v16415_v16  ;;  %3206 = vmatpush.msra.mxu2 %v16416_v53  ;;  %v16419_v51 = vld [vmem:[#allocation167_spill] sm:$0xff]  ;;  %v11966_v16 = vld [vmem:[%s14865_s2 + $0x250] sm:$0xff] }
 0x4ca   :  { %16414 = vst [vmem:[#allocation114_spill] sm:$0xff] %v11948_v48  ;;  %3223 = vmatpush.msra.mxu3 %v16417_v17  ;;  %3167 = vmatpush.msrb.mxu0 %v11957_v14  ;;  %v16423_v53 = vld [vmem:[#allocation39_spill] sm:$0xff]  ;;  %v16424_v17 = vld [vmem:[#allocation86_spill] sm:$0xff]  ;;  %v16425_v48 = vld [vmem:[#allocation37_spill] sm:$0xff] }
 0x4cb   :  { %16418 = vst [vmem:[#allocation134_spill] sm:$0xff] %v11957_v14  ;;  %3184 = vmatpush.msrb.mxu1 %v16419_v51  ;;  %3207 = vmatpush.msra.mxu2 %v16420_v22  ;;  %v11975_v51 = vld [vmem:[%s14865_s2 + $0x210] sm:$0xff]  ;;  %v16429_v14 = vld [vmem:[#allocation40_spill] sm:$0xff] }
 0x4cc   :  { %3224 = vmatpush.msra.mxu3 %v16421_v0  ;;  %16422 = vst [vmem:[#allocation175_spill] sm:$0xff] %v11966_v16  ;;  %3168 = vmatpush.msrb.mxu0 %v11966_v16  ;;  %v16427_v0 = vld [vmem:[#allocation41_spill] sm:$0xff]  ;;  %v16433_v16 = vld [vmem:[#allocation42_spill] sm:$0xff] }
 0x4cd   :  { %3185 = vmatpush.msrb.mxu1 %v16423_v53  ;;  %3208 = vmatpush.msra.mxu2 %v16424_v17  ;;  %16426 = vst [vmem:[#allocation10_spill] sm:$0xff] %v11975_v51  ;;  %v16428_v22 = vld [vmem:[#allocation89_spill] sm:$0xff]  ;;  %v16432_v17 = vld [vmem:[#allocation92_spill] sm:$0xff] }
 0x4ce   :  { %3225 = vmatpush.msra.mxu3 %v16425_v48  ;;  %3169 = vmatpush.msrb.mxu0 %v11975_v51  ;;  %v11984_v53 = vld [vmem:[%s14865_s2 + $0x1d0] sm:$0xff]  ;;  %v16431_v48 = vld [vmem:[#allocation43_spill] sm:$0xff]  ;;  %v16437_v51 = vld [vmem:[#allocation44_spill] sm:$0xff] }
 0x4cf   :  { %3186 = vmatpush.msrb.mxu1 %v16427_v0  ;;  %3209 = vmatpush.msra.mxu2 %v16428_v22  ;;  %16430 = vst [vmem:[#allocation176_spill] sm:$0xff] %v11984_v53  ;;  %v11993_v0 = vld [vmem:[%s14865_s2 + $0x190] sm:$0xff] }
 0x4d0   :  { %3226 = vmatpush.msra.mxu3 %v16429_v14  ;;  %3170 = vmatpush.msrb.mxu0 %v11984_v53  ;;  %16434 = vst [vmem:[#allocation5_spill] sm:$0xff] %v11993_v0  ;;  %v16435_v14 = vld [vmem:[#allocation46_spill] sm:$0xff]  ;;  %v16436_v22 = vld [vmem:[#allocation97_spill] sm:$0xff]  ;;  %v2634_v53 = vpop.f32.mrf.mxu0 }
 0x4d1   :  { %3187 = vmatpush.msrb.mxu1 %v16431_v48  ;;  %3210 = vmatpush.msra.mxu2 %v16432_v17  ;;  %v12002_v48 = vld [vmem:[%s14865_s2 + $0x150] sm:$0xff]  ;;  %v16440_v17 = vld [vmem:[#allocation51_spill] sm:$0xff] }
 0x4d2   :  { %3227 = vmatpush.msra.mxu3 %v16433_v16  ;;  %3171 = vmatpush.msrb.mxu0 %v11993_v0  ;;  %16438 = vst [vmem:[#allocation177_spill] sm:$0xff] %v12002_v48  ;;  %v12008_v16 = vld [vmem:[%s14865_s2 + $0x610] sm:$0xff]  ;;  %v16453_v0 = vld [vmem:[#allocation108_spill] sm:$0xff] }
 0x4d3   :  { %3188 = vmatpush.msrb.mxu1 %v16435_v14  ;;  %3211 = vmatpush.msra.mxu2 %v16436_v22  ;;  %16439 = vst [vmem:[#allocation17_spill] sm:$0xff] %v12008_v16  ;;  %v16441_v14 = vld [vmem:[#allocation102_spill] sm:$0xff]  ;;  %v12022_v22 = vld [vmem:[%s14865_s2 + $0x5d0] sm:$0xff] }
 0x4d4   :  { %3228 = vmatpush.msra.mxu3 %v16437_v51  ;;  %3172 = vmatpush.msrb.mxu0 %v12002_v48  ;;  %v12016_v51 = vld [vmem:[%s14865_s2 + $0x110] sm:$0xff]  ;;  %16443 = vst [vmem:[#allocation52_spill] sm:$0xff] %v12022_v22  ;;  %v16444_v48 = vld [vmem:[#allocation48_spill] sm:$0xff] }
 0x4d5   :  { %3189 = vmatpush.msrb.mxu1 %v12008_v16  ;;  %3212 = vmatpush.msra.mxu2 %v16440_v17  ;;  %16442 = vst [vmem:[#allocation18_spill] sm:$0xff] %v12016_v51  ;;  %v16445_v16 = vld [vmem:[#allocation56_spill] sm:$0xff]  ;;  %v12030_v17 = vld [vmem:[%s14865_s2 + $0xd0] sm:$0xff]  ;;  %v2654_v21 = vpop.f32.mrf.mxu1 }
 0x4d6   :  { %3229 = vmatpush.msra.mxu3 %v16441_v14  ;;  %3173 = vmatpush.msrb.mxu0 %v12016_v51  ;;  %16446 = vst [vmem:[#allocation153_spill] sm:$0xff] %v12030_v17  ;;  %v12036_v14 = vld [vmem:[%s14865_s2 + $0x590] sm:$0xff]  ;;  %v2655_v24 = vadd.f32 %v2654_v21, %v2634_v53 }
 0x4d7   :  { %3190 = vmatpush.msrb.mxu1 %v12022_v22  ;;  %3213 = vmatpush.msra.mxu2 %v16444_v48  ;;  %16447 = vst [vmem:[#allocation53_spill] sm:$0xff] %v12036_v14  ;;  %v16448_v51 = vld [vmem:[#allocation105_spill] sm:$0xff]  ;;  %v16449_v22 = vld [vmem:[#allocation54_spill] sm:$0xff]  ;;  %v16450_v48 = vld [vmem:[#allocation59_spill] sm:$0xff] }
 0x4d8   :  { %3230 = vmatpush.msra.mxu3 %v16445_v16  ;;  %3174 = vmatpush.msrb.mxu0 %v12030_v17  ;;  %v12045_v16 = vld [vmem:[%s14865_s2 + $0x550] sm:$0xff] }
 0x4d9   :  { %3191 = vmatpush.msrb.mxu1 %v12036_v14  ;;  %3214 = vmatpush.msra.mxu2 %v16448_v51  ;;  %16451 = vst [vmem:[#allocation115_spill] sm:$0xff] %v12045_v16  ;;  %v16452_v17 = vld [vmem:[#allocation57_spill] sm:$0xff]  ;;  %v16454_v14 = vld [vmem:[#allocation60_spill] sm:$0xff] }
 0x4da   :  { %3231 = vmatpush.msra.mxu3 %v16449_v22  ;;  %3175 = vmatpush.msrb.mxu0 %v16450_v48  ;;  %v12054_v51 = vld [vmem:[%s14865_s2 + $0x510] sm:$0xff]  ;;  %v16457_v48 = vld [vmem:[#allocation15_spill] sm:$0xff] }
 0x4db   :  { %3192 = vmatpush.msrb.mxu1 %v12045_v16  ;;  %3215 = vmatpush.msra.mxu2 %v16452_v17  ;;  %16455 = vst [vmem:[#allocation116_spill] sm:$0xff] %v12054_v51  ;;  %v16456_v22 = vld [vmem:[#allocation145_spill] sm:$0xff] }
 0x4dc   :  { %3232 = vmatpush.msra.mxu3 %v16453_v0  ;;  %3176 = vmatpush.msrb.mxu0 %v16454_v14  ;;  %v128_v43 = vadd.f32 %v16457_v48, %v16456_v22  ;;  %v16458_v16 = vld [vmem:[#allocation45_spill] sm:$0xff]  ;;  %v16460_v0 = vld [vmem:[#allocation62_spill] sm:$0xff]  ;;  %v2674_v48 = vpop.f32.mrf.mxu2  ;;  %v2714_v22 = vpop.f32.mrf.mxu0 }
 0x4dd   :  { %3193 = vmatpush.msrb.mxu1 %v12054_v51  ;;  %3216 = vmatpush.msra.mxu2 %v16458_v16  ;;  %v16459_v17 = vld [vmem:[#allocation157_spill] sm:$0xff]  ;;  %v16463_v51 = vld [vmem:[#allocation111_spill] sm:$0xff] }
 0x4de   :  { %3233 = vmatpush.msra.mxu3 %v16459_v17  ;;  %3177 = vmatpush.msrb.mxu0 %v16460_v0  ;;  %v12065_v14 = vld [vmem:[%s14865_s2 + $0x4d0] sm:$0xff]  ;;  %v2937_v11 = vadd.f32 %v2655_v24, %v128_v43  ;;  %v16465_v16 = vld [vmem:[#allocation163_spill] sm:$0xff]  ;;  %v2694_v17 = vpop.f32.mrf.mxu3  ;;  %v16468_v43 = vld [vmem:[#allocation16_spill] sm:$0xff] }
 0x4df   :  { %16461 = vst [vmem:[#allocation6_spill] sm:$0xff] %v12065_v14  ;;  %3194 = vmatpush.msrb.mxu1 %v12065_v14  ;;  %3217 = vmatpush.msra.mxu2 %v16462_v29  ;;  %v12073_v21 = vld [vmem:[%s14865_s2 + $0x490] sm:$0xff]  ;;  %v16467_v29 = vld [vmem:[#allocation152_spill] sm:$0xff]  ;;  %v2695_v0 = vadd.f32 %v2694_v17, %v2674_v48  ;;  %v2734_v36 = vpop.f32.mrf.mxu1  ;;  %v16474_v17 = vld [vmem:[#allocation151_spill] sm:$0xff] }
 0x4e0   :  { %3234 = vmatpush.msra.mxu3 %v16463_v51  ;;  %16464 = vst [vmem:[#allocation13_spill] sm:$0xff] %v12073_v21  ;;  %v4955_v53 = vmul.f32 -1.442695, %v2937_v11  ;;  %v12080_v24 = vld [vmem:[%s14865_s2 + $0x450] sm:$0xff]  ;;  %v169_v51 = vadd.f32 %v16468_v43, %v16467_v29  ;;  %v2735_v55 = vadd.f32 %v2734_v36, %v2714_v22 }
 0x4e1   :  { %3195 = vmatpush.msrb.mxu1 %v12073_v21  ;;  %16466 = vst [vmem:[#allocation14_spill] sm:$0xff] %v12080_v24  ;;  %v16469_v14 = vld [vmem:[#allocation49_spill] sm:$0xff]  ;;  %v16470_v21 = vld [vmem:[#allocation64_spill] sm:$0xff] }
 0x4e2   :  { %3235 = vmatpush.msra.mxu3 %v16465_v16  ;;  %5113 = vpow2.f32 %v4955_v53  ;;  %v2938_v11 = vadd.f32 %v2695_v0, %v169_v51  ;;  %v16471_v16 = vld [vmem:[#allocation117_spill] sm:$0xff]  ;;  %v2939_v52 = vadd.f32 %v2735_v55, %v210_v40 }
 0x4e3   :  { %3196 = vmatpush.msrb.mxu1 %v12080_v24 }
 0x4e4   :  { %3236 = vmatpush.msra.mxu3 %v16469_v14  ;;  %v4956_v33 = vmul.f32 -1.442695, %v2938_v11  ;;  %v4957_v53 = vmul.f32 -1.442695, %v2939_v52  ;;  %v2754_v48 = vpop.f32.mrf.mxu2 }
 0x4e5   :  { %3197 = vmatpush.msrb.mxu1 %v16470_v21  ;;  %v16475_v21 = vld [vmem:[#allocation29_spill] sm:$0xff] }
 0x4e6   :  { %3237 = vmatpush.msra.mxu3 %v16471_v16  ;;  %5115 = vpow2.f32 %v4956_v33  ;;  %v2774_v14 = vpop.f32.mrf.mxu3  ;;  %v251_v51 = vadd.f32 %v16475_v21, %v16474_v17 }
 0x4e7   :  { %5117 = vpow2.f32 %v4957_v53  ;;  %v2775_v0 = vadd.f32 %v2774_v14, %v2754_v48 }
 0x4e8   :  { %v5114_v24 = vpop.eup %5113 }
 0x4e9   :  { %v12090_v43 = vadd.f32 1.0, %v5114_v24  ;;  %v2940_v29 = vadd.f32 %v2775_v0, %v251_v51 }
 0x4eb   :  { %5119 = vrcp.f32 %v12090_v43  ;;  %v4958_v36 = vmul.f32 -1.442695, %v2940_v29  ;;  %v2964_v1 = vand.u32 2147483648, %v12090_v43  ;;  %vm2958_vm5 = vweird.f32 %v12090_v43 }
 0x4ec   :  { %v5116_v16 = vpop.eup %5115 }
 0x4ed   :  { %v12095_v20 = vadd.f32 1.0, %v5116_v16  ;;  %v5118_v22 = vpop.eup %5117  ;;  %5121 = vpow2.f32 %v4958_v36  ;;  %v16476_v36 = vld [vmem:[#allocation150_spill] sm:$0xff] }
 0x4ee   :  { %v2989_v55 = vadd.f32 1.0, %v5118_v22  ;;  %v16477_v22 = vld [vmem:[#allocation81_spill] sm:$0xff] }
 0x4ef   :  { %5123 = vrcp.f32 %v12095_v20  ;;  %v292_v17 = vadd.f32 %v16477_v22, %v16476_v36  ;;  %vm2973_vm13 = vweird.f32 %v12095_v20 }
 0x4f0   :  { %5125 = vrcp.f32 %v2989_v55  ;;  %v3002_v2 = vand.u32 2147483648, %v2989_v55  ;;  %vm2996_vm2 = vweird.f32 %v2989_v55 }
 0x4f1   :  { %v5120_v33 = vpop.eup %5119 }
 0x4f2   :  { %v2954_v52 = vmul.f32 %v5120_v33, %v12090_v43  ;;  %v2794_v51 = vpop.f32.mrf.mxu0  ;;  %vm2959_vm3 = vweird.f32 %v5120_v33 }
 0x4f3   :  { %v5122_v40 = vpop.eup %5121  ;;  %vm12121_vm6 = vmor %vm2958_vm5, %vm2959_vm3 }
 0x4f4   :  { %v12099_v24 = vadd.f32 1.0, %v5122_v40  ;;  %v2955_v48 = vsub.f32 1.0, %v2954_v52  ;;  %v2962_v52 = vand.u32 2147483647, %v12090_v43 }
 0x4f5   :  { %v12101_v11 = vpop.eup %5123 }
 0x4f6   :  { %v5126_v53 = vpop.eup %5125  ;;  %5127 = vrcp.f32 %v12099_v24  ;;  %v2969_v29 = vmul.f32 %v12101_v11, %v12095_v20  ;;  %v2956_v16 = vmul.f32 %v5120_v33, %v2955_v48  ;;  %v3000_v48 = vand.u32 2147483647, %v2989_v55 }
 0x4f7   :  { %v2992_v14 = vmul.f32 %v5126_v53, %v2989_v55  ;;  %vm2997_vm1 = vweird.f32 %v5126_v53  ;;  %vm12125_vm7 = vcmp.eq.f32.partialorder %v2962_v52, 8.507059e+37  ;;  %vm3011_vm10 = vweird.f32 %v12099_v24 }
 0x4f8   :  { %v2970_v44 = vsub.f32 1.0, %v2969_v29  ;;  %v2957_v13 = vadd.f32 %v5120_v33, %v2956_v16  ;;  %vm12111_vm4 = vmor %vm2996_vm2, %vm2997_vm1  ;;  %v16480_v29 = vld [vmem:[#allocation82_spill] sm:$0xff]  ;;  %vm3001_vm9 = vcmp.eq.f32.partialorder %v3000_v48, 8.507059e+37  ;;  %vm2974_vm11 = vweird.f32 %v12101_v11 }
 0x4f9   :  { %v2993_v21 = vsub.f32 1.0, %v2992_v14  ;;  %v2814_v0 = vpop.f32.mrf.mxu1  ;;  %v3015_v52 = vand.u32 2147483647, %v12099_v24  ;;  %v2977_v48 = vand.u32 2147483647, %v12095_v20  ;;  %vm2975_vm14 = vmor %vm2973_vm13, %vm2974_vm11 }
 0x4fa   :  { %v2815_v40 = vadd.f32 %v2814_v0, %v2794_v51  ;;  %v333_v51 = vadd.f32 %v16480_v29, %v16057_v59  ;;  %v2971_v16 = vmul.f32 %v12101_v11, %v2970_v44  ;;  %v2961_v43 = vsel %vm12121_vm6, %v5120_v33, %v2957_v13 }
 0x4fb   :  { %v2994_v7 = vmul.f32 %v5126_v53, %v2993_v21  ;;  %vm3016_vm15 = vcmp.eq.f32.partialorder %v3015_v52, 8.507059e+37  ;;  %vm2978_vm0 = vcmp.eq.f32.partialorder %v2977_v48, 8.507059e+37  ;;  %v16488_v52 = vld [vmem:[#allocation141_spill] sm:$0xff] }
 0x4fc   :  { %v5128_v56 = vpop.eup %5127  ;;  %v2941_v47 = vadd.f32 %v2815_v40, %v292_v17  ;;  %v2834_v17 = vpop.f32.mrf.mxu2  ;;  %v3003_v40 = vor.u32 1.1754944e-38, %v3002_v2 }
 0x4fd   :  { %v3007_v27 = vmul.f32 %v5128_v56, %v12099_v24  ;;  %v2995_v14 = vadd.f32 %v5126_v53, %v2994_v7  ;;  %vm3012_vm8 = vweird.f32 %v5128_v56 }
 0x4fe   :  { %5129 = vtanh.f32 %v2941_v47  ;;  %vm12136_vm12 = vmor %vm3011_vm10, %vm3012_vm8 }
 0x4ff   :  { %v3008_v21 = vsub.f32 1.0, %v3007_v27  ;;  %v2999_v0 = vsel %vm12111_vm4, %v5126_v53, %v2995_v14  ;;  %v2854_v7 = vpop.f32.mrf.mxu3  ;;  %v2965_v53 = vor.u32 1.1754944e-38, %v2964_v1  ;;  %v3017_v14 = vand.u32 2147483648, %v12099_v24 }
 0x500   :  { %v2855_v27 = vadd.f32 %v2854_v7, %v2834_v17  ;;  %v3004_v44 = vsel %vm3001_vm9, %v3003_v40, %v2999_v0  ;;  %v2979_v1 = vand.u32 2147483648, %v12095_v20 }
 0x501   :  { %v3009_v55 = vmul.f32 %v5128_v56, %v3008_v21  ;;  %v2972_v21 = vadd.f32 %v12101_v11, %v2971_v16  ;;  %v2966_v13 = vsel %vm12125_vm7, %v2965_v53, %v2961_v43  ;;  %v3061_v33 = vmul.f32 %v3004_v44, %v11241_v42 }
 0x502   :  { %v2942_v2 = vadd.f32 %v2855_v27, %v333_v51  ;;  %v3018_v51 = vor.u32 1.1754944e-38, %v3017_v14  ;;  %v2980_v16 = vor.u32 1.1754944e-38, %v2979_v1 }
 0x503   :  { %v3010_v22 = vadd.f32 %v5128_v56, %v3009_v55  ;;  %v2976_v7 = vsel %vm2975_vm14, %v12101_v11, %v2972_v21 }
 0x504   :  { %v5130_v29 = vpop.eup %5129  ;;  %5131 = vtanh.f32 %v2942_v2  ;;  %v2981_v47 = vsel %vm2978_vm0, %v2980_v16, %v2976_v7 }
 0x505   :  { %v3063_v36 = vmul.f32 %v5130_v29, %v2966_v13  ;;  %v3014_v24 = vsel %vm12136_vm12, %v5128_v56, %v3010_v22  ;;  %v16487_v56 = vld [vmem:[#allocation140_spill] sm:$0xff]  ;;  %v415_v29 = vadd.f32 %v16488_v52, %v8173_v30 }
 0x506   :  { %v3019_v40 = vsel %vm3016_vm15, %v3018_v51, %v3014_v24  ;;  %v374_v14 = vadd.f32 %v16487_v56, %v8130_v61 }
 0x507   :  { %v12148_v0 = vadd.f32 %v3063_v36, %v3061_v33  ;;  %v3062_v42 = vmul.f32 %v3019_v40, %v11245_v34 }
 0x50a   :  { %v5132_v55 = vpop.eup %5131 }
 0x50b   :  { %v3064_v27 = vmul.f32 %v5132_v55, %v2981_v47 }
 0x50d   :  { %v12152_v43 = vadd.f32 %v3064_v27, %v3062_v42 }
 0x514   :  { %v2874_v20 = vpop.f32.mrf.mxu0 }
 0x51a   :  { %v2894_v53 = vpop.f32.mrf.mxu1  ;;  %v2914_v11 = vpop.f32.mrf.mxu2 }
 0x51b   :  { %v2895_v44 = vadd.f32 %v2894_v53, %v2874_v20 }
 0x51d   :  { %v2943_v2 = vadd.f32 %v2895_v44, %v374_v14 }
 0x51f   :  { %v4959_v22 = vmul.f32 -1.442695, %v2943_v2 }
 0x520   :  { %v2934_v21 = vpop.f32.mrf.mxu3 }
 0x521   :  { %5133 = vpow2.f32 %v4959_v22  ;;  %v2935_v17 = vadd.f32 %v2934_v21, %v2914_v11 }
 0x523   :  { %v2944_v13 = vadd.f32 %v2935_v17, %v415_v29  ;;  %v12167_v17 = vld [vmem:[%s14865_s2 + $0x3e0] sm:$0xff] }
 0x525   :  { %v4960_v34 = vmul.f32 -1.442695, %v2944_v13 }
 0x527   :  { %v5134_v1 = vpop.eup %5133  ;;  %5135 = vpow2.f32 %v4960_v34 }
 0x528   :  { %v3029_v33 = vadd.f32 1.0, %v5134_v1 }
 0x52a   :  { %5137 = vrcp.f32 %v3029_v33  ;;  %v3042_v16 = vand.u32 2147483648, %v3029_v33  ;;  %v3040_v55 = vand.u32 2147483647, %v3029_v33  ;;  %vm3036_vm2 = vweird.f32 %v3029_v33 }
 0x52c   :  { %v3043_v20 = vor.u32 1.1754944e-38, %v3042_v16  ;;  %vm3041_vm4 = vcmp.eq.f32.partialorder %v3040_v55, 8.507059e+37  ;;  %v12238_v16 = vld [vmem:[%s14865_s2 + $0x760] sm:$0xff] }
 0x52d   :  { %v5136_v36 = vpop.eup %5135  ;;  %v12257_v55 = vld [vmem:[%s14865_s2 + $0x720] sm:$0xff] }
 0x52e   :  { %v3030_v48 = vadd.f32 1.0, %v5136_v36 }
 0x530   :  { %v5138_v24 = vpop.eup %5137  ;;  %5139 = vrcp.f32 %v3030_v48  ;;  %v3057_v2 = vand.u32 2147483648, %v3030_v48  ;;  %v3055_v21 = vand.u32 2147483647, %v3030_v48  ;;  %vm3051_vm6 = vweird.f32 %v3030_v48 }
 0x531   :  { %v3032_v51 = vmul.f32 %v5138_v24, %v3029_v33  ;;  %5141 = vtanh.f32 %v12148_v0  ;;  %vm3037_vm1 = vweird.f32 %v5138_v24  ;;  %v12174_v33 = vld [vmem:[%s14865_s2 + $0x3a0] sm:$0xff] }
 0x532   :  { %vm3038_vm3 = vmor %vm3036_vm2, %vm3037_vm1  ;;  %5143 = vtanh.f32 %v12152_v43  ;;  %v3058_v29 = vor.u32 1.1754944e-38, %v3057_v2  ;;  %vm3056_vm8 = vcmp.eq.f32.partialorder %v3055_v21, 8.507059e+37  ;;  %v12348_v2 = vld [vmem:[%s14865_s2 + $0x120] sm:$0xff] }
 0x533   :  { %v3033_v7 = vsub.f32 1.0, %v3032_v51  ;;  %v12226_v51 = vld [vmem:[%s14865_s2 + $0x7a8] sm:$0xff]  ;;  %v12367_v21 = vld [vmem:[%s14865_s2 + $0xe0] sm:$0xff] }
 0x535   :  { %v3034_v40 = vmul.f32 %v5138_v24, %v3033_v7  ;;  %v12232_v7 = vld [vmem:[%s14865_s2 + $0x2a0] sm:$0xff] }
 0x536   :  { %v5140_v47 = vpop.eup %5139 }
 0x537   :  { %v3035_v42 = vadd.f32 %v5138_v24, %v3034_v40  ;;  %v3047_v27 = vmul.f32 %v5140_v47, %v3030_v48  ;;  %v5142_v14 = vpop.eup %5141  ;;  %vm3052_vm5 = vweird.f32 %v5140_v47  ;;  %v12183_v48 = vld [vmem:[%s14865_s2 + $0x360] sm:$0xff] }
 0x538   :  { %vm3053_vm7 = vmor %vm3051_vm6, %vm3052_vm5  ;;  %v5144_v34 = vpop.eup %5143  ;;  %v12251_v40 = vld [vmem:[%s14865_s2 + $0x260] sm:$0xff] }
 0x539   :  { %v3039_v53 = vsel %vm3038_vm3, %v5138_v24, %v3035_v42  ;;  %v3048_v56 = vsub.f32 1.0, %v3047_v27  ;;  %v12213_v24 = vld [vmem:[%s14865_s2 + $0x2e0] sm:$0xff]  ;;  %v12285_v42 = vld [vmem:[%s14865_s2 + $0x6e8] sm:$0xff] }
 0x53a   :  { %v3044_v44 = vsel %vm3041_vm4, %v3043_v20, %v3039_v53  ;;  %v12291_v27 = vld [vmem:[%s14865_s2 + $0x1e0] sm:$0xff] }
 0x53b   :  { %v12160_v22 = vmul.f32 %v5142_v14, %v3044_v44  ;;  %v3049_v11 = vmul.f32 %v5140_v47, %v3048_v56  ;;  %v12297_v20 = vld [vmem:[%s14865_s2 + $0x6a0] sm:$0xff] }
 0x53c   :  { %v12310_v53 = vld [vmem:[%s14865_s2 + $0x1a0] sm:$0xff] }
 0x53d   :  { %v3050_v52 = vadd.f32 %v5140_v47, %v3049_v11  ;;  %3098 = vmatmul.f32.vlgmr.msra.gmra.mxu0 %v12160_v22  ;;  %3138 = vmatmul.f32.vlgmr.msrb.gmra.mxu2 %v12160_v22  ;;  %v12316_v56 = vld [vmem:[%s14865_s2 + $0x660] sm:$0xff] }
 0x53e   :  { %3242 = vmatpush.msra.mxu0 %v12167_v17  ;;  %3282 = vmatpush.msrb.mxu2 %v11261_v26  ;;  %v12192_v26 = vld [vmem:[%s14865_s2 + $0x320] sm:$0xff] }
 0x53f   :  { %v3054_v13 = vsel %vm3053_vm7, %v5140_v47, %v3050_v52  ;;  %v12272_v47 = vld [vmem:[%s14865_s2 + $0x220] sm:$0xff] }
 0x540   :  { %v3059_v1 = vsel %vm3056_vm8, %v3058_v29, %v3054_v13  ;;  %3243 = vmatpush.msra.mxu0 %v12174_v33  ;;  %3283 = vmatpush.msrb.mxu2 %v11268_v62  ;;  %v12198_v62 = vld [vmem:[%s14865_s2 + $0x7e0] sm:$0xff] }
 0x541   :  { %v12178_v36 = vmul.f32 %v5144_v34, %v3059_v1  ;;  %v12329_v14 = vld [vmem:[%s14865_s2 + $0x160] sm:$0xff] }
 0x542   :  { %3244 = vmatpush.msra.mxu0 %v12183_v48  ;;  %3284 = vmatpush.msrb.mxu2 %v11277_v23  ;;  %v12205_v23 = vld [vmem:[%s14865_s2 + $0x7e8] sm:$0xff]  ;;  %v12335_v44 = vld [vmem:[%s14865_s2 + $0x620] sm:$0xff] }
 0x543   :  { %3118 = vmatmul.f32.vlgmr.msra.gmra.mxu1 %v12178_v36  ;;  %3158 = vmatmul.f32.vlgmr.msrb.gmra.mxu3 %v12178_v36  ;;  %v12354_v11 = vld [vmem:[%s14865_s2 + $0x5e0] sm:$0xff] }
 0x544   :  { %3245 = vmatpush.msra.mxu0 %v12192_v26  ;;  %3262 = vmatpush.msra.mxu1 %v12198_v62  ;;  %v12373_v52 = vld [vmem:[%s14865_s2 + $0x5a0] sm:$0xff] }
 0x545   :  { %3285 = vmatpush.msrb.mxu2 %v11287_v6  ;;  %3302 = vmatpush.msrb.mxu3 %v12205_v23  ;;  %v12219_v6 = vld [vmem:[%s14865_s2 + $0x7a0] sm:$0xff] }
 0x546   :  { %3178 = vmatmul.f32.vlgmr.msrb.gmra.mxu0 %v12160_v22  ;;  %3218 = vmatmul.f32.vlgmr.msra.gmra.mxu2 %v12160_v22  ;;  %v12386_v29 = vld [vmem:[%s14865_s2 + $0xa0] sm:$0xff] }
 0x547   :  { %3246 = vmatpush.msra.mxu0 %v12213_v24  ;;  %3263 = vmatpush.msra.mxu1 %v12219_v6  ;;  %16490 = vst [vmem:[#allocation35_spill] sm:$0xff] %v12386_v29  ;;  %v12392_v13 = vld [vmem:[%s14865_s2 + $0x560] sm:$0xff] }
 0x548   :  { %3286 = vmatpush.msrb.mxu2 %v11298_v57  ;;  %3303 = vmatpush.msrb.mxu3 %v12226_v51  ;;  %v12245_v57 = vld [vmem:[%s14865_s2 + $0x768] sm:$0xff]  ;;  %16491 = vst [vmem:[#allocation95_spill] sm:$0xff] %v12392_v13  ;;  %v12405_v34 = vld [vmem:[%s14865_s2 + $0x60] sm:$0xff] }
 0x549   :  { %3247 = vmatpush.msra.mxu0 %v12232_v7  ;;  %3264 = vmatpush.msra.mxu1 %v12238_v16  ;;  %16493 = vst [vmem:[#allocation155_spill] sm:$0xff] %v12405_v34  ;;  %v12411_v1 = vld [vmem:[%s14865_s2 + $0x520] sm:$0xff] }
 0x54a   :  { %3287 = vmatpush.msrb.mxu2 %v11307_v5  ;;  %3304 = vmatpush.msrb.mxu3 %v12245_v57  ;;  %v12264_v5 = vld [vmem:[%s14865_s2 + $0x728] sm:$0xff]  ;;  %16494 = vst [vmem:[#allocation156_spill] sm:$0xff] %v12411_v1 }
 0x54b   :  { %3248 = vmatpush.msra.mxu0 %v12251_v40  ;;  %3265 = vmatpush.msra.mxu1 %v12257_v55 }
 0x54c   :  { %3288 = vmatpush.msrb.mxu2 %v11316_v46  ;;  %3305 = vmatpush.msrb.mxu3 %v12264_v5  ;;  %v12278_v46 = vld [vmem:[%s14865_s2 + $0x6e0] sm:$0xff] }
 0x54d   :  { %3198 = vmatmul.f32.vlgmr.msrb.gmra.mxu1 %v12178_v36  ;;  %3238 = vmatmul.f32.vlgmr.msra.gmra.mxu3 %v12178_v36 }
 0x54e   :  { %3249 = vmatpush.msra.mxu0 %v12272_v47  ;;  %3266 = vmatpush.msra.mxu1 %v12278_v46 }
 0x54f   :  { %3289 = vmatpush.msrb.mxu2 %v11327_v28  ;;  %3306 = vmatpush.msrb.mxu3 %v12285_v42  ;;  %v12304_v28 = vld [vmem:[%s14865_s2 + $0x6a8] sm:$0xff] }
 0x550   :  { %3250 = vmatpush.msra.mxu0 %v12291_v27  ;;  %3267 = vmatpush.msra.mxu1 %v12297_v20 }
 0x551   :  { %3290 = vmatpush.msrb.mxu2 %v11336_v54  ;;  %3307 = vmatpush.msrb.mxu3 %v12304_v28  ;;  %v12323_v54 = vld [vmem:[%s14865_s2 + $0x668] sm:$0xff] }
 0x552   :  { %3251 = vmatpush.msra.mxu0 %v12310_v53  ;;  %3268 = vmatpush.msra.mxu1 %v12316_v56 }
 0x553   :  { %3291 = vmatpush.msrb.mxu2 %v11345_v3  ;;  %3308 = vmatpush.msrb.mxu3 %v12323_v54  ;;  %v12342_v3 = vld [vmem:[%s14865_s2 + $0x628] sm:$0xff] }
 0x554   :  { %3252 = vmatpush.msra.mxu0 %v12329_v14  ;;  %3269 = vmatpush.msra.mxu1 %v12335_v44 }
 0x555   :  { %3292 = vmatpush.msrb.mxu2 %v11354_v50  ;;  %3309 = vmatpush.msrb.mxu3 %v12342_v3  ;;  %v12361_v50 = vld [vmem:[%s14865_s2 + $0x5e8] sm:$0xff] }
 0x556   :  { %3253 = vmatpush.msra.mxu0 %v12348_v2  ;;  %3270 = vmatpush.msra.mxu1 %v12354_v11 }
 0x557   :  { %3293 = vmatpush.msrb.mxu2 %v11363_v25  ;;  %3310 = vmatpush.msrb.mxu3 %v12361_v50  ;;  %v12380_v25 = vld [vmem:[%s14865_s2 + $0x5a8] sm:$0xff] }
 0x558   :  { %3254 = vmatpush.msra.mxu0 %v12367_v21  ;;  %3271 = vmatpush.msra.mxu1 %v12373_v52  ;;  %16489 = vst [vmem:[#allocation32_spill] sm:$0xff] %v12380_v25 }
 0x559   :  { %3294 = vmatpush.msrb.mxu2 %v11372_v41  ;;  %3311 = vmatpush.msrb.mxu3 %v12380_v25  ;;  %v12399_v41 = vld [vmem:[%s14865_s2 + $0x568] sm:$0xff] }
 0x55a   :  { %3255 = vmatpush.msra.mxu0 %v12386_v29  ;;  %3272 = vmatpush.msra.mxu1 %v12392_v13  ;;  %16492 = vst [vmem:[#allocation96_spill] sm:$0xff] %v12399_v41 }
 0x55b   :  { %3295 = vmatpush.msrb.mxu2 %v11381_v15  ;;  %3312 = vmatpush.msrb.mxu3 %v12399_v41  ;;  %v12418_v15 = vld [vmem:[%s14865_s2 + $0x528] sm:$0xff] }
 0x55c   :  { %3256 = vmatpush.msra.mxu0 %v12405_v34  ;;  %3273 = vmatpush.msra.mxu1 %v12411_v1  ;;  %16495 = vst [vmem:[#allocation21_spill] sm:$0xff] %v12418_v15  ;;  %v12424_v34 = vld [vmem:[%s14865_s2 + $0x20] sm:$0xff] }
 0x55d   :  { %3296 = vmatpush.msrb.mxu2 %v11390_v31  ;;  %3313 = vmatpush.msrb.mxu3 %v12418_v15  ;;  %16496 = vst [vmem:[#allocation158_spill] sm:$0xff] %v12424_v34  ;;  %v12430_v1 = vld [vmem:[%s14865_s2 + $0x4e0] sm:$0xff]  ;;  %v12437_v31 = vld [vmem:[%s14865_s2 + $0x4e8] sm:$0xff] }
 0x55e   :  { %3257 = vmatpush.msra.mxu0 %v12424_v34  ;;  %16497 = vst [vmem:[#allocation159_spill] sm:$0xff] %v12430_v1  ;;  %3274 = vmatpush.msra.mxu1 %v12430_v1  ;;  %v12445_v34 = vld [vmem:[%s14865_s2 + $0x3f0] sm:$0xff] }
 0x55f   :  { %3297 = vmatpush.msrb.mxu2 %v11399_v12  ;;  %16498 = vst [vmem:[#allocation24_spill] sm:$0xff] %v12437_v31  ;;  %3314 = vmatpush.msrb.mxu3 %v12437_v31  ;;  %v12452_v12 = vld [vmem:[%s14865_s2 + $0x4a0] sm:$0xff]  ;;  %v12458_v31 = vld [vmem:[%s14865_s2 + $0x4a8] sm:$0xff] }
 0x560   :  { %3258 = vmatmul.f32.vlgmr.msra.gmra.mxu0 %v12160_v22  ;;  %3298 = vmatmul.f32.vlgmr.msrb.gmra.mxu2 %v12160_v22  ;;  %16499 = vst [vmem:[#allocation161_spill] sm:$0xff] %v12445_v34 }
 0x561   :  { %3322 = vmatpush.msrb.mxu0 %v12445_v34  ;;  %3362 = vmatpush.msra.mxu2 %v11409_v37  ;;  %16500 = vst [vmem:[#allocation162_spill] sm:$0xff] %v12452_v12  ;;  %v12464_v34 = vld [vmem:[%s14865_s2 + $0x3b0] sm:$0xff]  ;;  %v12471_v37 = vld [vmem:[%s14865_s2 + $0x460] sm:$0xff] }
 0x562   :  { %3275 = vmatpush.msra.mxu1 %v12452_v12  ;;  %16501 = vst [vmem:[#allocation25_spill] sm:$0xff] %v12458_v31  ;;  %3315 = vmatpush.msrb.mxu3 %v12458_v31  ;;  %v12477_v31 = vld [vmem:[%s14865_s2 + $0x468] sm:$0xff] }
 0x563   :  { %16502 = vst [vmem:[#allocation73_spill] sm:$0xff] %v12464_v34  ;;  %3323 = vmatpush.msrb.mxu0 %v12464_v34  ;;  %3363 = vmatpush.msra.mxu2 %v11418_v32  ;;  %v12483_v34 = vld [vmem:[%s14865_s2 + $0x370] sm:$0xff]  ;;  %v12490_v32 = vld [vmem:[%s14865_s2 + $0x420] sm:$0xff] }
 0x564   :  { %16503 = vst [vmem:[#allocation164_spill] sm:$0xff] %v12471_v37  ;;  %3276 = vmatpush.msra.mxu1 %v12471_v37  ;;  %3316 = vmatpush.msrb.mxu3 %v12477_v31 }
 0x565   :  { %16504 = vst [vmem:[#allocation26_spill] sm:$0xff] %v12477_v31  ;;  %3324 = vmatpush.msrb.mxu0 %v12483_v34  ;;  %3364 = vmatpush.msra.mxu2 %v11427_v19  ;;  %v12496_v31 = vld [vmem:[%s14865_s2 + $0x428] sm:$0xff]  ;;  %v12504_v19 = vld [vmem:[%s14865_s2 + $0x330] sm:$0xff] }
 0x566   :  { %16505 = vst [vmem:[#allocation165_spill] sm:$0xff] %v12483_v34  ;;  %3277 = vmatpush.msra.mxu1 %v12490_v32  ;;  %3317 = vmatpush.msrb.mxu3 %v12496_v31 }
 0x567   :  { %16506 = vst [vmem:[#allocation166_spill] sm:$0xff] %v12490_v32  ;;  %3278 = vmatmul.f32.vlgmr.msra.gmra.mxu1 %v12178_v36  ;;  %3318 = vmatmul.f32.vlgmr.msrb.gmra.mxu3 %v12178_v36  ;;  %v12510_v32 = vld [vmem:[%s14865_s2 + $0x7f0] sm:$0xff] }
 0x568   :  { %16507 = vst [vmem:[#allocation28_spill] sm:$0xff] %v12496_v31  ;;  %3325 = vmatpush.msrb.mxu0 %v12504_v19  ;;  %3342 = vmatpush.msrb.mxu1 %v12510_v32  ;;  %v12517_v31 = vld [vmem:[%s14865_s2 + $0x7f8] sm:$0xff] }
 0x569   :  { %16508 = vst [vmem:[#allocation31_spill] sm:$0xff] %v12504_v19  ;;  %3365 = vmatpush.msra.mxu2 %v11439_v58  ;;  %3382 = vmatpush.msra.mxu3 %v12517_v31  ;;  %v12523_v19 = vld [vmem:[%s14865_s2 + $0x2f0] sm:$0xff]  ;;  %v12536_v58 = vld [vmem:[%s14865_s2 + $0x7b8] sm:$0xff] }
 0x56a   :  { %16509 = vst [vmem:[#allocation77_spill] sm:$0xff] %v12510_v32  ;;  %3326 = vmatpush.msrb.mxu0 %v12523_v19  ;;  %v12529_v32 = vld [vmem:[%s14865_s2 + $0x7b0] sm:$0xff] }
 0x56b   :  { %16510 = vst [vmem:[#allocation30_spill] sm:$0xff] %v12517_v31  ;;  %3343 = vmatpush.msrb.mxu1 %v12529_v32  ;;  %3366 = vmatpush.msra.mxu2 %v11448_v18  ;;  %v12555_v18 = vld [vmem:[%s14865_s2 + $0x778] sm:$0xff] }
 0x56c   :  { %16511 = vst [vmem:[#allocation34_spill] sm:$0xff] %v12523_v19  ;;  %3383 = vmatpush.msra.mxu3 %v12536_v58  ;;  %v12542_v19 = vld [vmem:[%s14865_s2 + $0x2b0] sm:$0xff] }
 0x56d   :  { %16512 = vst [vmem:[#allocation83_spill] sm:$0xff] %v12529_v32  ;;  %3327 = vmatpush.msrb.mxu0 %v12542_v19  ;;  %v12548_v32 = vld [vmem:[%s14865_s2 + $0x770] sm:$0xff]  ;;  %3367 = vmatpush.msra.mxu2 %v11457_v39  ;;  %v12574_v39 = vld [vmem:[%s14865_s2 + $0x738] sm:$0xff] }
 0x56e   :  { %16513 = vst [vmem:[#allocation154_spill] sm:$0xff] %v12536_v58  ;;  %3344 = vmatpush.msrb.mxu1 %v12548_v32  ;;  %3384 = vmatpush.msra.mxu3 %v12555_v18  ;;  %v16688_v58 = vld [vmem:[#allocation38_spill] sm:$0xff] }
 0x56f   :  { %16514 = vst [vmem:[#allocation167_spill] sm:$0xff] %v12542_v19  ;;  %v12561_v19 = vld [vmem:[%s14865_s2 + $0x270] sm:$0xff]  ;;  %3368 = vmatpush.msra.mxu2 %v11466_v8  ;;  %v12593_v8 = vld [vmem:[%s14865_s2 + $0x6f8] sm:$0xff] }
 0x570   :  { %16515 = vst [vmem:[#allocation168_spill] sm:$0xff] %v12548_v32  ;;  %3328 = vmatpush.msrb.mxu0 %v12561_v19  ;;  %v12567_v32 = vld [vmem:[%s14865_s2 + $0x730] sm:$0xff]  ;;  %3385 = vmatpush.msra.mxu3 %v12574_v39 }
 0x571   :  { %16516 = vst [vmem:[#allocation33_spill] sm:$0xff] %v12555_v18  ;;  %3345 = vmatpush.msrb.mxu1 %v12567_v32  ;;  %3369 = vmatpush.msra.mxu2 %v11475_v35  ;;  %v12612_v35 = vld [vmem:[%s14865_s2 + $0x6b8] sm:$0xff]  ;;  %v16687_v18 = vld [vmem:[#allocation151_spill] sm:$0xff] }
 0x572   :  { %16517 = vst [vmem:[#allocation39_spill] sm:$0xff] %v12561_v19  ;;  %v12580_v19 = vld [vmem:[%s14865_s2 + $0x230] sm:$0xff]  ;;  %3386 = vmatpush.msra.mxu3 %v12593_v8  ;;  %v254_v31 = vadd.f32 %v16688_v58, %v16687_v18 }
 0x573   :  { %16518 = vst [vmem:[#allocation86_spill] sm:$0xff] %v12567_v32  ;;  %3329 = vmatpush.msrb.mxu0 %v12580_v19  ;;  %v12586_v32 = vld [vmem:[%s14865_s2 + $0x6f0] sm:$0xff]  ;;  %3370 = vmatpush.msra.mxu2 %v11484_v49  ;;  %v12631_v49 = vld [vmem:[%s14865_s2 + $0x678] sm:$0xff] }
 0x574   :  { %16519 = vst [vmem:[#allocation37_spill] sm:$0xff] %v12574_v39  ;;  %3346 = vmatpush.msrb.mxu1 %v12586_v32  ;;  %3387 = vmatpush.msra.mxu3 %v12612_v35 }
 0x575   :  { %16520 = vst [vmem:[#allocation41_spill] sm:$0xff] %v12580_v19  ;;  %v12599_v19 = vld [vmem:[%s14865_s2 + $0x1f0] sm:$0xff]  ;;  %3371 = vmatpush.msra.mxu2 %v11493_v45 }
 0x576   :  { %16521 = vst [vmem:[#allocation89_spill] sm:$0xff] %v12586_v32  ;;  %3330 = vmatpush.msrb.mxu0 %v12599_v19  ;;  %v12605_v32 = vld [vmem:[%s14865_s2 + $0x6b0] sm:$0xff]  ;;  %3388 = vmatpush.msra.mxu3 %v12631_v49 }
 0x577   :  { %16522 = vst [vmem:[#allocation40_spill] sm:$0xff] %v12593_v8  ;;  %3347 = vmatpush.msrb.mxu1 %v12605_v32  ;;  %3372 = vmatpush.msra.mxu2 %v11502_v63  ;;  %v12651_v45 = vld [vmem:[%s14865_s2 + $0x130] sm:$0xff] }
 0x578   :  { %16523 = vst [vmem:[#allocation43_spill] sm:$0xff] %v12599_v19  ;;  %v12618_v19 = vld [vmem:[%s14865_s2 + $0x1b0] sm:$0xff]  ;;  %3389 = vmatpush.msra.mxu3 %v11508_v10 }
 0x579   :  { %16524 = vst [vmem:[#allocation92_spill] sm:$0xff] %v12605_v32  ;;  %3331 = vmatpush.msrb.mxu0 %v12618_v19  ;;  %v12624_v32 = vld [vmem:[%s14865_s2 + $0x670] sm:$0xff]  ;;  %3373 = vmatpush.msra.mxu2 %v11516_v60 }
 0x57a   :  { %16525 = vst [vmem:[#allocation42_spill] sm:$0xff] %v12612_v35  ;;  %3348 = vmatpush.msrb.mxu1 %v12624_v32  ;;  %3390 = vmatpush.msra.mxu3 %v11522_v4  ;;  %v12665_v63 = vld [vmem:[%s14865_s2 + $0xf0] sm:$0xff] }
 0x57b   :  { %16526 = vst [vmem:[#allocation46_spill] sm:$0xff] %v12618_v19  ;;  %v12637_v19 = vld [vmem:[%s14865_s2 + $0x170] sm:$0xff]  ;;  %3374 = vmatpush.msra.mxu2 %v11530_v38 }
 0x57c   :  { %16527 = vst [vmem:[#allocation97_spill] sm:$0xff] %v12624_v32  ;;  %3332 = vmatpush.msrb.mxu0 %v12637_v19  ;;  %v12643_v32 = vld [vmem:[%s14865_s2 + $0x630] sm:$0xff]  ;;  %3391 = vmatpush.msra.mxu3 %v11536_v9 }
 0x57d   :  { %16528 = vst [vmem:[#allocation44_spill] sm:$0xff] %v12631_v49  ;;  %3349 = vmatpush.msrb.mxu1 %v12643_v32  ;;  %v12671_v10 = vld [vmem:[%s14865_s2 + $0x5b0] sm:$0xff] }
 0x57e   :  { %16529 = vst [vmem:[#allocation51_spill] sm:$0xff] %v12637_v19  ;;  %3333 = vmatpush.msrb.mxu0 %v12651_v45  ;;  %v12657_v19 = vld [vmem:[%s14865_s2 + $0x5f0] sm:$0xff] }
 0x57f   :  { %16530 = vst [vmem:[#allocation102_spill] sm:$0xff] %v12643_v32  ;;  %3350 = vmatpush.msrb.mxu1 %v12657_v19  ;;  %v12679_v60 = vld [vmem:[%s14865_s2 + $0xb0] sm:$0xff] }
 0x580   :  { %16531 = vst [vmem:[#allocation48_spill] sm:$0xff] %v12651_v45  ;;  %3334 = vmatpush.msrb.mxu0 %v12665_v63  ;;  %v12685_v4 = vld [vmem:[%s14865_s2 + $0x570] sm:$0xff]  ;;  %v13109_v45 = vld [vmem:[%s14865_s2 + $0x58] sm:$0xff] }
 0x581   :  { %16532 = vst [vmem:[#allocation56_spill] sm:$0xff] %v12657_v19  ;;  %3351 = vmatpush.msrb.mxu1 %v12671_v10  ;;  %v12693_v38 = vld [vmem:[%s14865_s2 + $0x70] sm:$0xff]  ;;  %v16554_v19 = vld [vmem:[#allocation91_spill] sm:$0xff] }
 0x582   :  { %16533 = vst [vmem:[#allocation105_spill] sm:$0xff] %v12665_v63  ;;  %3335 = vmatpush.msrb.mxu0 %v12679_v60  ;;  %v16537_v63 = vld [vmem:[#allocation68_spill] sm:$0xff]  ;;  %v12699_v9 = vld [vmem:[%s14865_s2 + $0x530] sm:$0xff] }
 0x583   :  { %16534 = vst [vmem:[#allocation54_spill] sm:$0xff] %v12671_v10  ;;  %3352 = vmatpush.msrb.mxu1 %v12685_v4  ;;  %3375 = vmatpush.msra.mxu2 %v16537_v63  ;;  %v16538_v10 = vld [vmem:[#allocation58_spill] sm:$0xff]  ;;  %v12707_v63 = vld [vmem:[%s14865_s2 + $0x30] sm:$0xff] }
 0x584   :  { %16535 = vst [vmem:[#allocation59_spill] sm:$0xff] %v12679_v60  ;;  %3392 = vmatpush.msra.mxu3 %v16538_v10  ;;  %3336 = vmatpush.msrb.mxu0 %v12693_v38  ;;  %v16541_v60 = vld [vmem:[#allocation126_spill] sm:$0xff]  ;;  %v12713_v10 = vld [vmem:[%s14865_s2 + $0x4f0] sm:$0xff] }
 0x585   :  { %16536 = vst [vmem:[#allocation57_spill] sm:$0xff] %v12685_v4  ;;  %3353 = vmatpush.msrb.mxu1 %v12699_v9  ;;  %3376 = vmatpush.msra.mxu2 %v16541_v60  ;;  %v16542_v4 = vld [vmem:[#allocation75_spill] sm:$0xff]  ;;  %v12723_v60 = vld [vmem:[%s14865_s2 + $0x4b0] sm:$0xff] }
 0x586   :  { %16539 = vst [vmem:[#allocation108_spill] sm:$0xff] %v12693_v38  ;;  %3393 = vmatpush.msra.mxu3 %v16542_v4  ;;  %3337 = vmatpush.msrb.mxu0 %v12707_v63  ;;  %v16545_v38 = vld [vmem:[#allocation63_spill] sm:$0xff]  ;;  %v16548_v4 = vld [vmem:[#allocation78_spill] sm:$0xff] }
 0x587   :  { %16540 = vst [vmem:[#allocation60_spill] sm:$0xff] %v12699_v9  ;;  %3354 = vmatpush.msrb.mxu1 %v12713_v10  ;;  %3377 = vmatpush.msra.mxu2 %v16545_v38  ;;  %v16546_v9 = vld [vmem:[#allocation133_spill] sm:$0xff] }
 0x588   :  { %16543 = vst [vmem:[#allocation15_spill] sm:$0xff] %v12707_v63  ;;  %3394 = vmatpush.msra.mxu3 %v16546_v9  ;;  %3338 = vmatmul.f32.vlgmr.msrb.gmra.mxu0 %v12160_v22  ;;  %v16549_v63 = vld [vmem:[#allocation79_spill] sm:$0xff]  ;;  %v12732_v38 = vld [vmem:[%s14865_s2 + $0x470] sm:$0xff]  ;;  %v16553_v9 = vld [vmem:[#allocation88_spill] sm:$0xff] }
 0x589   :  { %16544 = vst [vmem:[#allocation45_spill] sm:$0xff] %v12713_v10  ;;  %3378 = vmatmul.f32.vlgmr.msra.gmra.mxu2 %v12160_v22  ;;  %3355 = vmatpush.msrb.mxu1 %v12723_v60  ;;  %v16550_v10 = vld [vmem:[#allocation80_spill] sm:$0xff]  ;;  %v16552_v22 = vld [vmem:[#allocation85_spill] sm:$0xff] }
 0x58a   :  { %16547 = vst [vmem:[#allocation157_spill] sm:$0xff] %v12723_v60  ;;  %3395 = vmatpush.msra.mxu3 %v16548_v4  ;;  %3547 = vmatpush.msra.mxu0 %v16549_v63  ;;  %v12741_v4 = vld [vmem:[%s14865_s2 + $0x430] sm:$0xff]  ;;  %v16556_v63 = vld [vmem:[#allocation94_spill] sm:$0xff] }
 0x58b   :  { %3587 = vmatpush.msrb.mxu2 %v16550_v10  ;;  %16551 = vst [vmem:[#allocation62_spill] sm:$0xff] %v12732_v38  ;;  %3356 = vmatpush.msrb.mxu1 %v12732_v38  ;;  %v16557_v10 = vld [vmem:[#allocation99_spill] sm:$0xff] }
 0x58c   :  { %3396 = vmatpush.msra.mxu3 %v16552_v22  ;;  %3548 = vmatpush.msra.mxu0 %v16553_v9  ;;  %16555 = vst [vmem:[#allocation160_spill] sm:$0xff] %v12741_v4  ;;  %v16558_v22 = vld [vmem:[#allocation11_spill] sm:$0xff] }
 0x58d   :  { %3588 = vmatpush.msrb.mxu2 %v16554_v19  ;;  %3357 = vmatpush.msrb.mxu1 %v12741_v4  ;;  %v12752_v19 = vld [vmem:[%s14865_s2 + $0x7c0] sm:$0xff]  ;;  %v16561_v4 = vld [vmem:[#allocation106_spill] sm:$0xff] }
 0x58e   :  { %3397 = vmatpush.msra.mxu3 %v16556_v63  ;;  %3358 = vmatmul.f32.vlgmr.msrb.gmra.mxu1 %v12178_v36  ;;  %16559 = vst [vmem:[#allocation111_spill] sm:$0xff] %v12752_v19  ;;  %v16560_v9 = vld [vmem:[#allocation55_spill] sm:$0xff]  ;;  %v16562_v63 = vld [vmem:[#allocation72_spill] sm:$0xff] }
 0x58f   :  { %3398 = vmatmul.f32.vlgmr.msra.gmra.mxu3 %v12178_v36  ;;  %3549 = vmatpush.msra.mxu0 %v16557_v10  ;;  %v12761_v36 = vld [vmem:[%s14865_s2 + $0x780] sm:$0xff]  ;;  %v16564_v10 = vld [vmem:[#allocation12_spill] sm:$0xff] }
 0x590   :  { %3589 = vmatpush.msrb.mxu2 %v16558_v22  ;;  %3567 = vmatpush.msra.mxu1 %v12752_v19  ;;  %16563 = vst [vmem:[#allocation163_spill] sm:$0xff] %v12761_v36  ;;  %v16565_v22 = vld [vmem:[#allocation22_spill] sm:$0xff]  ;;  %v16566_v38 = vld [vmem:[#allocation23_spill] sm:$0xff]  ;;  %v16570_v19 = vld [vmem:[#allocation136_spill] sm:$0xff] }
 0x591   :  { %3607 = vmatpush.msrb.mxu3 %v16560_v9  ;;  %3550 = vmatpush.msra.mxu0 %v16561_v4  ;;  %v12770_v9 = vld [vmem:[%s14865_s2 + $0x740] sm:$0xff]  ;;  %v16568_v4 = vld [vmem:[#allocation69_spill] sm:$0xff] }
 0x592   :  { %3590 = vmatpush.msrb.mxu2 %v16562_v63  ;;  %3568 = vmatpush.msra.mxu1 %v12761_v36  ;;  %16567 = vst [vmem:[#allocation16_spill] sm:$0xff] %v12770_v9  ;;  %v16569_v63 = vld [vmem:[#allocation70_spill] sm:$0xff]  ;;  %v16574_v36 = vld [vmem:[#allocation61_spill] sm:$0xff] }
 0x593   :  { %3608 = vmatpush.msrb.mxu3 %v16564_v10  ;;  %3551 = vmatpush.msra.mxu0 %v16565_v22  ;;  %v12779_v10 = vld [vmem:[%s14865_s2 + $0x700] sm:$0xff]  ;;  %v16573_v22 = vld [vmem:[#allocation110_spill] sm:$0xff] }
 0x594   :  { %3591 = vmatpush.msrb.mxu2 %v16566_v38  ;;  %3569 = vmatpush.msra.mxu1 %v12770_v9  ;;  %16571 = vst [vmem:[#allocation49_spill] sm:$0xff] %v12779_v10  ;;  %v16572_v38 = vld [vmem:[#allocation137_spill] sm:$0xff]  ;;  %v16578_v9 = vld [vmem:[#allocation130_spill] sm:$0xff] }
 0x595   :  { %3609 = vmatpush.msrb.mxu3 %v16568_v4  ;;  %3552 = vmatpush.msra.mxu0 %v16569_v63  ;;  %v12788_v4 = vld [vmem:[%s14865_s2 + $0x6c0] sm:$0xff]  ;;  %v16577_v63 = vld [vmem:[#allocation120_spill] sm:$0xff] }
 0x596   :  { %3592 = vmatpush.msrb.mxu2 %v16570_v19  ;;  %3570 = vmatpush.msra.mxu1 %v12779_v10  ;;  %16575 = vst [vmem:[#allocation64_spill] sm:$0xff] %v12788_v4  ;;  %v16576_v19 = vld [vmem:[#allocation119_spill] sm:$0xff]  ;;  %v16582_v10 = vld [vmem:[#allocation125_spill] sm:$0xff] }
 0x597   :  { %3610 = vmatpush.msrb.mxu3 %v16572_v38  ;;  %3553 = vmatpush.msra.mxu0 %v16573_v22  ;;  %v12797_v38 = vld [vmem:[%s14865_s2 + $0x680] sm:$0xff]  ;;  %v16581_v22 = vld [vmem:[#allocation76_spill] sm:$0xff] }
 0x598   :  { %3593 = vmatpush.msrb.mxu2 %v16574_v36  ;;  %3571 = vmatpush.msra.mxu1 %v12788_v4  ;;  %16579 = vst [vmem:[#allocation117_spill] sm:$0xff] %v12797_v38  ;;  %v16580_v36 = vld [vmem:[#allocation124_spill] sm:$0xff]  ;;  %v16586_v4 = vld [vmem:[#allocation129_spill] sm:$0xff] }
 0x599   :  { %3611 = vmatpush.msrb.mxu3 %v16576_v19  ;;  %3554 = vmatpush.msra.mxu0 %v16577_v63  ;;  %v12806_v19 = vld [vmem:[%s14865_s2 + $0x640] sm:$0xff] }
 0x59a   :  { %3594 = vmatpush.msrb.mxu2 %v16578_v9  ;;  %3572 = vmatpush.msra.mxu1 %v12797_v38  ;;  %16583 = vst [vmem:[#allocation27_spill] sm:$0xff] %v12806_v19  ;;  %v16584_v9 = vld [vmem:[#allocation128_spill] sm:$0xff]  ;;  %v16585_v63 = vld [vmem:[#allocation67_spill] sm:$0xff] }
 0x59b   :  { %3612 = vmatpush.msrb.mxu3 %v16580_v36  ;;  %3555 = vmatpush.msra.mxu0 %v16581_v22  ;;  %v12815_v36 = vld [vmem:[%s14865_s2 + $0x600] sm:$0xff] }
 0x59c   :  { %3595 = vmatpush.msrb.mxu2 %v16582_v10  ;;  %3573 = vmatpush.msra.mxu1 %v12806_v19  ;;  %16587 = vst [vmem:[#allocation29_spill] sm:$0xff] %v12815_v36  ;;  %v16588_v10 = vld [vmem:[#allocation132_spill] sm:$0xff]  ;;  %v16589_v22 = vld [vmem:[#allocation71_spill] sm:$0xff]  ;;  %v16594_v19 = vld [vmem:[#allocation170_spill] sm:$0xff] }
 0x59d   :  { %3613 = vmatpush.msrb.mxu3 %v16584_v9  ;;  %3556 = vmatpush.msra.mxu0 %v16585_v63  ;;  %v16590_v38 = vld [vmem:[#allocation135_spill] sm:$0xff]  ;;  %v16593_v63 = vld [vmem:[#allocation74_spill] sm:$0xff]  ;;  %16671 = vst [vmem:[#allocation71_spill] sm:$0xff] %v13109_v45 }
 0x59e   :  { %3596 = vmatpush.msrb.mxu2 %v16586_v4  ;;  %3574 = vmatpush.msra.mxu1 %v12815_v36  ;;  %v12824_v9 = vld [vmem:[%s14865_s2 + $0x5c0] sm:$0xff]  ;;  %v16592_v4 = vld [vmem:[#allocation169_spill] sm:$0xff]  ;;  %v16598_v36 = vld [vmem:[#allocation172_spill] sm:$0xff] }
 0x59f   :  { %3614 = vmatpush.msrb.mxu3 %v16588_v10  ;;  %3557 = vmatpush.msra.mxu0 %v16589_v22  ;;  %16591 = vst [vmem:[#allocation81_spill] sm:$0xff] %v12824_v9  ;;  %v12833_v10 = vld [vmem:[%s14865_s2 + $0x580] sm:$0xff]  ;;  %v16597_v22 = vld [vmem:[#allocation84_spill] sm:$0xff] }
 0x5a0   :  { %3597 = vmatpush.msrb.mxu2 %v16590_v38  ;;  %3575 = vmatpush.msra.mxu1 %v12824_v9  ;;  %16595 = vst [vmem:[#allocation82_spill] sm:$0xff] %v12833_v10  ;;  %v16596_v38 = vld [vmem:[#allocation171_spill] sm:$0xff]  ;;  %v16602_v9 = vld [vmem:[#allocation174_spill] sm:$0xff] }
 0x5a1   :  { %3615 = vmatpush.msrb.mxu3 %v16592_v4  ;;  %3558 = vmatpush.msra.mxu0 %v16593_v63  ;;  %v12842_v4 = vld [vmem:[%s14865_s2 + $0x540] sm:$0xff] }
 0x5a2   :  { %3598 = vmatpush.msrb.mxu2 %v16594_v19  ;;  %3576 = vmatpush.msra.mxu1 %v12833_v10  ;;  %16599 = vst [vmem:[#allocation140_spill] sm:$0xff] %v12842_v4  ;;  %v16600_v19 = vld [vmem:[#allocation173_spill] sm:$0xff]  ;;  %v16601_v63 = vld [vmem:[#allocation87_spill] sm:$0xff] }
 0x5a3   :  { %3616 = vmatpush.msrb.mxu3 %v16596_v38  ;;  %3559 = vmatpush.msra.mxu0 %v16597_v22  ;;  %v12851_v38 = vld [vmem:[%s14865_s2 + $0x500] sm:$0xff]  ;;  %v16605_v22 = vld [vmem:[#allocation112_spill] sm:$0xff]  ;;  %v16606_v10 = vld [vmem:[#allocation93_spill] sm:$0xff] }
 0x5a4   :  { %3599 = vmatpush.msrb.mxu2 %v16598_v36  ;;  %3577 = vmatpush.msra.mxu1 %v12842_v4  ;;  %16603 = vst [vmem:[#allocation141_spill] sm:$0xff] %v12851_v38  ;;  %v16604_v36 = vld [vmem:[#allocation90_spill] sm:$0xff]  ;;  %v16610_v4 = vld [vmem:[#allocation123_spill] sm:$0xff] }
 0x5a5   :  { %3617 = vmatpush.msrb.mxu3 %v16600_v19  ;;  %3560 = vmatpush.msra.mxu0 %v16601_v63  ;;  %v12860_v19 = vld [vmem:[%s14865_s2 + $0x4c0] sm:$0xff]  ;;  %v16609_v63 = vld [vmem:[#allocation98_spill] sm:$0xff] }
 0x5a6   :  { %3600 = vmatpush.msrb.mxu2 %v16602_v9  ;;  %3578 = vmatpush.msra.mxu1 %v12851_v38  ;;  %16607 = vst [vmem:[#allocation68_spill] sm:$0xff] %v12860_v19  ;;  %v16608_v9 = vld [vmem:[#allocation118_spill] sm:$0xff]  ;;  %v16611_v38 = vld [vmem:[#allocation103_spill] sm:$0xff] }
 0x5a7   :  { %3618 = vmatpush.msrb.mxu3 %v16604_v36  ;;  %3561 = vmatpush.msra.mxu0 %v16605_v22  ;;  %v12870_v36 = vld [vmem:[%s14865_s2 + $0x3d8] sm:$0xff]  ;;  %v16614_v22 = vld [vmem:[#allocation104_spill] sm:$0xff] }
 0x5a8   :  { %3601 = vmatpush.msrb.mxu2 %v16606_v10  ;;  %3579 = vmatpush.msra.mxu1 %v12860_v19  ;;  %16612 = vst [vmem:[#allocation58_spill] sm:$0xff] %v12870_v36  ;;  %v12876_v10 = vld [vmem:[%s14865_s2 + $0x480] sm:$0xff] }
 0x5a9   :  { %3619 = vmatpush.msrb.mxu3 %v16608_v9  ;;  %3562 = vmatpush.msra.mxu0 %v16609_v63  ;;  %16613 = vst [vmem:[#allocation126_spill] sm:$0xff] %v12876_v10  ;;  %v16615_v9 = vld [vmem:[#allocation127_spill] sm:$0xff] }
 0x5aa   :  { %3602 = vmatpush.msrb.mxu2 %v16610_v4  ;;  %3580 = vmatpush.msra.mxu1 %v12876_v10  ;;  %v12884_v4 = vld [vmem:[%s14865_s2 + $0x398] sm:$0xff]  ;;  %v16618_v63 = vld [vmem:[#allocation107_spill] sm:$0xff]  ;;  %v16619_v10 = vld [vmem:[#allocation9_spill] sm:$0xff] }
 0x5ab   :  { %3627 = vmatpush.msrb.mxu0 %v16611_v38  ;;  %3620 = vmatpush.msrb.mxu3 %v16614_v22  ;;  %16616 = vst [vmem:[#allocation75_spill] sm:$0xff] %v12884_v4  ;;  %v12890_v38 = vld [vmem:[%s14865_s2 + $0x440] sm:$0xff]  ;;  %v12898_v22 = vld [vmem:[%s14865_s2 + $0x358] sm:$0xff] }
 0x5ac   :  { %3667 = vmatpush.msra.mxu2 %v12870_v36  ;;  %16617 = vst [vmem:[#allocation63_spill] sm:$0xff] %v12890_v38  ;;  %3581 = vmatpush.msra.mxu1 %v12890_v38  ;;  %v16623_v38 = vld [vmem:[#allocation131_spill] sm:$0xff]  ;;  %v16669_v36 = vld [vmem:[#allocation145_spill] sm:$0xff] }
 0x5ad   :  { %3628 = vmatpush.msrb.mxu0 %v16615_v9  ;;  %3621 = vmatpush.msrb.mxu3 %v16618_v63  ;;  %16620 = vst [vmem:[#allocation133_spill] sm:$0xff] %v12898_v22  ;;  %v12904_v9 = vld [vmem:[%s14865_s2 + $0x400] sm:$0xff]  ;;  %v12918_v63 = vld [vmem:[%s14865_s2 + $0x318] sm:$0xff] }
 0x5ae   :  { %3668 = vmatpush.msra.mxu2 %v12884_v4  ;;  %16621 = vst [vmem:[#allocation78_spill] sm:$0xff] %v12904_v9  ;;  %3582 = vmatpush.msra.mxu1 %v12904_v9  ;;  %v16622_v4 = vld [vmem:[#allocation109_spill] sm:$0xff]  ;;  %v16627_v9 = vld [vmem:[#allocation114_spill] sm:$0xff] }
 0x5af   :  { %3629 = vmatpush.msrb.mxu0 %v16619_v10  ;;  %3622 = vmatpush.msrb.mxu3 %v16622_v4  ;;  %v12912_v10 = vld [vmem:[%s14865_s2 + $0x7d0] sm:$0xff]  ;;  %16625 = vst [vmem:[#allocation80_spill] sm:$0xff] %v12918_v63 }
 0x5b0   :  { %3669 = vmatpush.msra.mxu2 %v12898_v22  ;;  %16624 = vst [vmem:[#allocation79_spill] sm:$0xff] %v12912_v10  ;;  %3647 = vmatpush.msrb.mxu1 %v12912_v10  ;;  %v16626_v22 = vld [vmem:[#allocation113_spill] sm:$0xff]  ;;  %v16655_v10 = vld [vmem:[#allocation18_spill] sm:$0xff] }
 0x5b1   :  { %3630 = vmatpush.msrb.mxu0 %v16623_v38  ;;  %3687 = vmatpush.msra.mxu3 %v16626_v22  ;;  %v12926_v4 = vld [vmem:[%s14865_s2 + $0x790] sm:$0xff]  ;;  %v12932_v38 = vld [vmem:[%s14865_s2 + $0x2d8] sm:$0xff] }
 0x5b2   :  { %3670 = vmatpush.msra.mxu2 %v12918_v63  ;;  %16628 = vst [vmem:[#allocation85_spill] sm:$0xff] %v12926_v4  ;;  %3648 = vmatpush.msrb.mxu1 %v12926_v4  ;;  %v12938_v22 = vld [vmem:[%s14865_s2 + $0x798] sm:$0xff]  ;;  %v12945_v4 = vld [vmem:[%s14865_s2 + $0x750] sm:$0xff] }
 0x5b3   :  { %3631 = vmatpush.msrb.mxu0 %v16627_v9  ;;  %16629 = vst [vmem:[#allocation88_spill] sm:$0xff] %v12932_v38  ;;  %3688 = vmatpush.msra.mxu3 %v12938_v22  ;;  %v16631_v9 = vld [vmem:[#allocation134_spill] sm:$0xff]  ;;  %v16652_v63 = vld [vmem:[#allocation17_spill] sm:$0xff] }
 0x5b4   :  { %3671 = vmatpush.msra.mxu2 %v12932_v38  ;;  %16630 = vst [vmem:[#allocation91_spill] sm:$0xff] %v12938_v22  ;;  %3649 = vmatpush.msrb.mxu1 %v12945_v4  ;;  %v12951_v38 = vld [vmem:[%s14865_s2 + $0x298] sm:$0xff] }
 0x5b5   :  { %3632 = vmatpush.msrb.mxu0 %v16631_v9  ;;  %16632 = vst [vmem:[#allocation94_spill] sm:$0xff] %v12945_v4  ;;  %v12957_v22 = vld [vmem:[%s14865_s2 + $0x758] sm:$0xff]  ;;  %v16635_v9 = vld [vmem:[#allocation175_spill] sm:$0xff]  ;;  %v12964_v4 = vld [vmem:[%s14865_s2 + $0x710] sm:$0xff] }
 0x5b6   :  { %16633 = vst [vmem:[#allocation99_spill] sm:$0xff] %v12951_v38  ;;  %3672 = vmatpush.msra.mxu2 %v12951_v38  ;;  %3689 = vmatpush.msra.mxu3 %v12957_v22  ;;  %v12970_v38 = vld [vmem:[%s14865_s2 + $0x258] sm:$0xff] }
 0x5b7   :  { %16634 = vst [vmem:[#allocation11_spill] sm:$0xff] %v12957_v22  ;;  %3633 = vmatpush.msrb.mxu0 %v16635_v9  ;;  %3650 = vmatpush.msrb.mxu1 %v12964_v4  ;;  %v12976_v22 = vld [vmem:[%s14865_s2 + $0x718] sm:$0xff] }
 0x5b8   :  { %16636 = vst [vmem:[#allocation55_spill] sm:$0xff] %v12964_v4  ;;  %3673 = vmatpush.msra.mxu2 %v12970_v38  ;;  %3690 = vmatpush.msra.mxu3 %v12976_v22  ;;  %v16639_v9 = vld [vmem:[#allocation10_spill] sm:$0xff]  ;;  %v12983_v4 = vld [vmem:[%s14865_s2 + $0x6d0] sm:$0xff] }
 0x5b9   :  { %16637 = vst [vmem:[#allocation106_spill] sm:$0xff] %v12970_v38  ;;  %3634 = vmatpush.msrb.mxu0 %v16639_v9  ;;  %3651 = vmatpush.msrb.mxu1 %v12983_v4  ;;  %v12989_v38 = vld [vmem:[%s14865_s2 + $0x218] sm:$0xff]  ;;  %v16643_v9 = vld [vmem:[#allocation176_spill] sm:$0xff] }
 0x5ba   :  { %16638 = vst [vmem:[#allocation72_spill] sm:$0xff] %v12976_v22  ;;  %3674 = vmatpush.msra.mxu2 %v12989_v38  ;;  %v12995_v22 = vld [vmem:[%s14865_s2 + $0x6d8] sm:$0xff] }
 0x5bb   :  { %16640 = vst [vmem:[#allocation12_spill] sm:$0xff] %v12983_v4  ;;  %3691 = vmatpush.msra.mxu3 %v12995_v22  ;;  %3635 = vmatpush.msrb.mxu0 %v16643_v9  ;;  %v13002_v4 = vld [vmem:[%s14865_s2 + $0x690] sm:$0xff] }
 0x5bc   :  { %16641 = vst [vmem:[#allocation22_spill] sm:$0xff] %v12989_v38  ;;  %3652 = vmatpush.msrb.mxu1 %v13002_v4  ;;  %v13008_v38 = vld [vmem:[%s14865_s2 + $0x1d8] sm:$0xff]  ;;  %v16647_v9 = vld [vmem:[#allocation5_spill] sm:$0xff] }
 0x5bd   :  { %16642 = vst [vmem:[#allocation23_spill] sm:$0xff] %v12995_v22  ;;  %3675 = vmatpush.msra.mxu2 %v13008_v38  ;;  %v13014_v22 = vld [vmem:[%s14865_s2 + $0x698] sm:$0xff]  ;;  %3636 = vmatpush.msrb.mxu0 %v16647_v9  ;;  %v16651_v9 = vld [vmem:[#allocation177_spill] sm:$0xff] }
 0x5be   :  { %16644 = vst [vmem:[#allocation69_spill] sm:$0xff] %v13002_v4  ;;  %3692 = vmatpush.msra.mxu3 %v13014_v22  ;;  %v13021_v4 = vld [vmem:[%s14865_s2 + $0x650] sm:$0xff] }
 0x5bf   :  { %16645 = vst [vmem:[#allocation70_spill] sm:$0xff] %v13008_v38  ;;  %3653 = vmatpush.msrb.mxu1 %v13021_v4  ;;  %v13027_v38 = vld [vmem:[%s14865_s2 + $0x198] sm:$0xff]  ;;  %3637 = vmatpush.msrb.mxu0 %v16651_v9 }
 0x5c0   :  { %16646 = vst [vmem:[#allocation136_spill] sm:$0xff] %v13014_v22  ;;  %3676 = vmatpush.msra.mxu2 %v13027_v38  ;;  %v13033_v22 = vld [vmem:[%s14865_s2 + $0x658] sm:$0xff] }
 0x5c1   :  { %16648 = vst [vmem:[#allocation137_spill] sm:$0xff] %v13021_v4  ;;  %3693 = vmatpush.msra.mxu3 %v13033_v22  ;;  %3654 = vmatpush.msrb.mxu1 %v16652_v63  ;;  %v13041_v4 = vld [vmem:[%s14865_s2 + $0x158] sm:$0xff] }
 0x5c2   :  { %16649 = vst [vmem:[#allocation110_spill] sm:$0xff] %v13027_v38  ;;  %3677 = vmatpush.msra.mxu2 %v13041_v4  ;;  %v13047_v38 = vld [vmem:[%s14865_s2 + $0x618] sm:$0xff]  ;;  %3638 = vmatpush.msrb.mxu0 %v16655_v10 }
 0x5c3   :  { %16650 = vst [vmem:[#allocation61_spill] sm:$0xff] %v13033_v22  ;;  %3694 = vmatpush.msra.mxu3 %v13047_v38  ;;  %v16656_v22 = vld [vmem:[#allocation52_spill] sm:$0xff]  ;;  %v13055_v63 = vld [vmem:[%s14865_s2 + $0x118] sm:$0xff] }
 0x5c4   :  { %16653 = vst [vmem:[#allocation119_spill] sm:$0xff] %v13041_v4  ;;  %3655 = vmatpush.msrb.mxu1 %v16656_v22  ;;  %3678 = vmatpush.msra.mxu2 %v13055_v63  ;;  %v13061_v9 = vld [vmem:[%s14865_s2 + $0x5d8] sm:$0xff]  ;;  %v16659_v4 = vld [vmem:[#allocation153_spill] sm:$0xff] }
 0x5c5   :  { %16654 = vst [vmem:[#allocation120_spill] sm:$0xff] %v13047_v38  ;;  %3695 = vmatpush.msra.mxu3 %v13061_v9  ;;  %3639 = vmatpush.msrb.mxu0 %v16659_v4  ;;  %v16660_v38 = vld [vmem:[#allocation53_spill] sm:$0xff]  ;;  %v13069_v10 = vld [vmem:[%s14865_s2 + $0xd8] sm:$0xff] }
 0x5c6   :  { %16657 = vst [vmem:[#allocation130_spill] sm:$0xff] %v13055_v63  ;;  %3656 = vmatpush.msrb.mxu1 %v16660_v38  ;;  %3679 = vmatpush.msra.mxu2 %v13069_v10  ;;  %v13075_v22 = vld [vmem:[%s14865_s2 + $0x598] sm:$0xff]  ;;  %v13081_v4 = vld [vmem:[%s14865_s2 + $0x90] sm:$0xff]  ;;  %v16664_v38 = vld [vmem:[#allocation115_spill] sm:$0xff]  ;;  %v3119_v63 = vpop.f32.mrf.mxu1 }
 0x5c7   :  { %16658 = vst [vmem:[#allocation124_spill] sm:$0xff] %v13061_v9  ;;  %3696 = vmatpush.msra.mxu3 %v13075_v22  ;;  %3640 = vmatpush.msrb.mxu0 %v13081_v4  ;;  %v3099_v9 = vpop.f32.mrf.mxu0 }
 0x5c8   :  { %16661 = vst [vmem:[#allocation76_spill] sm:$0xff] %v13069_v10  ;;  %3657 = vmatpush.msrb.mxu1 %v16664_v38  ;;  %v13088_v10 = vld [vmem:[%s14865_s2 + $0x98] sm:$0xff]  ;;  %v13100_v38 = vld [vmem:[%s14865_s2 + $0x50] sm:$0xff]  ;;  %v3120_v60 = vadd.f32 %v3119_v63, %v3099_v9 }
 0x5c9   :  { %16662 = vst [vmem:[#allocation125_spill] sm:$0xff] %v13075_v22  ;;  %3680 = vmatpush.msra.mxu2 %v13088_v10  ;;  %v13094_v22 = vld [vmem:[%s14865_s2 + $0x558] sm:$0xff]  ;;  %3641 = vmatpush.msrb.mxu0 %v13100_v38 }
 0x5ca   :  { %16663 = vst [vmem:[#allocation128_spill] sm:$0xff] %v13081_v4  ;;  %3697 = vmatpush.msra.mxu3 %v13094_v22  ;;  %v16668_v4 = vld [vmem:[#allocation116_spill] sm:$0xff]  ;;  %v16674_v63 = vld [vmem:[#allocation6_spill] sm:$0xff] }
 0x5cb   :  { %16665 = vst [vmem:[#allocation67_spill] sm:$0xff] %v13088_v10  ;;  %3658 = vmatpush.msrb.mxu1 %v16668_v4  ;;  %v16670_v10 = vld [vmem:[#allocation19_spill] sm:$0xff]  ;;  %3681 = vmatpush.msra.mxu2 %v13109_v45  ;;  %v13121_v4 = vld [vmem:[%s14865_s2 + $0x10] sm:$0xff] }
 0x5cc   :  { %16666 = vst [vmem:[#allocation129_spill] sm:$0xff] %v13094_v22  ;;  %v131_v19 = vadd.f32 %v16670_v10, %v16669_v36  ;;  %v13115_v22 = vld [vmem:[%s14865_s2 + $0x518] sm:$0xff]  ;;  %3642 = vmatpush.msrb.mxu0 %v13121_v4  ;;  %v16677_v45 = vld [vmem:[#allocation13_spill] sm:$0xff]  ;;  %v16680_v36 = vld [vmem:[#allocation152_spill] sm:$0xff] }
 0x5cd   :  { %16667 = vst [vmem:[#allocation132_spill] sm:$0xff] %v13100_v38  ;;  %3698 = vmatpush.msra.mxu3 %v13115_v22  ;;  %3659 = vmatpush.msrb.mxu1 %v16674_v63  ;;  %v13128_v10 = vld [vmem:[%s14865_s2 + $0x18] sm:$0xff]  ;;  %v3159_v63 = vpop.f32.mrf.mxu3  ;;  %v16681_v38 = vld [vmem:[#allocation20_spill] sm:$0xff] }
 0x5ce   :  { %16672 = vst [vmem:[#allocation135_spill] sm:$0xff] %v13115_v22  ;;  %v3402_v9 = vadd.f32 %v3120_v60, %v131_v19  ;;  %3682 = vmatpush.msra.mxu2 %v13128_v10  ;;  %v13134_v22 = vld [vmem:[%s14865_s2 + $0x4d8] sm:$0xff]  ;;  %v3139_v19 = vpop.f32.mrf.mxu2  ;;  %v172_v32 = vadd.f32 %v16681_v38, %v16680_v36  ;;  %v16686_v36 = vld [vmem:[#allocation36_spill] sm:$0xff] }
 0x5cf   :  { %16673 = vst [vmem:[#allocation169_spill] sm:$0xff] %v13121_v4  ;;  %3699 = vmatpush.msra.mxu3 %v13134_v22  ;;  %3660 = vmatpush.msrb.mxu1 %v16677_v45  ;;  %v13141_v60 = vld [vmem:[%s14865_s2 + $0x498] sm:$0xff]  ;;  %v3160_v49 = vadd.f32 %v3159_v63, %v3139_v19  ;;  %v3199_v19 = vpop.f32.mrf.mxu1  ;;  %v16685_v63 = vld [vmem:[#allocation144_spill] sm:$0xff] }
 0x5d0   :  { %16675 = vst [vmem:[#allocation74_spill] sm:$0xff] %v13128_v10  ;;  %v4961_v4 = vmul.f32 -1.442695, %v3402_v9  ;;  %v16679_v10 = vld [vmem:[#allocation14_spill] sm:$0xff]  ;;  %v13156_v9 = vld [vmem:[%s14865_s2 + $0x410] sm:$0xff] }
 0x5d1   :  { %16676 = vst [vmem:[#allocation170_spill] sm:$0xff] %v13134_v22  ;;  %3700 = vmatpush.msra.mxu3 %v13141_v60  ;;  %3661 = vmatpush.msrb.mxu1 %v16679_v10  ;;  %v13150_v45 = vld [vmem:[%s14865_s2 + $0x458] sm:$0xff]  ;;  %v3403_v10 = vadd.f32 %v3160_v49, %v172_v32 }
 0x5d2   :  { %16678 = vst [vmem:[#allocation171_spill] sm:$0xff] %v13141_v60  ;;  %5145 = vpow2.f32 %v4961_v4  ;;  %v13162_v38 = vld [vmem:[%s14865_s2 + $0x418] sm:$0xff]  ;;  %v3179_v4 = vpop.f32.mrf.mxu0 }
 0x5d3   :  { %16682 = vst [vmem:[#allocation84_spill] sm:$0xff] %v13150_v45  ;;  %3701 = vmatpush.msra.mxu3 %v13150_v45  ;;  %3662 = vmatpush.msrb.mxu1 %v13156_v9  ;;  %v213_v45 = vadd.f32 %v16686_v36, %v16685_v63  ;;  %v4962_v60 = vmul.f32 -1.442695, %v3403_v10  ;;  %v3200_v22 = vadd.f32 %v3199_v19, %v3179_v4 }
 0x5d4   :  { %16683 = vst [vmem:[#allocation172_spill] sm:$0xff] %v13156_v9 }
 0x5d5   :  { %16684 = vst [vmem:[#allocation173_spill] sm:$0xff] %v13162_v38  ;;  %3702 = vmatpush.msra.mxu3 %v13162_v38  ;;  %5147 = vpow2.f32 %v4962_v60  ;;  %v3404_v8 = vadd.f32 %v3200_v22, %v213_v45  ;;  %v3239_v9 = vpop.f32.mrf.mxu3 }
 0x5d6   :  { %v3219_v49 = vpop.f32.mrf.mxu2 }
 0x5d7   :  { %v4963_v32 = vmul.f32 -1.442695, %v3404_v8  ;;  %v3240_v38 = vadd.f32 %v3239_v9, %v3219_v49 }
 0x5d8   :  { %v5146_v35 = vpop.eup %5145 }
 0x5d9   :  { %v13167_v39 = vadd.f32 1.0, %v5146_v35  ;;  %5149 = vpow2.f32 %v4963_v32  ;;  %v3405_v37 = vadd.f32 %v3240_v38, %v254_v31 }
 0x5db   :  { %v5148_v34 = vpop.eup %5147  ;;  %5151 = vrcp.f32 %v13167_v39  ;;  %v4964_v10 = vmul.f32 -1.442695, %v3405_v37  ;;  %v3429_v15 = vand.u32 2147483648, %v13167_v39  ;;  %vm3423_vm13 = vweird.f32 %v13167_v39 }
 0x5dc   :  { %v13172_v36 = vadd.f32 1.0, %v5148_v34 }
 0x5dd   :  { %5153 = vpow2.f32 %v4964_v10  ;;  %v3259_v38 = vpop.f32.mrf.mxu0  ;;  %v16689_v10 = vld [vmem:[#allocation150_spill] sm:$0xff] }
 0x5de   :  { %5155 = vrcp.f32 %v13172_v36  ;;  %vm3438_vm5 = vweird.f32 %v13172_v36 }
 0x5df   :  { %v5150_v4 = vpop.eup %5149 }
 0x5e0   :  { %v3454_v22 = vadd.f32 1.0, %v5150_v4  ;;  %v16690_v4 = vld [vmem:[#allocation100_spill] sm:$0xff] }
 0x5e1   :  { %v5152_v35 = vpop.eup %5151  ;;  %v295_v18 = vadd.f32 %v16690_v4, %v16689_v10 }
 0x5e2   :  { %5157 = vrcp.f32 %v3454_v22  ;;  %v3419_v8 = vmul.f32 %v5152_v35, %v13167_v39  ;;  %v3467_v41 = vand.u32 2147483648, %v3454_v22  ;;  %vm3461_vm10 = vweird.f32 %v3454_v22 }
 0x5e3   :  { %v5154_v60 = vpop.eup %5153  ;;  %vm3424_vm11 = vweird.f32 %v5152_v35 }
 0x5e4   :  { %v13176_v58 = vadd.f32 1.0, %v5154_v60  ;;  %v13178_v45 = vpop.eup %5155  ;;  %v3420_v19 = vsub.f32 1.0, %v3419_v8  ;;  %v3279_v32 = vpop.f32.mrf.mxu1  ;;  %v3427_v8 = vand.u32 2147483647, %v13167_v39  ;;  %vm13198_vm14 = vmor %vm3423_vm13, %vm3424_vm11 }
 0x5e5   :  { %v3434_v31 = vmul.f32 %v13178_v45, %v13172_v36  ;;  %v3280_v60 = vadd.f32 %v3279_v32, %v3259_v38  ;;  %vm3439_vm3 = vweird.f32 %v13178_v45 }
 0x5e6   :  { %5159 = vrcp.f32 %v13176_v58  ;;  %v3421_v49 = vmul.f32 %v5152_v35, %v3420_v19  ;;  %v3465_v19 = vand.u32 2147483647, %v3454_v22  ;;  %vm13202_vm15 = vcmp.eq.f32.partialorder %v3427_v8, 8.507059e+37  ;;  %vm3440_vm6 = vmor %vm3438_vm5, %vm3439_vm3 }
 0x5e7   :  { %v3435_v1 = vsub.f32 1.0, %v3434_v31  ;;  %v3406_v29 = vadd.f32 %v3280_v60, %v295_v18  ;;  %v16693_v31 = vld [vmem:[#allocation101_spill] sm:$0xff]  ;;  %v3299_v18 = vpop.f32.mrf.mxu2  ;;  %v3468_v60 = vor.u32 1.1754944e-38, %v3467_v41  ;;  %vm3476_vm2 = vweird.f32 %v13176_v58 }
 0x5e8   :  { %v5158_v9 = vpop.eup %5157  ;;  %v3422_v25 = vadd.f32 %v5152_v35, %v3421_v49  ;;  %v336_v38 = vadd.f32 %v16693_v31, %v16057_v59  ;;  %vm3466_vm1 = vcmp.eq.f32.partialorder %v3465_v19, 8.507059e+37  ;;  %v3480_v8 = vand.u32 2147483647, %v13176_v58 }
 0x5e9   :  { %v3457_v34 = vmul.f32 %v5158_v9, %v3454_v22  ;;  %vm3462_vm9 = vweird.f32 %v5158_v9  ;;  %5161 = vtanh.f32 %v3406_v29  ;;  %v3436_v49 = vmul.f32 %v13178_v45, %v3435_v1 }
 0x5ea   :  { %vm13188_vm12 = vmor %vm3461_vm10, %vm3462_vm9  ;;  %v3426_v39 = vsel %vm13198_vm14, %v5152_v35, %v3422_v25  ;;  %v3442_v19 = vand.u32 2147483647, %v13172_v36  ;;  %vm3481_vm7 = vcmp.eq.f32.partialorder %v3480_v8, 8.507059e+37  ;;  %v16701_v8 = vld [vmem:[#allocation143_spill] sm:$0xff] }
 0x5eb   :  { %v3458_v37 = vsub.f32 1.0, %v3457_v34 }
 0x5ec   :  { %v5160_v12 = vpop.eup %5159  ;;  %vm3443_vm8 = vcmp.eq.f32.partialorder %v3442_v19, 8.507059e+37 }
 0x5ed   :  { %v3459_v63 = vmul.f32 %v5158_v9, %v3458_v37  ;;  %v3472_v13 = vmul.f32 %v5160_v12, %v13176_v58  ;;  %vm3477_vm0 = vweird.f32 %v5160_v12 }
 0x5ee   :  { %vm13213_vm4 = vmor %vm3476_vm2, %vm3477_vm0 }
 0x5ef   :  { %v3460_v34 = vadd.f32 %v5158_v9, %v3459_v63  ;;  %v3473_v37 = vsub.f32 1.0, %v3472_v13  ;;  %v3319_v63 = vpop.f32.mrf.mxu3  ;;  %v5162_v31 = vpop.eup %5161 }
 0x5f0   :  { %v3320_v13 = vadd.f32 %v3319_v63, %v3299_v18 }
 0x5f1   :  { %v3464_v32 = vsel %vm13188_vm12, %v5158_v9, %v3460_v34  ;;  %v3474_v22 = vmul.f32 %v5160_v12, %v3473_v37  ;;  %v3430_v9 = vor.u32 1.1754944e-38, %v3429_v15  ;;  %v3482_v34 = vand.u32 2147483648, %v13176_v58 }
 0x5f2   :  { %v3469_v1 = vsel %vm3466_vm1, %v3468_v60, %v3464_v32  ;;  %v3407_v41 = vadd.f32 %v3320_v13, %v336_v38  ;;  %v3437_v37 = vadd.f32 %v13178_v45, %v3436_v49  ;;  %v3444_v15 = vand.u32 2147483648, %v13172_v36 }
 0x5f3   :  { %v3475_v4 = vadd.f32 %v5160_v12, %v3474_v22  ;;  %v3431_v25 = vsel %vm13202_vm15, %v3430_v9, %v3426_v39  ;;  %v3526_v35 = vmul.f32 %v3469_v1, %v12148_v0  ;;  %v3483_v38 = vor.u32 1.1754944e-38, %v3482_v34 }
 0x5f4   :  { %5163 = vtanh.f32 %v3407_v41  ;;  %v3528_v10 = vmul.f32 %v5162_v31, %v3431_v25  ;;  %v3441_v63 = vsel %vm3440_vm6, %v13178_v45, %v3437_v37  ;;  %v3445_v49 = vor.u32 1.1754944e-38, %v3444_v15 }
 0x5f5   :  { %v3479_v58 = vsel %vm13213_vm4, %v5160_v12, %v3475_v4  ;;  %v16700_v12 = vld [vmem:[#allocation142_spill] sm:$0xff]  ;;  %v418_v31 = vadd.f32 %v16701_v8, %v8173_v30 }
 0x5f6   :  { %v13225_v32 = vadd.f32 %v3528_v10, %v3526_v35  ;;  %v3484_v60 = vsel %vm3481_vm7, %v3483_v38, %v3479_v58  ;;  %v3446_v29 = vsel %vm3443_vm8, %v3445_v49, %v3441_v63  ;;  %v377_v34 = vadd.f32 %v16700_v12, %v8130_v61 }
 0x5f7   :  { %v3527_v0 = vmul.f32 %v3484_v60, %v12152_v43 }
 0x5fa   :  { %v5164_v22 = vpop.eup %5163 }
 0x5fb   :  { %v3529_v13 = vmul.f32 %v5164_v22, %v3446_v29 }
 0x5fd   :  { %v13229_v39 = vadd.f32 %v3529_v13, %v3527_v0 }
 0x605   :  { %v3339_v36 = vpop.f32.mrf.mxu0 }
 0x60b   :  { %v3359_v9 = vpop.f32.mrf.mxu1 }
 0x60c   :  { %v3360_v1 = vadd.f32 %v3359_v9, %v3339_v36  ;;  %v3379_v45 = vpop.f32.mrf.mxu2 }
 0x60e   :  { %v3408_v41 = vadd.f32 %v3360_v1, %v377_v34 }
 0x610   :  { %v4965_v4 = vmul.f32 -1.442695, %v3408_v41 }
 0x612   :  { %v3399_v37 = vpop.f32.mrf.mxu3  ;;  %5165 = vpow2.f32 %v4965_v4 }
 0x613   :  { %v3400_v18 = vadd.f32 %v3399_v37, %v3379_v45 }
 0x615   :  { %v3409_v25 = vadd.f32 %v3400_v18, %v418_v31  ;;  %v13245_v18 = vld [vmem:[%s14865_s2 + $0x3e8] sm:$0xff] }
 0x617   :  { %v4966_v43 = vmul.f32 -1.442695, %v3409_v25 }
 0x618   :  { %v5166_v15 = vpop.eup %5165 }
 0x619   :  { %5167 = vpow2.f32 %v4966_v43  ;;  %v3494_v35 = vadd.f32 1.0, %v5166_v15 }
 0x61b   :  { %5169 = vrcp.f32 %v3494_v35  ;;  %v3507_v49 = vand.u32 2147483648, %v3494_v35  ;;  %v3505_v22 = vand.u32 2147483647, %v3494_v35  ;;  %vm3501_vm10 = vweird.f32 %v3494_v35 }
 0x61d   :  { %v3508_v36 = vor.u32 1.1754944e-38, %v3507_v49  ;;  %vm3506_vm12 = vcmp.eq.f32.partialorder %v3505_v22, 8.507059e+37  ;;  %v16721_v49 = vld [vmem:[#allocation31_spill] sm:$0xff]  ;;  %v13423_v22 = vld [vmem:[%s14865_s2 + $0x338] sm:$0xff] }
 0x61f   :  { %v5168_v10 = vpop.eup %5167 }
 0x620   :  { %v3495_v19 = vadd.f32 1.0, %v5168_v10  ;;  %v13261_v10 = vld [vmem:[%s14865_s2 + $0x368] sm:$0xff] }
 0x621   :  { %v5170_v58 = vpop.eup %5169 }
 0x622   :  { %5171 = vrcp.f32 %v3495_v19  ;;  %v3497_v38 = vmul.f32 %v5170_v58, %v3494_v35  ;;  %vm3502_vm9 = vweird.f32 %v5170_v58  ;;  %v3522_v41 = vand.u32 2147483648, %v3495_v19  ;;  %v13252_v35 = vld [vmem:[%s14865_s2 + $0x3a8] sm:$0xff] }
 0x623   :  { %5173 = vtanh.f32 %v13225_v32  ;;  %vm3503_vm11 = vmor %vm3501_vm10, %vm3502_vm9  ;;  %v3520_v37 = vand.u32 2147483647, %v3495_v19  ;;  %vm3516_vm14 = vweird.f32 %v3495_v19 }
 0x624   :  { %v3498_v63 = vsub.f32 1.0, %v3497_v38  ;;  %5175 = vtanh.f32 %v13229_v39  ;;  %v3523_v31 = vor.u32 1.1754944e-38, %v3522_v41  ;;  %v16719_v38 = vld [vmem:[#allocation166_spill] sm:$0xff]  ;;  %v16729_v41 = vld [vmem:[#allocation33_spill] sm:$0xff] }
 0x625   :  { %vm3521_vm0 = vcmp.eq.f32.partialorder %v3520_v37, 8.507059e+37  ;;  %v16731_v37 = vld [vmem:[#allocation86_spill] sm:$0xff] }
 0x626   :  { %v3499_v60 = vmul.f32 %v5170_v58, %v3498_v63  ;;  %v16720_v63 = vld [vmem:[#allocation28_spill] sm:$0xff] }
 0x628   :  { %v5172_v29 = vpop.eup %5171  ;;  %v3500_v0 = vadd.f32 %v5170_v58, %v3499_v60  ;;  %v16722_v60 = vld [vmem:[#allocation77_spill] sm:$0xff] }
 0x629   :  { %v3512_v13 = vmul.f32 %v5172_v29, %v3495_v19  ;;  %v5174_v34 = vpop.eup %5173  ;;  %vm3517_vm13 = vweird.f32 %v5172_v29  ;;  %v16718_v19 = vld [vmem:[#allocation165_spill] sm:$0xff] }
 0x62a   :  { %v3504_v9 = vsel %vm3503_vm11, %v5170_v58, %v3500_v0  ;;  %vm3518_vm15 = vmor %vm3516_vm14, %vm3517_vm13  ;;  %v5176_v43 = vpop.eup %5175  ;;  %v13411_v58 = vld [vmem:[%s14865_s2 + $0x378] sm:$0xff] }
 0x62b   :  { %v3513_v12 = vsub.f32 1.0, %v3512_v13  ;;  %v3509_v1 = vsel %vm3506_vm12, %v3508_v36, %v3504_v9  ;;  %v16724_v0 = vld [vmem:[#allocation34_spill] sm:$0xff]  ;;  %v16725_v13 = vld [vmem:[#allocation83_spill] sm:$0xff] }
 0x62c   :  { %v13237_v4 = vmul.f32 %v5174_v34, %v3509_v1  ;;  %v13432_v36 = vld [vmem:[%s14865_s2 + $0x2f8] sm:$0xff]  ;;  %v16728_v34 = vld [vmem:[#allocation168_spill] sm:$0xff] }
 0x62d   :  { %v3514_v45 = vmul.f32 %v5172_v29, %v3513_v12  ;;  %v16726_v9 = vld [vmem:[#allocation154_spill] sm:$0xff]  ;;  %v16727_v12 = vld [vmem:[#allocation167_spill] sm:$0xff] }
 0x62e   :  { %3563 = vmatmul.f32.vlgmr.msra.gmra.mxu0 %v13237_v4  ;;  %3603 = vmatmul.f32.vlgmr.msrb.gmra.mxu2 %v13237_v4  ;;  %v13441_v1 = vld [vmem:[%s14865_s2 + $0x2b8] sm:$0xff] }
 0x62f   :  { %v3515_v8 = vadd.f32 %v5172_v29, %v3514_v45  ;;  %3707 = vmatpush.msra.mxu0 %v12167_v17  ;;  %3747 = vmatpush.msrb.mxu2 %v13245_v18  ;;  %v16730_v45 = vld [vmem:[#allocation39_spill] sm:$0xff] }
 0x631   :  { %v3519_v25 = vsel %vm3518_vm15, %v5172_v29, %v3515_v8  ;;  %3708 = vmatpush.msra.mxu0 %v12174_v33  ;;  %3748 = vmatpush.msrb.mxu2 %v13252_v35  ;;  %v13271_v33 = vld [vmem:[%s14865_s2 + $0x328] sm:$0xff]  ;;  %v16723_v29 = vld [vmem:[#allocation30_spill] sm:$0xff] }
 0x632   :  { %v3524_v15 = vsel %vm3521_vm0, %v3523_v31, %v3519_v25  ;;  %v13450_v8 = vld [vmem:[%s14865_s2 + $0x278] sm:$0xff]  ;;  %v16732_v31 = vld [vmem:[#allocation37_spill] sm:$0xff] }
 0x633   :  { %v13255_v17 = vmul.f32 %v5176_v43, %v3524_v15  ;;  %3709 = vmatpush.msra.mxu0 %v12183_v48  ;;  %3749 = vmatpush.msrb.mxu2 %v13261_v10  ;;  %v13282_v48 = vld [vmem:[%s14865_s2 + $0x2e8] sm:$0xff]  ;;  %v16733_v25 = vld [vmem:[#allocation41_spill] sm:$0xff]  ;;  %v13459_v15 = vld [vmem:[%s14865_s2 + $0x238] sm:$0xff] }
 0x634   :  { %v16734_v43 = vld [vmem:[#allocation89_spill] sm:$0xff] }
 0x635   :  { %3583 = vmatmul.f32.vlgmr.msra.gmra.mxu1 %v13255_v17  ;;  %3623 = vmatmul.f32.vlgmr.msrb.gmra.mxu3 %v13255_v17 }
 0x636   :  { %3710 = vmatpush.msra.mxu0 %v12192_v26  ;;  %3727 = vmatpush.msra.mxu1 %v12198_v62  ;;  %v13291_v26 = vld [vmem:[%s14865_s2 + $0x2a8] sm:$0xff] }
 0x637   :  { %3750 = vmatpush.msrb.mxu2 %v13271_v33  ;;  %3767 = vmatpush.msrb.mxu3 %v12205_v23  ;;  %v13300_v62 = vld [vmem:[%s14865_s2 + $0x268] sm:$0xff] }
 0x638   :  { %3643 = vmatmul.f32.vlgmr.msrb.gmra.mxu0 %v13237_v4  ;;  %3683 = vmatmul.f32.vlgmr.msra.gmra.mxu2 %v13237_v4  ;;  %v13311_v23 = vld [vmem:[%s14865_s2 + $0x228] sm:$0xff] }
 0x639   :  { %3711 = vmatpush.msra.mxu0 %v12213_v24  ;;  %3728 = vmatpush.msra.mxu1 %v12219_v6  ;;  %v13320_v24 = vld [vmem:[%s14865_s2 + $0x1e8] sm:$0xff] }
 0x63a   :  { %3751 = vmatpush.msrb.mxu2 %v13282_v48  ;;  %3768 = vmatpush.msrb.mxu3 %v12226_v51  ;;  %v13329_v6 = vld [vmem:[%s14865_s2 + $0x1a8] sm:$0xff] }
 0x63b   :  { %3712 = vmatpush.msra.mxu0 %v12232_v7  ;;  %3729 = vmatpush.msra.mxu1 %v12238_v16  ;;  %v13338_v51 = vld [vmem:[%s14865_s2 + $0x168] sm:$0xff] }
 0x63c   :  { %3752 = vmatpush.msrb.mxu2 %v13291_v26  ;;  %3769 = vmatpush.msrb.mxu3 %v12245_v57  ;;  %v13347_v7 = vld [vmem:[%s14865_s2 + $0x128] sm:$0xff] }
 0x63d   :  { %3713 = vmatpush.msra.mxu0 %v12251_v40  ;;  %3730 = vmatpush.msra.mxu1 %v12257_v55  ;;  %v13356_v16 = vld [vmem:[%s14865_s2 + $0xe8] sm:$0xff]  ;;  %v16703_v40 = vld [vmem:[#allocation35_spill] sm:$0xff] }
 0x63e   :  { %3753 = vmatpush.msrb.mxu2 %v13300_v62  ;;  %3770 = vmatpush.msrb.mxu3 %v12264_v5  ;;  %v16702_v57 = vld [vmem:[#allocation32_spill] sm:$0xff]  ;;  %v16704_v55 = vld [vmem:[#allocation95_spill] sm:$0xff] }
 0x63f   :  { %3663 = vmatmul.f32.vlgmr.msrb.gmra.mxu1 %v13255_v17  ;;  %3703 = vmatmul.f32.vlgmr.msra.gmra.mxu3 %v13255_v17  ;;  %v13365_v5 = vld [vmem:[%s14865_s2 + $0xa8] sm:$0xff] }
 0x640   :  { %3714 = vmatpush.msra.mxu0 %v12272_v47  ;;  %3731 = vmatpush.msra.mxu1 %v12278_v46  ;;  %v16705_v47 = vld [vmem:[#allocation96_spill] sm:$0xff]  ;;  %v16706_v46 = vld [vmem:[#allocation155_spill] sm:$0xff] }
 0x641   :  { %3754 = vmatpush.msrb.mxu2 %v13311_v23  ;;  %3771 = vmatpush.msrb.mxu3 %v12285_v42  ;;  %v16707_v42 = vld [vmem:[#allocation156_spill] sm:$0xff] }
 0x642   :  { %3715 = vmatpush.msra.mxu0 %v12291_v27  ;;  %3732 = vmatpush.msra.mxu1 %v12297_v20  ;;  %v13374_v27 = vld [vmem:[%s14865_s2 + $0x68] sm:$0xff]  ;;  %v16708_v20 = vld [vmem:[#allocation21_spill] sm:$0xff] }
 0x643   :  { %3755 = vmatpush.msrb.mxu2 %v13320_v24  ;;  %3772 = vmatpush.msrb.mxu3 %v12304_v28  ;;  %v16709_v28 = vld [vmem:[#allocation158_spill] sm:$0xff] }
 0x644   :  { %3716 = vmatpush.msra.mxu0 %v12310_v53  ;;  %3733 = vmatpush.msra.mxu1 %v12316_v56  ;;  %v16710_v53 = vld [vmem:[#allocation159_spill] sm:$0xff]  ;;  %v13383_v56 = vld [vmem:[%s14865_s2 + $0x28] sm:$0xff] }
 0x645   :  { %3756 = vmatpush.msrb.mxu2 %v13329_v6  ;;  %3773 = vmatpush.msrb.mxu3 %v12323_v54  ;;  %v16711_v54 = vld [vmem:[#allocation24_spill] sm:$0xff] }
 0x646   :  { %3717 = vmatpush.msra.mxu0 %v12329_v14  ;;  %3734 = vmatpush.msra.mxu1 %v12335_v44  ;;  %v16712_v14 = vld [vmem:[#allocation161_spill] sm:$0xff]  ;;  %v13393_v44 = vld [vmem:[%s14865_s2 + $0x3f8] sm:$0xff] }
 0x647   :  { %3757 = vmatpush.msrb.mxu2 %v13338_v51  ;;  %3774 = vmatpush.msrb.mxu3 %v12342_v3  ;;  %v16713_v3 = vld [vmem:[#allocation162_spill] sm:$0xff] }
 0x648   :  { %3718 = vmatpush.msra.mxu0 %v12348_v2  ;;  %3735 = vmatpush.msra.mxu1 %v12354_v11  ;;  %v16714_v2 = vld [vmem:[#allocation25_spill] sm:$0xff] }
 0x649   :  { %3758 = vmatpush.msrb.mxu2 %v13347_v7  ;;  %3775 = vmatpush.msrb.mxu3 %v12361_v50  ;;  %v16715_v11 = vld [vmem:[#allocation73_spill] sm:$0xff]  ;;  %v13402_v50 = vld [vmem:[%s14865_s2 + $0x3b8] sm:$0xff] }
 0x64a   :  { %3719 = vmatpush.msra.mxu0 %v12367_v21  ;;  %3736 = vmatpush.msra.mxu1 %v12373_v52  ;;  %v16716_v21 = vld [vmem:[#allocation164_spill] sm:$0xff]  ;;  %v16717_v52 = vld [vmem:[#allocation26_spill] sm:$0xff] }
 0x64b   :  { %3759 = vmatpush.msrb.mxu2 %v13356_v16  ;;  %3776 = vmatpush.msrb.mxu3 %v16702_v57  ;;  %v16735_v57 = vld [vmem:[#allocation40_spill] sm:$0xff] }
 0x64c   :  { %3720 = vmatpush.msra.mxu0 %v16703_v40  ;;  %3737 = vmatpush.msra.mxu1 %v16704_v55  ;;  %v16736_v40 = vld [vmem:[#allocation43_spill] sm:$0xff]  ;;  %v16737_v55 = vld [vmem:[#allocation92_spill] sm:$0xff] }
 0x64d   :  { %3760 = vmatpush.msrb.mxu2 %v13365_v5  ;;  %3777 = vmatpush.msrb.mxu3 %v16705_v47  ;;  %v13468_v47 = vld [vmem:[%s14865_s2 + $0x1f8] sm:$0xff] }
 0x64e   :  { %3721 = vmatpush.msra.mxu0 %v16706_v46  ;;  %3738 = vmatpush.msra.mxu1 %v16707_v42  ;;  %v16738_v46 = vld [vmem:[#allocation42_spill] sm:$0xff] }
 0x64f   :  { %3761 = vmatpush.msrb.mxu2 %v13374_v27  ;;  %3778 = vmatpush.msrb.mxu3 %v16708_v20  ;;  %v16739_v42 = vld [vmem:[#allocation46_spill] sm:$0xff]  ;;  %v16740_v20 = vld [vmem:[#allocation97_spill] sm:$0xff] }
 0x650   :  { %3722 = vmatpush.msra.mxu0 %v16709_v28  ;;  %3739 = vmatpush.msra.mxu1 %v16710_v53  ;;  %v13477_v28 = vld [vmem:[%s14865_s2 + $0x1b8] sm:$0xff]  ;;  %v16741_v53 = vld [vmem:[#allocation44_spill] sm:$0xff] }
 0x651   :  { %3762 = vmatpush.msrb.mxu2 %v13383_v56  ;;  %3779 = vmatpush.msrb.mxu3 %v16711_v54  ;;  %v16742_v54 = vld [vmem:[#allocation51_spill] sm:$0xff] }
 0x652   :  { %3723 = vmatmul.f32.vlgmr.msra.gmra.mxu0 %v13237_v4  ;;  %3763 = vmatmul.f32.vlgmr.msrb.gmra.mxu2 %v13237_v4 }
 0x653   :  { %3787 = vmatpush.msrb.mxu0 %v16712_v14  ;;  %3827 = vmatpush.msra.mxu2 %v13393_v44  ;;  %v16743_v14 = vld [vmem:[#allocation102_spill] sm:$0xff] }
 0x654   :  { %3740 = vmatpush.msra.mxu1 %v16713_v3  ;;  %3780 = vmatpush.msrb.mxu3 %v16714_v2  ;;  %v13486_v3 = vld [vmem:[%s14865_s2 + $0x178] sm:$0xff] }
 0x655   :  { %3788 = vmatpush.msrb.mxu0 %v16715_v11  ;;  %3828 = vmatpush.msra.mxu2 %v13402_v50  ;;  %v13492_v2 = vld [vmem:[%s14865_s2 + $0x638] sm:$0xff]  ;;  %v16744_v11 = vld [vmem:[#allocation48_spill] sm:$0xff] }
 0x656   :  { %3741 = vmatpush.msra.mxu1 %v16716_v21  ;;  %3781 = vmatpush.msrb.mxu3 %v16717_v52  ;;  %v16745_v21 = vld [vmem:[#allocation56_spill] sm:$0xff]  ;;  %v13500_v52 = vld [vmem:[%s14865_s2 + $0x138] sm:$0xff] }
 0x657   :  { %3789 = vmatpush.msrb.mxu0 %v16718_v19  ;;  %3829 = vmatpush.msra.mxu2 %v13411_v58  ;;  %v13506_v19 = vld [vmem:[%s14865_s2 + $0x5f8] sm:$0xff] }
 0x658   :  { %3742 = vmatpush.msra.mxu1 %v16719_v38  ;;  %3782 = vmatpush.msrb.mxu3 %v16720_v63  ;;  %v16746_v38 = vld [vmem:[#allocation105_spill] sm:$0xff]  ;;  %v16747_v63 = vld [vmem:[#allocation54_spill] sm:$0xff] }
 0x659   :  { %3743 = vmatmul.f32.vlgmr.msra.gmra.mxu1 %v13255_v17  ;;  %3783 = vmatmul.f32.vlgmr.msrb.gmra.mxu3 %v13255_v17 }
 0x65a   :  { %3790 = vmatpush.msrb.mxu0 %v16721_v49  ;;  %3807 = vmatpush.msrb.mxu1 %v16722_v60  ;;  %v13514_v49 = vld [vmem:[%s14865_s2 + $0xf8] sm:$0xff] }
 0x65b   :  { %3830 = vmatpush.msra.mxu2 %v13423_v22  ;;  %3847 = vmatpush.msra.mxu3 %v16723_v29  ;;  %v13520_v60 = vld [vmem:[%s14865_s2 + $0x5b8] sm:$0xff]  ;;  %v16748_v29 = vld [vmem:[#allocation59_spill] sm:$0xff] }
 0x65c   :  { %3791 = vmatpush.msrb.mxu0 %v16724_v0  ;;  %3808 = vmatpush.msrb.mxu1 %v16725_v13  ;;  %v16749_v0 = vld [vmem:[#allocation57_spill] sm:$0xff]  ;;  %v13528_v13 = vld [vmem:[%s14865_s2 + $0xb8] sm:$0xff] }
 0x65d   :  { %3831 = vmatpush.msra.mxu2 %v13432_v36  ;;  %3848 = vmatpush.msra.mxu3 %v16726_v9  ;;  %16750 = vst [vmem:[#allocation87_spill] sm:$0xff] %v13528_v13  ;;  %v13534_v9 = vld [vmem:[%s14865_s2 + $0x578] sm:$0xff] }
 0x65e   :  { %3792 = vmatpush.msrb.mxu0 %v16727_v12  ;;  %3809 = vmatpush.msrb.mxu1 %v16728_v34  ;;  %16751 = vst [vmem:[#allocation174_spill] sm:$0xff] %v13534_v9  ;;  %v16752_v12 = vld [vmem:[#allocation108_spill] sm:$0xff] }
 0x65f   :  { %3832 = vmatpush.msra.mxu2 %v13441_v1  ;;  %3849 = vmatpush.msra.mxu3 %v16729_v41  ;;  %v16753_v34 = vld [vmem:[#allocation60_spill] sm:$0xff]  ;;  %v13542_v41 = vld [vmem:[%s14865_s2 + $0x78] sm:$0xff] }
 0x660   :  { %3793 = vmatpush.msrb.mxu0 %v16730_v45  ;;  %3810 = vmatpush.msrb.mxu1 %v16731_v37  ;;  %16754 = vst [vmem:[#allocation90_spill] sm:$0xff] %v13542_v41  ;;  %v13548_v45 = vld [vmem:[%s14865_s2 + $0x538] sm:$0xff]  ;;  %v16756_v37 = vld [vmem:[#allocation15_spill] sm:$0xff] }
 0x661   :  { %3833 = vmatpush.msra.mxu2 %v13450_v8  ;;  %3850 = vmatpush.msra.mxu3 %v16732_v31  ;;  %16755 = vst [vmem:[#allocation112_spill] sm:$0xff] %v13548_v45  ;;  %v16757_v31 = vld [vmem:[#allocation45_spill] sm:$0xff] }
 0x662   :  { %3794 = vmatpush.msrb.mxu0 %v16733_v25  ;;  %3811 = vmatpush.msrb.mxu1 %v16734_v43  ;;  %v13556_v25 = vld [vmem:[%s14865_s2 + $0x38] sm:$0xff] }
 0x663   :  { %3834 = vmatpush.msra.mxu2 %v13459_v15  ;;  %3851 = vmatpush.msra.mxu3 %v16735_v57  ;;  %16758 = vst [vmem:[#allocation93_spill] sm:$0xff] %v13556_v25  ;;  %v13562_v43 = vld [vmem:[%s14865_s2 + $0x4f8] sm:$0xff]  ;;  %v16760_v57 = vld [vmem:[#allocation157_spill] sm:$0xff] }
 0x664   :  { %3795 = vmatpush.msrb.mxu0 %v16736_v40  ;;  %3812 = vmatpush.msrb.mxu1 %v16737_v55  ;;  %16759 = vst [vmem:[#allocation118_spill] sm:$0xff] %v13562_v43  ;;  %v13571_v40 = vld [vmem:[%s14865_s2 + $0x4b8] sm:$0xff]  ;;  %v6034_v55 = vld [vmem:[%s14865_s2 + $0x3c0] sm:$0xff] }
 0x665   :  { %3835 = vmatpush.msra.mxu2 %v13468_v47  ;;  %3852 = vmatpush.msra.mxu3 %v16738_v46  ;;  %16761 = vst [vmem:[#allocation98_spill] sm:$0xff] %v13571_v40  ;;  %v6035_v46 = vld [vmem:[%s14865_s2 + $0x3c8] sm:$0xff] }
 0x666   :  { %3796 = vmatpush.msrb.mxu0 %v16739_v42  ;;  %3813 = vmatpush.msrb.mxu1 %v16740_v20  ;;  %v13584_v42 = vld [vmem:[%s14865_s2 + $0x478] sm:$0xff]  ;;  %v6037_v20 = vld [vmem:[%s14865_s2 + $0x380] sm:$0xff] }
 0x667   :  { %3836 = vmatpush.msra.mxu2 %v13477_v28  ;;  %3853 = vmatpush.msra.mxu3 %v16741_v53  ;;  %16763 = vst [vmem:[#allocation123_spill] sm:$0xff] %v13584_v42  ;;  %v6038_v53 = vld [vmem:[%s14865_s2 + $0x388] sm:$0xff] }
 0x668   :  { %3797 = vmatpush.msrb.mxu0 %v16742_v54  ;;  %3814 = vmatpush.msrb.mxu1 %v16743_v14  ;;  %v16764_v54 = vld [vmem:[#allocation160_spill] sm:$0xff]  ;;  %v13597_v14 = vld [vmem:[%s14865_s2 + $0x438] sm:$0xff] }
 0x669   :  { %3837 = vmatpush.msra.mxu2 %v13486_v3  ;;  %3854 = vmatpush.msra.mxu3 %v13492_v2  ;;  %16765 = vst [vmem:[#allocation103_spill] sm:$0xff] %v13597_v14 }
 0x66a   :  { %3798 = vmatpush.msrb.mxu0 %v16744_v11  ;;  %3815 = vmatpush.msrb.mxu1 %v16745_v21  ;;  %v6040_v11 = vld [vmem:[%s14865_s2 + $0x340] sm:$0xff]  ;;  %v6041_v21 = vld [vmem:[%s14865_s2 + $0x348] sm:$0xff] }
 0x66b   :  { %3838 = vmatpush.msra.mxu2 %v13500_v52  ;;  %3855 = vmatpush.msra.mxu3 %v13506_v19 }
 0x66c   :  { %3799 = vmatpush.msrb.mxu0 %v16746_v38  ;;  %3816 = vmatpush.msrb.mxu1 %v16747_v63  ;;  %v16766_v38 = vld [vmem:[#allocation111_spill] sm:$0xff]  ;;  %v6042_v63 = vld [vmem:[%s14865_s2 + $0x7c8] sm:$0xff] }
 0x66d   :  { %3839 = vmatpush.msra.mxu2 %v13514_v49  ;;  %3856 = vmatpush.msra.mxu3 %v13520_v60 }
 0x66e   :  { %3800 = vmatpush.msrb.mxu0 %v16748_v29  ;;  %3817 = vmatpush.msrb.mxu1 %v16749_v0  ;;  %v6044_v29 = vld [vmem:[%s14865_s2 + $0x308] sm:$0xff]  ;;  %v16767_v0 = vld [vmem:[#allocation163_spill] sm:$0xff] }
 0x66f   :  { %3840 = vmatpush.msra.mxu2 %v13528_v13  ;;  %3857 = vmatpush.msra.mxu3 %v13534_v9 }
 0x670   :  { %3801 = vmatpush.msrb.mxu0 %v16752_v12  ;;  %3818 = vmatpush.msrb.mxu1 %v16753_v34  ;;  %v6045_v12 = vld [vmem:[%s14865_s2 + $0x788] sm:$0xff]  ;;  %v6046_v34 = vld [vmem:[%s14865_s2 + $0x2c0] sm:$0xff] }
 0x671   :  { %3841 = vmatpush.msra.mxu2 %v13542_v41  ;;  %3858 = vmatpush.msra.mxu3 %v13548_v45 }
 0x672   :  { %3802 = vmatpush.msrb.mxu0 %v16756_v37  ;;  %3819 = vmatpush.msrb.mxu1 %v16757_v31  ;;  %v6047_v37 = vld [vmem:[%s14865_s2 + $0x2c8] sm:$0xff] }
 0x673   :  { %3842 = vmatpush.msra.mxu2 %v13556_v25  ;;  %3859 = vmatpush.msra.mxu3 %v13562_v43  ;;  %v16768_v31 = vld [vmem:[#allocation16_spill] sm:$0xff] }
 0x674   :  { %3803 = vmatmul.f32.vlgmr.msrb.gmra.mxu0 %v13237_v4  ;;  %3843 = vmatmul.f32.vlgmr.msra.gmra.mxu2 %v13237_v4  ;;  %v16762_v4 = vld [vmem:[#allocation62_spill] sm:$0xff] }
 0x675   :  { %3820 = vmatpush.msrb.mxu1 %v16760_v57  ;;  %3860 = vmatpush.msra.mxu3 %v13571_v40  ;;  %v6048_v57 = vld [vmem:[%s14865_s2 + $0x748] sm:$0xff] }
 0x676   :  { %4012 = vmatpush.msra.mxu0 %v6034_v55  ;;  %4052 = vmatpush.msrb.mxu2 %v6035_v46  ;;  %v6049_v55 = vld [vmem:[%s14865_s2 + $0x280] sm:$0xff]  ;;  %v6050_v46 = vld [vmem:[%s14865_s2 + $0x288] sm:$0xff] }
 0x677   :  { %3821 = vmatpush.msrb.mxu1 %v16762_v4  ;;  %3861 = vmatpush.msra.mxu3 %v13584_v42  ;;  %v16769_v4 = vld [vmem:[#allocation49_spill] sm:$0xff] }
 0x678   :  { %4013 = vmatpush.msra.mxu0 %v6037_v20  ;;  %4053 = vmatpush.msrb.mxu2 %v6038_v53  ;;  %v6051_v20 = vld [vmem:[%s14865_s2 + $0x708] sm:$0xff]  ;;  %v6052_v53 = vld [vmem:[%s14865_s2 + $0x240] sm:$0xff] }
 0x679   :  { %3822 = vmatpush.msrb.mxu1 %v16764_v54  ;;  %3862 = vmatpush.msra.mxu3 %v13597_v14  ;;  %v6053_v54 = vld [vmem:[%s14865_s2 + $0x248] sm:$0xff] }
 0x67a   :  { %3823 = vmatmul.f32.vlgmr.msrb.gmra.mxu1 %v13255_v17  ;;  %3863 = vmatmul.f32.vlgmr.msra.gmra.mxu3 %v13255_v17  ;;  %v6043_v17 = vld [vmem:[%s14865_s2 + $0x300] sm:$0xff] }
 0x67b   :  { %4014 = vmatpush.msra.mxu0 %v6040_v11  ;;  %4054 = vmatpush.msrb.mxu2 %v6041_v21  ;;  %v16770_v11 = vld [vmem:[#allocation64_spill] sm:$0xff] }
 0x67c   :  { %4032 = vmatpush.msra.mxu1 %v16766_v38  ;;  %4072 = vmatpush.msrb.mxu3 %v6042_v63  ;;  %v6054_v21 = vld [vmem:[%s14865_s2 + $0x6c8] sm:$0xff]  ;;  %v6055_v38 = vld [vmem:[%s14865_s2 + $0x200] sm:$0xff] }
 0x67d   :  { %4015 = vmatpush.msra.mxu0 %v6043_v17  ;;  %4055 = vmatpush.msrb.mxu2 %v6044_v29  ;;  %v6056_v63 = vld [vmem:[%s14865_s2 + $0x208] sm:$0xff]  ;;  %v16771_v17 = vld [vmem:[#allocation117_spill] sm:$0xff] }
 0x67e   :  { %4033 = vmatpush.msra.mxu1 %v16767_v0  ;;  %4073 = vmatpush.msrb.mxu3 %v6045_v12  ;;  %v6057_v29 = vld [vmem:[%s14865_s2 + $0x688] sm:$0xff]  ;;  %v6058_v0 = vld [vmem:[%s14865_s2 + $0x1c0] sm:$0xff] }
 0x67f   :  { %4016 = vmatpush.msra.mxu0 %v6046_v34  ;;  %4056 = vmatpush.msrb.mxu2 %v6047_v37  ;;  %v6059_v12 = vld [vmem:[%s14865_s2 + $0x1c8] sm:$0xff]  ;;  %v16772_v34 = vld [vmem:[#allocation27_spill] sm:$0xff] }
 0x680   :  { %4034 = vmatpush.msra.mxu1 %v16768_v31  ;;  %4074 = vmatpush.msrb.mxu3 %v6048_v57  ;;  %v6060_v37 = vld [vmem:[%s14865_s2 + $0x648] sm:$0xff]  ;;  %v6061_v31 = vld [vmem:[%s14865_s2 + $0x180] sm:$0xff] }
 0x681   :  { %4017 = vmatpush.msra.mxu0 %v6049_v55  ;;  %4057 = vmatpush.msrb.mxu2 %v6050_v46  ;;  %v6062_v57 = vld [vmem:[%s14865_s2 + $0x188] sm:$0xff]  ;;  %v16773_v55 = vld [vmem:[#allocation29_spill] sm:$0xff] }
 0x682   :  { %4035 = vmatpush.msra.mxu1 %v16769_v4  ;;  %4075 = vmatpush.msrb.mxu3 %v6051_v20  ;;  %v6063_v46 = vld [vmem:[%s14865_s2 + $0x608] sm:$0xff]  ;;  %v6064_v4 = vld [vmem:[%s14865_s2 + $0x140] sm:$0xff] }
 0x683   :  { %4018 = vmatpush.msra.mxu0 %v6052_v53  ;;  %4058 = vmatpush.msrb.mxu2 %v6053_v54  ;;  %v6065_v20 = vld [vmem:[%s14865_s2 + $0x148] sm:$0xff]  ;;  %v16774_v53 = vld [vmem:[#allocation81_spill] sm:$0xff] }
 0x684   :  { %4036 = vmatpush.msra.mxu1 %v16770_v11  ;;  %4076 = vmatpush.msrb.mxu3 %v6054_v21  ;;  %v6066_v54 = vld [vmem:[%s14865_s2 + $0x5c8] sm:$0xff]  ;;  %v6067_v11 = vld [vmem:[%s14865_s2 + $0x100] sm:$0xff] }
 0x685   :  { %4019 = vmatpush.msra.mxu0 %v6055_v38  ;;  %4059 = vmatpush.msrb.mxu2 %v6056_v63  ;;  %v6068_v21 = vld [vmem:[%s14865_s2 + $0x108] sm:$0xff]  ;;  %v16775_v38 = vld [vmem:[#allocation82_spill] sm:$0xff] }
 0x686   :  { %4037 = vmatpush.msra.mxu1 %v16771_v17  ;;  %4077 = vmatpush.msrb.mxu3 %v6057_v29  ;;  %v6069_v63 = vld [vmem:[%s14865_s2 + $0x588] sm:$0xff]  ;;  %v6070_v17 = vld [vmem:[%s14865_s2 + $0xc0] sm:$0xff] }
 0x687   :  { %4020 = vmatpush.msra.mxu0 %v6058_v0  ;;  %4060 = vmatpush.msrb.mxu2 %v6059_v12  ;;  %v6071_v29 = vld [vmem:[%s14865_s2 + $0xc8] sm:$0xff] }
 0x688   :  { %4038 = vmatpush.msra.mxu1 %v16772_v34  ;;  %4078 = vmatpush.msrb.mxu3 %v6060_v37  ;;  %v16776_v0 = vld [vmem:[#allocation140_spill] sm:$0xff]  ;;  %v6073_v34 = vld [vmem:[%s14865_s2 + $0x80] sm:$0xff] }
 0x689   :  { %4021 = vmatpush.msra.mxu0 %v6061_v31  ;;  %4061 = vmatpush.msrb.mxu2 %v6062_v57  ;;  %v6072_v12 = vld [vmem:[%s14865_s2 + $0x548] sm:$0xff]  ;;  %v16777_v31 = vld [vmem:[#allocation141_spill] sm:$0xff] }
 0x68a   :  { %4039 = vmatpush.msra.mxu1 %v16773_v55  ;;  %4079 = vmatpush.msrb.mxu3 %v6063_v46  ;;  %v6074_v37 = vld [vmem:[%s14865_s2 + $0x88] sm:$0xff]  ;;  %v6076_v55 = vld [vmem:[%s14865_s2 + $0x40] sm:$0xff] }
 0x68b   :  { %4022 = vmatpush.msra.mxu0 %v6064_v4  ;;  %4062 = vmatpush.msrb.mxu2 %v6065_v20  ;;  %v6075_v57 = vld [vmem:[%s14865_s2 + $0x508] sm:$0xff] }
 0x68c   :  { %4040 = vmatpush.msra.mxu1 %v16774_v53  ;;  %4080 = vmatpush.msrb.mxu3 %v6066_v54  ;;  %v6077_v46 = vld [vmem:[%s14865_s2 + $0x48] sm:$0xff]  ;;  %v6079_v53 = vld [vmem:[%s14865_s2] sm:$0xff] }
 0x68d   :  { %4023 = vmatpush.msra.mxu0 %v6067_v11  ;;  %4063 = vmatpush.msrb.mxu2 %v6068_v21  ;;  %v16778_v4 = vld [vmem:[#allocation68_spill] sm:$0xff]  ;;  %v6081_v11 = vld [vmem:[%s14865_s2 + $0x3d0] sm:$0xff]  ;;  %v16779_v21 = vld [vmem:[#allocation58_spill] sm:$0xff] }
 0x68e   :  { %4041 = vmatpush.msra.mxu1 %v16775_v38  ;;  %4081 = vmatpush.msrb.mxu3 %v6069_v63  ;;  %v6078_v20 = vld [vmem:[%s14865_s2 + $0x4c8] sm:$0xff]  ;;  %v16780_v38 = vld [vmem:[#allocation126_spill] sm:$0xff] }
 0x68f   :  { %4024 = vmatpush.msra.mxu0 %v6070_v17  ;;  %4064 = vmatpush.msrb.mxu2 %v6071_v29  ;;  %v6080_v54 = vld [vmem:[%s14865_s2 + $0x8] sm:$0xff]  ;;  %v6083_v17 = vld [vmem:[%s14865_s2 + $0x390] sm:$0xff]  ;;  %v16781_v29 = vld [vmem:[#allocation75_spill] sm:$0xff] }
 0x690   :  { %4042 = vmatpush.msra.mxu1 %v16776_v0  ;;  %4082 = vmatpush.msrb.mxu3 %v6072_v12  ;;  %v6082_v63 = vld [vmem:[%s14865_s2 + $0x488] sm:$0xff]  ;;  %v16782_v0 = vld [vmem:[#allocation63_spill] sm:$0xff] }
 0x691   :  { %4025 = vmatpush.msra.mxu0 %v6073_v34  ;;  %4065 = vmatpush.msrb.mxu2 %v6074_v37  ;;  %v6084_v12 = vld [vmem:[%s14865_s2 + $0x448] sm:$0xff]  ;;  %v6085_v34 = vld [vmem:[%s14865_s2 + $0x350] sm:$0xff] }
 0x692   :  { %4043 = vmatpush.msra.mxu1 %v16777_v31  ;;  %4083 = vmatpush.msrb.mxu3 %v6075_v57  ;;  %v16783_v37 = vld [vmem:[#allocation133_spill] sm:$0xff]  ;;  %v16784_v31 = vld [vmem:[#allocation78_spill] sm:$0xff]  ;;  %v6086_v57 = vld [vmem:[%s14865_s2 + $0x408] sm:$0xff] }
 0x693   :  { %4026 = vmatpush.msra.mxu0 %v6076_v55  ;;  %4066 = vmatpush.msrb.mxu2 %v6077_v46  ;;  %v6087_v55 = vld [vmem:[%s14865_s2 + $0x310] sm:$0xff]  ;;  %v16785_v46 = vld [vmem:[#allocation79_spill] sm:$0xff] }
 0x694   :  { %4044 = vmatpush.msra.mxu1 %v16778_v4  ;;  %4084 = vmatpush.msrb.mxu3 %v6078_v20  ;;  %v16786_v4 = vld [vmem:[#allocation80_spill] sm:$0xff]  ;;  %v6088_v20 = vld [vmem:[%s14865_s2 + $0x7d8] sm:$0xff] }
 0x695   :  { %4027 = vmatpush.msra.mxu0 %v6079_v53  ;;  %4067 = vmatpush.msrb.mxu2 %v6080_v54  ;;  %v6089_v53 = vld [vmem:[%s14865_s2 + $0x2d0] sm:$0xff] }
 0x696   :  { %4045 = vmatpush.msra.mxu1 %v16780_v38  ;;  %4085 = vmatpush.msrb.mxu3 %v6082_v63  ;;  %v16787_v54 = vld [vmem:[#allocation85_spill] sm:$0xff]  ;;  %v16790_v63 = vld [vmem:[#allocation94_spill] sm:$0xff] }
 0x697   :  { %4092 = vmatpush.msrb.mxu0 %v6081_v11  ;;  %4132 = vmatpush.msra.mxu2 %v16779_v21  ;;  %v16788_v11 = vld [vmem:[#allocation88_spill] sm:$0xff]  ;;  %v16789_v21 = vld [vmem:[#allocation91_spill] sm:$0xff]  ;;  %v6090_v38 = vld [vmem:[%s14865_s2 + $0x290] sm:$0xff] }
 0x698   :  { %4046 = vmatpush.msra.mxu1 %v16782_v0  ;;  %4086 = vmatpush.msrb.mxu3 %v6084_v12  ;;  %v6091_v0 = vld [vmem:[%s14865_s2 + $0x250] sm:$0xff]  ;;  %v16793_v12 = vld [vmem:[#allocation55_spill] sm:$0xff] }
 0x699   :  { %4093 = vmatpush.msrb.mxu0 %v6083_v17  ;;  %4133 = vmatpush.msra.mxu2 %v16781_v29  ;;  %v16791_v17 = vld [vmem:[#allocation99_spill] sm:$0xff] }
 0x69a   :  { %4047 = vmatpush.msra.mxu1 %v16784_v31  ;;  %4087 = vmatpush.msrb.mxu3 %v6086_v57  ;;  %v16792_v29 = vld [vmem:[#allocation11_spill] sm:$0xff]  ;;  %v6092_v31 = vld [vmem:[%s14865_s2 + $0x210] sm:$0xff]  ;;  %v16796_v57 = vld [vmem:[#allocation12_spill] sm:$0xff] }
 0x69b   :  { %4094 = vmatpush.msrb.mxu0 %v6085_v34  ;;  %4134 = vmatpush.msra.mxu2 %v16783_v37  ;;  %v16794_v34 = vld [vmem:[#allocation106_spill] sm:$0xff]  ;;  %v16795_v37 = vld [vmem:[#allocation72_spill] sm:$0xff] }
 0x69c   :  { %4112 = vmatpush.msrb.mxu1 %v16785_v46  ;;  %4152 = vmatpush.msra.mxu3 %v6088_v20  ;;  %v16798_v46 = vld [vmem:[#allocation23_spill] sm:$0xff]  ;;  %v16799_v20 = vld [vmem:[#allocation69_spill] sm:$0xff] }
 0x69d   :  { %4095 = vmatpush.msrb.mxu0 %v6087_v55  ;;  %4135 = vmatpush.msra.mxu2 %v16786_v4  ;;  %v16797_v55 = vld [vmem:[#allocation22_spill] sm:$0xff]  ;;  %v6093_v4 = vld [vmem:[%s14865_s2 + $0x1d0] sm:$0xff] }
 0x69e   :  { %4113 = vmatpush.msrb.mxu1 %v16787_v54  ;;  %4153 = vmatpush.msra.mxu3 %v16789_v21  ;;  %v16801_v54 = vld [vmem:[#allocation136_spill] sm:$0xff]  ;;  %v16802_v21 = vld [vmem:[#allocation137_spill] sm:$0xff] }
 0x69f   :  { %4096 = vmatpush.msrb.mxu0 %v6089_v53  ;;  %4136 = vmatpush.msra.mxu2 %v16788_v11  ;;  %v16800_v53 = vld [vmem:[#allocation70_spill] sm:$0xff]  ;;  %v6094_v11 = vld [vmem:[%s14865_s2 + $0x190] sm:$0xff] }
 0x6a0   :  { %4114 = vmatpush.msrb.mxu1 %v16790_v63  ;;  %4154 = vmatpush.msra.mxu3 %v16792_v29  ;;  %v16804_v63 = vld [vmem:[#allocation61_spill] sm:$0xff] }
 0x6a1   :  { %4097 = vmatpush.msrb.mxu0 %v6090_v38  ;;  %4137 = vmatpush.msra.mxu2 %v16791_v17  ;;  %v16803_v38 = vld [vmem:[#allocation110_spill] sm:$0xff]  ;;  %v6095_v17 = vld [vmem:[%s14865_s2 + $0x150] sm:$0xff] }
 0x6a2   :  { %4115 = vmatpush.msrb.mxu1 %v16793_v12  ;;  %4155 = vmatpush.msra.mxu3 %v16795_v37  ;;  %v6096_v29 = vld [vmem:[%s14865_s2 + $0x610] sm:$0xff]  ;;  %v16806_v12 = vld [vmem:[#allocation120_spill] sm:$0xff] }
 0x6a3   :  { %4098 = vmatpush.msrb.mxu0 %v6091_v0  ;;  %4138 = vmatpush.msra.mxu2 %v16794_v34  ;;  %v16805_v0 = vld [vmem:[#allocation119_spill] sm:$0xff]  ;;  %v6097_v34 = vld [vmem:[%s14865_s2 + $0x110] sm:$0xff] }
 0x6a4   :  { %4116 = vmatpush.msrb.mxu1 %v16796_v57  ;;  %4156 = vmatpush.msra.mxu3 %v16798_v46  ;;  %v6098_v37 = vld [vmem:[%s14865_s2 + $0x5d0] sm:$0xff]  ;;  %v16808_v57 = vld [vmem:[#allocation124_spill] sm:$0xff] }
 0x6a5   :  { %4099 = vmatpush.msrb.mxu0 %v6092_v31  ;;  %4139 = vmatpush.msra.mxu2 %v16797_v55  ;;  %v16807_v31 = vld [vmem:[#allocation130_spill] sm:$0xff]  ;;  %v6099_v55 = vld [vmem:[%s14865_s2 + $0xd0] sm:$0xff] }
 0x6a6   :  { %4117 = vmatpush.msrb.mxu1 %v16799_v20  ;;  %4157 = vmatpush.msra.mxu3 %v16801_v54  ;;  %v6100_v46 = vld [vmem:[%s14865_s2 + $0x590] sm:$0xff] }
 0x6a7   :  { %4100 = vmatpush.msrb.mxu0 %v6093_v4  ;;  %4140 = vmatpush.msra.mxu2 %v16800_v53  ;;  %v16809_v4 = vld [vmem:[#allocation76_spill] sm:$0xff]  ;;  %v16810_v20 = vld [vmem:[#allocation125_spill] sm:$0xff] }
 0x6a8   :  { %4118 = vmatpush.msrb.mxu1 %v16802_v21  ;;  %4158 = vmatpush.msra.mxu3 %v16804_v63  ;;  %v16811_v53 = vld [vmem:[#allocation128_spill] sm:$0xff]  ;;  %v6101_v54 = vld [vmem:[%s14865_s2 + $0x550] sm:$0xff] }
 0x6a9   :  { %4101 = vmatpush.msrb.mxu0 %v6094_v11  ;;  %4141 = vmatpush.msra.mxu2 %v16803_v38  ;;  %v16812_v11 = vld [vmem:[#allocation67_spill] sm:$0xff]  ;;  %v16813_v21 = vld [vmem:[#allocation129_spill] sm:$0xff] }
 0x6aa   :  { %4119 = vmatpush.msrb.mxu1 %v6096_v29  ;;  %4159 = vmatpush.msra.mxu3 %v16806_v12  ;;  %v6102_v29 = vld [vmem:[%s14865_s2 + $0x510] sm:$0xff]  ;;  %v16816_v12 = vld [vmem:[#allocation3_spill] sm:$0xff] }
 0x6ab   :  { %4102 = vmatpush.msrb.mxu0 %v6095_v17  ;;  %4142 = vmatpush.msra.mxu2 %v16805_v0  ;;  %v3564_v38 = vpop.f32.mrf.mxu0  ;;  %v16814_v17 = vld [vmem:[#allocation132_spill] sm:$0xff]  ;;  %v16815_v0 = vld [vmem:[#allocation145_spill] sm:$0xff] }
 0x6ac   :  { %4120 = vmatpush.msrb.mxu1 %v6098_v37  ;;  %4160 = vmatpush.msra.mxu3 %v16808_v57  ;;  %v16818_v57 = vld [vmem:[#allocation135_spill] sm:$0xff] }
 0x6ad   :  { %4103 = vmatpush.msrb.mxu0 %v6097_v34  ;;  %4143 = vmatpush.msra.mxu2 %v16807_v31  ;;  %v134_v34 = vadd.f32 %v16816_v12, %v16815_v0  ;;  %v16817_v31 = vld [vmem:[#allocation71_spill] sm:$0xff]  ;;  %v16824_v12 = vld [vmem:[#allocation4_spill] sm:$0xff] }
 0x6ae   :  { %4121 = vmatpush.msrb.mxu1 %v6100_v46  ;;  %4161 = vmatpush.msra.mxu3 %v16810_v20  ;;  %v6103_v46 = vld [vmem:[%s14865_s2 + $0x4d0] sm:$0xff]  ;;  %v16820_v20 = vld [vmem:[#allocation74_spill] sm:$0xff] }
 0x6af   :  { %4104 = vmatpush.msrb.mxu0 %v6099_v55  ;;  %4144 = vmatpush.msra.mxu2 %v16809_v4  ;;  %v16819_v55 = vld [vmem:[#allocation169_spill] sm:$0xff] }
 0x6b0   :  { %4122 = vmatpush.msrb.mxu1 %v6101_v54  ;;  %4162 = vmatpush.msra.mxu3 %v16813_v21  ;;  %v6104_v54 = vld [vmem:[%s14865_s2 + $0x490] sm:$0xff]  ;;  %v16822_v21 = vld [vmem:[#allocation171_spill] sm:$0xff] }
 0x6b1   :  { %4105 = vmatpush.msrb.mxu0 %v16811_v53  ;;  %4145 = vmatpush.msra.mxu2 %v16812_v11  ;;  %v16821_v53 = vld [vmem:[#allocation170_spill] sm:$0xff] }
 0x6b2   :  { %v3584_v63 = vpop.f32.mrf.mxu1  ;;  %4123 = vmatpush.msrb.mxu1 %v6102_v29  ;;  %4163 = vmatpush.msra.mxu3 %v16818_v57  ;;  %v16823_v29 = vld [vmem:[#allocation152_spill] sm:$0xff] }
 0x6b3   :  { %4106 = vmatpush.msrb.mxu0 %v16814_v17  ;;  %v3585_v37 = vadd.f32 %v3584_v63, %v3564_v38  ;;  %4146 = vmatpush.msra.mxu2 %v16817_v31  ;;  %v3604_v38 = vpop.f32.mrf.mxu2  ;;  %v6105_v17 = vld [vmem:[%s14865_s2 + $0x450] sm:$0xff]  ;;  %v16825_v31 = vld [vmem:[#allocation84_spill] sm:$0xff] }
 0x6b4   :  { %4124 = vmatpush.msrb.mxu1 %v6103_v46  ;;  %4164 = vmatpush.msra.mxu3 %v16821_v53  ;;  %v16826_v57 = vld [vmem:[#allocation172_spill] sm:$0xff]  ;;  %v16827_v46 = vld [vmem:[#allocation173_spill] sm:$0xff] }
 0x6b5   :  { %4107 = vmatpush.msrb.mxu0 %v16819_v55  ;;  %v3867_v4 = vadd.f32 %v3585_v37, %v134_v34  ;;  %4147 = vmatpush.msra.mxu2 %v16820_v20  ;;  %v175_v34 = vadd.f32 %v16824_v12, %v16823_v29  ;;  %v16828_v53 = vld [vmem:[#allocation144_spill] sm:$0xff] }
 0x6b6   :  { %4125 = vmatpush.msrb.mxu1 %v6104_v54  ;;  %4165 = vmatpush.msra.mxu3 %v16822_v21  ;;  %v16829_v54 = vld [vmem:[#allocation47_spill] sm:$0xff] }
 0x6b7   :  { %v4967_v11 = vmul.f32 -1.442695, %v3867_v4  ;;  %v3644_v4 = vpop.f32.mrf.mxu0  ;;  %v216_v21 = vadd.f32 %v16829_v54, %v16828_v53 }
 0x6b8   :  { %v3624_v63 = vpop.f32.mrf.mxu3  ;;  %4126 = vmatpush.msrb.mxu1 %v6105_v17  ;;  %4166 = vmatpush.msra.mxu3 %v16825_v31  ;;  %v16830_v31 = vld [vmem:[#allocation151_spill] sm:$0xff] }
 0x6b9   :  { %5177 = vpow2.f32 %v4967_v11  ;;  %v3625_v37 = vadd.f32 %v3624_v63, %v3604_v38 }
 0x6ba   :  { %4127 = vmatpush.msrb.mxu1 %v16826_v57  ;;  %4167 = vmatpush.msra.mxu3 %v16827_v46  ;;  %v16831_v57 = vld [vmem:[#allocation50_spill] sm:$0xff] }
 0x6bb   :  { %v3868_v55 = vadd.f32 %v3625_v37, %v175_v34  ;;  %v3684_v38 = vpop.f32.mrf.mxu2  ;;  %v257_v34 = vadd.f32 %v16831_v57, %v16830_v31 }
 0x6bc   :  { %v3664_v20 = vpop.f32.mrf.mxu1 }
 0x6bd   :  { %v4968_v0 = vmul.f32 -1.442695, %v3868_v55  ;;  %v3665_v14 = vadd.f32 %v3664_v20, %v3644_v4 }
 0x6bf   :  { %v5178_v17 = vpop.eup %5177  ;;  %5179 = vpow2.f32 %v4968_v0  ;;  %v3869_v42 = vadd.f32 %v3665_v14, %v216_v21 }
 0x6c0   :  { %v13864_v12 = vadd.f32 1.0, %v5178_v17 }
 0x6c1   :  { %v4969_v11 = vmul.f32 -1.442695, %v3869_v42 }
 0x6c2   :  { %v3704_v63 = vpop.f32.mrf.mxu3  ;;  %v3894_v25 = vand.u32 2147483648, %v13864_v12  ;;  %vm3888_vm5 = vweird.f32 %v13864_v12 }
 0x6c3   :  { %5181 = vpow2.f32 %v4969_v11  ;;  %v3705_v37 = vadd.f32 %v3704_v63, %v3684_v38 }
 0x6c4   :  { %5183 = vrcp.f32 %v13864_v12 }
 0x6c5   :  { %v5180_v46 = vpop.eup %5179  ;;  %v3870_v29 = vadd.f32 %v3705_v37, %v257_v34 }
 0x6c6   :  { %v13869_v54 = vadd.f32 1.0, %v5180_v46 }
 0x6c7   :  { %v4970_v55 = vmul.f32 -1.442695, %v3870_v29 }
 0x6c8   :  { %vm3903_vm13 = vweird.f32 %v13869_v54 }
 0x6c9   :  { %v5182_v4 = vpop.eup %5181  ;;  %5185 = vpow2.f32 %v4970_v55  ;;  %v16832_v55 = vld [vmem:[#allocation150_spill] sm:$0xff] }
 0x6ca   :  { %v3919_v14 = vadd.f32 1.0, %v5182_v4  ;;  %v5184_v0 = vpop.eup %5183  ;;  %5187 = vrcp.f32 %v13869_v54  ;;  %v16833_v4 = vld [vmem:[#allocation121_spill] sm:$0xff] }
 0x6cb   :  { %v3884_v42 = vmul.f32 %v5184_v0, %v13864_v12  ;;  %v298_v31 = vadd.f32 %v16833_v4, %v16832_v55  ;;  %vm3889_vm3 = vweird.f32 %v5184_v0 }
 0x6cc   :  { %5189 = vrcp.f32 %v3919_v14  ;;  %v3932_v45 = vand.u32 2147483648, %v3919_v14  ;;  %vm3926_vm2 = vweird.f32 %v3919_v14  ;;  %vm13895_vm6 = vmor %vm3888_vm5, %vm3889_vm3 }
 0x6cd   :  { %v3885_v38 = vsub.f32 1.0, %v3884_v42  ;;  %v3892_v42 = vand.u32 2147483647, %v13864_v12 }
 0x6cf   :  { %v5186_v20 = vpop.eup %5185  ;;  %v3724_v34 = vpop.f32.mrf.mxu0  ;;  %v3886_v46 = vmul.f32 %v5184_v0, %v3885_v38  ;;  %v3930_v38 = vand.u32 2147483647, %v3919_v14  ;;  %vm13899_vm7 = vcmp.eq.f32.partialorder %v3892_v42, 8.507059e+37 }
 0x6d0   :  { %v13873_v21 = vadd.f32 1.0, %v5186_v20  ;;  %v13875_v17 = vpop.eup %5187 }
 0x6d1   :  { %v3899_v29 = vmul.f32 %v13875_v17, %v13869_v54  ;;  %v3887_v13 = vadd.f32 %v5184_v0, %v3886_v46  ;;  %vm3931_vm9 = vcmp.eq.f32.partialorder %v3930_v38, 8.507059e+37  ;;  %vm3904_vm11 = vweird.f32 %v13875_v17 }
 0x6d2   :  { %v5190_v11 = vpop.eup %5189  ;;  %5191 = vrcp.f32 %v13873_v21  ;;  %vm3941_vm10 = vweird.f32 %v13873_v21  ;;  %v3945_v42 = vand.u32 2147483647, %v13873_v21  ;;  %v3907_v38 = vand.u32 2147483647, %v13869_v54  ;;  %vm3905_vm14 = vmor %vm3903_vm13, %vm3904_vm11 }
 0x6d3   :  { %v3922_v63 = vmul.f32 %v5190_v11, %v3919_v14  ;;  %v3900_v43 = vsub.f32 1.0, %v3899_v29  ;;  %vm3927_vm1 = vweird.f32 %v5190_v11  ;;  %v16836_v29 = vld [vmem:[#allocation122_spill] sm:$0xff]  ;;  %v3891_v12 = vsel %vm13895_vm6, %v5184_v0, %v3887_v13 }
 0x6d4   :  { %vm13885_vm4 = vmor %vm3926_vm2, %vm3927_vm1  ;;  %vm3946_vm15 = vcmp.eq.f32.partialorder %v3945_v42, 8.507059e+37  ;;  %vm3908_vm0 = vcmp.eq.f32.partialorder %v3907_v38, 8.507059e+37  ;;  %v16844_v42 = vld [vmem:[#allocation147_spill] sm:$0xff] }
 0x6d5   :  { %v3923_v57 = vsub.f32 1.0, %v3922_v63  ;;  %v3901_v46 = vmul.f32 %v13875_v17, %v3900_v43 }
 0x6d6   :  { %v3744_v37 = vpop.f32.mrf.mxu1 }
 0x6d7   :  { %v3924_v53 = vmul.f32 %v5190_v11, %v3923_v57  ;;  %v3745_v20 = vadd.f32 %v3744_v37, %v3724_v34  ;;  %v339_v34 = vadd.f32 %v16836_v29, %v16057_v59 }
 0x6d8   :  { %v5192_v40 = vpop.eup %5191 }
 0x6d9   :  { %v3937_v41 = vmul.f32 %v5192_v40, %v13873_v21  ;;  %v3871_v9 = vadd.f32 %v3745_v20, %v298_v31  ;;  %v3925_v63 = vadd.f32 %v5190_v11, %v3924_v53  ;;  %v3764_v31 = vpop.f32.mrf.mxu2  ;;  %v3933_v20 = vor.u32 1.1754944e-38, %v3932_v45 }
 0x6da   :  { %vm3942_vm8 = vweird.f32 %v5192_v40 }
 0x6db   :  { %v3938_v57 = vsub.f32 1.0, %v3937_v41  ;;  %5193 = vtanh.f32 %v3871_v9  ;;  %v3929_v37 = vsel %vm13885_vm4, %v5190_v11, %v3925_v63  ;;  %v3895_v11 = vor.u32 1.1754944e-38, %v3894_v25  ;;  %vm13910_vm12 = vmor %vm3941_vm10, %vm3942_vm8 }
 0x6dc   :  { %v3784_v53 = vpop.f32.mrf.mxu3  ;;  %v3947_v63 = vand.u32 2147483648, %v13873_v21  ;;  %v3934_v43 = vsel %vm3931_vm9, %v3933_v20, %v3929_v37  ;;  %v3909_v25 = vand.u32 2147483648, %v13869_v54 }
 0x6dd   :  { %v3939_v14 = vmul.f32 %v5192_v40, %v3938_v57  ;;  %v3785_v41 = vadd.f32 %v3784_v53, %v3764_v31  ;;  %v3902_v57 = vadd.f32 %v13875_v17, %v3901_v46  ;;  %v3896_v13 = vsel %vm13899_vm7, %v3895_v11, %v3891_v12 }
 0x6de   :  { %v3991_v0 = vmul.f32 %v3934_v43, %v13225_v32  ;;  %v3910_v46 = vor.u32 1.1754944e-38, %v3909_v25 }
 0x6df   :  { %v3872_v45 = vadd.f32 %v3785_v41, %v339_v34  ;;  %v3940_v4 = vadd.f32 %v5192_v40, %v3939_v14  ;;  %v3948_v34 = vor.u32 1.1754944e-38, %v3947_v63  ;;  %v3906_v53 = vsel %vm3905_vm14, %v13875_v17, %v3902_v57 }
 0x6e0   :  { %v3911_v9 = vsel %vm3908_vm0, %v3910_v46, %v3906_v53 }
 0x6e1   :  { %v5194_v29 = vpop.eup %5193  ;;  %5195 = vtanh.f32 %v3872_v45  ;;  %v3944_v21 = vsel %vm13910_vm12, %v5192_v40, %v3940_v4  ;;  %v16843_v40 = vld [vmem:[#allocation146_spill] sm:$0xff] }
 0x6e2   :  { %v3993_v55 = vmul.f32 %v5194_v29, %v3896_v13  ;;  %v3949_v20 = vsel %vm3946_vm15, %v3948_v34, %v3944_v21  ;;  %v380_v63 = vadd.f32 %v16843_v40, %v8130_v61  ;;  %v421_v29 = vadd.f32 %v16844_v42, %v8173_v30 }
 0x6e3   :  { %v3992_v32 = vmul.f32 %v3949_v20, %v13229_v39 }
 0x6e4   :  { %v13922_v37 = vadd.f32 %v3993_v55, %v3991_v0 }
 0x6e7   :  { %v5196_v14 = vpop.eup %5195 }
 0x6e8   :  { %v3994_v41 = vmul.f32 %v5196_v14, %v3911_v9 }
 0x6ea   :  { %v13926_v12 = vadd.f32 %v3994_v41, %v3992_v32 }
 0x6f1   :  { %v3804_v54 = vpop.f32.mrf.mxu0 }
 0x6f7   :  { %v3824_v11 = vpop.f32.mrf.mxu1  ;;  %v3844_v17 = vpop.f32.mrf.mxu2 }
 0x6f8   :  { %v3825_v43 = vadd.f32 %v3824_v11, %v3804_v54 }
 0x6fa   :  { %v3873_v45 = vadd.f32 %v3825_v43, %v380_v63 }
 0x6fc   :  { %v4971_v4 = vmul.f32 -1.442695, %v3873_v45 }
 0x6fd   :  { %v3864_v57 = vpop.f32.mrf.mxu3 }
 0x6fe   :  { %5197 = vpow2.f32 %v4971_v4  ;;  %v3865_v31 = vadd.f32 %v3864_v57, %v3844_v17 }
 0x700   :  { %v3874_v13 = vadd.f32 %v3865_v31, %v421_v29  ;;  %v6106_v31 = vld [vmem:[%s14865_s2 + $0x3e0] sm:$0xff] }
 0x702   :  { %v4972_v39 = vmul.f32 -1.442695, %v3874_v13 }
 0x704   :  { %v5198_v25 = vpop.eup %5197  ;;  %5199 = vpow2.f32 %v4972_v39 }
 0x705   :  { %v3959_v0 = vadd.f32 1.0, %v5198_v25 }
 0x707   :  { %5201 = vrcp.f32 %v3959_v0  ;;  %v3972_v46 = vand.u32 2147483648, %v3959_v0  ;;  %v3970_v14 = vand.u32 2147483647, %v3959_v0  ;;  %vm3966_vm2 = vweird.f32 %v3959_v0 }
 0x709   :  { %v3973_v54 = vor.u32 1.1754944e-38, %v3972_v46  ;;  %vm3971_vm4 = vcmp.eq.f32.partialorder %v3970_v14, 8.507059e+37  ;;  %v6116_v46 = vld [vmem:[%s14865_s2 + $0x760] sm:$0xff] }
 0x70a   :  { %v5200_v55 = vpop.eup %5199  ;;  %v6119_v14 = vld [vmem:[%s14865_s2 + $0x720] sm:$0xff] }
 0x70b   :  { %v3960_v38 = vadd.f32 1.0, %v5200_v55 }
 0x70d   :  { %v5202_v21 = vpop.eup %5201  ;;  %5203 = vrcp.f32 %v3960_v38  ;;  %v3987_v45 = vand.u32 2147483648, %v3960_v38  ;;  %v3985_v57 = vand.u32 2147483647, %v3960_v38  ;;  %vm3981_vm6 = vweird.f32 %v3960_v38 }
 0x70e   :  { %v3962_v34 = vmul.f32 %v5202_v21, %v3959_v0  ;;  %5205 = vtanh.f32 %v13922_v37  ;;  %vm3967_vm1 = vweird.f32 %v5202_v21  ;;  %v6107_v0 = vld [vmem:[%s14865_s2 + $0x3a0] sm:$0xff] }
 0x70f   :  { %vm3968_vm3 = vmor %vm3966_vm2, %vm3967_vm1  ;;  %5207 = vtanh.f32 %v13926_v12  ;;  %v3988_v29 = vor.u32 1.1754944e-38, %v3987_v45  ;;  %vm3986_vm8 = vcmp.eq.f32.partialorder %v3985_v57, 8.507059e+37  ;;  %v6133_v45 = vld [vmem:[%s14865_s2 + $0x120] sm:$0xff] }
 0x710   :  { %v3963_v53 = vsub.f32 1.0, %v3962_v34  ;;  %v6113_v34 = vld [vmem:[%s14865_s2 + $0x7a0] sm:$0xff] }
 0x711   :  { %v6136_v57 = vld [vmem:[%s14865_s2 + $0xe0] sm:$0xff] }
 0x712   :  { %v3964_v20 = vmul.f32 %v5202_v21, %v3963_v53  ;;  %v6115_v53 = vld [vmem:[%s14865_s2 + $0x2a0] sm:$0xff] }
 0x713   :  { %v5204_v9 = vpop.eup %5203 }
 0x714   :  { %v3965_v32 = vadd.f32 %v5202_v21, %v3964_v20  ;;  %v3977_v41 = vmul.f32 %v5204_v9, %v3960_v38  ;;  %v5206_v63 = vpop.eup %5205  ;;  %vm3982_vm5 = vweird.f32 %v5204_v9  ;;  %v6108_v38 = vld [vmem:[%s14865_s2 + $0x360] sm:$0xff] }
 0x715   :  { %vm3983_vm7 = vmor %vm3981_vm6, %vm3982_vm5  ;;  %v5208_v39 = vpop.eup %5207  ;;  %v6118_v20 = vld [vmem:[%s14865_s2 + $0x260] sm:$0xff] }
 0x716   :  { %v3969_v11 = vsel %vm3968_vm3, %v5202_v21, %v3965_v32  ;;  %v3978_v40 = vsub.f32 1.0, %v3977_v41  ;;  %v6112_v21 = vld [vmem:[%s14865_s2 + $0x2e0] sm:$0xff] }
 0x717   :  { %v3974_v43 = vsel %vm3971_vm4, %v3973_v54, %v3969_v11  ;;  %v6122_v32 = vld [vmem:[%s14865_s2 + $0x6e0] sm:$0xff] }
 0x718   :  { %v13934_v4 = vmul.f32 %v5206_v63, %v3974_v43  ;;  %v3979_v17 = vmul.f32 %v5204_v9, %v3978_v40  ;;  %v6124_v41 = vld [vmem:[%s14865_s2 + $0x1e0] sm:$0xff] }
 0x719   :  { %v6125_v54 = vld [vmem:[%s14865_s2 + $0x6a0] sm:$0xff] }
 0x71a   :  { %v3980_v42 = vadd.f32 %v5204_v9, %v3979_v17  ;;  %4028 = vmatmul.f32.vlgmr.msra.gmra.mxu0 %v13934_v4  ;;  %4068 = vmatmul.f32.vlgmr.msrb.gmra.mxu2 %v13934_v4  ;;  %v6127_v11 = vld [vmem:[%s14865_s2 + $0x1a0] sm:$0xff] }
 0x71b   :  { %4172 = vmatpush.msra.mxu0 %v6106_v31  ;;  %4212 = vmatpush.msrb.mxu2 %v13245_v18  ;;  %v6109_v18 = vld [vmem:[%s14865_s2 + $0x320] sm:$0xff] }
 0x71c   :  { %v3984_v13 = vsel %vm3983_vm7, %v5204_v9, %v3980_v42  ;;  %v6121_v9 = vld [vmem:[%s14865_s2 + $0x220] sm:$0xff] }
 0x71d   :  { %v3989_v25 = vsel %vm3986_vm8, %v3988_v29, %v3984_v13  ;;  %4173 = vmatpush.msra.mxu0 %v6107_v0  ;;  %4213 = vmatpush.msrb.mxu2 %v13252_v35  ;;  %v6110_v35 = vld [vmem:[%s14865_s2 + $0x7e0] sm:$0xff] }
 0x71e   :  { %v13946_v55 = vmul.f32 %v5208_v39, %v3989_v25  ;;  %v6128_v40 = vld [vmem:[%s14865_s2 + $0x660] sm:$0xff] }
 0x71f   :  { %4174 = vmatpush.msra.mxu0 %v6108_v38  ;;  %4214 = vmatpush.msrb.mxu2 %v13261_v10  ;;  %v6111_v10 = vld [vmem:[%s14865_s2 + $0x7e8] sm:$0xff]  ;;  %v6130_v63 = vld [vmem:[%s14865_s2 + $0x160] sm:$0xff]  ;;  %v6148_v38 = vld [vmem:[%s14865_s2 + $0x3f0] sm:$0xff] }
 0x720   :  { %4048 = vmatmul.f32.vlgmr.msra.gmra.mxu1 %v13946_v55  ;;  %4088 = vmatmul.f32.vlgmr.msrb.gmra.mxu3 %v13946_v55  ;;  %v6131_v43 = vld [vmem:[%s14865_s2 + $0x620] sm:$0xff] }
 0x721   :  { %4175 = vmatpush.msra.mxu0 %v6109_v18  ;;  %4192 = vmatpush.msra.mxu1 %v6110_v35  ;;  %v6134_v17 = vld [vmem:[%s14865_s2 + $0x5e0] sm:$0xff]  ;;  %v6150_v18 = vld [vmem:[%s14865_s2 + $0x4a8] sm:$0xff]  ;;  %v6151_v35 = vld [vmem:[%s14865_s2 + $0x3b0] sm:$0xff] }
 0x722   :  { %4215 = vmatpush.msrb.mxu2 %v13271_v33  ;;  %4232 = vmatpush.msrb.mxu3 %v6111_v10  ;;  %v6114_v33 = vld [vmem:[%s14865_s2 + $0x7a8] sm:$0xff]  ;;  %v6137_v42 = vld [vmem:[%s14865_s2 + $0x5a0] sm:$0xff] }
 0x723   :  { %4108 = vmatmul.f32.vlgmr.msrb.gmra.mxu0 %v13934_v4  ;;  %4148 = vmatmul.f32.vlgmr.msra.gmra.mxu2 %v13934_v4  ;;  %v6139_v29 = vld [vmem:[%s14865_s2 + $0xa0] sm:$0xff]  ;;  %v6153_v10 = vld [vmem:[%s14865_s2 + $0x468] sm:$0xff] }
 0x724   :  { %4176 = vmatpush.msra.mxu0 %v6112_v21  ;;  %4193 = vmatpush.msra.mxu1 %v6113_v34  ;;  %v6140_v31 = vld [vmem:[%s14865_s2 + $0x560] sm:$0xff]  ;;  %v6154_v21 = vld [vmem:[%s14865_s2 + $0x370] sm:$0xff]  ;;  %v6156_v34 = vld [vmem:[%s14865_s2 + $0x428] sm:$0xff] }
 0x725   :  { %4216 = vmatpush.msrb.mxu2 %v13282_v48  ;;  %4233 = vmatpush.msrb.mxu3 %v6114_v33  ;;  %v6117_v48 = vld [vmem:[%s14865_s2 + $0x768] sm:$0xff]  ;;  %v6142_v13 = vld [vmem:[%s14865_s2 + $0x60] sm:$0xff]  ;;  %v6157_v33 = vld [vmem:[%s14865_s2 + $0x330] sm:$0xff] }
 0x726   :  { %4177 = vmatpush.msra.mxu0 %v6115_v53  ;;  %4194 = vmatpush.msra.mxu1 %v6116_v46  ;;  %v6143_v39 = vld [vmem:[%s14865_s2 + $0x520] sm:$0xff]  ;;  %v6159_v53 = vld [vmem:[%s14865_s2 + $0x7f8] sm:$0xff]  ;;  %v6160_v46 = vld [vmem:[%s14865_s2 + $0x2f0] sm:$0xff] }
 0x727   :  { %4217 = vmatpush.msrb.mxu2 %v13291_v26  ;;  %4234 = vmatpush.msrb.mxu3 %v6117_v48  ;;  %v6120_v26 = vld [vmem:[%s14865_s2 + $0x728] sm:$0xff]  ;;  %v6145_v25 = vld [vmem:[%s14865_s2 + $0x20] sm:$0xff]  ;;  %v6161_v48 = vld [vmem:[%s14865_s2 + $0x7b0] sm:$0xff] }
 0x728   :  { %4178 = vmatpush.msra.mxu0 %v6118_v20  ;;  %4195 = vmatpush.msra.mxu1 %v6119_v14  ;;  %v6146_v0 = vld [vmem:[%s14865_s2 + $0x4e0] sm:$0xff]  ;;  %v6163_v20 = vld [vmem:[%s14865_s2 + $0x2b0] sm:$0xff] }
 0x729   :  { %4218 = vmatpush.msrb.mxu2 %v13300_v62  ;;  %4235 = vmatpush.msrb.mxu3 %v6120_v26  ;;  %v6123_v62 = vld [vmem:[%s14865_s2 + $0x6e8] sm:$0xff]  ;;  %v6164_v14 = vld [vmem:[%s14865_s2 + $0x770] sm:$0xff] }
 0x72a   :  { %4128 = vmatmul.f32.vlgmr.msrb.gmra.mxu1 %v13946_v55  ;;  %4168 = vmatmul.f32.vlgmr.msra.gmra.mxu3 %v13946_v55  ;;  %v6166_v26 = vld [vmem:[%s14865_s2 + $0x270] sm:$0xff] }
 0x72b   :  { %4179 = vmatpush.msra.mxu0 %v6121_v9  ;;  %4196 = vmatpush.msra.mxu1 %v6122_v32  ;;  %v6167_v9 = vld [vmem:[%s14865_s2 + $0x730] sm:$0xff] }
 0x72c   :  { %4219 = vmatpush.msrb.mxu2 %v13311_v23  ;;  %4236 = vmatpush.msrb.mxu3 %v6123_v62  ;;  %v6126_v23 = vld [vmem:[%s14865_s2 + $0x6a8] sm:$0xff]  ;;  %v6169_v32 = vld [vmem:[%s14865_s2 + $0x230] sm:$0xff] }
 0x72d   :  { %4180 = vmatpush.msra.mxu0 %v6124_v41  ;;  %4197 = vmatpush.msra.mxu1 %v6125_v54  ;;  %v6170_v62 = vld [vmem:[%s14865_s2 + $0x6f0] sm:$0xff] }
 0x72e   :  { %4220 = vmatpush.msrb.mxu2 %v13320_v24  ;;  %4237 = vmatpush.msrb.mxu3 %v6126_v23  ;;  %v6129_v24 = vld [vmem:[%s14865_s2 + $0x668] sm:$0xff]  ;;  %v6172_v41 = vld [vmem:[%s14865_s2 + $0x1f0] sm:$0xff] }
 0x72f   :  { %4181 = vmatpush.msra.mxu0 %v6127_v11  ;;  %4198 = vmatpush.msra.mxu1 %v6128_v40  ;;  %v6173_v54 = vld [vmem:[%s14865_s2 + $0x6b0] sm:$0xff] }
 0x730   :  { %4221 = vmatpush.msrb.mxu2 %v13329_v6  ;;  %4238 = vmatpush.msrb.mxu3 %v6129_v24  ;;  %v6132_v6 = vld [vmem:[%s14865_s2 + $0x628] sm:$0xff]  ;;  %v6175_v23 = vld [vmem:[%s14865_s2 + $0x1b0] sm:$0xff] }
 0x731   :  { %4182 = vmatpush.msra.mxu0 %v6130_v63  ;;  %4199 = vmatpush.msra.mxu1 %v6131_v43  ;;  %v6176_v11 = vld [vmem:[%s14865_s2 + $0x670] sm:$0xff]  ;;  %v16845_v43 = vld [vmem:[#allocation87_spill] sm:$0xff] }
 0x732   :  { %4222 = vmatpush.msrb.mxu2 %v13338_v51  ;;  %4239 = vmatpush.msrb.mxu3 %v6132_v6  ;;  %v6135_v51 = vld [vmem:[%s14865_s2 + $0x5e8] sm:$0xff]  ;;  %v6178_v40 = vld [vmem:[%s14865_s2 + $0x170] sm:$0xff]  ;;  %v16846_v6 = vld [vmem:[#allocation174_spill] sm:$0xff] }
 0x733   :  { %4183 = vmatpush.msra.mxu0 %v6133_v45  ;;  %4200 = vmatpush.msra.mxu1 %v6134_v17  ;;  %v6179_v24 = vld [vmem:[%s14865_s2 + $0x630] sm:$0xff]  ;;  %v16847_v45 = vld [vmem:[#allocation90_spill] sm:$0xff]  ;;  %v16848_v17 = vld [vmem:[#allocation112_spill] sm:$0xff] }
 0x734   :  { %4223 = vmatpush.msrb.mxu2 %v13347_v7  ;;  %4240 = vmatpush.msrb.mxu3 %v6135_v51  ;;  %v6138_v7 = vld [vmem:[%s14865_s2 + $0x5a8] sm:$0xff]  ;;  %v6181_v63 = vld [vmem:[%s14865_s2 + $0x5f0] sm:$0xff] }
 0x735   :  { %4184 = vmatpush.msra.mxu0 %v6136_v57  ;;  %4201 = vmatpush.msra.mxu1 %v6137_v42  ;;  %v6188_v51 = vld [vmem:[%s14865_s2 + $0x30] sm:$0xff] }
 0x736   :  { %4224 = vmatpush.msrb.mxu2 %v13356_v16  ;;  %4241 = vmatpush.msrb.mxu3 %v6138_v7  ;;  %v6141_v16 = vld [vmem:[%s14865_s2 + $0x568] sm:$0xff]  ;;  %v6189_v57 = vld [vmem:[%s14865_s2 + $0x4f0] sm:$0xff]  ;;  %v16850_v7 = vld [vmem:[#allocation118_spill] sm:$0xff] }
 0x737   :  { %4185 = vmatpush.msra.mxu0 %v6139_v29  ;;  %4202 = vmatpush.msra.mxu1 %v6140_v31  ;;  %v16849_v42 = vld [vmem:[#allocation93_spill] sm:$0xff]  ;;  %v16851_v31 = vld [vmem:[#allocation98_spill] sm:$0xff] }
 0x738   :  { %4225 = vmatpush.msrb.mxu2 %v13365_v5  ;;  %4242 = vmatpush.msrb.mxu3 %v6141_v16  ;;  %v6144_v5 = vld [vmem:[%s14865_s2 + $0x528] sm:$0xff]  ;;  %v6190_v29 = vld [vmem:[%s14865_s2 + $0x4b0] sm:$0xff] }
 0x739   :  { %4186 = vmatpush.msra.mxu0 %v6142_v13  ;;  %4203 = vmatpush.msra.mxu1 %v6143_v39  ;;  %v6191_v16 = vld [vmem:[%s14865_s2 + $0x470] sm:$0xff]  ;;  %v16852_v13 = vld [vmem:[#allocation123_spill] sm:$0xff] }
 0x73a   :  { %4226 = vmatpush.msrb.mxu2 %v13374_v27  ;;  %4243 = vmatpush.msrb.mxu3 %v6144_v5  ;;  %v6147_v27 = vld [vmem:[%s14865_s2 + $0x4e8] sm:$0xff]  ;;  %v6192_v39 = vld [vmem:[%s14865_s2 + $0x430] sm:$0xff] }
 0x73b   :  { %4187 = vmatpush.msra.mxu0 %v6145_v25  ;;  %4204 = vmatpush.msra.mxu1 %v6146_v0  ;;  %v16854_v0 = vld [vmem:[#allocation145_spill] sm:$0xff] }
 0x73c   :  { %4227 = vmatpush.msrb.mxu2 %v13383_v56  ;;  %4244 = vmatpush.msrb.mxu3 %v6147_v27  ;;  %v6149_v56 = vld [vmem:[%s14865_s2 + $0x4a0] sm:$0xff] }
 0x73d   :  { %4188 = vmatmul.f32.vlgmr.msra.gmra.mxu0 %v13934_v4  ;;  %4228 = vmatmul.f32.vlgmr.msrb.gmra.mxu2 %v13934_v4  ;;  %v16855_v27 = vld [vmem:[#allocation7_spill] sm:$0xff] }
 0x73e   :  { %4252 = vmatpush.msrb.mxu0 %v6148_v38  ;;  %4292 = vmatpush.msra.mxu2 %v13393_v44  ;;  %v6152_v44 = vld [vmem:[%s14865_s2 + $0x460] sm:$0xff]  ;;  %v137_v38 = vadd.f32 %v16855_v27, %v16854_v0 }
 0x73f   :  { %4205 = vmatpush.msra.mxu1 %v6149_v56  ;;  %4245 = vmatpush.msrb.mxu3 %v6150_v18 }
 0x740   :  { %4253 = vmatpush.msrb.mxu0 %v6151_v35  ;;  %4293 = vmatpush.msra.mxu2 %v13402_v50  ;;  %v6155_v50 = vld [vmem:[%s14865_s2 + $0x420] sm:$0xff] }
 0x741   :  { %4206 = vmatpush.msra.mxu1 %v6152_v44  ;;  %4246 = vmatpush.msrb.mxu3 %v6153_v10 }
 0x742   :  { %4254 = vmatpush.msrb.mxu0 %v6154_v21  ;;  %4294 = vmatpush.msra.mxu2 %v13411_v58  ;;  %v6158_v58 = vld [vmem:[%s14865_s2 + $0x7f0] sm:$0xff]  ;;  %v16856_v21 = vld [vmem:[#allocation152_spill] sm:$0xff] }
 0x743   :  { %4207 = vmatpush.msra.mxu1 %v6155_v50  ;;  %4247 = vmatpush.msrb.mxu3 %v6156_v34  ;;  %v16857_v50 = vld [vmem:[#allocation8_spill] sm:$0xff] }
 0x744   :  { %4208 = vmatmul.f32.vlgmr.msra.gmra.mxu1 %v13946_v55  ;;  %4248 = vmatmul.f32.vlgmr.msrb.gmra.mxu3 %v13946_v55  ;;  %v178_v34 = vadd.f32 %v16857_v50, %v16856_v21  ;;  %v16866_v50 = vld [vmem:[#allocation139_spill] sm:$0xff] }
 0x745   :  { %4255 = vmatpush.msrb.mxu0 %v6157_v33  ;;  %4272 = vmatpush.msrb.mxu1 %v6158_v58 }
 0x746   :  { %4295 = vmatpush.msra.mxu2 %v13423_v22  ;;  %4312 = vmatpush.msra.mxu3 %v6159_v53  ;;  %v6162_v22 = vld [vmem:[%s14865_s2 + $0x7b8] sm:$0xff] }
 0x747   :  { %4256 = vmatpush.msrb.mxu0 %v6160_v46  ;;  %4273 = vmatpush.msrb.mxu1 %v6161_v48  ;;  %v16858_v48 = vld [vmem:[#allocation144_spill] sm:$0xff] }
 0x748   :  { %4296 = vmatpush.msra.mxu2 %v13432_v36  ;;  %4313 = vmatpush.msra.mxu3 %v6162_v22  ;;  %v6165_v36 = vld [vmem:[%s14865_s2 + $0x778] sm:$0xff] }
 0x749   :  { %4257 = vmatpush.msrb.mxu0 %v6163_v20  ;;  %4274 = vmatpush.msrb.mxu1 %v6164_v14 }
 0x74a   :  { %4297 = vmatpush.msra.mxu2 %v13441_v1  ;;  %4314 = vmatpush.msra.mxu3 %v6165_v36  ;;  %v6168_v1 = vld [vmem:[%s14865_s2 + $0x738] sm:$0xff] }
 0x74b   :  { %4258 = vmatpush.msrb.mxu0 %v6166_v26  ;;  %4275 = vmatpush.msrb.mxu1 %v6167_v9 }
 0x74c   :  { %4298 = vmatpush.msra.mxu2 %v13450_v8  ;;  %4315 = vmatpush.msra.mxu3 %v6168_v1  ;;  %v6171_v8 = vld [vmem:[%s14865_s2 + $0x6f8] sm:$0xff] }
 0x74d   :  { %4259 = vmatpush.msrb.mxu0 %v6169_v32  ;;  %4276 = vmatpush.msrb.mxu1 %v6170_v62 }
 0x74e   :  { %4299 = vmatpush.msra.mxu2 %v13459_v15  ;;  %4316 = vmatpush.msra.mxu3 %v6171_v8  ;;  %v6174_v15 = vld [vmem:[%s14865_s2 + $0x6b8] sm:$0xff]  ;;  %v16860_v8 = vld [vmem:[#allocation151_spill] sm:$0xff] }
 0x74f   :  { %4260 = vmatpush.msrb.mxu0 %v6172_v41  ;;  %4277 = vmatpush.msrb.mxu1 %v6173_v54  ;;  %v16861_v41 = vld [vmem:[#allocation66_spill] sm:$0xff] }
 0x750   :  { %4300 = vmatpush.msra.mxu2 %v13468_v47  ;;  %4317 = vmatpush.msra.mxu3 %v6174_v15  ;;  %v6177_v47 = vld [vmem:[%s14865_s2 + $0x678] sm:$0xff]  ;;  %v260_v54 = vadd.f32 %v16861_v41, %v16860_v8 }
 0x751   :  { %4261 = vmatpush.msrb.mxu0 %v6175_v23  ;;  %4278 = vmatpush.msrb.mxu1 %v6176_v11 }
 0x752   :  { %4301 = vmatpush.msra.mxu2 %v13477_v28  ;;  %4318 = vmatpush.msra.mxu3 %v6177_v47  ;;  %v6180_v28 = vld [vmem:[%s14865_s2 + $0x130] sm:$0xff] }
 0x753   :  { %4262 = vmatpush.msrb.mxu0 %v6178_v40  ;;  %4279 = vmatpush.msrb.mxu1 %v6179_v24 }
 0x754   :  { %4302 = vmatpush.msra.mxu2 %v13486_v3  ;;  %4319 = vmatpush.msra.mxu3 %v13492_v2  ;;  %v6182_v3 = vld [vmem:[%s14865_s2 + $0xf0] sm:$0xff] }
 0x755   :  { %4263 = vmatpush.msrb.mxu0 %v6180_v28  ;;  %4280 = vmatpush.msrb.mxu1 %v6181_v63  ;;  %v6183_v2 = vld [vmem:[%s14865_s2 + $0x5b0] sm:$0xff] }
 0x756   :  { %4303 = vmatpush.msra.mxu2 %v13500_v52  ;;  %4320 = vmatpush.msra.mxu3 %v13506_v19  ;;  %v6184_v52 = vld [vmem:[%s14865_s2 + $0xb0] sm:$0xff] }
 0x757   :  { %4264 = vmatpush.msrb.mxu0 %v6182_v3  ;;  %4281 = vmatpush.msrb.mxu1 %v6183_v2  ;;  %v6185_v19 = vld [vmem:[%s14865_s2 + $0x570] sm:$0xff] }
 0x758   :  { %4304 = vmatpush.msra.mxu2 %v13514_v49  ;;  %4321 = vmatpush.msra.mxu3 %v13520_v60  ;;  %v6186_v49 = vld [vmem:[%s14865_s2 + $0x70] sm:$0xff] }
 0x759   :  { %4265 = vmatpush.msrb.mxu0 %v6184_v52  ;;  %4282 = vmatpush.msrb.mxu1 %v6185_v19  ;;  %v6187_v60 = vld [vmem:[%s14865_s2 + $0x530] sm:$0xff] }
 0x75a   :  { %4305 = vmatpush.msra.mxu2 %v16845_v43  ;;  %4322 = vmatpush.msra.mxu3 %v16846_v6 }
 0x75b   :  { %4266 = vmatpush.msrb.mxu0 %v6186_v49  ;;  %4283 = vmatpush.msrb.mxu1 %v6187_v60 }
 0x75c   :  { %4306 = vmatpush.msra.mxu2 %v16847_v45  ;;  %4323 = vmatpush.msra.mxu3 %v16848_v17 }
 0x75d   :  { %4267 = vmatpush.msrb.mxu0 %v6188_v51  ;;  %4284 = vmatpush.msrb.mxu1 %v6189_v57 }
 0x75e   :  { %4307 = vmatpush.msra.mxu2 %v16849_v42  ;;  %4324 = vmatpush.msra.mxu3 %v16850_v7  ;;  %v16862_v42 = vld [vmem:[#allocation150_spill] sm:$0xff] }
 0x75f   :  { %4268 = vmatmul.f32.vlgmr.msrb.gmra.mxu0 %v13934_v4  ;;  %4308 = vmatmul.f32.vlgmr.msra.gmra.mxu2 %v13934_v4  ;;  %v16853_v4 = vld [vmem:[#allocation103_spill] sm:$0xff]  ;;  %v16863_v7 = vld [vmem:[#allocation138_spill] sm:$0xff] }
 0x760   :  { %4285 = vmatpush.msrb.mxu1 %v6190_v29  ;;  %4325 = vmatpush.msra.mxu3 %v16851_v31  ;;  %v301_v29 = vadd.f32 %v16863_v7, %v16862_v42  ;;  %v4527_v42 = vld [vmem:[%s14866_s4 + $0x1e8] sm:$0xff] }
 0x762   :  { %4286 = vmatpush.msrb.mxu1 %v6191_v16  ;;  %4326 = vmatpush.msra.mxu3 %v16852_v13 }
 0x764   :  { %4287 = vmatpush.msrb.mxu1 %v6192_v39  ;;  %4327 = vmatpush.msra.mxu3 %v16853_v4 }
 0x765   :  { %4288 = vmatmul.f32.vlgmr.msrb.gmra.mxu1 %v13946_v55  ;;  %4328 = vmatmul.f32.vlgmr.msra.gmra.mxu3 %v13946_v55  ;;  %v16859_v55 = vld [vmem:[#allocation65_spill] sm:$0xff] }
 0x766   :  { %v219_v22 = vadd.f32 %v16859_v55, %v16858_v48  ;;  %v4494_v48 = vld [vmem:[%s14866_s4 + $0xe0] sm:$0xff]  ;;  %v4495_v55 = vld [vmem:[%s14866_s4 + $0xe8] sm:$0xff] }
 0x797   :  { %v4029_v5 = vpop.f32.mrf.mxu0 }
 0x79d   :  { %v4049_v25 = vpop.f32.mrf.mxu1  ;;  %v4069_v44 = vpop.f32.mrf.mxu2 }
 0x79e   :  { %v4050_v56 = vadd.f32 %v4049_v25, %v4029_v5 }
 0x7a0   :  { %v4332_v18 = vadd.f32 %v4050_v56, %v137_v38  ;;  %v4109_v53 = vpop.f32.mrf.mxu0 }
 0x7a2   :  { %v4973_v35 = vmul.f32 -1.442695, %v4332_v18 }
 0x7a3   :  { %v4089_v10 = vpop.f32.mrf.mxu3 }
 0x7a4   :  { %5209 = vpow2.f32 %v4973_v35  ;;  %v4090_v33 = vadd.f32 %v4089_v10, %v4069_v44  ;;  %v4496_v35 = vld [vmem:[%s14866_s4 + $0xf0] sm:$0xff]  ;;  %v4497_v44 = vld [vmem:[%s14866_s4 + $0xf8] sm:$0xff]  ;;  %v4483_v10 = vld [vmem:[%s14866_s4 + $0x88] sm:$0xff] }
 0x7a5   :  { %4535 = vmatpush.msra.mxu0 %v4496_v35  ;;  %4575 = vmatpush.msrb.mxu2 %v4497_v44  ;;  %v4482_v35 = vld [vmem:[%s14866_s4 + $0x80] sm:$0xff]  ;;  %v4520_v44 = vld [vmem:[%s14866_s4 + $0x1b0] sm:$0xff] }
 0x7a6   :  { %v4333_v58 = vadd.f32 %v4090_v33, %v178_v34  ;;  %v4149_v32 = vpop.f32.mrf.mxu2  ;;  %v342_v34 = vadd.f32 %v16866_v50, %v16057_v59  ;;  %v4480_v50 = vld [vmem:[%s14866_s4 + $0x70] sm:$0xff] }
 0x7a7   :  { %v4129_v46 = vpop.f32.mrf.mxu1  ;;  %4536 = vmatpush.msra.mxu0 %v4494_v48  ;;  %4576 = vmatpush.msrb.mxu2 %v4495_v55  ;;  %v4479_v48 = vld [vmem:[%s14866_s4 + $0x68] sm:$0xff]  ;;  %v4517_v55 = vld [vmem:[%s14866_s4 + $0x198] sm:$0xff] }
 0x7a8   :  { %v4974_v20 = vmul.f32 -1.442695, %v4333_v58  ;;  %v4130_v14 = vadd.f32 %v4129_v46, %v4109_v53 }
 0x7aa   :  { %v5210_v36 = vpop.eup %5209  ;;  %5211 = vpow2.f32 %v4974_v20  ;;  %v4334_v26 = vadd.f32 %v4130_v14, %v219_v22  ;;  %v4477_v20 = vld [vmem:[%s14866_s4 + $0x58] sm:$0xff]  ;;  %v4515_v14 = vld [vmem:[%s14866_s4 + $0x188] sm:$0xff] }
 0x7ab   :  { %v14262_v9 = vadd.f32 1.0, %v5210_v36 }
 0x7ac   :  { %v4975_v1 = vmul.f32 -1.442695, %v4334_v26 }
 0x7ad   :  { %v4169_v62 = vpop.f32.mrf.mxu3  ;;  %v4357_v4 = vand.u32 2147483647, %v14262_v9  ;;  %v4359_v5 = vand.u32 2147483648, %v14262_v9  ;;  %vm4353_vm13 = vweird.f32 %v14262_v9 }
 0x7ae   :  { %5213 = vpow2.f32 %v4975_v1  ;;  %v4170_v15 = vadd.f32 %v4169_v62, %v4149_v32  ;;  %v4492_v1 = vld [vmem:[%s14866_s4 + $0xd0] sm:$0xff]  ;;  %v4493_v32 = vld [vmem:[%s14866_s4 + $0xd8] sm:$0xff] }
 0x7af   :  { %5215 = vrcp.f32 %v14262_v9  ;;  %vm14321_vm15 = vcmp.eq.f32.partialorder %v4357_v4, 8.507059e+37  ;;  %4537 = vmatpush.msra.mxu0 %v4492_v1  ;;  %4577 = vmatpush.msrb.mxu2 %v4493_v32  ;;  %v4484_v4 = vld [vmem:[%s14866_s4 + $0x90] sm:$0xff]  ;;  %v4513_v1 = vld [vmem:[%s14866_s4 + $0x178] sm:$0xff] }
 0x7b0   :  { %v5212_v23 = vpop.eup %5211  ;;  %v4335_v11 = vadd.f32 %v4170_v15, %v260_v54  ;;  %v4472_v32 = vld [vmem:[%s14866_s4 + $0x30] sm:$0xff] }
 0x7b1   :  { %v14267_v47 = vadd.f32 1.0, %v5212_v23 }
 0x7b2   :  { %v4976_v40 = vmul.f32 -1.442695, %v4335_v11  ;;  %v4490_v11 = vld [vmem:[%s14866_s4 + $0xc0] sm:$0xff] }
 0x7b3   :  { %vm4368_vm5 = vweird.f32 %v14267_v47  ;;  %4538 = vmatpush.msra.mxu0 %v4490_v11  ;;  %v4509_v11 = vld [vmem:[%s14866_s4 + $0x158] sm:$0xff] }
 0x7b4   :  { %v5214_v24 = vpop.eup %5213  ;;  %5217 = vpow2.f32 %v4976_v40  ;;  %v4528_v40 = vld [vmem:[%s14866_s4 + $0x1f0] sm:$0xff] }
 0x7b5   :  { %v4384_v28 = vadd.f32 1.0, %v5214_v24  ;;  %v14269_v63 = vpop.eup %5215  ;;  %5219 = vrcp.f32 %v14267_v47  ;;  %v4491_v24 = vld [vmem:[%s14866_s4 + $0xc8] sm:$0xff]  ;;  %4555 = vmatpush.msra.mxu1 %v4528_v40  ;;  %v4468_v40 = vld [vmem:[%s14866_s4 + $0x10] sm:$0xff] }
 0x7b6   :  { %v4349_v3 = vmul.f32 %v14269_v63, %v14262_v9  ;;  %vm4354_vm11 = vweird.f32 %v14269_v63  ;;  %v4360_v9 = vor.u32 1.1754944e-38, %v4359_v5  ;;  %4578 = vmatpush.msrb.mxu2 %v4491_v24  ;;  %v4522_v5 = vld [vmem:[%s14866_s4 + $0x1c0] sm:$0xff] }
 0x7b7   :  { %5221 = vrcp.f32 %v4384_v28  ;;  %v4397_v25 = vand.u32 2147483648, %v4384_v28  ;;  %vm4391_vm10 = vweird.f32 %v4384_v28  ;;  %v4395_v18 = vand.u32 2147483647, %v4384_v28  ;;  %vm14317_vm14 = vmor %vm4353_vm13, %vm4354_vm11  ;;  %v4506_v24 = vld [vmem:[%s14866_s4 + $0x140] sm:$0xff] }
 0x7b8   :  { %v4350_v6 = vsub.f32 1.0, %v4349_v3 }
 0x7b9   :  { %v4398_v22 = vor.u32 1.1754944e-38, %v4397_v25  ;;  %vm4396_vm1 = vcmp.eq.f32.partialorder %v4395_v18, 8.507059e+37  ;;  %v4485_v25 = vld [vmem:[%s14866_s4 + $0x98] sm:$0xff] }
 0x7ba   :  { %v5218_v2 = vpop.eup %5217  ;;  %v4189_v17 = vpop.f32.mrf.mxu0  ;;  %v4351_v57 = vmul.f32 %v14269_v63, %v4350_v6 }
 0x7bb   :  { %v14274_v52 = vadd.f32 1.0, %v5218_v2  ;;  %v14276_v19 = vpop.eup %5219  ;;  %v4374_v2 = vand.u32 2147483648, %v14267_v47 }
 0x7bc   :  { %v4364_v60 = vmul.f32 %v14276_v19, %v14267_v47  ;;  %v4352_v56 = vadd.f32 %v14269_v63, %v4351_v57  ;;  %vm4369_vm3 = vweird.f32 %v14276_v19  ;;  %v4500_v57 = vld [vmem:[%s14866_s4 + $0x110] sm:$0xff] }
 0x7bd   :  { %v5222_v43 = vpop.eup %5221  ;;  %5223 = vrcp.f32 %v14274_v52  ;;  %v4412_v62 = vand.u32 2147483648, %v14274_v52  ;;  %vm4406_vm2 = vweird.f32 %v14274_v52  ;;  %v4410_v23 = vand.u32 2147483647, %v14274_v52  ;;  %vm14381_vm6 = vmor %vm4368_vm5, %vm4369_vm3 }
 0x7be   :  { %v4387_v49 = vmul.f32 %v5222_v43, %v4384_v28  ;;  %v4365_v39 = vsub.f32 1.0, %v4364_v60  ;;  %vm4392_vm9 = vweird.f32 %v5222_v43  ;;  %v4356_v26 = vsel %vm14317_vm14, %v14269_v63, %v4352_v56 }
 0x7bf   :  { %vm14298_vm12 = vmor %vm4391_vm10, %vm4392_vm9  ;;  %v4361_v3 = vsel %vm14321_vm15, %v4360_v9, %v4356_v26  ;;  %vm4411_vm7 = vcmp.eq.f32.partialorder %v4410_v23, 8.507059e+37  ;;  %v4512_v26 = vld [vmem:[%s14866_s4 + $0x170] sm:$0xff]  ;;  %v4475_v9 = vld [vmem:[%s14866_s4 + $0x48] sm:$0xff] }
 0x7c0   :  { %v4388_v45 = vsub.f32 1.0, %v4387_v49  ;;  %v4229_v58 = vpop.f32.mrf.mxu2  ;;  %v4366_v46 = vmul.f32 %v14276_v19, %v4365_v39  ;;  %v4372_v49 = vand.u32 2147483647, %v14267_v47  ;;  %v4486_v47 = vld [vmem:[%s14866_s4 + $0xa0] sm:$0xff]  ;;  %v4471_v23 = vld [vmem:[%s14866_s4 + $0x28] sm:$0xff] }
 0x7c1   :  { %v4209_v51 = vpop.f32.mrf.mxu1 }
 0x7c2   :  { %v4389_v31 = vmul.f32 %v5222_v43, %v4388_v45  ;;  %v4210_v16 = vadd.f32 %v4209_v51, %v4189_v17  ;;  %v4367_v15 = vadd.f32 %v14276_v19, %v4366_v46  ;;  %v4488_v45 = vld [vmem:[%s14866_s4 + $0xb0] sm:$0xff]  ;;  %v4526_v17 = vld [vmem:[%s14866_s4 + $0x1e0] sm:$0xff]  ;;  %v4413_v51 = vor.u32 1.1754944e-38, %v4412_v62 }
 0x7c3   :  { %v14284_v13 = vpop.eup %5223  ;;  %4539 = vmatpush.msra.mxu0 %v4488_v45  ;;  %4556 = vmatpush.msra.mxu1 %v4526_v17  ;;  %vm4373_vm8 = vcmp.eq.f32.partialorder %v4372_v49, 8.507059e+37  ;;  %v4516_v46 = vld [vmem:[%s14866_s4 + $0x190] sm:$0xff]  ;;  %v4510_v62 = vld [vmem:[%s14866_s4 + $0x160] sm:$0xff]  ;;  %v4467_v45 = vld [vmem:[%s14866_s4 + $0x8] sm:$0xff] }
 0x7c4   :  { %v4402_v0 = vmul.f32 %v14284_v13, %v14274_v52  ;;  %v4336_v27 = vadd.f32 %v4210_v16, %v301_v29  ;;  %v4390_v38 = vadd.f32 %v5222_v43, %v4389_v31  ;;  %vm4407_vm0 = vweird.f32 %v14284_v13  ;;  %v4529_v52 = vld [vmem:[%s14866_s4 + $0x1f8] sm:$0xff]  ;;  %v4524_v31 = vld [vmem:[%s14866_s4 + $0x1d0] sm:$0xff]  ;;  %v4487_v16 = vld [vmem:[%s14866_s4 + $0xa8] sm:$0xff] }
 0x7c5   :  { %vm14352_vm4 = vmor %vm4406_vm2, %vm4407_vm0  ;;  %4595 = vmatpush.msrb.mxu3 %v4529_v52  ;;  %v4371_v29 = vsel %vm14381_vm6, %v14276_v19, %v4367_v15  ;;  %4540 = vmatpush.msra.mxu0 %v4486_v47  ;;  %v4525_v19 = vld [vmem:[%s14866_s4 + $0x1d8] sm:$0xff]  ;;  %v4508_v15 = vld [vmem:[%s14866_s4 + $0x150] sm:$0xff] }
 0x7c6   :  { %v4403_v21 = vsub.f32 1.0, %v4402_v0  ;;  %5225 = vtanh.f32 %v4336_v27  ;;  %v4394_v33 = vsel %vm14298_vm12, %v5222_v43, %v4390_v38  ;;  %4557 = vmatpush.msra.mxu1 %v4524_v31  ;;  %v4523_v38 = vld [vmem:[%s14866_s4 + $0x1c8] sm:$0xff]  ;;  %v4466_v49 = vld [vmem:[%s14866_s4] sm:$0xff] }
 0x7c7   :  { %v4249_v53 = vpop.f32.mrf.mxu3  ;;  %v4399_v8 = vsel %vm4396_vm1, %v4398_v22, %v4394_v33  ;;  %4596 = vmatpush.msrb.mxu3 %v4527_v42  ;;  %4541 = vmatpush.msra.mxu0 %v4484_v4  ;;  %v4481_v33 = vld [vmem:[%s14866_s4 + $0x78] sm:$0xff]  ;;  %v4476_v22 = vld [vmem:[%s14866_s4 + $0x50] sm:$0xff]  ;;  %v16875_v52 = vld [vmem:[#allocation148_spill] sm:$0xff]  ;;  %vm4841_vm1 = vcmask 23552  }
 0x7c8   :  { %v4404_v59 = vmul.f32 %v14284_v13, %v4403_v21  ;;  %v4250_v36 = vadd.f32 %v4249_v53, %v4229_v58  ;;  %v4456_v43 = vmul.f32 %v4399_v8, %v13922_v37  ;;  %v4489_v37 = vld [vmem:[%s14866_s4 + $0xb8] sm:$0xff]  ;;  %4558 = vmatpush.msra.mxu1 %v4522_v5  ;;  %v4519_v58 = vld [vmem:[%s14866_s4 + $0x1a8] sm:$0xff]  ;;  %v4478_v53 = vld [vmem:[%s14866_s4 + $0x60] sm:$0xff] }
 0x7c9   :  { %4579 = vmatpush.msrb.mxu2 %v4489_v37  ;;  %4597 = vmatpush.msrb.mxu3 %v4525_v19  ;;  %v4473_v8 = vld [vmem:[%s14866_s4 + $0x38] sm:$0xff]  ;;  %v4502_v37 = vld [vmem:[%s14866_s4 + $0x120] sm:$0xff] }
 0x7ca   :  { %v4337_v41 = vadd.f32 %v4250_v36, %v342_v34  ;;  %v4405_v54 = vadd.f32 %v14284_v13, %v4404_v59  ;;  %4542 = vmatpush.msra.mxu0 %v4482_v35  ;;  %4559 = vmatpush.msra.mxu1 %v4520_v44  ;;  %v4518_v34 = vld [vmem:[%s14866_s4 + $0x1a0] sm:$0xff]  ;;  %v4501_v42 = vld [vmem:[%s14866_s4 + $0x118] sm:$0xff]  ;;  %v4679_v35 = vld [vmem:[%s14867_s5 + $0x1f0] sm:$0xff] }
 0x7cb   :  { %4580 = vmatpush.msrb.mxu2 %v4487_v16  ;;  %4598 = vmatpush.msrb.mxu3 %v4523_v38  ;;  %v4514_v59 = vld [vmem:[%s14866_s4 + $0x180] sm:$0xff]  ;;  %v4680_v44 = vld [vmem:[%s14867_s5 + $0x1f8] sm:$0xff] }
 0x7cc   :  { %v5226_v28 = vpop.eup %5225  ;;  %5227 = vtanh.f32 %v4337_v41  ;;  %v4409_v60 = vsel %vm14352_vm4, %v14284_v13, %v4405_v54  ;;  %v4375_v13 = vor.u32 1.1754944e-38, %v4374_v2  ;;  %4543 = vmatpush.msra.mxu0 %v4480_v50  ;;  %4560 = vmatpush.msra.mxu1 %v4518_v34  ;;  %v4474_v36 = vld [vmem:[%s14866_s4 + $0x40] sm:$0xff]  ;;  %v4511_v41 = vld [vmem:[%s14866_s4 + $0x168] sm:$0xff] }
 0x7cd   :  { %v4458_v6 = vmul.f32 %v5226_v28, %v4361_v3  ;;  %v4414_v39 = vsel %vm4411_vm7, %v4413_v51, %v4409_v60  ;;  %4581 = vmatpush.msrb.mxu2 %v4485_v25  ;;  %v4470_v54 = vld [vmem:[%s14866_s4 + $0x20] sm:$0xff]  ;;  %v4469_v28 = vld [vmem:[%s14866_s4 + $0x18] sm:$0xff]  ;;  %v4507_v2 = vld [vmem:[%s14866_s4 + $0x148] sm:$0xff] }
 0x7ce   :  { %v4376_v27 = vsel %vm4373_vm8, %v4375_v13, %v4371_v29  ;;  %v4457_v56 = vmul.f32 %v4414_v39, %v13926_v12  ;;  %v4521_v12 = vld [vmem:[%s14866_s4 + $0x1b8] sm:$0xff]  ;;  %4544 = vmatpush.msra.mxu0 %v4478_v53  ;;  %4561 = vmatpush.msra.mxu1 %v4516_v46  ;;  %v4504_v60 = vld [vmem:[%s14866_s4 + $0x130] sm:$0xff]  ;;  %v4503_v51 = vld [vmem:[%s14866_s4 + $0x128] sm:$0xff] }
 0x7cf   :  { %v14388_v7 = vadd.f32 %v4458_v6, %v4456_v43  ;;  %4582 = vmatpush.msrb.mxu2 %v4483_v10  ;;  %4599 = vmatpush.msrb.mxu3 %v4521_v12  ;;  %v383_v43 = vadd.f32 %v16875_v52, %v8130_v61  ;;  %v4505_v61 = vld [vmem:[%s14866_s4 + $0x138] sm:$0xff]  ;;  %v4498_v47 = vld [vmem:[%s14866_s4 + $0x100] sm:$0xff]  ;;  %v4499_v13 = vld [vmem:[%s14866_s4 + $0x108] sm:$0xff] }
 0x7d0   :  { %4545 = vmatpush.msra.mxu0 %v4476_v22  ;;  %4562 = vmatpush.msra.mxu1 %v4514_v59  ;;  %v16876_v39 = vld [vmem:[#allocation149_spill] sm:$0xff]  ;;  %v4677_v10 = vld [vmem:[%s14867_s5 + $0x1e0] sm:$0xff]  ;;  %v4642_v34 = vld [vmem:[%s14867_s5 + $0xc8] sm:$0xff] }
 0x7d1   :  { %4583 = vmatpush.msrb.mxu2 %v4481_v33  ;;  %4600 = vmatpush.msrb.mxu3 %v4519_v58  ;;  %v424_v19 = vadd.f32 %v16876_v39, %v8173_v30  ;;  %v4647_v25 = vld [vmem:[%s14867_s5 + $0xf0] sm:$0xff]  ;;  %v4646_v30 = vld [vmem:[%s14867_s5 + $0xe8] sm:$0xff]  ;;  %v4641_v50 = vld [vmem:[%s14867_s5 + $0xc0] sm:$0xff] }
 0x7d2   :  { %v5228_v0 = vpop.eup %5227  ;;  %4546 = vmatpush.msra.mxu0 %v4474_v36  ;;  %4563 = vmatpush.msra.mxu1 %v4512_v26  ;;  %v4678_v33 = vld [vmem:[%s14867_s5 + $0x1e8] sm:$0xff]  ;;  %v4675_v53 = vld [vmem:[%s14867_s5 + $0x1d0] sm:$0xff]  ;;  %v4676_v46 = vld [vmem:[%s14867_s5 + $0x1d8] sm:$0xff] }
 0x7d3   :  { %v4459_v18 = vmul.f32 %v5228_v0, %v4376_v27  ;;  %4584 = vmatpush.msrb.mxu2 %v4479_v48  ;;  %4601 = vmatpush.msrb.mxu3 %v4517_v55  ;;  %v4648_v0 = vld [vmem:[%s14867_s5 + $0xf8] sm:$0xff]  ;;  %v4645_v27 = vld [vmem:[%s14867_s5 + $0xe0] sm:$0xff]  ;;  %v4639_v48 = vld [vmem:[%s14867_s5 + $0xb0] sm:$0xff] }
 0x7d4   :  { %4547 = vmatpush.msra.mxu0 %v4472_v32  ;;  %4564 = vmatpush.msra.mxu1 %v4510_v62  ;;  %v4640_v55 = vld [vmem:[%s14867_s5 + $0xb8] sm:$0xff]  ;;  %v4673_v22 = vld [vmem:[%s14867_s5 + $0x1c0] sm:$0xff]  ;;  %v4674_v59 = vld [vmem:[%s14867_s5 + $0x1c8] sm:$0xff] }
 0x7d5   :  { %v14430_v21 = vadd.f32 %v4459_v18, %v4457_v56  ;;  %4585 = vmatpush.msrb.mxu2 %v4477_v20  ;;  %4602 = vmatpush.msrb.mxu3 %v4515_v14  ;;  %v4643_v56 = vld [vmem:[%s14867_s5 + $0xd0] sm:$0xff]  ;;  %v4644_v18 = vld [vmem:[%s14867_s5 + $0xd8] sm:$0xff]  ;;  %v4637_v20 = vld [vmem:[%s14867_s5 + $0xa0] sm:$0xff] }
 0x7d6   :  { %4548 = vmatpush.msra.mxu0 %v4470_v54  ;;  %4565 = vmatpush.msra.mxu1 %v4508_v15  ;;  %v4638_v14 = vld [vmem:[%s14867_s5 + $0xa8] sm:$0xff]  ;;  %v4671_v36 = vld [vmem:[%s14867_s5 + $0x1b0] sm:$0xff]  ;;  %v4672_v26 = vld [vmem:[%s14867_s5 + $0x1b8] sm:$0xff] }
 0x7d7   :  { %4586 = vmatpush.msrb.mxu2 %v4475_v9  ;;  %4603 = vmatpush.msrb.mxu3 %v4513_v1  ;;  %v4635_v1 = vld [vmem:[%s14867_s5 + $0x90] sm:$0xff]  ;;  %v4636_v32 = vld [vmem:[%s14867_s5 + $0x98] sm:$0xff]  ;;  %v4633_v54 = vld [vmem:[%s14867_s5 + $0x80] sm:$0xff] }
 0x7d8   :  { %4549 = vmatpush.msra.mxu0 %v4468_v40  ;;  %4566 = vmatpush.msra.mxu1 %v4506_v24  ;;  %v4634_v15 = vld [vmem:[%s14867_s5 + $0x88] sm:$0xff]  ;;  %v4668_v40 = vld [vmem:[%s14867_s5 + $0x198] sm:$0xff] }
 0x7d9   :  { %4587 = vmatpush.msrb.mxu2 %v4473_v8  ;;  %4604 = vmatpush.msrb.mxu3 %v4511_v41  ;;  %v4669_v8 = vld [vmem:[%s14867_s5 + $0x1a0] sm:$0xff]  ;;  %v4670_v41 = vld [vmem:[%s14867_s5 + $0x1a8] sm:$0xff] }
 0x7da   :  { %4550 = vmatpush.msra.mxu0 %v4466_v49  ;;  %4567 = vmatpush.msra.mxu1 %v4504_v60  ;;  %v4630_v52 = vld [vmem:[%s14867_s5 + $0x68] sm:$0xff] }
 0x7db   :  { %4588 = vmatpush.msrb.mxu2 %v4471_v23  ;;  %4605 = vmatpush.msrb.mxu3 %v4509_v11  ;;  %v4667_v11 = vld [vmem:[%s14867_s5 + $0x190] sm:$0xff] }
 0x7dc   :  { %v4269_v63 = vpop.f32.mrf.mxu0  ;;  %4568 = vmatpush.msra.mxu1 %v4502_v37  ;;  %4686 = vmatpush.msrb.mxu0 %v4647_v25  ;;  %v4665_v25 = vld [vmem:[%s14867_s5 + $0x180] sm:$0xff] }
 0x7dd   :  { %4589 = vmatpush.msrb.mxu2 %v4469_v28  ;;  %4606 = vmatpush.msrb.mxu3 %v4507_v2  ;;  %v4631_v28 = vld [vmem:[%s14867_s5 + $0x70] sm:$0xff]  ;;  %v4629_v2 = vld [vmem:[%s14867_s5 + $0x60] sm:$0xff] }
 0x7de   :  { %4569 = vmatpush.msra.mxu1 %v4500_v57  ;;  %4687 = vmatpush.msrb.mxu0 %v4645_v27  ;;  %v4666_v27 = vld [vmem:[%s14867_s5 + $0x188] sm:$0xff] }
 0x7df   :  { %4590 = vmatpush.msrb.mxu2 %v4467_v45  ;;  %4607 = vmatpush.msrb.mxu3 %v4505_v61 }
 0x7e0   :  { %4570 = vmatpush.msra.mxu1 %v4498_v47  ;;  %4688 = vmatpush.msrb.mxu0 %v4643_v56  ;;  %v4626_v56 = vld [vmem:[%s14867_s5 + $0x48] sm:$0xff] }
 0x7e1   :  { %4608 = vmatpush.msrb.mxu3 %v4503_v51  ;;  %4726 = vmatpush.msra.mxu2 %v4648_v0  ;;  %v4628_v0 = vld [vmem:[%s14867_s5 + $0x58] sm:$0xff] }
 0x7e2   :  { %v4289_v3 = vpop.f32.mrf.mxu1  ;;  %v4309_v31 = vpop.f32.mrf.mxu2  ;;  %4706 = vmatpush.msrb.mxu1 %v4679_v35  ;;  %4689 = vmatpush.msrb.mxu0 %v4641_v50  ;;  %v4623_v35 = vld [vmem:[%s14867_s5 + $0x30] sm:$0xff]  ;;  %v4621_v50 = vld [vmem:[%s14867_s5 + $0x20] sm:$0xff] }
 0x7e3   :  { %v4290_v6 = vadd.f32 %v4289_v3, %v4269_v63  ;;  %4609 = vmatpush.msrb.mxu3 %v4501_v42  ;;  %4727 = vmatpush.msra.mxu2 %v4646_v30  ;;  %v4632_v63 = vld [vmem:[%s14867_s5 + $0x78] sm:$0xff]  ;;  %v4625_v30 = vld [vmem:[%s14867_s5 + $0x40] sm:$0xff] }
 0x7e4   :  { %4707 = vmatpush.msrb.mxu1 %v4677_v10  ;;  %4690 = vmatpush.msrb.mxu0 %v4639_v48  ;;  %v4624_v10 = vld [vmem:[%s14867_s5 + $0x38] sm:$0xff] }
 0x7e5   :  { %v4338_v17 = vadd.f32 %v4290_v6, %v383_v43  ;;  %4610 = vmatpush.msrb.mxu3 %v4499_v13  ;;  %4728 = vmatpush.msra.mxu2 %v4644_v18  ;;  %v4664_v18 = vld [vmem:[%s14867_s5 + $0x178] sm:$0xff] }
 0x7e6   :  { %4708 = vmatpush.msrb.mxu1 %v4675_v53  ;;  %4691 = vmatpush.msrb.mxu0 %v4637_v20  ;;  %v4619_v53 = vld [vmem:[%s14867_s5 + $0x10] sm:$0xff]  ;;  %v4620_v48 = vld [vmem:[%s14867_s5 + $0x18] sm:$0xff]  ;;  %v4618_v20 = vld [vmem:[%s14867_s5 + $0x8] sm:$0xff] }
 0x7e7   :  { %v4977_v29 = vmul.f32 -1.442695, %v4338_v17  ;;  %4746 = vmatpush.msra.mxu3 %v4680_v44  ;;  %4729 = vmatpush.msra.mxu2 %v4642_v34  ;;  %v4661_v44 = vld [vmem:[%s14867_s5 + $0x160] sm:$0xff]  ;;  %v4659_v34 = vld [vmem:[%s14867_s5 + $0x150] sm:$0xff] }
 0x7e8   :  { %v4329_v16 = vpop.f32.mrf.mxu3  ;;  %4709 = vmatpush.msrb.mxu1 %v4673_v22  ;;  %4692 = vmatpush.msrb.mxu0 %v4635_v1  ;;  %v4617_v22 = vld [vmem:[%s14867_s5] sm:$0xff]  ;;  %v4652_v1 = vld [vmem:[%s14867_s5 + $0x118] sm:$0xff] }
 0x7e9   :  { %5229 = vpow2.f32 %v4977_v29  ;;  %v4330_v4 = vadd.f32 %v4329_v16, %v4309_v31  ;;  %4747 = vmatpush.msra.mxu3 %v4678_v33  ;;  %4730 = vmatpush.msra.mxu2 %v4640_v55  ;;  %v4622_v33 = vld [vmem:[%s14867_s5 + $0x28] sm:$0xff] }
 0x7ea   :  { %4710 = vmatpush.msrb.mxu1 %v4671_v36  ;;  %4693 = vmatpush.msrb.mxu0 %v4633_v54  ;;  %v4658_v55 = vld [vmem:[%s14867_s5 + $0x148] sm:$0xff]  ;;  %v4653_v36 = vld [vmem:[%s14867_s5 + $0x120] sm:$0xff]  ;;  %v4799_v54 = vld [vmem:[%s14868_s6 + $0xf8] sm:$0xff] }
 0x7eb   :  { %v4339_v5 = vadd.f32 %v4330_v4, %v424_v19  ;;  %4748 = vmatpush.msra.mxu3 %v4676_v46  ;;  %4731 = vmatpush.msra.mxu2 %v4638_v14  ;;  %v4657_v46 = vld [vmem:[%s14867_s5 + $0x140] sm:$0xff]  ;;  %v4656_v14 = vld [vmem:[%s14867_s5 + $0x138] sm:$0xff] }
 0x7ec   :  { %4711 = vmatpush.msrb.mxu1 %v4669_v8  ;;  %4694 = vmatpush.msrb.mxu0 %v4631_v28  ;;  %v4783_v8 = vld [vmem:[%s14868_s6 + $0x78] sm:$0xff] }
 0x7ed   :  { %v4978_v38 = vmul.f32 -1.442695, %v4339_v5  ;;  %4749 = vmatpush.msra.mxu3 %v4674_v59  ;;  %4732 = vmatpush.msra.mxu2 %v4636_v32  ;;  %v4655_v59 = vld [vmem:[%s14867_s5 + $0x130] sm:$0xff]  ;;  %v4649_v32 = vld [vmem:[%s14867_s5 + $0x100] sm:$0xff]  ;;  %v4779_v28 = vld [vmem:[%s14868_s6 + $0x58] sm:$0xff] }
 0x7ee   :  { %4712 = vmatpush.msrb.mxu1 %v4667_v11  ;;  %4695 = vmatpush.msrb.mxu0 %v4629_v2  ;;  %v4797_v11 = vld [vmem:[%s14868_s6 + $0xe8] sm:$0xff]  ;;  %v4794_v2 = vld [vmem:[%s14868_s6 + $0xd0] sm:$0xff] }
 0x7ef   :  { %v5230_v12 = vpop.eup %5229  ;;  %5231 = vpow2.f32 %v4978_v38  ;;  %4750 = vmatpush.msra.mxu3 %v4672_v26  ;;  %4733 = vmatpush.msra.mxu2 %v4634_v15  ;;  %v4663_v38 = vld [vmem:[%s14867_s5 + $0x170] sm:$0xff]  ;;  %v4654_v26 = vld [vmem:[%s14867_s5 + $0x128] sm:$0xff] }
 0x7f0   :  { %v14586_v58 = vadd.f32 1.0, %v5230_v12  ;;  %4713 = vmatpush.msrb.mxu1 %v4665_v25  ;;  %v4662_v12 = vld [vmem:[%s14867_s5 + $0x168] sm:$0xff]  ;;  %v4790_v25 = vld [vmem:[%s14868_s6 + $0xb0] sm:$0xff] }
 0x7f1   :  { %4751 = vmatpush.msra.mxu3 %v4670_v41  ;;  %4734 = vmatpush.msra.mxu2 %v4632_v63  ;;  %v4782_v41 = vld [vmem:[%s14868_s6 + $0x70] sm:$0xff]  ;;  %v4781_v15 = vld [vmem:[%s14868_s6 + $0x68] sm:$0xff]  ;;  %v4795_v63 = vld [vmem:[%s14868_s6 + $0xd8] sm:$0xff] }
 0x7f2   :  { %5233 = vrcp.f32 %v14586_v58  ;;  %v4437_v43 = vand.u32 2147483648, %v14586_v58  ;;  %v4435_v49 = vand.u32 2147483647, %v14586_v58  ;;  %vm4431_vm10 = vweird.f32 %v14586_v58  ;;  %4714 = vmatpush.msrb.mxu1 %v4663_v38  ;;  %v4788_v38 = vld [vmem:[%s14868_s6 + $0xa0] sm:$0xff] }
 0x7f3   :  { %4752 = vmatpush.msra.mxu3 %v4668_v40  ;;  %4735 = vmatpush.msra.mxu2 %v4630_v52  ;;  %v4780_v40 = vld [vmem:[%s14868_s6 + $0x60] sm:$0xff]  ;;  %v4777_v52 = vld [vmem:[%s14868_s6 + $0x48] sm:$0xff] }
 0x7f4   :  { %v4438_v17 = vor.u32 1.1754944e-38, %v4437_v43  ;;  %vm4436_vm12 = vcmp.eq.f32.partialorder %v4435_v49, 8.507059e+37  ;;  %4715 = vmatpush.msrb.mxu1 %v4661_v44  ;;  %v4793_v43 = vld [vmem:[%s14868_s6 + $0xc8] sm:$0xff]  ;;  %v4865_v49 = vld [vmem:[%s14864_s3 + $0x1] ss:$4 sm:$0x3] }
 0x7f5   :  { %v5232_v9 = vpop.eup %5231  ;;  %4736 = vmatpush.msra.mxu2 %v4628_v0  ;;  %4753 = vmatpush.msra.mxu3 %v4666_v27  ;;  %v4770_v0 = vld [vmem:[%s14868_s6 + $0x10] sm:$0xff]  ;;  %v4789_v27 = vld [vmem:[%s14868_s6 + $0xa8] sm:$0xff] }
 0x7f6   :  { %v4425_v62 = vadd.f32 1.0, %v5232_v9  ;;  %4716 = vmatpush.msrb.mxu1 %v4659_v34  ;;  %v4651_v9 = vld [vmem:[%s14867_s5 + $0x110] sm:$0xff]  ;;  %v4785_v44 = vld [vmem:[%s14868_s6 + $0x88] sm:$0xff] }
 0x7f7   :  { %4737 = vmatpush.msra.mxu2 %v4626_v56  ;;  %4754 = vmatpush.msra.mxu3 %v4664_v18  ;;  %v4768_v56 = vld [vmem:[%s14868_s6] sm:$0xff]  ;;  %v4787_v18 = vld [vmem:[%s14868_s6 + $0x98] sm:$0xff] }
 0x7f8   :  { %v5234_v23 = vpop.eup %5233  ;;  %5235 = vrcp.f32 %v4425_v62  ;;  %v4452_v57 = vand.u32 2147483648, %v4425_v62  ;;  %v4450_v31 = vand.u32 2147483647, %v4425_v62  ;;  %vm4446_vm14 = vweird.f32 %v4425_v62  ;;  %4717 = vmatpush.msrb.mxu1 %v4657_v46 }
 0x7f9   :  { %v4427_v24 = vmul.f32 %v5234_v23, %v14586_v58  ;;  %5237 = vtanh.f32 %v14388_v7  ;;  %vm4432_vm9 = vweird.f32 %v5234_v23  ;;  %4738 = vmatpush.msra.mxu2 %v4624_v10  ;;  %4755 = vmatpush.msra.mxu3 %v4662_v12  ;;  %v4660_v58 = vld [vmem:[%s14867_s5 + $0x158] sm:$0xff]  ;;  %v4784_v10 = vld [vmem:[%s14868_s6 + $0x80] sm:$0xff] }
 0x7fa   :  { %vm4433_vm11 = vmor %vm4431_vm10, %vm4432_vm9  ;;  %5239 = vtanh.f32 %v14430_v21  ;;  %v4453_v13 = vor.u32 1.1754944e-38, %v4452_v57  ;;  %vm4451_vm0 = vcmp.eq.f32.partialorder %v4450_v31, 8.507059e+37  ;;  %v4627_v21 = vld [vmem:[%s14867_s5 + $0x50] sm:$0xff]  ;;  %4718 = vmatpush.msrb.mxu1 %v4655_v59  ;;  %v4532_v57 = vperm.slane %v4865_v49, 1 }
 0x7fb   :  { %v4428_v3 = vsub.f32 1.0, %v4427_v24  ;;  %4696 = vmatpush.msrb.mxu0 %v4627_v21  ;;  %4739 = vmatpush.msra.mxu2 %v4622_v33  ;;  %v4796_v24 = vld [vmem:[%s14868_s6 + $0xe0] sm:$0xff]  ;;  %v4771_v21 = vld [vmem:[%s14868_s6 + $0x18] sm:$0xff] }
 0x7fc   :  { %4756 = vmatpush.msra.mxu3 %v4660_v58  ;;  %4719 = vmatpush.msrb.mxu1 %v4653_v36  ;;  %v4866_v12 = vld [vmem:[%s14864_s3 + $0x2] ss:$4 sm:$0x3]  ;;  %v4984_v36 = vld [vmem:[%s14864_s3 + $0x3] ss:$0 sm:$0xff] }
 0x7fd   :  { %v4429_v6 = vmul.f32 %v5234_v23, %v4428_v3  ;;  %4697 = vmatpush.msrb.mxu0 %v4625_v30  ;;  %4740 = vmatpush.msra.mxu2 %v4620_v48  ;;  %v4778_v3 = vld [vmem:[%s14868_s6 + $0x50] sm:$0xff]  ;;  %v4769_v30 = vld [vmem:[%s14868_s6 + $0x8] sm:$0xff]  ;;  %v4683_v46 = vperm.slane %v4866_v12, 1 }
 0x7fe   :  { %v5236_v60 = vpop.eup %5235  ;;  %4757 = vmatpush.msra.mxu3 %v4658_v55  ;;  %4720 = vmatpush.msrb.mxu1 %v4651_v9 }
 0x7ff   :  { %v4442_v45 = vmul.f32 %v5236_v60, %v4425_v62  ;;  %v4430_v61 = vadd.f32 %v5234_v23, %v4429_v6  ;;  %v5238_v7 = vpop.eup %5237  ;;  %vm4447_vm13 = vweird.f32 %v5236_v60  ;;  %4698 = vmatpush.msrb.mxu0 %v4623_v35  ;;  %4741 = vmatpush.msra.mxu2 %v4618_v20  ;;  %v4650_v62 = vld [vmem:[%s14867_s5 + $0x108] sm:$0xff]  ;;  %v4776_v6 = vld [vmem:[%s14868_s6 + $0x40] sm:$0xff]  ;;  %v4786_v35 = vld [vmem:[%s14868_s6 + $0x90] sm:$0xff] }
 0x800   :  { %vm4448_vm15 = vmor %vm4446_vm14, %vm4447_vm13  ;;  %v5240_v19 = vpop.eup %5239  ;;  %4758 = vmatpush.msra.mxu3 %v4656_v14  ;;  %4721 = vmatpush.msrb.mxu1 %v4649_v32 }
 0x801   :  { %v4443_v37 = vsub.f32 1.0, %v4442_v45  ;;  %v4434_v51 = vsel %vm4433_vm11, %v5234_v23, %v4430_v61  ;;  %4699 = vmatpush.msrb.mxu0 %v4621_v50  ;;  %v4798_v23 = vld [vmem:[%s14868_s6 + $0xf0] sm:$0xff]  ;;  %v4531_v45 = vperm.slane %v4865_v49, 0  ;;  %v4682_v50 = vperm.slane %v4866_v12, 0 }
 0x802   :  { %v4439_v42 = vsel %vm4436_vm12, %v4438_v17, %v4434_v51  ;;  %4759 = vmatpush.msra.mxu3 %v4654_v26  ;;  %v4774_v61 = vld [vmem:[%s14868_s6 + $0x30] sm:$0xff] }
 0x803   :  { %v4444_v29 = vmul.f32 %v5236_v60, %v4443_v37  ;;  %v4464_v47 = vmul.f32 %v5238_v7, %v4439_v42  ;;  %4700 = vmatpush.msrb.mxu0 %v4619_v53 }
 0x804   :  { %4760 = vmatpush.msra.mxu3 %v4652_v1 }
 0x805   :  { %4551 = vmatmul.f32.vlgmr.msra.gmra.mxu0 %v4464_v47  ;;  %4591 = vmatmul.f32.vlgmr.msrb.gmra.mxu2 %v4464_v47  ;;  %v4445_v16 = vadd.f32 %v5236_v60, %v4444_v29 }
 0x806   :  { %4701 = vmatpush.msrb.mxu0 %v4617_v22  ;;  %4761 = vmatpush.msra.mxu3 %v4650_v62 }
 0x807   :  { %v4449_v39 = vsel %vm4448_vm15, %v5236_v60, %v4445_v16  ;;  %v4775_v60 = vld [vmem:[%s14868_s6 + $0x38] sm:$0xff] }
 0x808   :  { %v4454_v4 = vsel %vm4451_vm0, %v4453_v13, %v4449_v39  ;;  %4801 = vmatpush.msra.mxu0 %v4783_v8  ;;  %v4773_v39 = vld [vmem:[%s14868_s6 + $0x28] sm:$0xff] }
 0x809   :  { %v4465_v5 = vmul.f32 %v5240_v19, %v4454_v4  ;;  %v4792_v19 = vld [vmem:[%s14868_s6 + $0xc0] sm:$0xff] }
 0x80a   :  { %4802 = vmatpush.msra.mxu0 %v4782_v41  ;;  %v4772_v4 = vld [vmem:[%s14868_s6 + $0x20] sm:$0xff] }
 0x80b   :  { %4571 = vmatmul.f32.vlgmr.msra.gmra.mxu1 %v4465_v5  ;;  %4611 = vmatmul.f32.vlgmr.msrb.gmra.mxu3 %v4465_v5  ;;  %v4791_v5 = vld [vmem:[%s14868_s6 + $0xb8] sm:$0xff] }
 0x80c   :  { %4821 = vmatpush.msra.mxu1 %v4799_v54  ;;  %4803 = vmatpush.msra.mxu0 %v4781_v15 }
 0x80e   :  { %4822 = vmatpush.msra.mxu1 %v4798_v23  ;;  %4804 = vmatpush.msra.mxu0 %v4780_v40 }
 0x810   :  { %4823 = vmatpush.msra.mxu1 %v4797_v11  ;;  %4805 = vmatpush.msra.mxu0 %v4779_v28 }
 0x812   :  { %4824 = vmatpush.msra.mxu1 %v4796_v24  ;;  %4806 = vmatpush.msra.mxu0 %v4778_v3 }
 0x814   :  { %4825 = vmatpush.msra.mxu1 %v4795_v63  ;;  %4807 = vmatpush.msra.mxu0 %v4777_v52 }
 0x816   :  { %4826 = vmatpush.msra.mxu1 %v4794_v2  ;;  %4808 = vmatpush.msra.mxu0 %v4776_v6 }
 0x818   :  { %4827 = vmatpush.msra.mxu1 %v4793_v43  ;;  %4809 = vmatpush.msra.mxu0 %v4775_v60 }
 0x81a   :  { %4810 = vmatpush.msra.mxu0 %v4774_v61  ;;  %4828 = vmatpush.msra.mxu1 %v4792_v19 }
 0x81c   :  { %4811 = vmatpush.msra.mxu0 %v4773_v39  ;;  %4829 = vmatpush.msra.mxu1 %v4791_v5 }
 0x81e   :  { %4812 = vmatpush.msra.mxu0 %v4772_v4  ;;  %4830 = vmatpush.msra.mxu1 %v4790_v25 }
 0x820   :  { %4813 = vmatpush.msra.mxu0 %v4771_v21  ;;  %4831 = vmatpush.msra.mxu1 %v4789_v27 }
 0x822   :  { %4814 = vmatpush.msra.mxu0 %v4770_v0  ;;  %4832 = vmatpush.msra.mxu1 %v4788_v38 }
 0x824   :  { %4815 = vmatpush.msra.mxu0 %v4769_v30  ;;  %4833 = vmatpush.msra.mxu1 %v4787_v18 }
 0x826   :  { %4816 = vmatpush.msra.mxu0 %v4768_v56  ;;  %4834 = vmatpush.msra.mxu1 %v4786_v35 }
 0x828   :  { %4835 = vmatpush.msra.mxu1 %v4785_v44 }
 0x82a   :  { %4836 = vmatpush.msra.mxu1 %v4784_v10 }
 0x882   :  { %v4552_v17 = vpop.f32.mrf.mxu0 }
 0x883   :  { %v4553_v37 = vadd.f32 %v4552_v17, %v4531_v45 }
 0x888   :  { %v4572_v51 = vpop.f32.mrf.mxu1  ;;  %v4592_v42 = vpop.f32.mrf.mxu2 }
 0x889   :  { %v4573_v7 = vadd.f32 %v4572_v51, %v4553_v37  ;;  %v4593_v47 = vadd.f32 %v4592_v42, %v4532_v57 }
 0x88b   :  { %v4615_v29 = vmax.f32 %v4573_v7, 0.0 }
 0x88d   :  { %4702 = vmatmul.f32.vlgmr.msrb.gmra.mxu0 %v4615_v29  ;;  %4742 = vmatmul.f32.vlgmr.msra.gmra.mxu2 %v4615_v29 }
 0x88e   :  { %v4612_v31 = vpop.f32.mrf.mxu3 }
 0x88f   :  { %v4613_v16 = vadd.f32 %v4612_v31, %v4593_v47 }
 0x891   :  { %v4616_v13 = vmax.f32 %v4613_v16, 0.0 }
 0x893   :  { %4722 = vmatmul.f32.vlgmr.msrb.gmra.mxu1 %v4616_v13  ;;  %4762 = vmatmul.f32.vlgmr.msra.gmra.mxu3 %v4616_v13 }
 0x90a   :  { %v4703_v34 = vpop.f32.mrf.mxu0 }
 0x90b   :  { %v4704_v33 = vadd.f32 %v4703_v34, %v4682_v50 }
 0x910   :  { %v4723_v58 = vpop.f32.mrf.mxu1  ;;  %v4743_v48 = vpop.f32.mrf.mxu2 }
 0x911   :  { %v4724_v53 = vadd.f32 %v4723_v58, %v4704_v33  ;;  %v4744_v22 = vadd.f32 %v4743_v48, %v4683_v46 }
 0x913   :  { %v4766_v55 = vmax.f32 %v4724_v53, 0.0 }
 0x915   :  { %4817 = vmatmul.f32.vlgmr.msra.gmra.mxu0 %v4766_v55 }
 0x916   :  { %v4763_v59 = vpop.f32.mrf.mxu3 }
 0x917   :  { %v4764_v20 = vadd.f32 %v4763_v59, %v4744_v22 }
 0x919   :  { %v4767_v14 = vmax.f32 %v4764_v20, 0.0 }
 0x91b   :  { %4837 = vmatmul.f32.vlgmr.msra.gmra.mxu1 %v4767_v14 }
 0x992   :  { %v4818_v26 = vpop.f32.mrf.mxu0 }
 0x993   :  { %v4819_v9 = vadd.f32 %v4984_v36, %v4818_v26 }
 0x998   :  { %v4838_v1 = vpop.f32.mrf.mxu1 }
 0x999   :  { %v4839_v32 = vadd.f32 %v4838_v1, %v4819_v9 }
 0x99b   :  { %v4842_v62 = vsel %vm4841_vm1, %v4839_v32, -inf }
 0x99c   :  { %4843 = vmax.xlane.f32.xlu0 %v4842_v62 }
 0xa0f   :  { %v4844_v8 = vpop.xlane.xlu0 %4843 }
 0xa10   :  { %v4845_v41 = vsub.f32 %v4839_v32, %v4844_v8 }
 0xa12   :  { %v4846_v54 = vmul.f32 1.442695, %v4845_v41 }
 0xa14   :  { %5241 = vpow2.f32 %v4846_v54 }
 0xa1a   :  { %v5242_v15 = vpop.eup %5241 }
 0xa1b   :  { %v4848_v23 = vsel %vm4841_vm1, %v5242_v15, 0.0 }
 0xa1c   :  { %4849 = vadd.xlane.f32.xlu0 %v4848_v23 }
 0xa8f   :  { %v4850_v11 = vpop.xlane.xlu0 %4849 }
 0xa90   :  { %5243 = vrcp.f32 %v4850_v11 }
 0xa96   :  { %v5244_v40 = vpop.eup %5243 }
 0xa97   :  { %v4852_v24 = vmul.f32 %v5244_v40, %v5242_v15 }
 0xa99   :  { %4853 = vst.msk [vmem:[%s14869_s7] sm:$0xff] %vm4841_vm1, %v4852_v24 }

</bundles_post_ra>
